<compile_context>
chip_gen: v7x
topology: tpu7x:2x2x1
jax: 0.10.0
libtpu: 0.0.40
codegen_flags: <defaults>
</compile_context>

<pallas_src>
import jax
import jax.numpy as jnp
from jax.experimental import pallas as pl
from jax.experimental.pallas import tpu as pltpu

CP = 128    # padded feature / lane width


def _tile_config(n):
    """Pick (batch tile, vmem limit) for this chip & batch size."""
    try:
        vmem_cap = int(getattr(pltpu.get_tpu_info(), "vmem_capacity_bytes", 0))
    except Exception:
        vmem_cap = 0
    if vmem_cap >= 100 * 1024 * 1024:            # v5e / v6e: 128 MiB physical
        nb_max, limit = 32, 96 * 1024 * 1024
    else:                                         # v7x (64 MiB) or unknown
        nb_max, limit = 16, 40 * 1024 * 1024
    # Shrink the tile for small batches; for n >= 16 keep >= 2 grid steps so a
    # megacore part can split the "parallel" axis across its TensorCores.
    nb = min(nb_max, max(8, ((n + 15) // 16) * 8))
    return nb, limit


# ----------------------------- fused kernel -------------------------------

def lenet5_kernel(x_ref, w1_ref, b1_ref, w2_ref, b2_ref,
                  wf1_ref, bf1_ref, wf2_ref, bf2_ref, wf3_ref, bf3_ref,
                  out_ref, c2_ref):
    nb = x_ref.shape[0]
    f32 = jnp.float32
    bf16 = jnp.bfloat16

    # ---- conv1: ONE matmul over the host-side 5x5 im2col (K = 25 -> 32) ----
    lhs = x_ref[...].reshape(nb * 576, 32)                        # bf16
    a1 = jnp.dot(lhs, w1_ref[...], preferred_element_type=f32)    # (nb*576,128)

    # ---- maxpool #1 for free: rows are (n, 2x2-parity, 12x12 position) -----
    a1 = a1.reshape(nb, 4, 144, CP)
    pooled = jnp.maximum(jnp.maximum(a1[:, 0], a1[:, 1]),
                         jnp.maximum(a1[:, 2], a1[:, 3]))         # (nb,144,128)
    p1 = jnp.maximum(pooled + b1_ref[...], 0.0)   # bias/ReLU after max (monotone)
    p1 = p1.reshape(nb, 12, 12, CP)

    # ---- conv2: pack the 5 kw taps into K=40 -> 5 matmuls over kh ----------
    p1w = jnp.concatenate([p1[:, :, dj:dj + 8, :8] for dj in range(5)],
                          axis=-1).astype(bf16)                   # (nb,12,8,40)
    m2 = nb * 64
    acc = jnp.zeros((m2, CP), f32)
    for di in range(5):
        tap = p1w[:, di:di + 8, :, :].reshape(m2, 40)
        acc = acc + jnp.dot(tap, w2_ref[di], preferred_element_type=f32)

    # ---- maxpool #2 (strided VMEM reads), then bias + ReLU on pooled -------
    c2_ref[...] = acc.reshape(nb * 8, 8, CP)
    wm = jnp.maximum(c2_ref[:, pl.ds(0, 4, 2), :],                # even cols
                     c2_ref[:, pl.ds(1, 4, 2), :])                # odd  cols
    wm = wm.reshape(nb, 4, 2, 4, CP)
    p2 = jnp.maximum(wm[:, :, 0, :, :], wm[:, :, 1, :, :])        # (nb,4,4,128)
    p2 = jnp.maximum(p2 + b2_ref[...], 0.0)

    # ---- fc1: single K=256 matmul (+ReLU), torch flatten order via packing -
    h_in = jnp.concatenate([p2[:, i, j, :16]
                            for i in range(4) for j in range(4)],
                           axis=-1).astype(bf16)                  # (nb,256)
    h1 = jnp.maximum(jnp.dot(h_in, wf1_ref[...], preferred_element_type=f32)
                     + bf1_ref[...], 0.0)

    # ---- fc2 (+ReLU), fc3 ---------------------------------------------------
    h2 = jnp.maximum(jnp.dot(h1.astype(bf16), wf2_ref[...],
                             preferred_element_type=f32) + bf2_ref[...], 0.0)
    out_ref[...] = (jnp.dot(h2.astype(bf16), wf3_ref[...],
                            preferred_element_type=f32) + bf3_ref[...])


# --------------------- one-time host-side weight packing -------------------

def _padto(a, shape):
    return jnp.pad(a, [(0, s - d) for d, s in zip(a.shape, shape)])


def pack_params(p):
    bf16 = jnp.bfloat16
    # conv1: (6,1,5,5) -> (25 taps [di*5+dj], cout) -> pad to (32, 128)
    w1 = jnp.transpose(p["conv1_w"][:, 0], (1, 2, 0)).reshape(25, 6)
    w1 = _padto(w1, (32, CP)).astype(bf16)
    # conv2: (16,6,5,5) -> (kh, kw*cin_pad8 = 40, cout -> 128)
    w2 = jnp.transpose(p["conv2_w"], (2, 3, 1, 0))            # (5,5,6,16)
    w2 = _padto(w2, (5, 5, 8, CP)).reshape(5, 40, CP).astype(bf16)
    # fc1: (120, 256), torch feature order c*16 + h*4 + w
    #      -> row index (h*4+w)*16 + c, cout -> 128
    wf1 = jnp.transpose(p["fc1_w"].reshape(120, 16, 4, 4), (2, 3, 1, 0))
    wf1 = _padto(wf1, (4, 4, 16, CP)).reshape(256, CP).astype(bf16)
    # fc2 / fc3: transpose to (in, out) and pad to (128, 128)
    wf2 = _padto(p["fc2_w"].T, (CP, CP)).astype(bf16)
    wf3 = _padto(p["fc3_w"].T, (CP, CP)).astype(bf16)

    def bias(b):
        return _padto(b, (CP,)).reshape(1, CP).astype(jnp.float32)

    return {
        "w1": w1, "b1": bias(p["conv1_b"]),
        "w2": w2, "b2": bias(p["conv2_b"]),
        "wf1": wf1, "bf1": bias(p["fc1_b"]),
        "wf2": wf2, "bf2": bias(p["fc2_b"]),
        "wf3": wf3, "bf3": bias(p["fc3_b"]),
    }


# ------------------------------ forward wrapper ----------------------------

def lenet5_forward(packed, x):
    # x: (N, 1, 28, 28) float32 -> logits (N, 10)
    n = x.shape[0]
    nb, vmem_limit = _tile_config(n)
    npad = ((n + nb - 1) // nb) * nb

    # Host-side im2col for conv1 (25 taps -> 32), rows reordered to
    # (n, 2x2-pool-parity, 12x12-pool-position) so maxpool #1 is a free
    # page-dimension max inside the kernel.  Cast to bf16 (MXU operand).
    x2 = x.reshape(n, 28, 28)
    patches = jnp.stack([x2[:, di:di + 24, dj:dj + 24]
                         for di in range(5) for dj in range(5)], axis=-1)
    patches = patches.reshape(n, 12, 2, 12, 2, 25)      # [n, i, a, j, b, tap]
    patches = patches.transpose(0, 2, 4, 1, 3, 5)       # [n, a, b, i, j, tap]
    xp = patches.reshape(n, 4, 144, 25)
    xp = jnp.pad(xp, ((0, npad - n), (0, 0), (0, 0), (0, 7)))
    xp = xp.astype(jnp.bfloat16)                        # (npad, 4, 144, 32)

    out = pl.pallas_call(
        lenet5_kernel,
        out_shape=jax.ShapeDtypeStruct((npad, CP), jnp.float32),
        grid=(npad // nb,),
        in_specs=[
            pl.BlockSpec((nb, 4, 144, 32), lambda b: (b, 0, 0, 0)),  # x im2col
            pl.BlockSpec((32, CP),         lambda b: (0, 0)),        # w1
            pl.BlockSpec((1, CP),          lambda b: (0, 0)),        # b1
            pl.BlockSpec((5, 40, CP),      lambda b: (0, 0, 0)),     # w2
            pl.BlockSpec((1, CP),          lambda b: (0, 0)),        # b2
            pl.BlockSpec((256, CP),        lambda b: (0, 0)),        # wf1
            pl.BlockSpec((1, CP),          lambda b: (0, 0)),        # bf1
            pl.BlockSpec((CP, CP),         lambda b: (0, 0)),        # wf2
            pl.BlockSpec((1, CP),          lambda b: (0, 0)),        # bf2
            pl.BlockSpec((CP, CP),         lambda b: (0, 0)),        # wf3
            pl.BlockSpec((1, CP),          lambda b: (0, 0)),        # bf3
        ],
        out_specs=pl.BlockSpec((nb, CP), lambda b: (b, 0)),
        scratch_shapes=[
            pltpu.VMEM((nb * 8, 8, CP), jnp.float32),   # conv2 out (pool #2)
        ],
        compiler_params=pltpu.CompilerParams(
            dimension_semantics=("parallel",),
            vmem_limit_bytes=vmem_limit,
        ),
    )(xp, packed["w1"], packed["b1"], packed["w2"], packed["b2"],
      packed["wf1"], packed["bf1"], packed["wf2"], packed["bf2"],
      packed["wf3"], packed["bf3"])

    return out[:n, :10]


# ------------------------------ reference & init ---------------------------

def lenet5_reference(params, x):
    prec = jax.lax.Precision.HIGHEST
    dn = ("NCHW", "OIHW", "NCHW")
    n = x.shape[0]
    y = jax.lax.conv_general_dilated(x, params["conv1_w"], (1, 1), "VALID",
                                     dimension_numbers=dn, precision=prec)
    y = jax.nn.relu(y + params["conv1_b"][None, :, None, None])
    y = y.reshape(n, 6, 12, 2, 12, 2).max(axis=(3, 5))
    y = jax.lax.conv_general_dilated(y, params["conv2_w"], (1, 1), "VALID",
                                     dimension_numbers=dn, precision=prec)
    y = jax.nn.relu(y + params["conv2_b"][None, :, None, None])
    y = y.reshape(n, 16, 4, 2, 4, 2).max(axis=(3, 5))
    y = y.reshape(n, 16 * 4 * 4)
    y = jax.nn.relu(jnp.dot(y, params["fc1_w"].T, precision=prec) + params["fc1_b"])
    y = jax.nn.relu(jnp.dot(y, params["fc2_w"].T, precision=prec) + params["fc2_b"])
    return jnp.dot(y, params["fc3_w"].T, precision=prec) + params["fc3_b"]


def init_params(key):
    # PyTorch-style default init: U(-1/sqrt(fan_in), 1/sqrt(fan_in)).
    def uniform(k_, shape, fan_in):
        bound = 1.0 / jnp.sqrt(jnp.float32(fan_in))
        return jax.random.uniform(k_, shape, jnp.float32, -bound, bound)

    ks = jax.random.split(key, 10)
    return {
        "conv1_w": uniform(ks[0], (6, 1, 5, 5), 1 * 5 * 5),
        "conv1_b": uniform(ks[1], (6,), 1 * 5 * 5),
        "conv2_w": uniform(ks[2], (16, 6, 5, 5), 6 * 5 * 5),
        "conv2_b": uniform(ks[3], (16,), 6 * 5 * 5),
        "fc1_w": uniform(ks[4], (120, 16 * 4 * 4), 16 * 4 * 4),
        "fc1_b": uniform(ks[5], (120,), 16 * 4 * 4),
        "fc2_w": uniform(ks[6], (84, 120), 120),
        "fc2_b": uniform(ks[7], (84,), 120),
        "fc3_w": uniform(ks[8], (10, 84), 84),
        "fc3_b": uniform(ks[9], (10,), 84),
    }


if __name__ == "__main__":
    key = jax.random.PRNGKey(0)
    k_params, k_x = jax.random.split(key)
    params = init_params(k_params)
    x = jax.random.normal(k_x, (2, 1, 28, 28), jnp.float32)  # MNIST-shaped batch

    packed = pack_params(params)
    logits = jax.block_until_ready(jax.jit(lenet5_forward)(packed, x))
    assert logits.shape == (2, 10) and logits.dtype == jnp.float32

    ref = jax.block_until_ready(jax.jit(lenet5_reference)(params, x))
    # bf16 MXU operands with f32 accumulation vs f32 HIGHEST reference.
    assert bool(jnp.allclose(logits, ref, atol=1e-2, rtol=2e-2)), (
        "max abs err %s" % jnp.max(jnp.abs(logits - ref)))
    print("KERNEL_OK")
</pallas_src>

<mosaic_0001>
module attributes {stable_mosaic.version = 11 : i64} {
  func.func @lenet5_kernel(%arg0: i32, %arg1: memref<8x4x144x32xbf16, #tpu.memory_space<vmem>>, %arg2: memref<32x128xbf16, #tpu.memory_space<vmem>>, %arg3: memref<1x128xf32, #tpu.memory_space<vmem>>, %arg4: memref<5x40x128xbf16, #tpu.memory_space<vmem>>, %arg5: memref<1x128xf32, #tpu.memory_space<vmem>>, %arg6: memref<256x128xbf16, #tpu.memory_space<vmem>>, %arg7: memref<1x128xf32, #tpu.memory_space<vmem>>, %arg8: memref<128x128xbf16, #tpu.memory_space<vmem>>, %arg9: memref<1x128xf32, #tpu.memory_space<vmem>>, %arg10: memref<128x128xbf16, #tpu.memory_space<vmem>>, %arg11: memref<1x128xf32, #tpu.memory_space<vmem>>, %arg12: memref<8x128xf32, #tpu.memory_space<vmem>>, %arg13: memref<64x8x128xf32, #tpu.memory_space<vmem>>) attributes {dimension_semantics = [#tpu.dimension_semantics<parallel>], iteration_bounds = array<i64: 1>, scalar_prefetch = 0 : i64, scratch_operands = 1 : i64, tpu.core_type = #tpu.core_type<tc>, window_params = [{transform_indices = @transform_0, window_bounds = array<i64: 8, 4, 144, 32>}, {pipeline_mode = #tpu.pipeline_mode<synchronous>, transform_indices = @transform_1, window_bounds = array<i64: 32, 128>}, {pipeline_mode = #tpu.pipeline_mode<synchronous>, transform_indices = @transform_2, window_bounds = array<i64: 1, 128>}, {pipeline_mode = #tpu.pipeline_mode<synchronous>, transform_indices = @transform_3, window_bounds = array<i64: 5, 40, 128>}, {pipeline_mode = #tpu.pipeline_mode<synchronous>, transform_indices = @transform_4, window_bounds = array<i64: 1, 128>}, {pipeline_mode = #tpu.pipeline_mode<synchronous>, transform_indices = @transform_5, window_bounds = array<i64: 256, 128>}, {pipeline_mode = #tpu.pipeline_mode<synchronous>, transform_indices = @transform_6, window_bounds = array<i64: 1, 128>}, {pipeline_mode = #tpu.pipeline_mode<synchronous>, transform_indices = @transform_7, window_bounds = array<i64: 128, 128>}, {pipeline_mode = #tpu.pipeline_mode<synchronous>, transform_indices = @transform_8, window_bounds = array<i64: 1, 128>}, {pipeline_mode = #tpu.pipeline_mode<synchronous>, transform_indices = @transform_9, window_bounds = array<i64: 128, 128>}, {pipeline_mode = #tpu.pipeline_mode<synchronous>, transform_indices = @transform_10, window_bounds = array<i64: 1, 128>}, {transform_indices = @transform_11, window_bounds = array<i64: 8, 128>}]} {
    %c0 = arith.constant 0 : index
    %c0_0 = arith.constant 0 : index
    %c0_1 = arith.constant 0 : index
    %c0_2 = arith.constant 0 : index
    %0 = vector.load %arg1[%c0, %c0_0, %c0_1, %c0_2] : memref<8x4x144x32xbf16, #tpu.memory_space<vmem>>, vector<8x4x144x32xbf16>
    %1 = vector.shape_cast %0 : vector<8x4x144x32xbf16> to vector<4608x32xbf16>
    %c0_3 = arith.constant 0 : index
    %c0_4 = arith.constant 0 : index
    %2 = vector.load %arg2[%c0_3, %c0_4] : memref<32x128xbf16, #tpu.memory_space<vmem>>, vector<32x128xbf16>
    %cst = arith.constant dense<0.000000e+00> : vector<4608x128xf32>
    %3 = tpu.matmul %1, %2, %cst {dimension_numbers = #tpu.dot_dimension_numbers<[1], [0], [0], [1], [0, 0, 1, 1], [], []>} : vector<4608x32xbf16>, vector<32x128xbf16>, vector<4608x128xf32> -> vector<4608x128xf32>
    %4 = vector.shape_cast %3 : vector<4608x128xf32> to vector<8x4x144x128xf32>
    %5 = vector.extract_strided_slice %4 {offsets = [0, 0, 0, 0], sizes = [8, 1, 144, 128], strides = [1, 1, 1, 1]} : vector<8x4x144x128xf32> to vector<8x1x144x128xf32>
    %6 = vector.shape_cast %5 : vector<8x1x144x128xf32> to vector<8x144x128xf32>
    %7 = vector.extract_strided_slice %4 {offsets = [0, 1, 0, 0], sizes = [8, 1, 144, 128], strides = [1, 1, 1, 1]} : vector<8x4x144x128xf32> to vector<8x1x144x128xf32>
    %8 = vector.shape_cast %7 : vector<8x1x144x128xf32> to vector<8x144x128xf32>
    %9 = arith.maximumf %6, %8 : vector<8x144x128xf32>
    %10 = vector.extract_strided_slice %4 {offsets = [0, 2, 0, 0], sizes = [8, 1, 144, 128], strides = [1, 1, 1, 1]} : vector<8x4x144x128xf32> to vector<8x1x144x128xf32>
    %11 = vector.shape_cast %10 : vector<8x1x144x128xf32> to vector<8x144x128xf32>
    %12 = vector.extract_strided_slice %4 {offsets = [0, 3, 0, 0], sizes = [8, 1, 144, 128], strides = [1, 1, 1, 1]} : vector<8x4x144x128xf32> to vector<8x1x144x128xf32>
    %13 = vector.shape_cast %12 : vector<8x1x144x128xf32> to vector<8x144x128xf32>
    %14 = arith.maximumf %11, %13 : vector<8x144x128xf32>
    %15 = arith.maximumf %9, %14 : vector<8x144x128xf32>
    %c0_5 = arith.constant 0 : index
    %c0_6 = arith.constant 0 : index
    %16 = vector.load %arg3[%c0_5, %c0_6] : memref<1x128xf32, #tpu.memory_space<vmem>>, vector<1x128xf32>
    %17 = vector.shape_cast %16 : vector<1x128xf32> to vector<1x1x128xf32>
    %18 = vector.broadcast %17 : vector<1x1x128xf32> to vector<8x144x128xf32>
    %19 = arith.addf %15, %18 : vector<8x144x128xf32>
    %cst_7 = arith.constant 0.000000e+00 : f32
    %20 = vector.broadcast %cst_7 : f32 to vector<8x144x128xf32>
    %21 = arith.maximumf %19, %20 : vector<8x144x128xf32>
    %22 = vector.shape_cast %21 : vector<8x144x128xf32> to vector<8x12x12x128xf32>
    %23 = vector.extract_strided_slice %22 {offsets = [0, 0, 0, 0], sizes = [8, 12, 8, 8], strides = [1, 1, 1, 1]} : vector<8x12x12x128xf32> to vector<8x12x8x8xf32>
    %24 = vector.extract_strided_slice %22 {offsets = [0, 0, 1, 0], sizes = [8, 12, 8, 8], strides = [1, 1, 1, 1]} : vector<8x12x12x128xf32> to vector<8x12x8x8xf32>
    %25 = vector.extract_strided_slice %22 {offsets = [0, 0, 2, 0], sizes = [8, 12, 8, 8], strides = [1, 1, 1, 1]} : vector<8x12x12x128xf32> to vector<8x12x8x8xf32>
    %26 = vector.extract_strided_slice %22 {offsets = [0, 0, 3, 0], sizes = [8, 12, 8, 8], strides = [1, 1, 1, 1]} : vector<8x12x12x128xf32> to vector<8x12x8x8xf32>
    %27 = vector.extract_strided_slice %22 {offsets = [0, 0, 4, 0], sizes = [8, 12, 8, 8], strides = [1, 1, 1, 1]} : vector<8x12x12x128xf32> to vector<8x12x8x8xf32>
    %28 = tpu.concatenate %23, %24, %25, %26, %27 in 3 : vector<8x12x8x8xf32>, vector<8x12x8x8xf32>, vector<8x12x8x8xf32>, vector<8x12x8x8xf32>, vector<8x12x8x8xf32> -> vector<8x12x8x40xf32>
    %29 = arith.truncf %28 : vector<8x12x8x40xf32> to vector<8x12x8x40xbf16>
    %cst_8 = arith.constant 0.000000e+00 : f32
    %30 = vector.broadcast %cst_8 : f32 to vector<512x128xf32>
    %31 = vector.extract_strided_slice %29 {offsets = [0, 0, 0, 0], sizes = [8, 8, 8, 40], strides = [1, 1, 1, 1]} : vector<8x12x8x40xbf16> to vector<8x8x8x40xbf16>
    %32 = vector.shape_cast %31 : vector<8x8x8x40xbf16> to vector<512x40xbf16>
    %c0_9 = arith.constant 0 : index
    %c0_10 = arith.constant 0 : index
    %c0_11 = arith.constant 0 : index
    %33 = vector.load %arg4[%c0_9, %c0_10, %c0_11] : memref<5x40x128xbf16, #tpu.memory_space<vmem>>, vector<1x40x128xbf16>
    %34 = vector.shape_cast %33 : vector<1x40x128xbf16> to vector<40x128xbf16>
    %cst_12 = arith.constant dense<0.000000e+00> : vector<512x128xf32>
    %35 = tpu.matmul %32, %34, %cst_12 {dimension_numbers = #tpu.dot_dimension_numbers<[1], [0], [0], [1], [0, 0, 1, 1], [], []>} : vector<512x40xbf16>, vector<40x128xbf16>, vector<512x128xf32> -> vector<512x128xf32>
    %36 = arith.addf %30, %35 : vector<512x128xf32>
    %37 = vector.extract_strided_slice %29 {offsets = [0, 1, 0, 0], sizes = [8, 8, 8, 40], strides = [1, 1, 1, 1]} : vector<8x12x8x40xbf16> to vector<8x8x8x40xbf16>
    %38 = vector.shape_cast %37 : vector<8x8x8x40xbf16> to vector<512x40xbf16>
    %c1 = arith.constant 1 : index
    %c0_13 = arith.constant 0 : index
    %c0_14 = arith.constant 0 : index
    %39 = vector.load %arg4[%c1, %c0_13, %c0_14] : memref<5x40x128xbf16, #tpu.memory_space<vmem>>, vector<1x40x128xbf16>
    %40 = vector.shape_cast %39 : vector<1x40x128xbf16> to vector<40x128xbf16>
    %cst_15 = arith.constant dense<0.000000e+00> : vector<512x128xf32>
    %41 = tpu.matmul %38, %40, %cst_15 {dimension_numbers = #tpu.dot_dimension_numbers<[1], [0], [0], [1], [0, 0, 1, 1], [], []>} : vector<512x40xbf16>, vector<40x128xbf16>, vector<512x128xf32> -> vector<512x128xf32>
    %42 = arith.addf %36, %41 : vector<512x128xf32>
    %43 = vector.extract_strided_slice %29 {offsets = [0, 2, 0, 0], sizes = [8, 8, 8, 40], strides = [1, 1, 1, 1]} : vector<8x12x8x40xbf16> to vector<8x8x8x40xbf16>
    %44 = vector.shape_cast %43 : vector<8x8x8x40xbf16> to vector<512x40xbf16>
    %c2 = arith.constant 2 : index
    %c0_16 = arith.constant 0 : index
    %c0_17 = arith.constant 0 : index
    %45 = vector.load %arg4[%c2, %c0_16, %c0_17] : memref<5x40x128xbf16, #tpu.memory_space<vmem>>, vector<1x40x128xbf16>
    %46 = vector.shape_cast %45 : vector<1x40x128xbf16> to vector<40x128xbf16>
    %cst_18 = arith.constant dense<0.000000e+00> : vector<512x128xf32>
    %47 = tpu.matmul %44, %46, %cst_18 {dimension_numbers = #tpu.dot_dimension_numbers<[1], [0], [0], [1], [0, 0, 1, 1], [], []>} : vector<512x40xbf16>, vector<40x128xbf16>, vector<512x128xf32> -> vector<512x128xf32>
    %48 = arith.addf %42, %47 : vector<512x128xf32>
    %49 = vector.extract_strided_slice %29 {offsets = [0, 3, 0, 0], sizes = [8, 8, 8, 40], strides = [1, 1, 1, 1]} : vector<8x12x8x40xbf16> to vector<8x8x8x40xbf16>
    %50 = vector.shape_cast %49 : vector<8x8x8x40xbf16> to vector<512x40xbf16>
    %c3 = arith.constant 3 : index
    %c0_19 = arith.constant 0 : index
    %c0_20 = arith.constant 0 : index
    %51 = vector.load %arg4[%c3, %c0_19, %c0_20] : memref<5x40x128xbf16, #tpu.memory_space<vmem>>, vector<1x40x128xbf16>
    %52 = vector.shape_cast %51 : vector<1x40x128xbf16> to vector<40x128xbf16>
    %cst_21 = arith.constant dense<0.000000e+00> : vector<512x128xf32>
    %53 = tpu.matmul %50, %52, %cst_21 {dimension_numbers = #tpu.dot_dimension_numbers<[1], [0], [0], [1], [0, 0, 1, 1], [], []>} : vector<512x40xbf16>, vector<40x128xbf16>, vector<512x128xf32> -> vector<512x128xf32>
    %54 = arith.addf %48, %53 : vector<512x128xf32>
    %55 = vector.extract_strided_slice %29 {offsets = [0, 4, 0, 0], sizes = [8, 8, 8, 40], strides = [1, 1, 1, 1]} : vector<8x12x8x40xbf16> to vector<8x8x8x40xbf16>
    %56 = vector.shape_cast %55 : vector<8x8x8x40xbf16> to vector<512x40xbf16>
    %c4 = arith.constant 4 : index
    %c0_22 = arith.constant 0 : index
    %c0_23 = arith.constant 0 : index
    %57 = vector.load %arg4[%c4, %c0_22, %c0_23] : memref<5x40x128xbf16, #tpu.memory_space<vmem>>, vector<1x40x128xbf16>
    %58 = vector.shape_cast %57 : vector<1x40x128xbf16> to vector<40x128xbf16>
    %cst_24 = arith.constant dense<0.000000e+00> : vector<512x128xf32>
    %59 = tpu.matmul %56, %58, %cst_24 {dimension_numbers = #tpu.dot_dimension_numbers<[1], [0], [0], [1], [0, 0, 1, 1], [], []>} : vector<512x40xbf16>, vector<40x128xbf16>, vector<512x128xf32> -> vector<512x128xf32>
    %60 = arith.addf %54, %59 : vector<512x128xf32>
    %61 = vector.shape_cast %60 : vector<512x128xf32> to vector<64x8x128xf32>
    %c0_25 = arith.constant 0 : index
    %c0_26 = arith.constant 0 : index
    %c0_27 = arith.constant 0 : index
    %62 = vector.load %arg13[%c0_25, %c0_26, %c0_27] : memref<64x8x128xf32, #tpu.memory_space<vmem>>, vector<64x8x128xf32>
    tpu.vector_store %arg13[%c0_25, %c0_26, %c0_27], %61 {strides = array<i32>} : memref<64x8x128xf32, #tpu.memory_space<vmem>>, vector<64x8x128xf32>,
    %c0_28 = arith.constant 0 : index
    %c0_29 = arith.constant 0 : index
    %c0_30 = arith.constant 0 : index
    %63 = tpu.strided_load %arg13[%c0_28, %c0_29, %c0_30] {strides = array<i32: 1, 2, 1>} : memref<64x8x128xf32, #tpu.memory_space<vmem>>, vector<64x4x128xf32>
    %c0_31 = arith.constant 0 : index
    %c1_32 = arith.constant 1 : index
    %c0_33 = arith.constant 0 : index
    %64 = tpu.strided_load %arg13[%c0_31, %c1_32, %c0_33] {strides = array<i32: 1, 2, 1>} : memref<64x8x128xf32, #tpu.memory_space<vmem>>, vector<64x4x128xf32>
    %65 = arith.maximumf %63, %64 : vector<64x4x128xf32>
    %66 = vector.shape_cast %65 : vector<64x4x128xf32> to vector<8x4x2x4x128xf32>
    %67 = vector.extract_strided_slice %66 {offsets = [0, 0, 0, 0, 0], sizes = [8, 4, 1, 4, 128], strides = [1, 1, 1, 1, 1]} : vector<8x4x2x4x128xf32> to vector<8x4x1x4x128xf32>
    %68 = vector.shape_cast %67 : vector<8x4x1x4x128xf32> to vector<8x4x4x128xf32>
    %69 = vector.extract_strided_slice %66 {offsets = [0, 0, 1, 0, 0], sizes = [8, 4, 1, 4, 128], strides = [1, 1, 1, 1, 1]} : vector<8x4x2x4x128xf32> to vector<8x4x1x4x128xf32>
    %70 = vector.shape_cast %69 : vector<8x4x1x4x128xf32> to vector<8x4x4x128xf32>
    %71 = arith.maximumf %68, %70 : vector<8x4x4x128xf32>
    %c0_34 = arith.constant 0 : index
    %c0_35 = arith.constant 0 : index
    %72 = vector.load %arg5[%c0_34, %c0_35] : memref<1x128xf32, #tpu.memory_space<vmem>>, vector<1x128xf32>
    %73 = vector.shape_cast %72 : vector<1x128xf32> to vector<1x1x1x128xf32>
    %74 = vector.broadcast %73 : vector<1x1x1x128xf32> to vector<8x4x4x128xf32>
    %75 = arith.addf %71, %74 : vector<8x4x4x128xf32>
    %cst_36 = arith.constant 0.000000e+00 : f32
    %76 = vector.broadcast %cst_36 : f32 to vector<8x4x4x128xf32>
    %77 = arith.maximumf %75, %76 : vector<8x4x4x128xf32>
    %78 = vector.extract_strided_slice %77 {offsets = [0, 0, 0, 0], sizes = [8, 1, 1, 16], strides = [1, 1, 1, 1]} : vector<8x4x4x128xf32> to vector<8x1x1x16xf32>
    %79 = vector.shape_cast %78 : vector<8x1x1x16xf32> to vector<8x16xf32>
    %80 = vector.extract_strided_slice %77 {offsets = [0, 0, 1, 0], sizes = [8, 1, 1, 16], strides = [1, 1, 1, 1]} : vector<8x4x4x128xf32> to vector<8x1x1x16xf32>
    %81 = vector.shape_cast %80 : vector<8x1x1x16xf32> to vector<8x16xf32>
    %82 = vector.extract_strided_slice %77 {offsets = [0, 0, 2, 0], sizes = [8, 1, 1, 16], strides = [1, 1, 1, 1]} : vector<8x4x4x128xf32> to vector<8x1x1x16xf32>
    %83 = vector.shape_cast %82 : vector<8x1x1x16xf32> to vector<8x16xf32>
    %84 = vector.extract_strided_slice %77 {offsets = [0, 0, 3, 0], sizes = [8, 1, 1, 16], strides = [1, 1, 1, 1]} : vector<8x4x4x128xf32> to vector<8x1x1x16xf32>
    %85 = vector.shape_cast %84 : vector<8x1x1x16xf32> to vector<8x16xf32>
    %86 = vector.extract_strided_slice %77 {offsets = [0, 1, 0, 0], sizes = [8, 1, 1, 16], strides = [1, 1, 1, 1]} : vector<8x4x4x128xf32> to vector<8x1x1x16xf32>
    %87 = vector.shape_cast %86 : vector<8x1x1x16xf32> to vector<8x16xf32>
    %88 = vector.extract_strided_slice %77 {offsets = [0, 1, 1, 0], sizes = [8, 1, 1, 16], strides = [1, 1, 1, 1]} : vector<8x4x4x128xf32> to vector<8x1x1x16xf32>
    %89 = vector.shape_cast %88 : vector<8x1x1x16xf32> to vector<8x16xf32>
    %90 = vector.extract_strided_slice %77 {offsets = [0, 1, 2, 0], sizes = [8, 1, 1, 16], strides = [1, 1, 1, 1]} : vector<8x4x4x128xf32> to vector<8x1x1x16xf32>
    %91 = vector.shape_cast %90 : vector<8x1x1x16xf32> to vector<8x16xf32>
    %92 = vector.extract_strided_slice %77 {offsets = [0, 1, 3, 0], sizes = [8, 1, 1, 16], strides = [1, 1, 1, 1]} : vector<8x4x4x128xf32> to vector<8x1x1x16xf32>
    %93 = vector.shape_cast %92 : vector<8x1x1x16xf32> to vector<8x16xf32>
    %94 = vector.extract_strided_slice %77 {offsets = [0, 2, 0, 0], sizes = [8, 1, 1, 16], strides = [1, 1, 1, 1]} : vector<8x4x4x128xf32> to vector<8x1x1x16xf32>
    %95 = vector.shape_cast %94 : vector<8x1x1x16xf32> to vector<8x16xf32>
    %96 = vector.extract_strided_slice %77 {offsets = [0, 2, 1, 0], sizes = [8, 1, 1, 16], strides = [1, 1, 1, 1]} : vector<8x4x4x128xf32> to vector<8x1x1x16xf32>
    %97 = vector.shape_cast %96 : vector<8x1x1x16xf32> to vector<8x16xf32>
    %98 = vector.extract_strided_slice %77 {offsets = [0, 2, 2, 0], sizes = [8, 1, 1, 16], strides = [1, 1, 1, 1]} : vector<8x4x4x128xf32> to vector<8x1x1x16xf32>
    %99 = vector.shape_cast %98 : vector<8x1x1x16xf32> to vector<8x16xf32>
    %100 = vector.extract_strided_slice %77 {offsets = [0, 2, 3, 0], sizes = [8, 1, 1, 16], strides = [1, 1, 1, 1]} : vector<8x4x4x128xf32> to vector<8x1x1x16xf32>
    %101 = vector.shape_cast %100 : vector<8x1x1x16xf32> to vector<8x16xf32>
    %102 = vector.extract_strided_slice %77 {offsets = [0, 3, 0, 0], sizes = [8, 1, 1, 16], strides = [1, 1, 1, 1]} : vector<8x4x4x128xf32> to vector<8x1x1x16xf32>
    %103 = vector.shape_cast %102 : vector<8x1x1x16xf32> to vector<8x16xf32>
    %104 = vector.extract_strided_slice %77 {offsets = [0, 3, 1, 0], sizes = [8, 1, 1, 16], strides = [1, 1, 1, 1]} : vector<8x4x4x128xf32> to vector<8x1x1x16xf32>
    %105 = vector.shape_cast %104 : vector<8x1x1x16xf32> to vector<8x16xf32>
    %106 = vector.extract_strided_slice %77 {offsets = [0, 3, 2, 0], sizes = [8, 1, 1, 16], strides = [1, 1, 1, 1]} : vector<8x4x4x128xf32> to vector<8x1x1x16xf32>
    %107 = vector.shape_cast %106 : vector<8x1x1x16xf32> to vector<8x16xf32>
    %108 = vector.extract_strided_slice %77 {offsets = [0, 3, 3, 0], sizes = [8, 1, 1, 16], strides = [1, 1, 1, 1]} : vector<8x4x4x128xf32> to vector<8x1x1x16xf32>
    %109 = vector.shape_cast %108 : vector<8x1x1x16xf32> to vector<8x16xf32>
    %110 = tpu.concatenate %79, %81, %83, %85, %87, %89, %91, %93, %95, %97, %99, %101, %103, %105, %107, %109 in 1 : vector<8x16xf32>, vector<8x16xf32>, vector<8x16xf32>, vector<8x16xf32>, vector<8x16xf32>, vector<8x16xf32>, vector<8x16xf32>, vector<8x16xf32>, vector<8x16xf32>, vector<8x16xf32>, vector<8x16xf32>, vector<8x16xf32>, vector<8x16xf32>, vector<8x16xf32>, vector<8x16xf32>, vector<8x16xf32> -> vector<8x256xf32>
    %111 = arith.truncf %110 : vector<8x256xf32> to vector<8x256xbf16>
    %c0_37 = arith.constant 0 : index
    %c0_38 = arith.constant 0 : index
    %112 = vector.load %arg6[%c0_37, %c0_38] : memref<256x128xbf16, #tpu.memory_space<vmem>>, vector<256x128xbf16>
    %cst_39 = arith.constant dense<0.000000e+00> : vector<8x128xf32>
    %113 = tpu.matmul %111, %112, %cst_39 {dimension_numbers = #tpu.dot_dimension_numbers<[1], [0], [0], [1], [0, 0, 1, 1], [], []>} : vector<8x256xbf16>, vector<256x128xbf16>, vector<8x128xf32> -> vector<8x128xf32>
    %c0_40 = arith.constant 0 : index
    %c0_41 = arith.constant 0 : index
    %114 = vector.load %arg7[%c0_40, %c0_41] : memref<1x128xf32, #tpu.memory_space<vmem>>, vector<1x128xf32>
    %115 = vector.broadcast %114 : vector<1x128xf32> to vector<8x128xf32>
    %116 = arith.addf %113, %115 : vector<8x128xf32>
    %cst_42 = arith.constant 0.000000e+00 : f32
    %117 = vector.broadcast %cst_42 : f32 to vector<8x128xf32>
    %118 = arith.maximumf %116, %117 : vector<8x128xf32>
    %119 = arith.truncf %118 : vector<8x128xf32> to vector<8x128xbf16>
    %c0_43 = arith.constant 0 : index
    %c0_44 = arith.constant 0 : index
    %120 = vector.load %arg8[%c0_43, %c0_44] : memref<128x128xbf16, #tpu.memory_space<vmem>>, vector<128x128xbf16>
    %cst_45 = arith.constant dense<0.000000e+00> : vector<8x128xf32>
    %121 = tpu.matmul %119, %120, %cst_45 {dimension_numbers = #tpu.dot_dimension_numbers<[1], [0], [0], [1], [0, 0, 1, 1], [], []>} : vector<8x128xbf16>, vector<128x128xbf16>, vector<8x128xf32> -> vector<8x128xf32>
    %c0_46 = arith.constant 0 : index
    %c0_47 = arith.constant 0 : index
    %122 = vector.load %arg9[%c0_46, %c0_47] : memref<1x128xf32, #tpu.memory_space<vmem>>, vector<1x128xf32>
    %123 = vector.broadcast %122 : vector<1x128xf32> to vector<8x128xf32>
    %124 = arith.addf %121, %123 : vector<8x128xf32>
    %cst_48 = arith.constant 0.000000e+00 : f32
    %125 = vector.broadcast %cst_48 : f32 to vector<8x128xf32>
    %126 = arith.maximumf %124, %125 : vector<8x128xf32>
    %127 = arith.truncf %126 : vector<8x128xf32> to vector<8x128xbf16>
    %c0_49 = arith.constant 0 : index
    %c0_50 = arith.constant 0 : index
    %128 = vector.load %arg10[%c0_49, %c0_50] : memref<128x128xbf16, #tpu.memory_space<vmem>>, vector<128x128xbf16>
    %cst_51 = arith.constant dense<0.000000e+00> : vector<8x128xf32>
    %129 = tpu.matmul %127, %128, %cst_51 {dimension_numbers = #tpu.dot_dimension_numbers<[1], [0], [0], [1], [0, 0, 1, 1], [], []>} : vector<8x128xbf16>, vector<128x128xbf16>, vector<8x128xf32> -> vector<8x128xf32>
    %c0_52 = arith.constant 0 : index
    %c0_53 = arith.constant 0 : index
    %130 = vector.load %arg11[%c0_52, %c0_53] : memref<1x128xf32, #tpu.memory_space<vmem>>, vector<1x128xf32>
    %131 = vector.broadcast %130 : vector<1x128xf32> to vector<8x128xf32>
    %132 = arith.addf %129, %131 : vector<8x128xf32>
    %c0_54 = arith.constant 0 : index
    %c0_55 = arith.constant 0 : index
    %133 = vector.load %arg12[%c0_54, %c0_55] : memref<8x128xf32, #tpu.memory_space<vmem>>, vector<8x128xf32>
    tpu.vector_store %arg12[%c0_54, %c0_55], %132 {strides = array<i32>} : memref<8x128xf32, #tpu.memory_space<vmem>>, vector<8x128xf32>,
    return
  }
  func.func @transform_0(%arg0: i32) -> (i32, i32, i32, i32) {
    %c0_i32 = arith.constant 0 : i32
    %c0_i32_0 = arith.constant 0 : i32
    %c0_i32_1 = arith.constant 0 : i32
    %c0_i32_2 = arith.constant 0 : i32
    return %arg0, %c0_i32, %c0_i32_0, %c0_i32_1 : i32, i32, i32, i32
  }
  func.func @transform_1(%arg0: i32) -> (i32, i32) {
    %c0_i32 = arith.constant 0 : i32
    %c0_i32_0 = arith.constant 0 : i32
    %c0_i32_1 = arith.constant 0 : i32
    return %c0_i32, %c0_i32_0 : i32, i32
  }
  func.func @transform_2(%arg0: i32) -> (i32, i32) {
    %c0_i32 = arith.constant 0 : i32
    %c0_i32_0 = arith.constant 0 : i32
    %c0_i32_1 = arith.constant 0 : i32
    return %c0_i32, %c0_i32_0 : i32, i32
  }
  func.func @transform_3(%arg0: i32) -> (i32, i32, i32) {
    %c0_i32 = arith.constant 0 : i32
    %c0_i32_0 = arith.constant 0 : i32
    %c0_i32_1 = arith.constant 0 : i32
    %c0_i32_2 = arith.constant 0 : i32
    return %c0_i32, %c0_i32_0, %c0_i32_1 : i32, i32, i32
  }
  func.func @transform_4(%arg0: i32) -> (i32, i32) {
    %c0_i32 = arith.constant 0 : i32
    %c0_i32_0 = arith.constant 0 : i32
    %c0_i32_1 = arith.constant 0 : i32
    return %c0_i32, %c0_i32_0 : i32, i32
  }
  func.func @transform_5(%arg0: i32) -> (i32, i32) {
    %c0_i32 = arith.constant 0 : i32
    %c0_i32_0 = arith.constant 0 : i32
    %c0_i32_1 = arith.constant 0 : i32
    return %c0_i32, %c0_i32_0 : i32, i32
  }
  func.func @transform_6(%arg0: i32) -> (i32, i32) {
    %c0_i32 = arith.constant 0 : i32
    %c0_i32_0 = arith.constant 0 : i32
    %c0_i32_1 = arith.constant 0 : i32
    return %c0_i32, %c0_i32_0 : i32, i32
  }
  func.func @transform_7(%arg0: i32) -> (i32, i32) {
    %c0_i32 = arith.constant 0 : i32
    %c0_i32_0 = arith.constant 0 : i32
    %c0_i32_1 = arith.constant 0 : i32
    return %c0_i32, %c0_i32_0 : i32, i32
  }
  func.func @transform_8(%arg0: i32) -> (i32, i32) {
    %c0_i32 = arith.constant 0 : i32
    %c0_i32_0 = arith.constant 0 : i32
    %c0_i32_1 = arith.constant 0 : i32
    return %c0_i32, %c0_i32_0 : i32, i32
  }
  func.func @transform_9(%arg0: i32) -> (i32, i32) {
    %c0_i32 = arith.constant 0 : i32
    %c0_i32_0 = arith.constant 0 : i32
    %c0_i32_1 = arith.constant 0 : i32
    return %c0_i32, %c0_i32_0 : i32, i32
  }
  func.func @transform_10(%arg0: i32) -> (i32, i32) {
    %c0_i32 = arith.constant 0 : i32
    %c0_i32_0 = arith.constant 0 : i32
    %c0_i32_1 = arith.constant 0 : i32
    return %c0_i32, %c0_i32_0 : i32, i32
  }
  func.func @transform_11(%arg0: i32) -> (i32, i32) {
    %c0_i32 = arith.constant 0 : i32
    %c0_i32_0 = arith.constant 0 : i32
    return %arg0, %c0_i32 : i32, i32
  }
}

</mosaic_0001>

<bundles_post_ra>
// kernel: lenet5_forward.1
= control target key start
LH: loop header
LB: loop body
LE: loop exit
PB: predicated region body
PF: predicated region fallthrough
CT: control target
= control target key end

     0   :  { %vm2071_vm0 = vcmask 261120   ;;  %vm7057_vm1 = vcmask 1045504   ;;  %vm6480_vm2 = vcmask 1046528   ;;  %s16357_s19 = smov 32   ;;  %vm7634_vm3 = vcmask 1044480   ;;  %s16358_s27 = smov 16   ;;  %s23855_s1 = inlined_call_operand.vmem [shape: bf16[32,128], index: 1, kind: input, shape index: {}]   ;;  %s23856_s0 = inlined_call_operand.vmem [shape: bf16[8,4,144,32], index: 0, kind: input, shape index: {}]   ;;  %s23857_s2 = inlined_call_operand.vmem [shape: f32[1,128], index: 2, kind: input, shape index: {}]   ;;  %s23858_s3 = inlined_call_operand.vmem [shape: bf16[5,40,128], index: 3, kind: input, shape index: {}]   ;;  %s23859_s5 = inlined_call_operand.vmem [shape: bf16[256,128], index: 5, kind: input, shape index: {}]   ;;  %s23860_s4 = inlined_call_operand.vmem [shape: f32[1,128], index: 4, kind: input, shape index: {}]   ;;  %s23861_s7 = inlined_call_operand.vmem [shape: bf16[128,128], index: 7, kind: input, shape index: {}]   ;;  %s23862_s9 = inlined_call_operand.vmem [shape: bf16[128,128], index: 9, kind: input, shape index: {}]   ;;  %s23863_s6 = inlined_call_operand.vmem [shape: f32[1,128], index: 6, kind: input, shape index: {}]   ;;  %s23864_s8 = inlined_call_operand.vmem [shape: f32[1,128], index: 8, kind: input, shape index: {}]   ;;  %s23865_s10 = inlined_call_operand.vmem [shape: f32[1,128], index: 10, kind: input, shape index: {}]   ;;  %s23866_s11 = inlined_call_operand.vmem [shape: f32[8,128], index: 11, kind: output, shape index: {}]  }
   0x1   :  { %v16012_v0 = vld [vmem:[%s23855_s1] sm:$0xff]   ;;  %v16013_v1 = vld [vmem:[%s23855_s1 + $0x8] sm:$0xff]   ;;  %v16016_v4 = vld [vmem:[%s23856_s0 + $0x10] sm:$0xff]   ;;  %s16359_s30 = smov 8   ;;  %s16360_s21 = smov 24   ;;  %vm9361_vm4 = vcmask 1043456  }
   0x2   :  { %14091 = vmatprep.subr.bf16.mxu0 %v16012_v0  ;;  %v16014_v2 = vld [vmem:[%s23856_s0] sm:$0xff]   ;;  %15061 = vmatprep.subr.bf16.mxu1 %v16012_v0  ;;  %v16015_v3 = vld [vmem:[%s23856_s0 + $0x8] sm:$0xff]   ;;  %v16017_v5 = vld [vmem:[%s23856_s0 + $0x18] sm:$0xff]   ;;  %vm8595_vm5 = vcmask 64512   ;;  %vm8692_vm6 = vcmask 130048   ;;  %vm8789_vm7 = vcmask 195584  }
   0x3   :  { %14092 = vmatpush3.bf16.msra.mxu0 %v16012_v0  ;;  %15063 = vmatpush3.bf16.msra.mxu1 %v16012_v0  ;;  %v16018_v6 = vld [vmem:[%s23856_s0 + $0x20] sm:$0xff]   ;;  %v16029_v7 = vld [vmem:[%s23856_s0 + $0x750] sm:$0xff]   ;;  %v16031_v8 = vld [vmem:[%s23856_s0 + $0x758] sm:$0xff]   ;;  %vm9264_vm8 = vcmask 326656   ;;  %vm11875_vm9 = vcmask 1041409   ;;  %vm11878_vm10 = vcmask 1042434  }
   0x4   :  { %14093 = vmatprep.subr.bf16.mxu0 %v16013_v1  ;;  %14095 = vmatprep.mubr.msk.bf16.mxu0 %vm2071_vm0, %v16014_v2  ;;  %v16033_v9 = vld [vmem:[%s23856_s0 + $0x760] sm:$0xff]   ;;  %v16019_v10 = vld [vmem:[%s23856_s0 + $0x28] sm:$0xff]   ;;  %v16020_v11 = vld [vmem:[%s23856_s0 + $0x30] sm:$0xff]   ;;  %vm11881_vm11 = vcmask 1043459   ;;  %vm11884_vm12 = vcmask 1044484   ;;  %vm11887_vm13 = vcmask 1045509  }
   0x5   :  { %15062 = vmatprep.subr.bf16.mxu1 %v16013_v1  ;;  %14563 = vmatprep.mubr.msk.bf16.mxu1 %vm2071_vm0, %v16029_v7  ;;  %v16035_v12 = vld [vmem:[%s23856_s0 + $0x768] sm:$0xff]   ;;  %v16037_v13 = vld [vmem:[%s23856_s0 + $0x770] sm:$0xff]   ;;  %v16021_v14 = vld [vmem:[%s23856_s0 + $0x38] sm:$0xff]   ;;  %vm11890_vm14 = vcmask 1046534   ;;  %vm11893_vm15 = vcmask 1047559   ;;  %s16362_s14 = smov 64  }
   0x6   :  { %v16022_v15 = vld [vmem:[%s23856_s0 + $0x40] sm:$0xff]   ;;  %v16039_v16 = vld [vmem:[%s23856_s0 + $0x778] sm:$0xff]   ;;  %v16023_v18 = vld [vmem:[%s23856_s0 + $0x48] sm:$0xff]   ;;  %s16366_s15 = smov 112  }
   0x7   :  { %14094 = vmatpush3.bf16.msra.mxu0 %v16013_v1  ;;  %15064 = vmatpush3.bf16.msra.mxu1 %v16013_v1  ;;  %v16041_v17 = vld [vmem:[%s23856_s0 + $0x780] sm:$0xff]   ;;  %v16024_v19 = vld [vmem:[%s23856_s0 + $0x50] sm:$0xff]   ;;  %v16043_v20 = vld [vmem:[%s23856_s0 + $0x788] sm:$0xff]  }
   0x8   :  { %v16045_v21 = vld [vmem:[%s23856_s0 + $0x790] sm:$0xff]   ;;  %v16025_v22 = vld [vmem:[%s23856_s0 + $0x58] sm:$0xff]   ;;  %v16026_v23 = vld [vmem:[%s23856_s0 + $0x60] sm:$0xff]  }
   0x9   :  { %v16047_v24 = vld [vmem:[%s23856_s0 + $0x798] sm:$0xff]   ;;  %v16049_v25 = vld [vmem:[%s23856_s0 + $0x7a0] sm:$0xff]   ;;  %v16027_v26 = vld [vmem:[%s23856_s0 + $0x68] sm:$0xff]  }
   0xa   :  { %14096 = vmatmul.mubr.msk.bf16.vlgmr.msra.gmra.mrb[0].mxu0 %vm2071_vm0, %v16015_v3  ;;  %14564 = vmatmul.mubr.msk.bf16.vlgmr.msra.gmra.mrb[0].mxu1 %vm2071_vm0, %v16031_v8  ;;  %v16028_v27 = vld [vmem:[%s23856_s0 + $0x70] sm:$0xff]   ;;  %v16051_v28 = vld [vmem:[%s23856_s0 + $0x7a8] sm:$0xff]   ;;  %v16030_v30 = vld [vmem:[%s23856_s0 + $0x78] sm:$0xff]  }
   0xb   :  { %14099 = vmatprep.mubr.msk.bf16.mxu0 %vm2071_vm0, %v16016_v4  ;;  %14567 = vmatprep.mubr.msk.bf16.mxu1 %vm2071_vm0, %v16033_v9  ;;  %v16053_v29 = vld [vmem:[%s23856_s0 + $0x7b0] sm:$0xff]   ;;  %v16032_v31 = vld [vmem:[%s23856_s0 + $0x80] sm:$0xff]   ;;  %v16055_v32 = vld [vmem:[%s23856_s0 + $0x7b8] sm:$0xff]  }
   0xc   :  { %v16057_v33 = vld [vmem:[%s23856_s0 + $0x7c0] sm:$0xff]   ;;  %v16034_v34 = vld [vmem:[%s23856_s0 + $0x88] sm:$0xff]   ;;  %v16036_v35 = vld [vmem:[%s23856_s0 + $0x90] sm:$0xff]  }
   0xd   :  { %v16059_v36 = vld [vmem:[%s23856_s0 + $0x7c8] sm:$0xff]   ;;  %v16061_v37 = vld [vmem:[%s23856_s0 + $0x7d0] sm:$0xff]   ;;  %v16038_v38 = vld [vmem:[%s23856_s0 + $0x98] sm:$0xff]  }
   0xe   :  { %v16040_v39 = vld [vmem:[%s23856_s0 + $0xa0] sm:$0xff]   ;;  %v16063_v40 = vld [vmem:[%s23856_s0 + $0x7d8] sm:$0xff]   ;;  %v16042_v42 = vld [vmem:[%s23856_s0 + $0xa8] sm:$0xff]  }
   0xf   :  { %v16065_v41 = vld [vmem:[%s23856_s0 + $0x7e0] sm:$0xff]   ;;  %v16044_v43 = vld [vmem:[%s23856_s0 + $0xb0] sm:$0xff]   ;;  %v16067_v44 = vld [vmem:[%s23856_s0 + $0x7e8] sm:$0xff]  }
  0x10   :  { %v16069_v45 = vld [vmem:[%s23856_s0 + $0x7f0] sm:$0xff]   ;;  %v16046_v46 = vld [vmem:[%s23856_s0 + $0xb8] sm:$0xff]   ;;  %v16048_v47 = vld [vmem:[%s23856_s0 + $0xc0] sm:$0xff]  }
  0x11   :  { %v16071_v48 = vld [vmem:[%s23856_s0 + $0x7f8] sm:$0xff]   ;;  %v16073_v49 = vld [vmem:[%s23856_s0 + $0x800] sm:$0xff]   ;;  %v16050_v50 = vld [vmem:[%s23856_s0 + $0xc8] sm:$0xff]  }
  0x12   :  { %14100 = vmatmul.mubr.msk.bf16.gmra.mrb[4].mxu0 %vm2071_vm0, %v16017_v5  ;;  %14568 = vmatmul.mubr.msk.bf16.gmra.mrb[4].mxu1 %vm2071_vm0, %v16035_v12  ;;  %v16052_v51 = vld [vmem:[%s23856_s0 + $0xd0] sm:$0xff]   ;;  %v16075_v52 = vld [vmem:[%s23856_s0 + $0x808] sm:$0xff]   ;;  %v16054_v54 = vld [vmem:[%s23856_s0 + $0xd8] sm:$0xff]  }
  0x13   :  { %14103 = vmatprep.mubr.msk.bf16.mxu0 %vm2071_vm0, %v16018_v6  ;;  %14571 = vmatprep.mubr.msk.bf16.mxu1 %vm2071_vm0, %v16037_v13  ;;  %v16077_v53 = vld [vmem:[%s23856_s0 + $0x810] sm:$0xff]   ;;  %v16056_v55 = vld [vmem:[%s23856_s0 + $0xe0] sm:$0xff]   ;;  %v16079_v56 = vld [vmem:[%s23856_s0 + $0x818] sm:$0xff]  }
  0x14   :  { %v16081_v57 = vld [vmem:[%s23856_s0 + $0x820] sm:$0xff]   ;;  %v16058_v58 = vld [vmem:[%s23856_s0 + $0xe8] sm:$0xff]   ;;  %v16060_v59 = vld [vmem:[%s23856_s0 + $0xf0] sm:$0xff]  }
  0x15   :  { %v16083_v60 = vld [vmem:[%s23856_s0 + $0x828] sm:$0xff]   ;;  %v16085_v61 = vld [vmem:[%s23856_s0 + $0x830] sm:$0xff]   ;;  %v16062_v62 = vld [vmem:[%s23856_s0 + $0xf8] sm:$0xff]  }
  0x16   :  { %v16064_v63 = vld [vmem:[%s23856_s0 + $0x100] sm:$0xff]   ;;  %v16087_v0 = vld [vmem:[%s23856_s0 + $0x838] sm:$0xff]   ;;  %v16066_v2 = vld [vmem:[%s23856_s0 + $0x108] sm:$0xff]  }
  0x17   :  { %v16089_v1 = vld [vmem:[%s23856_s0 + $0x840] sm:$0xff]   ;;  %v16068_v3 = vld [vmem:[%s23856_s0 + $0x110] sm:$0xff]   ;;  %v16091_v4 = vld [vmem:[%s23856_s0 + $0x848] sm:$0xff]  }
  0x18   :  { %v16093_v5 = vld [vmem:[%s23856_s0 + $0x850] sm:$0xff]   ;;  %v16070_v6 = vld [vmem:[%s23856_s0 + $0x118] sm:$0xff]   ;;  %v16072_v7 = vld [vmem:[%s23856_s0 + $0x120] sm:$0xff]  }
  0x19   :  { %v16095_v8 = vld [vmem:[%s23856_s0 + $0x858] sm:$0xff]   ;;  %v16097_v9 = vld [vmem:[%s23856_s0 + $0x860] sm:$0xff]   ;;  %v16099_v12 = vld [vmem:[%s23856_s0 + $0x868] sm:$0xff]  }
  0x1a   :  { %14104 = vmatmul.mubr.msk.bf16.gmra.mrb[8].mxu0 %vm2071_vm0, %v16019_v10  ;;  %14572 = vmatmul.mubr.msk.bf16.gmra.mrb[8].mxu1 %vm2071_vm0, %v16039_v16  ;;  %v16074_v10 = vld [vmem:[%s23856_s0 + $0x128] sm:$0xff]   ;;  %v16101_v13 = vld [vmem:[%s23856_s0 + $0x870] sm:$0xff]   ;;  %v16103_v16 = vld [vmem:[%s23856_s0 + $0x878] sm:$0xff]  }
  0x1b   :  { %14107 = vmatprep.mubr.msk.bf16.mxu0 %vm2071_vm0, %v16020_v11  ;;  %14575 = vmatprep.mubr.msk.bf16.mxu1 %vm2071_vm0, %v16041_v17  ;;  %v16076_v11 = vld [vmem:[%s23856_s0 + $0x130] sm:$0xff]   ;;  %v16105_v17 = vld [vmem:[%s23856_s0 + $0x880] sm:$0xff]  }
  0x22   :  { %14108 = vmatmul.mubr.msk.bf16.gmra.mrb[12].mxu0 %vm2071_vm0, %v16021_v14  ;;  %14576 = vmatmul.mubr.msk.bf16.gmra.mrb[12].mxu1 %vm2071_vm0, %v16043_v20  ;;  %v16078_v14 = vld [vmem:[%s23856_s0 + $0x138] sm:$0xff]   ;;  %v16107_v20 = vld [vmem:[%s23856_s0 + $0x888] sm:$0xff]  }
  0x23   :  { %14111 = vmatprep.mubr.msk.bf16.mxu0 %vm2071_vm0, %v16022_v15  ;;  %14579 = vmatprep.mubr.msk.bf16.mxu1 %vm2071_vm0, %v16045_v21  ;;  %v16080_v15 = vld [vmem:[%s23856_s0 + $0x140] sm:$0xff]   ;;  %v16109_v21 = vld [vmem:[%s23856_s0 + $0x890] sm:$0xff]  }
  0x2a   :  { %14112 = vmatmul.mubr.msk.bf16.gmra.mrb[16].mxu0 %vm2071_vm0, %v16023_v18  ;;  %14580 = vmatmul.mubr.msk.bf16.gmra.mrb[16].mxu1 %vm2071_vm0, %v16047_v24  ;;  %v16082_v18 = vld [vmem:[%s23856_s0 + $0x148] sm:$0xff]   ;;  %v16111_v24 = vld [vmem:[%s23856_s0 + $0x898] sm:$0xff]  }
  0x2b   :  { %14115 = vmatprep.mubr.msk.bf16.mxu0 %vm2071_vm0, %v16024_v19  ;;  %14583 = vmatprep.mubr.msk.bf16.mxu1 %vm2071_vm0, %v16049_v25  ;;  %v16084_v19 = vld [vmem:[%s23856_s0 + $0x150] sm:$0xff]   ;;  %v16113_v25 = vld [vmem:[%s23856_s0 + $0x8a0] sm:$0xff]  }
  0x32   :  { %14116 = vmatmul.mubr.msk.bf16.gmra.mrb[20].mxu0 %vm2071_vm0, %v16025_v22  ;;  %14584 = vmatmul.mubr.msk.bf16.gmra.mrb[20].mxu1 %vm2071_vm0, %v16051_v28  ;;  %v16086_v22 = vld [vmem:[%s23856_s0 + $0x158] sm:$0xff]   ;;  %v16115_v28 = vld [vmem:[%s23856_s0 + $0x8a8] sm:$0xff]  }
  0x33   :  { %14119 = vmatprep.mubr.msk.bf16.mxu0 %vm2071_vm0, %v16026_v23  ;;  %14587 = vmatprep.mubr.msk.bf16.mxu1 %vm2071_vm0, %v16053_v29  ;;  %v16088_v23 = vld [vmem:[%s23856_s0 + $0x160] sm:$0xff]   ;;  %v16117_v29 = vld [vmem:[%s23856_s0 + $0x8b0] sm:$0xff]  }
  0x3a   :  { %14120 = vmatmul.mubr.msk.bf16.gmra.mrb[24].mxu0 %vm2071_vm0, %v16027_v26  ;;  %14588 = vmatmul.mubr.msk.bf16.gmra.mrb[24].mxu1 %vm2071_vm0, %v16055_v32  ;;  %v16090_v26 = vld [vmem:[%s23856_s0 + $0x168] sm:$0xff]   ;;  %v16119_v32 = vld [vmem:[%s23856_s0 + $0x8b8] sm:$0xff]  }
  0x3b   :  { %14123 = vmatprep.mubr.msk.bf16.mxu0 %vm2071_vm0, %v16028_v27  ;;  %14591 = vmatprep.mubr.msk.bf16.mxu1 %vm2071_vm0, %v16057_v33  ;;  %v16092_v27 = vld [vmem:[%s23856_s0 + $0x170] sm:$0xff]   ;;  %v16121_v33 = vld [vmem:[%s23856_s0 + $0x8c0] sm:$0xff]  }
  0x42   :  { %14124 = vmatmul.mubr.msk.bf16.gmra.mrb[28].mxu0 %vm2071_vm0, %v16030_v30  ;;  %14592 = vmatmul.mubr.msk.bf16.gmra.mrb[28].mxu1 %vm2071_vm0, %v16059_v36  ;;  %v16094_v30 = vld [vmem:[%s23856_s0 + $0x178] sm:$0xff]   ;;  %v16123_v36 = vld [vmem:[%s23856_s0 + $0x8c8] sm:$0xff]  }
  0x43   :  { %14127 = vmatprep.mubr.msk.bf16.mxu0 %vm2071_vm0, %v16032_v31  ;;  %14595 = vmatprep.mubr.msk.bf16.mxu1 %vm2071_vm0, %v16061_v37  ;;  %v16096_v31 = vld [vmem:[%s23856_s0 + $0x180] sm:$0xff]   ;;  %v16125_v37 = vld [vmem:[%s23856_s0 + $0x8d0] sm:$0xff]  }
  0x4a   :  { %14128 = vmatmul.mubr.msk.bf16.gmra.mrb[32].mxu0 %vm2071_vm0, %v16034_v34  ;;  %14596 = vmatmul.mubr.msk.bf16.gmra.mrb[32].mxu1 %vm2071_vm0, %v16063_v40  ;;  %v16098_v34 = vld [vmem:[%s23856_s0 + $0x188] sm:$0xff]   ;;  %v16127_v40 = vld [vmem:[%s23856_s0 + $0x8d8] sm:$0xff]  }
  0x4b   :  { %14131 = vmatprep.mubr.msk.bf16.mxu0 %vm2071_vm0, %v16036_v35  ;;  %14599 = vmatprep.mubr.msk.bf16.mxu1 %vm2071_vm0, %v16065_v41  ;;  %v16100_v35 = vld [vmem:[%s23856_s0 + $0x190] sm:$0xff]   ;;  %v16106_v41 = vld [vmem:[%s23856_s0 + $0x1a8] sm:$0xff]  }
  0x52   :  { %14132 = vmatmul.mubr.msk.bf16.gmra.mrb[36].mxu0 %vm2071_vm0, %v16038_v38  ;;  %14600 = vmatmul.mubr.msk.bf16.gmra.mrb[36].mxu1 %vm2071_vm0, %v16067_v44  ;;  %v16102_v38 = vld [vmem:[%s23856_s0 + $0x198] sm:$0xff]  }
  0x53   :  { %14135 = vmatprep.mubr.msk.bf16.mxu0 %vm2071_vm0, %v16040_v39  ;;  %14603 = vmatprep.mubr.msk.bf16.mxu1 %vm2071_vm0, %v16069_v45  ;;  %v16104_v39 = vld [vmem:[%s23856_s0 + $0x1a0] sm:$0xff]   ;;  %v16110_v45 = vld [vmem:[%s23856_s0 + $0x1b8] sm:$0xff]  }
  0x5a   :  { %14136 = vmatmul.mubr.msk.bf16.gmra.mrb[40].mxu0 %vm2071_vm0, %v16042_v42  ;;  %14604 = vmatmul.mubr.msk.bf16.gmra.mrb[40].mxu1 %vm2071_vm0, %v16071_v48  ;;  %v16108_v42 = vld [vmem:[%s23856_s0 + $0x1b0] sm:$0xff]  }
  0x5b   :  { %14139 = vmatprep.mubr.msk.bf16.mxu0 %vm2071_vm0, %v16044_v43  ;;  %14607 = vmatprep.mubr.msk.bf16.mxu1 %vm2071_vm0, %v16073_v49 }
  0x62   :  { %14140 = vmatmul.mubr.msk.bf16.gmra.mrb[44].mxu0 %vm2071_vm0, %v16046_v46  ;;  %14608 = vmatmul.mubr.msk.bf16.gmra.mrb[44].mxu1 %vm2071_vm0, %v16075_v52 }
  0x63   :  { %14143 = vmatprep.mubr.msk.bf16.mxu0 %vm2071_vm0, %v16048_v47  ;;  %14611 = vmatprep.mubr.msk.bf16.mxu1 %vm2071_vm0, %v16077_v53  ;;  %v16112_v47 = vld [vmem:[%s23856_s0 + $0x1c0] sm:$0xff]   ;;  %v16116_v53 = vld [vmem:[%s23856_s0 + $0x1d0] sm:$0xff]  }
  0x6a   :  { %14144 = vmatmul.mubr.msk.bf16.gmra.mrb[48].mxu0 %vm2071_vm0, %v16050_v50  ;;  %14612 = vmatmul.mubr.msk.bf16.gmra.mrb[48].mxu1 %vm2071_vm0, %v16079_v56 }
  0x6b   :  { %14147 = vmatprep.mubr.msk.bf16.mxu0 %vm2071_vm0, %v16052_v51  ;;  %14615 = vmatprep.mubr.msk.bf16.mxu1 %vm2071_vm0, %v16081_v57  ;;  %v16114_v51 = vld [vmem:[%s23856_s0 + $0x1c8] sm:$0xff]   ;;  %v16118_v57 = vld [vmem:[%s23856_s0 + $0x1d8] sm:$0xff]  }
  0x72   :  { %14148 = vmatmul.mubr.msk.bf16.gmra.mrb[52].mxu0 %vm2071_vm0, %v16054_v54  ;;  %14616 = vmatmul.mubr.msk.bf16.gmra.mrb[52].mxu1 %vm2071_vm0, %v16083_v60 }
  0x73   :  { %14151 = vmatprep.mubr.msk.bf16.mxu0 %vm2071_vm0, %v16056_v55  ;;  %14619 = vmatprep.mubr.msk.bf16.mxu1 %vm2071_vm0, %v16085_v61 }
  0x7a   :  { %14152 = vmatmul.mubr.msk.bf16.gmra.mrb[56].mxu0 %vm2071_vm0, %v16058_v58  ;;  %14620 = vmatmul.mubr.msk.bf16.gmra.mrb[56].mxu1 %vm2071_vm0, %v16087_v0 }
  0x7b   :  { %14155 = vmatprep.mubr.msk.bf16.mxu0 %vm2071_vm0, %v16060_v59  ;;  %14623 = vmatprep.mubr.msk.bf16.mxu1 %vm2071_vm0, %v16089_v1  ;;  %v16120_v59 = vld [vmem:[%s23856_s0 + $0x1e0] sm:$0xff]   ;;  %v16124_v1 = vld [vmem:[%s23856_s0 + $0x1f0] sm:$0xff]  }
  0x82   :  { %14156 = vmatmul.mubr.msk.bf16.gmra.mrb[60].mxu0 %vm2071_vm0, %v16062_v62  ;;  %14624 = vmatmul.mubr.msk.bf16.gmra.mrb[60].mxu1 %vm2071_vm0, %v16091_v4 }
  0x83   :  { %14159 = vmatprep.mubr.msk.bf16.mxu0 %vm2071_vm0, %v16064_v63  ;;  %14627 = vmatprep.mubr.msk.bf16.mxu1 %vm2071_vm0, %v16093_v5  ;;  %v16122_v63 = vld [vmem:[%s23856_s0 + $0x1e8] sm:$0xff]  }
  0x8a   :  { %14160 = vmatmul.mubr.msk.bf16.gmra.mrb[64].mxu0 %vm2071_vm0, %v16066_v2  ;;  %14628 = vmatmul.mubr.msk.bf16.gmra.mrb[64].mxu1 %vm2071_vm0, %v16095_v8 }
  0x8b   :  { %14163 = vmatprep.mubr.msk.bf16.mxu0 %vm2071_vm0, %v16068_v3  ;;  %14631 = vmatprep.mubr.msk.bf16.mxu1 %vm2071_vm0, %v16097_v9  ;;  %v16126_v9 = vld [vmem:[%s23856_s0 + $0x1f8] sm:$0xff]  }
  0x92   :  { %14164 = vmatmul.mubr.msk.bf16.gmra.mrb[68].mxu0 %vm2071_vm0, %v16070_v6  ;;  %14632 = vmatmul.mubr.msk.bf16.gmra.mrb[68].mxu1 %vm2071_vm0, %v16099_v12  ;;  %v16128_v12 = vld [vmem:[%s23856_s0 + $0x200] sm:$0xff]  }
  0x93   :  { %14167 = vmatprep.mubr.msk.bf16.mxu0 %vm2071_vm0, %v16072_v7  ;;  %14635 = vmatprep.mubr.msk.bf16.mxu1 %vm2071_vm0, %v16101_v13  ;;  %v16135_v7 = vld [vmem:[%s23856_s0 + $0x238] sm:$0xff]  }
  0x9a   :  { %14168 = vmatmul.mubr.msk.bf16.gmra.mrb[72].mxu0 %vm2071_vm0, %v16074_v10  ;;  %14636 = vmatmul.mubr.msk.bf16.gmra.mrb[72].mxu1 %vm2071_vm0, %v16103_v16 }
  0x9b   :  { %14171 = vmatprep.mubr.msk.bf16.mxu0 %vm2071_vm0, %v16076_v11  ;;  %14639 = vmatprep.mubr.msk.bf16.mxu1 %vm2071_vm0, %v16105_v17 }
  0xa2   :  { %14172 = vmatmul.mubr.msk.bf16.gmra.mrb[76].mxu0 %vm2071_vm0, %v16078_v14  ;;  %14640 = vmatmul.mubr.msk.bf16.gmra.mrb[76].mxu1 %vm2071_vm0, %v16107_v20 }
  0xa3   :  { %14175 = vmatprep.mubr.msk.bf16.mxu0 %vm2071_vm0, %v16080_v15  ;;  %14643 = vmatprep.mubr.msk.bf16.mxu1 %vm2071_vm0, %v16109_v21 }
  0xaa   :  { %14176 = vmatmul.mubr.msk.bf16.gmra.mrb[80].mxu0 %vm2071_vm0, %v16082_v18  ;;  %14644 = vmatmul.mubr.msk.bf16.gmra.mrb[80].mxu1 %vm2071_vm0, %v16111_v24 }
  0xab   :  { %14179 = vmatprep.mubr.msk.bf16.mxu0 %vm2071_vm0, %v16084_v19  ;;  %14647 = vmatprep.mubr.msk.bf16.mxu1 %vm2071_vm0, %v16113_v25  ;;  %v16129_v25 = vld [vmem:[%s23856_s0 + $0x208] sm:$0xff]  }
  0xb2   :  { %14180 = vmatmul.mubr.msk.bf16.gmra.mrb[84].mxu0 %vm2071_vm0, %v16086_v22  ;;  %14648 = vmatmul.mubr.msk.bf16.gmra.mrb[84].mxu1 %vm2071_vm0, %v16115_v28 }
  0xb3   :  { %14183 = vmatprep.mubr.msk.bf16.mxu0 %vm2071_vm0, %v16088_v23  ;;  %14651 = vmatprep.mubr.msk.bf16.mxu1 %vm2071_vm0, %v16117_v29  ;;  %v16130_v29 = vld [vmem:[%s23856_s0 + $0x210] sm:$0xff]   ;;  %v16136_v23 = vld [vmem:[%s23856_s0 + $0x240] sm:$0xff]  }
  0xba   :  { %14184 = vmatmul.mubr.msk.bf16.gmra.mrb[88].mxu0 %vm2071_vm0, %v16090_v26  ;;  %14652 = vmatmul.mubr.msk.bf16.gmra.mrb[88].mxu1 %vm2071_vm0, %v16119_v32 }
  0xbb   :  { %14187 = vmatprep.mubr.msk.bf16.mxu0 %vm2071_vm0, %v16092_v27  ;;  %14655 = vmatprep.mubr.msk.bf16.mxu1 %vm2071_vm0, %v16121_v33 }
  0xc2   :  { %14188 = vmatmul.mubr.msk.bf16.gmra.mrb[92].mxu0 %vm2071_vm0, %v16094_v30  ;;  %14656 = vmatmul.mubr.msk.bf16.gmra.mrb[92].mxu1 %vm2071_vm0, %v16123_v36 }
  0xc3   :  { %14191 = vmatprep.mubr.msk.bf16.mxu0 %vm2071_vm0, %v16096_v31  ;;  %14659 = vmatprep.mubr.msk.bf16.mxu1 %vm2071_vm0, %v16125_v37 }
  0xca   :  { %14192 = vmatmul.mubr.msk.bf16.gmra.mrb[96].mxu0 %vm2071_vm0, %v16098_v34  ;;  %14660 = vmatmul.mubr.msk.bf16.gmra.mrb[96].mxu1 %vm2071_vm0, %v16127_v40 }
  0xcb   :  { %14195 = vmatprep.mubr.msk.bf16.mxu0 %vm2071_vm0, %v16100_v35 }
  0xd2   :  { %14196 = vmatmul.mubr.msk.bf16.gmra.mrb[100].mxu0 %vm2071_vm0, %v16102_v38  ;;  %v16133_v38 = vld [vmem:[%s23856_s0 + $0x228] sm:$0xff]  }
  0xd3   :  { %14199 = vmatprep.mubr.msk.bf16.mxu0 %vm2071_vm0, %v16104_v39 }
  0xda   :  { %14200 = vmatmul.mubr.msk.bf16.gmra.mrb[104].mxu0 %vm2071_vm0, %v16106_v41 }
  0xdb   :  { %14203 = vmatprep.mubr.msk.bf16.mxu0 %vm2071_vm0, %v16108_v42 }
  0xdd   :  { %v16854_v43 = vpop.f32.mrb[0].mxu0  ;;  %v16916_v3 = vpop.f32.mrb[0].mxu1 }
  0xde   :  { %v16856_v44 = vpop.f32.mrb[1].mxu0  ;;  %24188 = vst [vmem:[#allocation4_spill] sm:$0xff] %v16916_v3  ;;  %v16919_v4 = vpop.f32.mrb[1].mxu1 }
  0xdf   :  { %v16861_v46 = vpop.f32.mrb[2].mxu0  ;;  %24189 = vst [vmem:[#allocation5_spill] sm:$0xff] %v16919_v4  ;;  %v16922_v5 = vpop.f32.mrb[2].mxu1 }
  0xe0   :  { %v16866_v48 = vpop.f32.mrb[3].mxu0  ;;  %24190 = vst [vmem:[#allocation6_spill] sm:$0xff] %v16922_v5  ;;  %v16933_v10 = vpop.f32.mrb[3].mxu1 }
  0xe1   :  { %24191 = vst [vmem:[#allocation7_spill] sm:$0xff] %v16933_v10 }
  0xe2   :  { %14204 = vmatmul.mubr.msk.bf16.gmra.mrb[108].mxu0 %vm2071_vm0, %v16110_v45 }
  0xe3   :  { %14207 = vmatprep.mubr.msk.bf16.mxu0 %vm2071_vm0, %v16112_v47  ;;  %v16131_v47 = vld [vmem:[%s23856_s0 + $0x218] sm:$0xff]  }
  0xe5   :  { %v16870_v49 = vpop.f32.mrb[4].mxu0  ;;  %v16940_v13 = vpop.f32.mrb[4].mxu1 }
  0xe6   :  { %v16872_v50 = vpop.f32.mrb[5].mxu0  ;;  %24192 = vst [vmem:[#allocation8_spill] sm:$0xff] %v16940_v13  ;;  %v16946_v16 = vpop.f32.mrb[5].mxu1 }
  0xe7   :  { %v16877_v52 = vpop.f32.mrb[6].mxu0  ;;  %24193 = vst [vmem:[#allocation9_spill] sm:$0xff] %v16946_v16  ;;  %v16948_v17 = vpop.f32.mrb[6].mxu1 }
  0xe8   :  { %v16882_v54 = vpop.f32.mrb[7].mxu0  ;;  %24194 = vst [vmem:[#allocation10_spill] sm:$0xff] %v16948_v17  ;;  %v16951_v18 = vpop.f32.mrb[7].mxu1 }
  0xe9   :  { %24195 = vst [vmem:[#allocation11_spill] sm:$0xff] %v16951_v18 }
  0xea   :  { %14208 = vmatmul.mubr.msk.bf16.gmra.mrb[112].mxu0 %vm2071_vm0, %v16114_v51 }
  0xeb   :  { %14211 = vmatprep.mubr.msk.bf16.mxu0 %vm2071_vm0, %v16116_v53 }
  0xed   :  { %v16886_v55 = vpop.f32.mrb[8].mxu0  ;;  %v16954_v19 = vpop.f32.mrb[8].mxu1 }
  0xee   :  { %v16888_v56 = vpop.f32.mrb[9].mxu0  ;;  %24196 = vst [vmem:[#allocation12_spill] sm:$0xff] %v16954_v19  ;;  %v16956_v20 = vpop.f32.mrb[9].mxu1 }
  0xef   :  { %v16893_v58 = vpop.f32.mrb[10].mxu0  ;;  %24197 = vst [vmem:[#allocation13_spill] sm:$0xff] %v16956_v20  ;;  %v16960_v22 = vpop.f32.mrb[10].mxu1 }
  0xf0   :  { %v16898_v60 = vpop.f32.mrb[11].mxu0  ;;  %24198 = vst [vmem:[#allocation14_spill] sm:$0xff] %v16960_v22  ;;  %v16969_v26 = vpop.f32.mrb[11].mxu1 }
  0xf1   :  { %24199 = vst [vmem:[#allocation15_spill] sm:$0xff] %v16969_v26 }
  0xf2   :  { %14212 = vmatmul.mubr.msk.bf16.gmra.mrb[116].mxu0 %vm2071_vm0, %v16118_v57 }
  0xf3   :  { %14215 = vmatprep.mubr.msk.bf16.mxu0 %vm2071_vm0, %v16120_v59 }
  0xf5   :  { %v16902_v61 = vpop.f32.mrb[12].mxu0  ;;  %v16978_v30 = vpop.f32.mrb[12].mxu1 }
  0xf6   :  { %v16904_v62 = vpop.f32.mrb[13].mxu0  ;;  %24200 = vst [vmem:[#allocation16_spill] sm:$0xff] %v16978_v30  ;;  %v16984_v33 = vpop.f32.mrb[13].mxu1  ;;  %v16141_v30 = vld [vmem:[%s23856_s0 + $0x268] sm:$0xff]  }
  0xf7   :  { %v16909_v0 = vpop.f32.mrb[14].mxu0  ;;  %24201 = vst [vmem:[#allocation17_spill] sm:$0xff] %v16984_v33  ;;  %v16988_v35 = vpop.f32.mrb[14].mxu1 }
  0xf8   :  { %24187 = vst [vmem:[#allocation3_spill] sm:$0xff] %v16909_v0  ;;  %v16914_v2 = vpop.f32.mrb[15].mxu0  ;;  %24202 = vst [vmem:[#allocation18_spill] sm:$0xff] %v16988_v35  ;;  %v16991_v36 = vpop.f32.mrb[15].mxu1 }
  0xf9   :  { %24203 = vst [vmem:[#allocation19_spill] sm:$0xff] %v16991_v36 }
  0xfa   :  { %14216 = vmatmul.mubr.msk.bf16.gmra.mrb[120].mxu0 %vm2071_vm0, %v16122_v63  ;;  %v16132_v63 = vld [vmem:[%s23856_s0 + $0x220] sm:$0xff]  }
  0xfb   :  { %14219 = vmatprep.mubr.msk.bf16.mxu0 %vm2071_vm0, %v16124_v1 }
  0xfd   :  { %v16924_v6 = vpop.f32.mrb[16].mxu0  ;;  %v16994_v37 = vpop.f32.mrb[16].mxu1 }
  0xfe   :  { %v16928_v8 = vpop.f32.mrb[17].mxu0  ;;  %24204 = vst [vmem:[#allocation20_spill] sm:$0xff] %v16994_v37  ;;  %v16998_v39 = vpop.f32.mrb[17].mxu1 }
  0xff   :  { %v16935_v11 = vpop.f32.mrb[18].mxu0  ;;  %24205 = vst [vmem:[#allocation21_spill] sm:$0xff] %v16998_v39  ;;  %v17002_v41 = vpop.f32.mrb[18].mxu1 }
 0x100   :  { %v16944_v15 = vpop.f32.mrb[19].mxu0  ;;  %24206 = vst [vmem:[#allocation22_spill] sm:$0xff] %v17002_v41  ;;  %v17013_v53 = vpop.f32.mrb[19].mxu1  ;;  %v16143_v41 = vld [vmem:[%s23856_s0 + $0x278] sm:$0xff]  }
 0x101   :  { %24207 = vst [vmem:[#allocation23_spill] sm:$0xff] %v17013_v53 }
 0x102   :  { %14220 = vmatmul.mubr.msk.bf16.gmra.mrb[124].mxu0 %vm2071_vm0, %v16126_v9 }
 0x103   :  { %14223 = vmatprep.mubr.msk.bf16.mxu0 %vm2071_vm0, %v16128_v12 }
 0x105   :  { %v16958_v21 = vpop.f32.mrb[20].mxu0  ;;  %v17026_v12 = vpop.f32.mrb[20].mxu1 }
 0x106   :  { %v16964_v24 = vpop.f32.mrb[21].mxu0  ;;  %24208 = vst [vmem:[#allocation24_spill] sm:$0xff] %v17026_v12  ;;  %v17032_v51 = vpop.f32.mrb[21].mxu1 }
 0x107   :  { %v16973_v28 = vpop.f32.mrb[22].mxu0  ;;  %24209 = vst [vmem:[#allocation25_spill] sm:$0xff] %v17032_v51  ;;  %v17037_v57 = vpop.f32.mrb[22].mxu1 }
 0x108   :  { %v16982_v32 = vpop.f32.mrb[23].mxu0  ;;  %24210 = vst [vmem:[#allocation26_spill] sm:$0xff] %v17037_v57  ;;  %v17042_v42 = vpop.f32.mrb[23].mxu1 }
 0x109   :  { %24211 = vst [vmem:[#allocation27_spill] sm:$0xff] %v17042_v42 }
 0x10a   :  { %14224 = vmatmul.mubr.msk.bf16.gmra.mrb[128].mxu0 %vm2071_vm0, %v16129_v25  ;;  %v16134_v25 = vld [vmem:[%s23856_s0 + $0x230] sm:$0xff]  }
 0x10b   :  { %14227 = vmatprep.mubr.msk.bf16.mxu0 %vm2071_vm0, %v16130_v29 }
 0x10d   :  { %v17000_v40 = vpop.f32.mrb[24].mxu0 }
 0x10e   :  { %v17006_v45 = vpop.f32.mrb[25].mxu0 }
 0x10f   :  { %v17017_v59 = vpop.f32.mrb[26].mxu0 }
 0x110   :  { %v17024_v9 = vpop.f32.mrb[27].mxu0 }
 0x112   :  { %14228 = vmatmul.mubr.msk.bf16.gmra.mrb[132].mxu0 %vm2071_vm0, %v16131_v47  ;;  %v17066_v47 = vpop.f32.mrb[24].mxu1 }
 0x113   :  { %14231 = vmatprep.mubr.msk.bf16.mxu0 %vm2071_vm0, %v16132_v63  ;;  %24212 = vst [vmem:[#allocation28_spill] sm:$0xff] %v17066_v47  ;;  %v17072_v63 = vpop.f32.mrb[25].mxu1 }
 0x114   :  { %24213 = vst [vmem:[#allocation29_spill] sm:$0xff] %v17072_v63  ;;  %v17077_v42 = vpop.f32.mrb[26].mxu1 }
 0x115   :  { %v17046_v29 = vpop.f32.mrb[28].mxu0  ;;  %24214 = vst [vmem:[#allocation30_spill] sm:$0xff] %v17077_v42  ;;  %v17082_v5 = vpop.f32.mrb[27].mxu1 }
 0x116   :  { %v17050_v34 = vpop.f32.mrb[29].mxu0  ;;  %24215 = vst [vmem:[#allocation31_spill] sm:$0xff] %v17082_v5 }
 0x117   :  { %v17057_v1 = vpop.f32.mrb[30].mxu0 }
 0x118   :  { %v17064_v27 = vpop.f32.mrb[31].mxu0 }
 0x11a   :  { %14232 = vmatmul.mubr.msk.bf16.gmra.mrb[136].mxu0 %vm2071_vm0, %v16133_v38  ;;  %v17106_v38 = vpop.f32.mrb[28].mxu1 }
 0x11b   :  { %14235 = vmatprep.mubr.msk.bf16.mxu0 %vm2071_vm0, %v16134_v25  ;;  %24218 = vst [vmem:[#allocation34_spill] sm:$0xff] %v17106_v38  ;;  %v17112_v25 = vpop.f32.mrb[29].mxu1 }
 0x11c   :  { %24219 = vst [vmem:[#allocation35_spill] sm:$0xff] %v17112_v25  ;;  %v17117_v13 = vpop.f32.mrb[30].mxu1 }
 0x11d   :  { %v17086_v14 = vpop.f32.mrb[32].mxu0  ;;  %24220 = vst [vmem:[#allocation36_spill] sm:$0xff] %v17117_v13  ;;  %v17122_v20 = vpop.f32.mrb[31].mxu1 }
 0x11e   :  { %v17090_v47 = vpop.f32.mrb[33].mxu0  ;;  %24221 = vst [vmem:[#allocation37_spill] sm:$0xff] %v17122_v20  ;;  %v17136_v5 = vpop.f32.mrb[32].mxu1 }
 0x11f   :  { %v17097_v31 = vpop.f32.mrb[34].mxu0  ;;  %24222 = vst [vmem:[#allocation38_spill] sm:$0xff] %v17136_v5  ;;  %v17140_v42 = vpop.f32.mrb[33].mxu1 }
 0x120   :  { %24216 = vst [vmem:[#allocation32_spill] sm:$0xff] %v17097_v31  ;;  %v17104_v17 = vpop.f32.mrb[35].mxu0  ;;  %24223 = vst [vmem:[#allocation39_spill] sm:$0xff] %v17140_v42  ;;  %v17145_v22 = vpop.f32.mrb[34].mxu1 }
 0x121   :  { %24217 = vst [vmem:[#allocation33_spill] sm:$0xff] %v17104_v17  ;;  %24224 = vst [vmem:[#allocation40_spill] sm:$0xff] %v17145_v22  ;;  %v17150_v19 = vpop.f32.mrb[35].mxu1 }
 0x122   :  { %14236 = vmatmul.mubr.msk.bf16.gmra.mrb[140].mxu0 %vm2071_vm0, %v16135_v7  ;;  %v16137_v7 = vld [vmem:[%s23856_s0 + $0x248] sm:$0xff]   ;;  %24225 = vst [vmem:[#allocation41_spill] sm:$0xff] %v17150_v19 }
 0x123   :  { %14239 = vmatprep.mubr.msk.bf16.mxu0 %vm2071_vm0, %v16136_v23  ;;  %v16138_v23 = vld [vmem:[%s23856_s0 + $0x250] sm:$0xff]  }
 0x125   :  { %v17126_v26 = vpop.f32.mrb[36].mxu0  ;;  %v17166_v36 = vpop.f32.mrb[36].mxu1 }
 0x126   :  { %v3114_v38 = vpop.f32.mrb[37].mxu0  ;;  %24226 = vst [vmem:[#allocation42_spill] sm:$0xff] %v17166_v36  ;;  %v17168_v22 = vpop.f32.mrb[37].mxu1 }
 0x127   :  { %v17131_v63 = vpop.f32.mrb[38].mxu0  ;;  %v17171_v33 = vpop.f32.mrb[38].mxu1 }
 0x128   :  { %v3117_v25 = vpop.f32.mrb[39].mxu0  ;;  %24227 = vst [vmem:[#allocation43_spill] sm:$0xff] %v17171_v33  ;;  %v17174_v19 = vpop.f32.mrb[39].mxu1 }
 0x12a   :  { %14240 = vmatmul.mubr.msk.bf16.gmra.mrb[144].mxu0 %vm2071_vm0, %v16137_v7  ;;  %v16139_v7 = vld [vmem:[%s23856_s0 + $0x258] sm:$0xff]  }
 0x12b   :  { %14243 = vmatprep.mubr.msk.bf16.mxu0 %vm2071_vm0, %v16138_v23  ;;  %v16140_v23 = vld [vmem:[%s23856_s0 + $0x260] sm:$0xff]  }
 0x12d   :  { %v17154_v13 = vpop.f32.mrb[40].mxu0  ;;  %v17190_v18 = vpop.f32.mrb[40].mxu1 }
 0x12e   :  { %v3130_v5 = vpop.f32.mrb[41].mxu0  ;;  %24228 = vst [vmem:[#allocation44_spill] sm:$0xff] %v17190_v18 }
 0x12f   :  { %v17159_v20 = vpop.f32.mrb[42].mxu0 }
 0x130   :  { %v17164_v42 = vpop.f32.mrb[43].mxu0 }
 0x132   :  { %14244 = vmatmul.mubr.msk.bf16.gmra.mrb[148].mxu0 %vm2071_vm0, %v16139_v7  ;;  %v16142_v7 = vld [vmem:[%s23856_s0 + $0x270] sm:$0xff]  }
 0x133   :  { %14247 = vmatprep.mubr.msk.bf16.mxu0 %vm2071_vm0, %v16140_v23  ;;  %v17192_v23 = vpop.f32.mrb[41].mxu1 }
 0x134   :  { %24229 = vst [vmem:[#allocation45_spill] sm:$0xff] %v17192_v23  ;;  %v17195_v51 = vpop.f32.mrb[42].mxu1  ;;  %v16145_v23 = vld [vmem:[%s23856_s0 + $0x288] sm:$0xff]  }
 0x135   :  { %v17176_v35 = vpop.f32.mrb[44].mxu0  ;;  %24230 = vst [vmem:[#allocation46_spill] sm:$0xff] %v17195_v51  ;;  %v17198_v3 = vpop.f32.mrb[43].mxu1 }
 0x136   :  { %v17178_v53 = vpop.f32.mrb[45].mxu0  ;;  %24231 = vst [vmem:[#allocation47_spill] sm:$0xff] %v17198_v3  ;;  %v17214_v4 = vpop.f32.mrb[44].mxu1 }
 0x137   :  { %v17183_v39 = vpop.f32.mrb[46].mxu0  ;;  %24233 = vst [vmem:[#allocation49_spill] sm:$0xff] %v17214_v4  ;;  %v16146_v4 = vld [vmem:[%s23856_s0 + $0x290] sm:$0xff]  }
 0x138   :  { %v17188_v57 = vpop.f32.mrb[47].mxu0 }
 0x13a   :  { %14248 = vmatmul.mubr.msk.bf16.gmra.mrb[152].mxu0 %vm2071_vm0, %v16141_v30  ;;  %v16144_v30 = vld [vmem:[%s23856_s0 + $0x280] sm:$0xff]  }
 0x13b   :  { %14251 = vmatprep.mubr.msk.bf16.mxu0 %vm2071_vm0, %v16142_v7  ;;  %v17216_v7 = vpop.f32.mrb[45].mxu1 }
 0x13c   :  { %24234 = vst [vmem:[#allocation50_spill] sm:$0xff] %v17216_v7  ;;  %v17219_v51 = vpop.f32.mrb[46].mxu1 }
 0x13d   :  { %v17200_v12 = vpop.f32.mrb[48].mxu0  ;;  %24235 = vst [vmem:[#allocation51_spill] sm:$0xff] %v17219_v51  ;;  %v17222_v18 = vpop.f32.mrb[47].mxu1 }
 0x13e   :  { %v17202_v16 = vpop.f32.mrb[49].mxu0  ;;  %24236 = vst [vmem:[#allocation52_spill] sm:$0xff] %v17222_v18  ;;  %v17237_v18 = vpop.f32.mrb[48].mxu1 }
 0x13f   :  { %v17207_v10 = vpop.f32.mrb[50].mxu0  ;;  %24238 = vst [vmem:[#allocation53_spill] sm:$0xff] %v17237_v18 }
 0x140   :  { %24232 = vst [vmem:[#allocation48_spill] sm:$0xff] %v17207_v10  ;;  %v17212_v37 = vpop.f32.mrb[51].mxu0 }
 0x142   :  { %14252 = vmatmul.mubr.msk.bf16.gmra.mrb[156].mxu0 %vm2071_vm0, %v16143_v41  ;;  %v24237_v41 = vmax.f32 %v16856_v44, %v16924_v6  ;;  %v17253_v44 = vld [vmem:[%s23857_s2] ss:$0 sm:$0xff] }
 0x143   :  { %14255 = vmatprep.mubr.msk.bf16.mxu0 %vm2071_vm0, %v16144_v30  ;;  %24243 = vst [vmem:[#allocation57_spill] sm:$0xff] %v17253_v44 }
 0x145   :  { %v14149_v33 = vpop.f32.mrb[52].mxu0 }
 0x146   :  { %v5417_v3 = vmax.f32 %v3114_v38, %v14149_v33  ;;  %v17224_v36 = vpop.f32.mrb[53].mxu0  ;;  %v17239_v33 = vpop.f32.mrb[49].mxu1  ;;  %v24240_v38 = vmax.f32 %v16866_v48, %v16935_v11  ;;  %v16147_v48 = vld [vmem:[%s23856_s0 + $0x298] sm:$0xff]  }
 0x147   :  { %v14150_v17 = vpop.f32.mrb[54].mxu0  ;;  %24239 = vst [vmem:[#allocation54_spill] sm:$0xff] %v17239_v33  ;;  %v17245_v10 = vpop.f32.mrb[50].mxu1 }
 0x148   :  { %v5561_v51 = vmax.f32 %v24237_v41, %v5417_v3  ;;  %v5418_v30 = vmax.f32 %v3117_v25, %v14150_v17  ;;  %v17235_v7 = vpop.f32.mrb[55].mxu0  ;;  %24241 = vst [vmem:[#allocation55_spill] sm:$0xff] %v17245_v10  ;;  %v17248_v31 = vpop.f32.mrb[51].mxu1  ;;  %v24244_v41 = vmax.f32 %v16872_v50, %v16958_v21  ;;  %v24246_v10 = vmax.f32 %v16854_v43, %v16964_v24 }
 0x149   :  { %24242 = vst [vmem:[#allocation56_spill] sm:$0xff] %v17248_v31  ;;  %v24248_v21 = vmax.f32 %v16882_v54, %v16973_v28 }
 0x14a   :  { %v5562_v0 = vmax.f32 %v24240_v38, %v5418_v30  ;;  %14256 = vmatmul.mubr.msk.bf16.gmra.mrb[160].mxu0 %vm2071_vm0, %v16145_v23 }
 0x14b   :  { %14259 = vmatprep.mubr.msk.bf16.mxu0 %vm2071_vm0, %v16146_v4  ;;  %v16148_v4 = vld [vmem:[%s23856_s0 + $0x2a0] sm:$0xff]  }
 0x14c   :  { %v5713_v3 = vadd.f32 %v17253_v44, %v5562_v0 }
 0x14d   :  { %v14153_v6 = vpop.f32.mrb[56].mxu0 }
 0x14e   :  { %v5421_v17 = vmax.f32 %v3130_v5, %v14153_v6  ;;  %v3194_v25 = vpop.f32.mrb[57].mxu0  ;;  %v17267_v5 = vpop.f32.mrb[52].mxu1  ;;  %v17269_v6 = vmax.f32 %v5713_v3, 0.0 }
 0x14f   :  { %v5419_v11 = vmax.f32 %v17126_v26, %v3194_v25  ;;  %v14154_v23 = vpop.f32.mrb[58].mxu0  ;;  %v17277_v31 = vpop.f32.mrb[53].mxu1 }
 0x150   :  { %v5565_v30 = vmax.f32 %v24244_v41, %v5421_v17  ;;  %v5422_v0 = vmax.f32 %v17164_v42, %v14154_v23  ;;  %v3197_v38 = vpop.f32.mrb[59].mxu0  ;;  %24245 = vst [vmem:[#allocation58_spill] sm:$0xff] %v17269_v6  ;;  %24247 = vst [vmem:[#allocation59_spill] sm:$0xff] %v17277_v31  ;;  %v17284_v3 = vpop.f32.mrb[54].mxu1  ;;  %v6145_v41 = vcombine.high %v17269_v6, %v17269_v6 }
 0x151   :  { %v5563_v26 = vmax.f32 %v24246_v10, %v5419_v11  ;;  %v5420_v25 = vmax.f32 %v17131_v63, %v3197_v38  ;;  %24249 = vst [vmem:[#allocation60_spill] sm:$0xff] %v17284_v3  ;;  %v24250_v10 = vmax.f32 %v16861_v46, %v16982_v32  ;;  %v17293_v17 = vpop.f32.mrb[55].mxu1 }
 0x152   :  { %v5716_v50 = vadd.f32 %v17253_v44, %v5565_v30  ;;  %v5566_v42 = vmax.f32 %v24248_v21, %v5422_v0  ;;  %14260 = vmatmul.mubr.msk.bf16.gmra.mrb[164].mxu0 %vm2071_vm0, %v16147_v48  ;;  %24251 = vst [vmem:[#allocation61_spill] sm:$0xff] %v17293_v17  ;;  %v16149_v0 = vld [vmem:[%s23856_s0 + $0x2a8] sm:$0xff]   ;;  %v16166_v17 = vld [vmem:[%s23856_s0 + $0x330] sm:$0xff]  }
 0x153   :  { %v5714_v43 = vadd.f32 %v17253_v44, %v5563_v26  ;;  %v5564_v24 = vmax.f32 %v24250_v10, %v5420_v25  ;;  %14263 = vmatprep.mubr.msk.bf16.mxu0 %vm2071_vm0, %v16148_v4  ;;  %v24254_v10 = vmax.f32 %v16888_v56, %v17000_v40  ;;  %v24256_v40 = vmax.f32 %v16898_v60, %v17017_v59 }
 0x154   :  { %v17295_v11 = vmax.f32 %v5716_v50, 0.0  ;;  %v5717_v54 = vadd.f32 %v17253_v44, %v5566_v42  ;;  %v16150_v42 = vld [vmem:[%s23856_s0 + $0x2b0] sm:$0xff]  }
 0x155   :  { %v5715_v28 = vadd.f32 %v17253_v44, %v5564_v24  ;;  %v14157_v48 = vpop.f32.mrb[60].mxu0  ;;  %v5858_v23 = vmax.f32 %v5714_v43, 0.0 }
 0x156   :  { %v17301_v46 = vmax.f32 %v5717_v54, 0.0  ;;  %v6148_v32 = vcombine.high %v17295_v11, %v17295_v11  ;;  %v5425_v4 = vmax.f32 %v17178_v53, %v14157_v48  ;;  %v3210_v30 = vpop.f32.mrb[61].mxu0  ;;  %v5712_v53 = vadd.f32 %v17253_v44, %v5561_v51 }
 0x157   :  { %v5423_v38 = vmax.f32 %v17154_v13, %v3210_v30  ;;  %v14158_v26 = vpop.f32.mrb[62].mxu0  ;;  %v5859_v25 = vmax.f32 %v5715_v28, 0.0  ;;  %v17310_v50 = vcombine.high %v5858_v23, %v5858_v23  ;;  %v17312_v21 = vcombine.low %v6145_v41, %v5858_v23  ;;  %v17325_v28 = vpop.f32.mrb[56].mxu1 }
 0x158   :  { %v17319_v43 = vcombine.low %v6148_v32, %v17301_v46  ;;  %v5569_v24 = vmax.f32 %v24254_v10, %v5425_v4  ;;  %v5426_v13 = vmax.f32 %v17188_v57, %v14158_v26  ;;  %v3213_v54 = vpop.f32.mrb[63].mxu0  ;;  %v24255_v48 = vmax.f32 %v16870_v49, %v17006_v45  ;;  %v17332_v32 = vpop.f32.mrb[57].mxu1 }
 0x159   :  { %24252 = vst [vmem:[#allocation62_spill] sm:$0xff] %v17312_v21  ;;  %v5424_v30 = vmax.f32 %v17159_v20, %v3213_v54  ;;  %v6147_v63 = vcombine.high %v5859_v25, %v5859_v25  ;;  %v8212_v51 = vcombine.low %v5858_v23, %v17310_v50  ;;  %v7061_v4 = vrot.slane %v17312_v21, 2  ;;  %v17341_v45 = vpop.f32.mrb[58].mxu1 }
 0x15a   :  { %24253 = vst [vmem:[#allocation63_spill] sm:$0xff] %v17319_v43  ;;  %v5567_v41 = vmax.f32 %v24255_v48, %v5423_v38  ;;  %v5720_v56 = vadd.f32 %v17253_v44, %v5569_v24  ;;  %v5570_v57 = vmax.f32 %v24256_v40, %v5426_v13  ;;  %14264 = vmatmul.mubr.msk.bf16.gmra.mrb[168].mxu0 %vm2071_vm0, %v16149_v0  ;;  %v7062_v49 = vrot.slane %v17310_v50, 2  ;;  %v17351_v60 = vpop.f32.mrb[59].mxu1 }
 0x15b   :  { %v24257_v23 = vmax.f32 %v16877_v52, %v17024_v9  ;;  %v8213_v26 = vcombine.low %v6147_v63, %v17295_v11  ;;  %v17348_v10 = vcombine.low %v5859_v25, %v6147_v63  ;;  %14267 = vmatprep.mubr.msk.bf16.mxu0 %vm2071_vm0, %v16150_v42  ;;  %v17353_v59 = vmax.f32 %v5712_v53, 0.0 }
 0x15c   :  { %v5718_v20 = vadd.f32 %v17253_v44, %v5567_v41  ;;  %v17357_v0 = vcombine.high %v17301_v46, %v17301_v46  ;;  %v17359_v24 = vmax.f32 %v5720_v56, 0.0  ;;  %v7065_v13 = vrot.slane %v17295_v11, 2  ;;  %v16151_v41 = vld [vmem:[%s23856_s0 + $0x2b8] sm:$0xff]  }
 0x15d   :  { %v5568_v38 = vmax.f32 %v24257_v23, %v5424_v30  ;;  %24258 = vst [vmem:[#allocation64_spill] sm:$0xff] %v17348_v10  ;;  %24259 = vst [vmem:[#allocation65_spill] sm:$0xff] %v17353_v59  ;;  %v14161_v63 = vpop.f32.mrb[64].mxu0  ;;  %v15337_v25 = vpack.i.bf16 %v8213_v26, %v8212_v51  ;;  %v7064_v42 = vrot.slane %v17348_v10, 2  ;;  %v5721_v54 = vadd.f32 %v17253_v44, %v5570_v57  ;;  %v16152_v23 = vld [vmem:[%s23856_s0 + $0x2c0] sm:$0xff]  }
 0x15e   :  { %v17362_v52 = vmax.f32 %v5718_v20, 0.0  ;;  %v5429_v53 = vmax.f32 %v17202_v16, %v14161_v63  ;;  %v3226_v48 = vpop.f32.mrb[65].mxu0  ;;  %v6484_v30 = vrot.slane %v17312_v21, 1  ;;  %v6485_v56 = vrot.slane %v17310_v50, 1 }
 0x15f   :  { %v5719_v9 = vadd.f32 %v17253_v44, %v5568_v38  ;;  %v5427_v40 = vmax.f32 %v17176_v35, %v3226_v48  ;;  %15338 = vrot.lane.b32.xlu0 %v15337_v25, %s16357_s19  ;;  %v14162_v51 = vpop.f32.mrb[66].mxu0  ;;  %v7063_v20 = vsel %vm7057_vm1, %v7061_v4, %v7062_v49  ;;  %v7066_v57 = vsel %vm7057_vm1, %v7064_v42, %v7065_v13  ;;  %v17387_v4 = vpop.f32.mrb[60].mxu1  ;;  %v16180_v49 = vld [vmem:[%s23856_s0 + $0x8e0] sm:$0xff]  }
 0x160   :  { %v6487_v16 = vrot.slane %v17348_v10, 1  ;;  %v24260_v35 = vmax.f32 %v16904_v62, %v17046_v29  ;;  %v5430_v63 = vmax.f32 %v17212_v37, %v14162_v51  ;;  %v3229_v25 = vpop.f32.mrb[67].mxu0  ;;  %v15347_v48 = vpack.i.bf16 %v7066_v57, %v7063_v20  ;;  %v17399_v37 = vpop.f32.mrb[61].mxu1  ;;  %v16181_v29 = vld [vmem:[%s23856_s0 + $0x8e8] sm:$0xff]   ;;  %14663 = vmatprep.mubr.msk.bf16.mxu1 %vm2071_vm0, %v16180_v49 }
 0x161   :  { %v17381_v38 = vmax.f32 %v5719_v9, 0.0  ;;  %v24261_v13 = vmax.f32 %v16886_v55, %v17050_v34  ;;  %v5428_v9 = vmax.f32 %v17183_v39, %v3229_v25  ;;  %v6488_v18 = vrot.slane %v17295_v11, 1  ;;  %v17416_v20 = vpop.f32.mrb[62].mxu1  ;;  %14664 = vmatmul.mubr.msk.bf16.gmra.mrb[100].mxu1 %vm2071_vm0, %v16181_v29 }
 0x162   :  { %v5573_v26 = vmax.f32 %v24260_v35, %v5429_v53  ;;  %v6150_v62 = vcombine.high %v17362_v52, %v17362_v52  ;;  %v16184_v53 = vld [vmem:[%s23858_s3 + $0x14] sm:$0xff]   ;;  %v17407_v51 = vmax.f32 %v5721_v54, 0.0  ;;  %v24262_v34 = vmax.f32 %v16914_v2, %v17057_v1  ;;  %14268 = vmatmul.mubr.msk.bf16.gmra.mrb[172].mxu0 %vm2071_vm0, %v16151_v41  ;;  %15348 = vrot.lane.b32.xlu1 %v15347_v48, %s16358_s27  ;;  %v17426_v1 = vpop.f32.mrb[63].mxu1 }
 0x163   :  { %v5571_v42 = vmax.f32 %v24261_v13, %v5427_v40  ;;  %v6486_v40 = vsel %vm6480_vm2, %v6484_v30, %v6485_v56  ;;  %v24263_v54 = vmax.f32 %v16893_v58, %v17064_v27  ;;  %v8214_v2 = vcombine.low %v17301_v46, %v17357_v0  ;;  %14271 = vmatprep.mubr.msk.bf16.mxu0 %vm2071_vm0, %v16152_v23  ;;  %v16153_v58 = vld [vmem:[%s23856_s0 + $0x2c8] sm:$0xff]  }
 0x164   :  { %v5724_v55 = vadd.f32 %v17253_v44, %v5573_v26  ;;  %v5574_v39 = vmax.f32 %v24262_v34, %v5430_v63  ;;  %v6489_v26 = vsel %vm6480_vm2, %v6487_v16, %v6488_v18  ;;  %v8215_v56 = vcombine.low %v6150_v62, %v17381_v38  ;;  %14671 = vmatprep.subr.bf16.mxu1 %v16184_v53 }
 0x165   :  { %v5722_v57 = vadd.f32 %v17253_v44, %v5571_v42  ;;  %v5572_v35 = vmax.f32 %v24263_v54, %v5428_v9  ;;  %v15342_v30 = vpack.i.bf16 %v6489_v26, %v6486_v40  ;;  %v7638_v63 = vrot.slane %v17312_v21, 3  ;;  %v14165_v46 = vpop.f32.mrb[68].mxu0  ;;  %v16154_v9 = vld [vmem:[%s23856_s0 + $0x2d0] sm:$0xff]   ;;  %14672 = vmatpush3.bf16.msra.mxu1 %v16184_v53  ;;  %v17464_v26 = vpop.f32.mrb[64].mxu1 }
 0x166   :  { %v5725_v41 = vadd.f32 %v17253_v44, %v5574_v39  ;;  %v7639_v16 = vrot.slane %v17310_v50, 3  ;;  %v7641_v23 = vrot.slane %v17348_v10, 3  ;;  %v5433_v48 = vmax.f32 %v17224_v36, %v14165_v46  ;;  %v3242_v13 = vpop.f32.mrb[69].mxu0  ;;  %24266 = vst [vmem:[#allocation67_spill] sm:$0xff] %v17464_v26 }
 0x167   :  { %v17435_v18 = vmax.f32 %v5722_v57, 0.0  ;;  %v5723_v27 = vadd.f32 %v17253_v44, %v5572_v35  ;;  %15343 = vrot.lane.b32.xlu0 %v15342_v30, %s16359_s30  ;;  %v15357_v49 = vpack.i.bf16 %v8215_v56, %v8214_v2  ;;  %v7642_v42 = vrot.slane %v17295_v11, 3  ;;  %v14166_v36 = vpop.f32.mrb[70].mxu0  ;;  %v17474_v2 = vpop.f32.mrb[65].mxu1  ;;  %v24270_v30 = vld [vmem:[#allocation32_spill] sm:$0xff] }
 0x168   :  { %v17441_v25 = vmax.f32 %v5725_v41, 0.0  ;;  %v17454_v34 = vcombine.low %v17362_v52, %v6150_v62  ;;  %v5431_v39 = vmax.f32 %v17200_v12, %v3242_v13  ;;  %v24265_v40 = vmax.f32 %v16928_v8, %v17086_v14  ;;  %v3245_v35 = vpop.f32.mrb[71].mxu0  ;;  %24269 = vst [vmem:[#allocation69_spill] sm:$0xff] %v17474_v2  ;;  %v17483_v46 = vpop.f32.mrb[66].mxu1 }
 0x169   :  { %v17449_v50 = vmax.f32 %v5723_v27, 0.0  ;;  %v6154_v29 = vcombine.high %v17435_v18, %v17435_v18  ;;  %15358 = vrot.lane.b32.xlu1 %v15357_v49, %s16357_s19  ;;  %v7640_v57 = vsel %vm7634_vm3, %v7638_v63, %v7639_v16  ;;  %v7643_v53 = vsel %vm7634_vm3, %v7641_v23, %v7642_v42  ;;  %v24272_v63 = vld [vmem:[#allocation48_spill] sm:$0xff]  ;;  %24273 = vst [vmem:[#allocation32_spill] sm:$0xff] %v17483_v46  ;;  %v17500_v49 = vpop.f32.mrb[67].mxu1 }
 0x16a   :  { %24264 = vst [vmem:[#allocation66_spill] sm:$0xff] %v17454_v34  ;;  %v5577_v11 = vmax.f32 %v24265_v40, %v5433_v48  ;;  %v5434_v54 = vmax.f32 %v17235_v7, %v14166_v36  ;;  %v17466_v52 = vmax.f32 %v5724_v55, 0.0  ;;  %v24268_v8 = vmax.f32 %v16902_v61, %v17090_v47  ;;  %14272 = vmatmul.mubr.msk.bf16.gmra.mrb[176].mxu0 %vm2071_vm0, %v16153_v58  ;;  %v16185_v61 = vld [vmem:[%s23856_s0 + $0x8f0] sm:$0xff]   ;;  %v16186_v47 = vld [vmem:[%s23856_s0 + $0x8f8] sm:$0xff]  }
 0x16b   :  { %v17469_v12 = vcombine.low %v6154_v29, %v17449_v50  ;;  %v15352_v62 = vpack.i.bf16 %v7643_v53, %v7640_v57  ;;  %v24271_v7 = vmax.f32 %v16944_v15, %v24270_v30  ;;  %v5432_v27 = vmax.f32 %v24272_v63, %v3245_v35  ;;  %v16187_v15 = vld [vmem:[%s23858_s3 + $0x1c] sm:$0xff]   ;;  %14275 = vmatprep.mubr.msk.bf16.mxu0 %vm2071_vm0, %v16154_v9  ;;  %v24277_v36 = vld [vmem:[#allocation33_spill] sm:$0xff] }
 0x16c   :  { %v5575_v14 = vmax.f32 %v24268_v8, %v5431_v39  ;;  %v5728_v41 = vadd.f32 %v17253_v44, %v5577_v11  ;;  %v7067_v55 = vrot.slane %v17319_v43, 2  ;;  %v7068_v58 = vrot.slane %v17357_v0, 2  ;;  %24274 = vst [vmem:[#allocation48_spill] sm:$0xff] %v17500_v49  ;;  %v24276_v39 = vld [vmem:[#allocation3_spill] sm:$0xff]  ;;  %14667 = vmatprep.mubr.msk.bf16.mxu1 %vm2071_vm0, %v16185_v61  ;;  %14673 = vmatprep.subr.bf16.mxu1 %v16187_v15 }
 0x16d   :  { %24267 = vst [vmem:[#allocation68_spill] sm:$0xff] %v17469_v12  ;;  %v5578_v56 = vmax.f32 %v24271_v7, %v5434_v54  ;;  %15353 = vrot.lane.b32.xlu0 %v15352_v62, %s16360_s21  ;;  %v7070_v23 = vrot.slane %v17454_v34, 2  ;;  %v7071_v48 = vrot.slane %v17381_v38, 2  ;;  %v6157_v42 = vcombine.high %v17441_v25, %v17441_v25  ;;  %v17516_v35 = vpop.f32.mrb[72].mxu0  ;;  %14668 = vmatmul.mubr.msk.bf16.gmra.mrb[104].mxu1 %vm2071_vm0, %v16186_v47  ;;  %v16155_v7 = vld [vmem:[%s23856_s0 + $0x2d8] sm:$0xff]  }
 0x16e   :  { %v5726_v16 = vadd.f32 %v17253_v44, %v5575_v14  ;;  %v17502_v13 = vmax.f32 %v5728_v41, 0.0  ;;  %v24278_v40 = vmax.f32 %v24276_v39, %v24277_v36  ;;  %v7069_v9 = vsel %vm7057_vm1, %v7067_v55, %v7068_v58  ;;  %v17524_v30 = vpop.f32.mrb[73].mxu0  ;;  %14674 = vmatpush3.bf16.msra.mxu1 %v16187_v15 }
 0x16f   :  { %v5729_v29 = vadd.f32 %v17253_v44, %v5578_v56  ;;  %v7072_v53 = vsel %vm7057_vm1, %v7070_v23, %v7071_v48  ;;  %v6490_v54 = vrot.slane %v17319_v43, 1  ;;  %v6491_v41 = vrot.slane %v17357_v0, 1  ;;  %v16156_v56 = vld [vmem:[%s23856_s0 + $0x2e0] sm:$0xff]   ;;  %v17540_v61 = vpop.f32.mrb[74].mxu0  ;;  %v17557_v48 = vpop.f32.mrb[68].mxu1 }
 0x170   :  { %24275 = vst [vmem:[#allocation70_spill] sm:$0xff] %v17502_v13  ;;  %v5576_v11 = vmax.f32 %v24278_v40, %v5432_v27  ;;  %v17511_v57 = vmax.f32 %v5726_v16, 0.0  ;;  %v6160_v14 = vcombine.high %v17502_v13, %v17502_v13  ;;  %v15367_v62 = vpack.i.bf16 %v7072_v53, %v7069_v9  ;;  %v17555_v23 = vpop.f32.mrb[75].mxu0  ;;  %24284 = vst [vmem:[#allocation74_spill] sm:$0xff] %v17557_v48  ;;  %v17563_v40 = vpop.f32.mrb[69].mxu1 }
 0x171   :  { %v17519_v8 = vmax.f32 %v5729_v29, 0.0  ;;  %v17534_v63 = vcombine.high %v17353_v59, %v17353_v59  ;;  %v6493_v55 = vrot.slane %v17454_v34, 1  ;;  %v17544_v47 = vcombine.high %v17359_v24, %v17359_v24  ;;  %24285 = vst [vmem:[#allocation75_spill] sm:$0xff] %v17563_v40 }
 0x172   :  { %24279 = vst [vmem:[#allocation3_spill] sm:$0xff] %v17511_v57  ;;  %v17537_v27 = vcombine.low %v6157_v42, %v17511_v57  ;;  %v17548_v16 = vcombine.high %v17449_v50, %v17449_v50  ;;  %15368 = vrot.lane.b32.xlu1 %v15367_v62, %s16358_s27  ;;  %v6494_v58 = vrot.slane %v17381_v38, 1  ;;  %v7644_v42 = vrot.slane %v17319_v43, 3  ;;  %14276 = vmatmul.mubr.msk.bf16.gmra.mrb[180].mxu0 %vm2071_vm0, %v16155_v7 }
 0x173   :  { %24280 = vst [vmem:[#allocation33_spill] sm:$0xff] %v17519_v8  ;;  %24281 = vst [vmem:[#allocation71_spill] sm:$0xff] %v17534_v63  ;;  %v17551_v15 = vcombine.low %v6160_v14, %v17519_v8  ;;  %v7645_v29 = vrot.slane %v17357_v0, 3  ;;  %v7647_v39 = vrot.slane %v17454_v34, 3  ;;  %v7648_v36 = vrot.slane %v17381_v38, 3  ;;  %14279 = vmatprep.mubr.msk.bf16.mxu0 %vm2071_vm0, %v16156_v56 }
 0x174   :  { %24282 = vst [vmem:[#allocation72_spill] sm:$0xff] %v17537_v27  ;;  %v17566_v9 = vadd.f32 %v17253_v44, %v5576_v11  ;;  %v6492_v53 = vsel %vm6480_vm2, %v6490_v54, %v6491_v41  ;;  %v6495_v14 = vsel %vm6480_vm2, %v6493_v55, %v6494_v58  ;;  %v6153_v62 = vcombine.high %v17407_v51, %v17407_v51 }
 0x175   :  { %24283 = vst [vmem:[#allocation73_spill] sm:$0xff] %v17551_v15  ;;  %v17573_v15 = vpop.f32.mrb[70].mxu1  ;;  %v15362_v0 = vpack.i.bf16 %v6495_v14, %v6492_v53  ;;  %v7646_v8 = vsel %vm7634_vm3, %v7644_v42, %v7645_v29  ;;  %v7649_v27 = vsel %vm7634_vm3, %v7647_v39, %v7648_v36  ;;  %v6156_v11 = vcombine.high %v17466_v52, %v17466_v52 }
 0x176   :  { %24286 = vst [vmem:[#allocation76_spill] sm:$0xff] %v17573_v15  ;;  %v17580_v54 = vpop.f32.mrb[71].mxu1  ;;  %v15372_v41 = vpack.i.bf16 %v7649_v27, %v7646_v8  ;;  %v17583_v55 = vcombine.low %v17407_v51, %v6153_v62  ;;  %v8216_v7 = vcombine.low %v17359_v24, %v17544_v47  ;;  %v8217_v58 = vcombine.low %v6153_v62, %v17435_v18  ;;  %v17597_v51 = vpop.f32.mrb[76].mxu0 }
 0x177   :  { %24287 = vst [vmem:[#allocation77_spill] sm:$0xff] %v17580_v54  ;;  %15363 = vrot.lane.b32.xlu0 %v15362_v0, %s16359_s30  ;;  %v17590_v42 = vcombine.low %v17466_v52, %v6156_v11  ;;  %v8218_v29 = vcombine.low %v17449_v50, %v17548_v16  ;;  %v8219_v56 = vcombine.low %v6156_v11, %v17441_v25  ;;  %24290 = vst [vmem:[#allocation80_spill] sm:$0xff] %v17597_v51  ;;  %v17603_v53 = vpop.f32.mrb[77].mxu0  ;;  %v16157_v50 = vld [vmem:[%s23856_s0 + $0x2e8] sm:$0xff]  }
 0x178   :  { %24288 = vst [vmem:[#allocation78_spill] sm:$0xff] %v17583_v55  ;;  %v6151_v8 = vcombine.high %v17381_v38, %v17381_v38  ;;  %15373 = vrot.lane.b32.xlu1 %v15372_v41, %s16360_s21  ;;  %v15377_v27 = vpack.i.bf16 %v8217_v58, %v8216_v7  ;;  %v6497_v39 = vrot.slane %v17544_v47, 1  ;;  %v6499_v36 = vrot.slane %v17583_v55, 1  ;;  %v17613_v11 = vpop.f32.mrb[78].mxu0  ;;  %v16158_v41 = vld [vmem:[%s23856_s0 + $0x2f0] sm:$0xff]  }
 0x179   :  { %24289 = vst [vmem:[#allocation79_spill] sm:$0xff] %v17590_v42  ;;  %v6500_v52 = vrot.slane %v17435_v18, 1  ;;  %v15397_v14 = vpack.i.bf16 %v8219_v56, %v8218_v29  ;;  %v6502_v62 = vrot.slane %v17469_v12, 1  ;;  %v6503_v0 = vrot.slane %v17548_v16, 1  ;;  %24292 = vst [vmem:[#allocation82_spill] sm:$0xff] %v17613_v11  ;;  %v17624_v56 = vpop.f32.mrb[72].mxu1 }
 0x17a   :  { %v17609_v38 = vcombine.low %v6151_v8, %v17359_v24  ;;  %v6505_v58 = vrot.slane %v17590_v42, 1  ;;  %v6506_v57 = vrot.slane %v17441_v25, 1  ;;  %v7074_v29 = vrot.slane %v17544_v47, 2  ;;  %v17622_v24 = vpop.f32.mrb[79].mxu0  ;;  %24293 = vst [vmem:[#allocation83_spill] sm:$0xff] %v17624_v56  ;;  %14280 = vmatmul.mubr.msk.bf16.gmra.mrb[184].mxu0 %vm2071_vm0, %v16157_v50 }
 0x17b   :  { %v6501_v7 = vsel %vm6480_vm2, %v6499_v36, %v6500_v52  ;;  %15378 = vrot.lane.b32.xlu0 %v15377_v27, %s16357_s19  ;;  %v6504_v59 = vsel %vm6480_vm2, %v6502_v62, %v6503_v0  ;;  %v7076_v36 = vrot.slane %v17583_v55, 2  ;;  %v17631_v52 = vpop.f32.mrb[73].mxu1  ;;  %v7077_v21 = vrot.slane %v17435_v18, 2  ;;  %14283 = vmatprep.mubr.msk.bf16.mxu0 %vm2071_vm0, %v16158_v41 }
 0x17c   :  { %24291 = vst [vmem:[#allocation81_spill] sm:$0xff] %v17609_v38  ;;  %v6496_v8 = vrot.slane %v17609_v38, 1  ;;  %v7073_v43 = vrot.slane %v17609_v38, 2  ;;  %15398 = vrot.lane.b32.xlu1 %v15397_v14, %s16357_s19  ;;  %v6507_v34 = vsel %vm6480_vm2, %v6505_v58, %v6506_v57  ;;  %v7079_v27 = vrot.slane %v17469_v12, 2  ;;  %v17639_v56 = vpop.f32.mrb[74].mxu1 }
 0x17d   :  { %v7080_v10 = vrot.slane %v17548_v16, 2  ;;  %24294 = vst [vmem:[#allocation84_spill] sm:$0xff] %v17639_v56  ;;  %v15402_v0 = vpack.i.bf16 %v6507_v34, %v6504_v59  ;;  %v7082_v44 = vrot.slane %v17590_v42, 2  ;;  %v17645_v57 = vpop.f32.mrb[75].mxu1  ;;  %v7078_v50 = vsel %vm7057_vm1, %v7076_v36, %v7077_v21  ;;  %v17653_v34 = vpop.f32.mrb[80].mxu0 }
 0x17e   :  { %v6498_v62 = vsel %vm6480_vm2, %v6496_v8, %v6497_v39  ;;  %v7075_v11 = vsel %vm7057_vm1, %v7073_v43, %v7074_v29  ;;  %v7083_v51 = vrot.slane %v17441_v25, 2  ;;  %v7650_v56 = vrot.slane %v17609_v38, 3  ;;  %v17661_v41 = vpop.f32.mrb[81].mxu0 }
 0x17f   :  { %v15382_v14 = vpack.i.bf16 %v6501_v7, %v6498_v62  ;;  %v7081_v58 = vsel %vm7057_vm1, %v7079_v27, %v7080_v10  ;;  %v15387_v3 = vpack.i.bf16 %v7078_v50, %v7075_v11  ;;  %v7651_v59 = vrot.slane %v17544_v47, 3  ;;  %v17666_v36 = vpop.f32.mrb[82].mxu0  ;;  %v24296_v27 = vld [vmem:[#allocation45_spill] sm:$0xff] }
 0x180   :  { %v7653_v43 = vrot.slane %v17583_v55, 3  ;;  %15403 = vrot.lane.b32.xlu1 %v15402_v0, %s16359_s30  ;;  %v7084_v39 = vsel %vm7057_vm1, %v7082_v44, %v7083_v51  ;;  %v7654_v21 = vrot.slane %v17435_v18, 3  ;;  %v7656_v10 = vrot.slane %v17469_v12, 3  ;;  %v16159_v44 = vld [vmem:[%s23856_s0 + $0x2f8] sm:$0xff]  }
 0x181   :  { %15383 = vrot.lane.b32.xlu0 %v15382_v14, %s16359_s30  ;;  %v7657_v11 = vrot.slane %v17548_v16, 3  ;;  %v15407_v7 = vpack.i.bf16 %v7084_v39, %v7081_v58  ;;  %v7652_v47 = vsel %vm7634_vm3, %v7650_v56, %v7651_v59  ;;  %v7659_v29 = vrot.slane %v17590_v42, 3  ;;  %v17673_v16 = vpop.f32.mrb[83].mxu0  ;;  %v16160_v56 = vld [vmem:[%s23856_s0 + $0x300] sm:$0xff]   ;;  %v17682_v14 = vpop.f32.mrb[76].mxu1 }
 0x182   :  { %v7660_v8 = vrot.slane %v17441_v25, 3  ;;  %v7655_v18 = vsel %vm7634_vm3, %v7653_v43, %v7654_v21  ;;  %24295 = vst [vmem:[#allocation85_spill] sm:$0xff] %v17673_v16  ;;  %v24297_v25 = vld [vmem:[#allocation42_spill] sm:$0xff]  ;;  %v24298_v59 = vld [vmem:[#allocation47_spill] sm:$0xff]  ;;  %14284 = vmatmul.mubr.msk.bf16.gmra.mrb[188].mxu0 %vm2071_vm0, %v16159_v44  ;;  %v24303_v21 = vld [vmem:[#allocation52_spill] sm:$0xff] }
 0x183   :  { %v7658_v51 = vsel %vm7634_vm3, %v7656_v10, %v7657_v11  ;;  %v15392_v50 = vpack.i.bf16 %v7655_v18, %v7652_v47  ;;  %v24299_v39 = vld [vmem:[#allocation43_spill] sm:$0xff]  ;;  %v17689_v10 = vpop.f32.mrb[77].mxu1  ;;  %v17692_v11 = vmax.f32 %v17566_v9, 0.0  ;;  %v24301_v47 = vld [vmem:[#allocation50_spill] sm:$0xff]  ;;  %14287 = vmatprep.mubr.msk.bf16.mxu0 %vm2071_vm0, %v16160_v56  ;;  %v16161_v56 = vld [vmem:[%s23856_s0 + $0x308] sm:$0xff]  }
 0x184   :  { %v7661_v58 = vsel %vm7634_vm3, %v7659_v29, %v7660_v8  ;;  %15408 = vrot.lane.b32.xlu1 %v15407_v7, %s16358_s27  ;;  %v24302_v29 = vld [vmem:[#allocation44_spill] sm:$0xff]  ;;  %v17700_v43 = vpop.f32.mrb[78].mxu1  ;;  %v24304_v9 = vld [vmem:[#allocation46_spill] sm:$0xff]  ;;  %v16190_v8 = vld [vmem:[%s23858_s3 + $0x24] ss:$0 sps:$4 sm:$0xff]  }
 0x185   :  { %24300 = vst [vmem:[#allocation45_spill] sm:$0xff] %v17692_v11  ;;  %15388 = vrot.lane.b32.xlu0 %v15387_v3, %s16358_s27  ;;  %v15412_v0 = vpack.i.bf16 %v7661_v58, %v7658_v51  ;;  %v17711_v58 = vpop.f32.mrb[79].mxu1  ;;  %v17725_v2 = vpop.f32.mrb[84].mxu0  ;;  %v17739_v51 = vcombine.high %v17692_v11, %v17692_v11  ;;  %15321 = vmatprep.subr.msk.bf16.mxu1 %vm9361_vm4, %v16190_v8  ;;  %v16162_v3 = vld [vmem:[%s23856_s0 + $0x310] sm:$0xff]   ;;  %v24331_v42 = vld [vmem:[#allocation83_spill] sm:$0xff] }
 0x186   :  { %v17733_v62 = vpop.f32.mrb[85].mxu0  ;;  %v17753_v7 = vpop.f32.mrb[80].mxu1 }
 0x187   :  { %24310 = vst [vmem:[#allocation42_spill] sm:$0xff] %v17739_v51  ;;  %v17741_v12 = vpop.f32.mrb[86].mxu0  ;;  %24312 = vst [vmem:[#allocation43_spill] sm:$0xff] %v17753_v7  ;;  %v17755_v11 = vpop.f32.mrb[81].mxu1 }
 0x188   :  { %15413 = vrot.lane.b32.xlu1 %v15412_v0, %s16360_s21  ;;  %24311 = vst [vmem:[#allocation47_spill] sm:$0xff] %v17741_v12  ;;  %v9363_v0 = vsel %vm9361_vm4, %v16190_v8, 0  ;;  %v17757_v6 = vpop.f32.mrb[82].mxu1 }
 0x189   :  { %15393 = vrot.lane.b32.xlu0 %v15392_v50, %s16360_s21  ;;  %v17748_v50 = vpop.f32.mrb[87].mxu0  ;;  %14676 = vmatpush3.bf16.msra.mxu1 %v9363_v0  ;;  %24313 = vst [vmem:[#allocation50_spill] sm:$0xff] %v17757_v6  ;;  %v17760_v63 = vpop.f32.mrb[83].mxu1 }
 0x18a   :  { %14288 = vmatmul.mubr.msk.bf16.gmra.mrb[192].mxu0 %vm2071_vm0, %v16161_v56  ;;  %v16163_v56 = vld [vmem:[%s23856_s0 + $0x318] sm:$0xff]   ;;  %v17783_v8 = vpop.f32.mrb[84].mxu1 }
 0x18b   :  { %14291 = vmatprep.mubr.msk.bf16.mxu0 %vm2071_vm0, %v16162_v3  ;;  %v16164_v3 = vld [vmem:[%s23856_s0 + $0x320] sm:$0xff]   ;;  %24315 = vst [vmem:[#allocation52_spill] sm:$0xff] %v17783_v8  ;;  %v17785_v33 = vpop.f32.mrb[85].mxu1 }
 0x18c   :  { %24316 = vst [vmem:[#allocation46_spill] sm:$0xff] %v17785_v33  ;;  %v17787_v13 = vpop.f32.mrb[86].mxu1 }
 0x18d   :  { %v17765_v54 = vpop.f32.mrb[88].mxu0  ;;  %24317 = vst [vmem:[#allocation86_spill] sm:$0xff] %v17787_v13  ;;  %v17790_v51 = vpop.f32.mrb[87].mxu1  ;;  %v24320_v13 = vmax.f32 %v17168_v22, %v17267_v5  ;;  %v24325_v22 = vld [vmem:[#allocation80_spill] sm:$0xff] }
 0x18e   :  { %v17769_v15 = vpop.f32.mrb[89].mxu0  ;;  %24318 = vst [vmem:[#allocation87_spill] sm:$0xff] %v17790_v51  ;;  %v14653_v49 = vpop.f32.mrb[88].mxu1 }
 0x18f   :  { %v17771_v0 = vpop.f32.mrb[90].mxu0  ;;  %v5543_v31 = vmax.f32 %v17631_v52, %v14653_v49  ;;  %v17816_v46 = vpop.f32.mrb[89].mxu1  ;;  %v24323_v49 = vld [vmem:[#allocation60_spill] sm:$0xff] }
 0x190   :  { %v17778_v40 = vpop.f32.mrb[91].mxu0  ;;  %24319 = vst [vmem:[#allocation88_spill] sm:$0xff] %v17816_v46  ;;  %v14654_v44 = vpop.f32.mrb[90].mxu1  ;;  %v24324_v52 = vmax.f32 %v17174_v19, %v24323_v49  ;;  %v24332_v19 = vmax.f32 %v24296_v27, %v17325_v28 }
 0x191   :  { %24314 = vst [vmem:[#allocation44_spill] sm:$0xff] %v17778_v40  ;;  %v17822_v6 = vmax.f32 %v24320_v13, %v5543_v31  ;;  %v5544_v51 = vmax.f32 %v17645_v57, %v14654_v44  ;;  %v17825_v7 = vpop.f32.mrb[91].mxu1  ;;  %v24327_v13 = vld [vmem:[#allocation57_spill] sm:$0xff]  ;;  %v16168_v44 = vld [vmem:[%s23856_s0 + $0x340] sm:$0xff]  }
 0x192   :  { %14292 = vmatmul.mubr.msk.bf16.gmra.mrb[196].mxu0 %vm2071_vm0, %v16163_v56  ;;  %v16165_v56 = vld [vmem:[%s23856_s0 + $0x328] sm:$0xff]   ;;  %24322 = vst [vmem:[#allocation90_spill] sm:$0xff] %v17825_v7 }
 0x193   :  { %14295 = vmatprep.mubr.msk.bf16.mxu0 %vm2071_vm0, %v16164_v3  ;;  %24321 = vst [vmem:[#allocation89_spill] sm:$0xff] %v17822_v6  ;;  %v5688_v18 = vmax.f32 %v24324_v52, %v5544_v51  ;;  %v24329_v52 = vld [vmem:[#allocation82_spill] sm:$0xff] }
 0x195   :  { %v17793_v26 = vpop.f32.mrb[92].mxu0  ;;  %v5839_v57 = vadd.f32 %v24327_v13, %v5688_v18  ;;  %v14657_v49 = vpop.f32.mrb[92].mxu1 }
 0x196   :  { %v17797_v48 = vpop.f32.mrb[93].mxu0  ;;  %v5210_v6 = vpop.f32.mrb[93].mxu1 }
 0x197   :  { %v17801_v8 = vpop.f32.mrb[94].mxu0  ;;  %v17855_v7 = vmax.f32 %v5839_v57, 0.0  ;;  %v5545_v18 = vmax.f32 %v24331_v42, %v5210_v6  ;;  %v14658_v38 = vpop.f32.mrb[94].mxu1  ;;  %v24334_v57 = vld [vmem:[#allocation84_spill] sm:$0xff]  ;;  %v24335_v42 = vmax.f32 %v24298_v59, %v17341_v45 }
 0x198   :  { %v17808_v3 = vpop.f32.mrb[95].mxu0  ;;  %v5213_v16 = vpop.f32.mrb[95].mxu1  ;;  %v16169_v45 = vld [vmem:[%s23856_s0 + $0x348] sm:$0xff]  }
 0x199   :  { %24330 = vst [vmem:[#allocation57_spill] sm:$0xff] %v17855_v7  ;;  %v5546_v31 = vmax.f32 %v24334_v57, %v5213_v16  ;;  %v24336_v16 = vmax.f32 %v24299_v39, %v17351_v60  ;;  %v16170_v60 = vld [vmem:[%s23856_s0 + $0x350] sm:$0xff]  }
 0x19a   :  { %14296 = vmatmul.mubr.msk.bf16.gmra.mrb[200].mxu0 %vm2071_vm0, %v16165_v56  ;;  %v5547_v56 = vmax.f32 %v17689_v10, %v14657_v49  ;;  %v24333_v10 = vmax.f32 %v24297_v25, %v17332_v32  ;;  %v6271_v32 = vcombine.high %v17855_v7, %v17855_v7 }
 0x19b   :  { %14299 = vmatprep.mubr.msk.bf16.mxu0 %vm2071_vm0, %v16166_v17  ;;  %v16167_v17 = vld [vmem:[%s23856_s0 + $0x338] sm:$0xff]   ;;  %v5690_v25 = vmax.f32 %v24336_v16, %v5546_v31 }
 0x19c   :  { %v5691_v55 = vmax.f32 %v24332_v19, %v5547_v56  ;;  %v5689_v49 = vmax.f32 %v24333_v10, %v5545_v18 }
 0x19d   :  { %v17828_v33 = vpop.f32.mrb[96].mxu0  ;;  %v5841_v31 = vadd.f32 %v24327_v13, %v5690_v25 }
 0x19e   :  { %v17835_v46 = vpop.f32.mrb[97].mxu0  ;;  %v5842_v6 = vadd.f32 %v24327_v13, %v5691_v55 }
 0x19f   :  { %v17839_v5 = vpop.f32.mrb[98].mxu0  ;;  %v5985_v16 = vmax.f32 %v5841_v31, 0.0  ;;  %v24340_v31 = vmax.f32 %v24302_v29, %v17399_v37 }
 0x1a0   :  { %24326 = vst [vmem:[#allocation60_spill] sm:$0xff] %v17839_v5  ;;  %v17847_v51 = vpop.f32.mrb[99].mxu0  ;;  %v5548_v5 = vmax.f32 %v17711_v58, %v14658_v38  ;;  %v5840_v58 = vadd.f32 %v24327_v13, %v5689_v49  ;;  %v17891_v59 = vmax.f32 %v5842_v6, 0.0 }
 0x1a1   :  { %24328 = vst [vmem:[#allocation80_spill] sm:$0xff] %v17847_v51 }
 0x1a2   :  { %14300 = vmatmul.mubr.msk.bf16.gmra.mrb[204].mxu0 %vm2071_vm0, %v16167_v17  ;;  %v5692_v28 = vmax.f32 %v24335_v42, %v5548_v5  ;;  %v5984_v39 = vmax.f32 %v5840_v58, 0.0  ;;  %v6274_v49 = vcombine.high %v17891_v59, %v17891_v59  ;;  %v7894_v38 = vrot.slane %v17891_v59, 3 }
 0x1a3   :  { %14303 = vmatprep.mubr.msk.bf16.mxu0 %vm2071_vm0, %v16168_v44  ;;  %v14661_v44 = vpop.f32.mrb[96].mxu1 }
 0x1a4   :  { %v5843_v5 = vadd.f32 %v24327_v13, %v5692_v28  ;;  %v5551_v57 = vmax.f32 %v17755_v11, %v14661_v44  ;;  %v5226_v6 = vpop.f32.mrb[97].mxu1  ;;  %v17909_v42 = vcombine.high %v5984_v39, %v5984_v39  ;;  %v17911_v28 = vcombine.low %v6271_v32, %v5984_v39 }
 0x1a5   :  { %v17868_v51 = vpop.f32.mrb[100].mxu0  ;;  %v5549_v58 = vmax.f32 %v17682_v14, %v5226_v6  ;;  %v14662_v25 = vpop.f32.mrb[98].mxu1  ;;  %v6273_v32 = vcombine.high %v5985_v16, %v5985_v16 }
 0x1a6   :  { %v17876_v27 = vpop.f32.mrb[101].mxu0  ;;  %v17904_v10 = vmax.f32 %v5843_v5, 0.0  ;;  %24337 = vst [vmem:[#allocation82_spill] sm:$0xff] %v17911_v28  ;;  %v24339_v5 = vmax.f32 %v24301_v47, %v17387_v4  ;;  %v5552_v11 = vmax.f32 %v17760_v63, %v14662_v25  ;;  %v5229_v44 = vpop.f32.mrb[99].mxu1  ;;  %v24341_v4 = vmax.f32 %v24303_v21, %v17416_v20 }
 0x1a7   :  { %v17886_v56 = vpop.f32.mrb[102].mxu0  ;;  %v5693_v14 = vmax.f32 %v24340_v31, %v5549_v58  ;;  %v5550_v6 = vmax.f32 %v17700_v43, %v5229_v44  ;;  %v6736_v47 = vrot.slane %v17911_v28, 1  ;;  %v17942_v43 = vcombine.low %v5985_v16, %v6273_v32  ;;  %v16171_v58 = vld [vmem:[%s23856_s0 + $0x358] sm:$0xff]  }
 0x1a8   :  { %v17896_v19 = vpop.f32.mrb[103].mxu0  ;;  %v17916_v18 = vcombine.low %v6274_v49, %v17904_v10  ;;  %v5695_v17 = vmax.f32 %v24339_v5, %v5551_v57  ;;  %v17934_v63 = vmax.f32 %v24341_v4, %v5552_v11  ;;  %v17957_v25 = vcombine.high %v17904_v10, %v17904_v10 }
 0x1a9   :  { %24343 = vst [vmem:[#allocation91_spill] sm:$0xff] %v17942_v43  ;;  %v8297_v16 = vcombine.low %v6273_v32, %v17891_v59  ;;  %v6739_v5 = vrot.slane %v17942_v43, 1  ;;  %v6740_v20 = vrot.slane %v17891_v59, 1  ;;  %v7317_v31 = vrot.slane %v17891_v59, 2 }
 0x1aa   :  { %14304 = vmatmul.mubr.msk.bf16.gmra.mrb[208].mxu0 %vm2071_vm0, %v16169_v45  ;;  %24338 = vst [vmem:[#allocation83_spill] sm:$0xff] %v17916_v18  ;;  %v8296_v45 = vcombine.low %v5984_v39, %v17909_v42  ;;  %v5846_v55 = vadd.f32 %v24327_v13, %v5695_v17  ;;  %24342 = vst [vmem:[#allocation84_spill] sm:$0xff] %v17934_v63  ;;  %v5844_v39 = vadd.f32 %v24327_v13, %v5693_v14 }
 0x1ab   :  { %14307 = vmatprep.mubr.msk.bf16.mxu0 %vm2071_vm0, %v16170_v60  ;;  %v6737_v60 = vrot.slane %v17909_v42, 1  ;;  %v24344_v17 = vmax.f32 %v24304_v9, %v17426_v1  ;;  %v16172_v9 = vld [vmem:[%s23856_s0 + $0x360] sm:$0xff]   ;;  %v6742_v37 = vrot.slane %v17916_v18, 1 }
 0x1ac   :  { %v5988_v11 = vmax.f32 %v5844_v39, 0.0  ;;  %v17970_v14 = vmax.f32 %v5846_v55, 0.0  ;;  %v7313_v55 = vrot.slane %v17911_v28, 2  ;;  %v6741_v39 = vsel %vm6480_vm2, %v6739_v5, %v6740_v20  ;;  %v16173_v5 = vld [vmem:[%s23856_s0 + $0x368] sm:$0xff]  }
 0x1ad   :  { %v17928_v49 = vpop.f32.mrb[104].mxu0  ;;  %v5694_v57 = vmax.f32 %v24344_v17, %v5550_v6  ;;  %v15417_v6 = vpack.i.bf16 %v8297_v16, %v8296_v45  ;;  %v6738_v32 = vsel %vm6480_vm2, %v6736_v47, %v6737_v60  ;;  %v7314_v45 = vrot.slane %v17909_v42, 2 }
 0x1ae   :  { %v17940_v29 = vpop.f32.mrb[105].mxu0  ;;  %24347 = vst [vmem:[#allocation94_spill] sm:$0xff] %v17970_v14  ;;  %v6276_v4 = vcombine.high %v5988_v11, %v5988_v11  ;;  %v15422_v16 = vpack.i.bf16 %v6741_v39, %v6738_v32  ;;  %v6743_v32 = vrot.slane %v17957_v25, 1 }
 0x1af   :  { %v17950_v21 = vpop.f32.mrb[106].mxu0  ;;  %v5845_v44 = vadd.f32 %v24327_v13, %v5694_v57  ;;  %15418 = vrot.lane.b32.xlu0 %v15417_v6, %s16357_s19  ;;  %v8298_v13 = vcombine.low %v17904_v10, %v17957_v25  ;;  %v7315_v10 = vsel %vm7057_vm1, %v7313_v55, %v7314_v45 }
 0x1b0   :  { %24345 = vst [vmem:[#allocation92_spill] sm:$0xff] %v17950_v21  ;;  %v17962_v1 = vpop.f32.mrb[107].mxu0  ;;  %v17984_v47 = vcombine.low %v5988_v11, %v6276_v4 }
 0x1b1   :  { %24346 = vst [vmem:[#allocation93_spill] sm:$0xff] %v17962_v1  ;;  %v17973_v17 = vmax.f32 %v5845_v44, 0.0  ;;  %v7316_v44 = vrot.slane %v17942_v43, 2 }
 0x1b2   :  { %14308 = vmatmul.mubr.msk.bf16.gmra.mrb[212].mxu0 %vm2071_vm0, %v16171_v58  ;;  %24348 = vst [vmem:[#allocation95_spill] sm:$0xff] %v17984_v47  ;;  %v7322_v59 = vrot.slane %v17984_v47, 2 }
 0x1b3   :  { %14311 = vmatprep.mubr.msk.bf16.mxu0 %vm2071_vm0, %v16172_v9  ;;  %v6277_v60 = vcombine.high %v17973_v17, %v17973_v17  ;;  %v8299_v57 = vcombine.low %v6276_v4, %v17973_v17  ;;  %15423 = vrot.lane.b32.xlu0 %v15422_v16, %s16359_s30  ;;  %v6745_v4 = vrot.slane %v17984_v47, 1  ;;  %v6746_v55 = vrot.slane %v17973_v17, 1 }
 0x1b4   :  { %v7318_v39 = vsel %vm7057_vm1, %v7316_v44, %v7317_v31  ;;  %v7893_v16 = vrot.slane %v17942_v43, 3  ;;  %v7320_v31 = vrot.slane %v17957_v25, 2  ;;  %v7899_v44 = vrot.slane %v17984_v47, 3  ;;  %v24354_v43 = vld [vmem:[#allocation64_spill] sm:$0xff] }
 0x1b5   :  { %v17990_v58 = vpop.f32.mrb[108].mxu0  ;;  %v17997_v9 = vcombine.low %v6277_v60, %v17970_v14  ;;  %v15437_v11 = vpack.i.bf16 %v8299_v57, %v8298_v13  ;;  %v7890_v13 = vrot.slane %v17911_v28, 3  ;;  %v16174_v60 = vld [vmem:[%s23856_s0 + $0x370] sm:$0xff]   ;;  %v7891_v57 = vrot.slane %v17909_v42, 3 }
 0x1b6   :  { %v17994_v6 = vpop.f32.mrb[109].mxu0  ;;  %v15427_v7 = vpack.i.bf16 %v7318_v39, %v7315_v10  ;;  %v6747_v28 = vsel %vm6480_vm2, %v6745_v4, %v6746_v55  ;;  %v7319_v14 = vrot.slane %v17916_v18, 2  ;;  %v7896_v10 = vrot.slane %v17916_v18, 3 }
 0x1b7   :  { %24349 = vst [vmem:[#allocation96_spill] sm:$0xff] %v17997_v9  ;;  %v18001_v20 = vpop.f32.mrb[110].mxu0  ;;  %15438 = vrot.lane.b32.xlu1 %v15437_v11, %s16357_s19  ;;  %v6744_v9 = vsel %vm6480_vm2, %v6742_v37, %v6743_v32  ;;  %v7892_v1 = vsel %vm7634_vm3, %v7890_v13, %v7891_v57  ;;  %v7895_v11 = vsel %vm7634_vm3, %v7893_v16, %v7894_v38  ;;  %v7323_v37 = vrot.slane %v17973_v17, 2  ;;  %v16176_v13 = vld [vmem:[%s23856_s0 + $0x380] sm:$0xff]   ;;  %v16177_v16 = vld [vmem:[%s23856_s0 + $0x388] sm:$0xff]  }
 0x1b8   :  { %v18011_v45 = vpop.f32.mrb[111].mxu0  ;;  %v15442_v63 = vpack.i.bf16 %v6747_v28, %v6744_v9  ;;  %15428 = vrot.lane.b32.xlu0 %v15427_v7, %s16358_s27  ;;  %v15432_v42 = vpack.i.bf16 %v7895_v11, %v7892_v1  ;;  %v7321_v28 = vsel %vm7057_vm1, %v7319_v14, %v7320_v31  ;;  %v7897_v38 = vrot.slane %v17957_v25, 3  ;;  %v16175_v25 = vld [vmem:[%s23856_s0 + $0x378] sm:$0xff]   ;;  %v16178_v31 = vld [vmem:[%s23856_s0 + $0x390] sm:$0xff]  }
 0x1b9   :  { %v7900_v9 = vrot.slane %v17973_v17, 3  ;;  %v7324_v1 = vsel %vm7057_vm1, %v7322_v59, %v7323_v37  ;;  %v24353_v47 = vmax.f32 %v17555_v23, %v17771_v0 }
 0x1ba   :  { %14312 = vmatmul.mubr.msk.bf16.gmra.mrb[216].mxu0 %vm2071_vm0, %v16173_v5  ;;  %v15447_v32 = vpack.i.bf16 %v7324_v1, %v7321_v28  ;;  %v7898_v4 = vsel %vm7634_vm3, %v7896_v10, %v7897_v38  ;;  %v16179_v10 = vld [vmem:[%s23856_s0 + $0x398] sm:$0xff]   ;;  %v16182_v38 = vld [vmem:[%s23856_s0 + $0x3a0] sm:$0xff]  }
 0x1bb   :  { %14315 = vmatprep.mubr.msk.bf16.mxu0 %vm2071_vm0, %v16174_v60  ;;  %15443 = vrot.lane.b32.xlu1 %v15442_v63, %s16359_s30  ;;  %v7901_v55 = vsel %vm7634_vm3, %v7899_v44, %v7900_v9 }
 0x1bc   :  { %15433 = vrot.lane.b32.xlu0 %v15432_v42, %s16360_s21  ;;  %v15452_v14 = vpack.i.bf16 %v7901_v55, %v7898_v4 }
 0x1bd   :  { %v18038_v7 = vpop.f32.mrb[112].mxu0 }
 0x1be   :  { %v18041_v5 = vpop.f32.mrb[113].mxu0 }
 0x1bf   :  { %v18045_v63 = vpop.f32.mrb[114].mxu0  ;;  %15448 = vrot.lane.b32.xlu1 %v15447_v32, %s16358_s27 }
 0x1c0   :  { %v18051_v17 = vpop.f32.mrb[115].mxu0 }
 0x1c2   :  { %14316 = vmatmul.mubr.msk.bf16.gmra.mrb[220].mxu0 %vm2071_vm0, %v16175_v25  ;;  %v16183_v25 = vld [vmem:[%s23856_s0 + $0x3a8] sm:$0xff]  }
 0x1c3   :  { %14319 = vmatprep.mubr.msk.bf16.mxu0 %vm2071_vm0, %v16176_v13  ;;  %15453 = vrot.lane.b32.xlu1 %v15452_v14, %s16360_s21  ;;  %v24351_v13 = vmax.f32 %v17524_v30, %v17765_v54  ;;  %v24355_v54 = vld [vmem:[#allocation62_spill] sm:$0xff] }
 0x1c5   :  { %v18060_v60 = vpop.f32.mrb[116].mxu0 }
 0x1c6   :  { %v18062_v39 = vpop.f32.mrb[117].mxu0 }
 0x1c7   :  { %v18064_v57 = vpop.f32.mrb[118].mxu0 }
 0x1c8   :  { %v18069_v11 = vpop.f32.mrb[119].mxu0 }
 0x1ca   :  { %14320 = vmatmul.mubr.msk.bf16.gmra.mrb[224].mxu0 %vm2071_vm0, %v16177_v16 }
 0x1cb   :  { %14323 = vmatprep.mubr.msk.bf16.mxu0 %vm2071_vm0, %v16178_v31 }
 0x1cd   :  { %v18076_v42 = vpop.f32.mrb[120].mxu0 }
 0x1ce   :  { %v18078_v59 = vpop.f32.mrb[121].mxu0 }
 0x1cf   :  { %v18080_v37 = vpop.f32.mrb[122].mxu0 }
 0x1d0   :  { %24350 = vst [vmem:[#allocation97_spill] sm:$0xff] %v18080_v37  ;;  %v18085_v28 = vpop.f32.mrb[123].mxu0 }
 0x1d1   :  { %v15339_v44 = vpop.permute.xlu0 %15338 }
 0x1d2   :  { %14324 = vmatmul.mubr.msk.bf16.gmra.mrb[228].mxu0 %vm2071_vm0, %v16179_v10 }
 0x1d3   :  { %14327 = vmatprep.mubr.msk.bf16.mxu0 %vm2071_vm0, %v16182_v38 }
 0x1d4   :  { %v15349_v1 = vpop.permute.xlu1 %15348 }
 0x1d5   :  { %v14221_v9 = vpop.f32.mrb[124].mxu0  ;;  %v15351_v23 = vunpack.i.h.bf16 %v15349_v1  ;;  %v15350_v0 = vunpack.i.l.bf16 %v15349_v1  ;;  %v16189_v1 = vld [vmem:[%s23856_s0 + $0x3b8] sm:$0xff]  }
 0x1d6   :  { %v5435_v32 = vmax.f32 %v17994_v6, %v14221_v9  ;;  %v18093_v4 = vpop.f32.mrb[125].mxu0  ;;  %v16188_v6 = vld [vmem:[%s23856_s0 + $0x3b0] sm:$0xff]  }
 0x1d7   :  { %v14222_v55 = vpop.f32.mrb[126].mxu0 }
 0x1d8   :  { %v5579_v16 = vmax.f32 %v24351_v13, %v5435_v32  ;;  %v5436_v31 = vmax.f32 %v18011_v45, %v14222_v55  ;;  %v18102_v10 = vpop.f32.mrb[127].mxu0  ;;  %v18118_v32 = vld [vmem:[%s23857_s2] ss:$0 sm:$0xff] }
 0x1d9   :  { %v15344_v14 = vpop.permute.xlu0 %15343  ;;  %24352 = vst [vmem:[#allocation98_spill] sm:$0xff] %v18102_v10 }
 0x1da   :  { %v15346_v38 = vunpack.i.h.bf16 %v15344_v14  ;;  %v15345_v9 = vunpack.i.l.bf16 %v15344_v14  ;;  %v5580_v18 = vmax.f32 %v24353_v47, %v5436_v31  ;;  %14328 = vmatmul.mubr.msk.bf16.gmra.mrb[232].mxu0 %vm2071_vm0, %v16183_v25  ;;  %v15340_v25 = vunpack.i.l.bf16 %v15339_v44 }
 0x1db   :  { %v18121_v14 = vpop.permute.xlu1 %15358  ;;  %14331 = vmatprep.mubr.msk.bf16.mxu0 %vm2071_vm0, %v16188_v6  ;;  %v15341_v6 = vunpack.i.h.bf16 %v15339_v44 }
 0x1dc   :  { %v8598_v30 = vsel %vm8595_vm5, %v24354_v43, %v15346_v38  ;;  %v8597_v45 = vsel %vm8595_vm5, %v24355_v54, %v15345_v9  ;;  %v5731_v55 = vadd.f32 %v18118_v32, %v5580_v18 }
 0x1dd   :  { %v14225_v43 = vpop.f32.mrb[128].mxu0  ;;  %v8694_v9 = vsel %vm8692_vm6, %v8597_v45, %v15350_v0  ;;  %v8695_v54 = vsel %vm8692_vm6, %v8598_v30, %v15351_v23  ;;  %v16191_v30 = vld [vmem:[%s23856_s0 + $0x3c0] sm:$0xff]   ;;  %v24358_v45 = vmax.f32 %v17516_v35, %v17797_v48  ;;  %v5730_v0 = vadd.f32 %v18118_v32, %v5579_v16 }
 0x1de   :  { %v3482_v38 = vpop.f32.mrb[129].mxu0  ;;  %v5439_v18 = vmax.f32 %v18041_v5, %v14225_v43  ;;  %v18131_v40 = vmax.f32 %v5731_v55, 0.0 }
 0x1df   :  { %v15354_v47 = vpop.permute.xlu0 %15353  ;;  %v5437_v12 = vmax.f32 %v17990_v58, %v3482_v38  ;;  %v14226_v21 = vpop.f32.mrb[130].mxu0  ;;  %v24357_v58 = vmax.f32 %v17603_v53, %v17793_v26  ;;  %v24361_v53 = vmax.f32 %v17540_v61, %v17808_v3 }
 0x1e0   :  { %v15356_v13 = vunpack.i.h.bf16 %v15354_v47  ;;  %v15355_v31 = vunpack.i.l.bf16 %v15354_v47  ;;  %24356 = vst [vmem:[#allocation64_spill] sm:$0xff] %v18131_v40  ;;  %v3485_v10 = vpop.f32.mrb[131].mxu0  ;;  %v5440_v44 = vmax.f32 %v18051_v17, %v14226_v21  ;;  %v6163_v16 = vcombine.high %v18131_v40, %v18131_v40 }
 0x1e1   :  { %v5583_v5 = vmax.f32 %v24357_v58, %v5439_v18  ;;  %v5581_v23 = vmax.f32 %v24358_v45, %v5437_v12  ;;  %v24360_v12 = vmax.f32 %v17622_v24, %v17801_v8  ;;  %v18169_v24 = vmax.f32 %v5730_v0, 0.0  ;;  %v16193_v0 = vld [vmem:[%s23856_s0 + $0x3d0] sm:$0xff]  }
 0x1e2   :  { %v8791_v37 = vsel %vm8789_vm7, %v8694_v9, %v15355_v31  ;;  %v8792_v47 = vsel %vm8789_vm7, %v8695_v54, %v15356_v13  ;;  %v5438_v31 = vmax.f32 %v18001_v20, %v3485_v10  ;;  %14332 = vmatmul.mubr.msk.bf16.gmra.mrb[236].mxu0 %vm2071_vm0, %v16189_v1  ;;  %v15361_v20 = vunpack.i.h.bf16 %v18121_v14 }
 0x1e3   :  { %v18146_v55 = vsel %vm2071_vm0, %v8791_v37, %v15340_v25  ;;  %v8888_v13 = vsel %vm2071_vm0, %v8792_v47, %v15341_v6  ;;  %v5734_v38 = vadd.f32 %v18118_v32, %v5583_v5  ;;  %v5732_v26 = vadd.f32 %v18118_v32, %v5581_v23  ;;  %14335 = vmatprep.mubr.msk.bf16.mxu0 %vm2071_vm0, %v16191_v30  ;;  %v16192_v30 = vld [vmem:[%s23856_s0 + $0x3c8] sm:$0xff]  }
 0x1e4   :  { %24359 = vst [vmem:[#allocation62_spill] sm:$0xff] %v18146_v55  ;;  %v15369_v43 = vpop.permute.xlu1 %15368  ;;  %v5584_v35 = vmax.f32 %v24360_v12, %v5440_v44  ;;  %v13498_v48 = vpack.c.bf16 %v8888_v13, %v18146_v55  ;;  %v5582_v21 = vmax.f32 %v24361_v53, %v5438_v31  ;;  %24362 = vst [vmem:[#allocation99_spill] sm:$0xff] %v18169_v24  ;;  %v16220_v55 = vld [vmem:[%s23856_s0 + $0x4a8] sm:$0xff]  }
 0x1e5   :  { %v18163_v17 = vmax.f32 %v5734_v38, 0.0  ;;  %v18165_v37 = vmax.f32 %v5732_v26, 0.0  ;;  %v14229_v10 = vpop.f32.mrb[132].mxu0  ;;  %v15371_v8 = vunpack.i.h.bf16 %v15369_v43  ;;  %v15370_v9 = vunpack.i.l.bf16 %v15369_v43 }
 0x1e6   :  { %v5735_v25 = vadd.f32 %v18118_v32, %v5584_v35  ;;  %14677 = vmatprep.mubr.msk.bf16.mxu1 %vm9264_vm8, %v13498_v48  ;;  %v5443_v61 = vmax.f32 %v18062_v39, %v14229_v10  ;;  %v3498_v3 = vpop.f32.mrb[133].mxu0  ;;  %v5733_v23 = vadd.f32 %v18118_v32, %v5582_v21  ;;  %v24364_v26 = vmax.f32 %v24325_v22, %v17835_v46  ;;  %v24365_v48 = vld [vmem:[#allocation66_spill] sm:$0xff]  ;;  %v24366_v21 = vld [vmem:[#allocation63_spill] sm:$0xff] }
 0x1e7   :  { %v18175_v18 = vcombine.low %v6163_v16, %v18165_v37  ;;  %v6166_v1 = vcombine.high %v18163_v17, %v18163_v17  ;;  %v5441_v6 = vmax.f32 %v18038_v7, %v3498_v3  ;;  %v14230_v47 = vpop.f32.mrb[134].mxu0  ;;  %v24363_v7 = vmax.f32 %v17661_v41, %v17828_v33 }
 0x1e8   :  { %v18183_v45 = vmax.f32 %v5735_v25, 0.0  ;;  %v3501_v44 = vpop.f32.mrb[135].mxu0  ;;  %v15360_v35 = vunpack.i.l.bf16 %v18121_v14  ;;  %v18205_v25 = vcombine.high %v18169_v24, %v18169_v24  ;;  %v18215_v14 = vcombine.high %v18165_v37, %v18165_v37 }
 0x1e9   :  { %v15364_v54 = vpop.permute.xlu0 %15363  ;;  %v5587_v38 = vmax.f32 %v24363_v7, %v5443_v61  ;;  %v5585_v12 = vmax.f32 %v24364_v26, %v5441_v6  ;;  %v5442_v7 = vmax.f32 %v18045_v63, %v3501_v44  ;;  %v24370_v44 = vld [vmem:[#allocation85_spill] sm:$0xff] }
 0x1ea   :  { %v15366_v58 = vunpack.i.h.bf16 %v15364_v54  ;;  %v15365_v5 = vunpack.i.l.bf16 %v15364_v54  ;;  %v15374_v39 = vpop.permute.xlu1 %15373  ;;  %v18201_v10 = vcombine.low %v6166_v1, %v18183_v45  ;;  %24367 = vst [vmem:[#allocation66_spill] sm:$0xff] %v18205_v25  ;;  %14336 = vmatmul.mubr.msk.bf16.gmra.mrb[240].mxu0 %vm2071_vm0, %v16192_v30  ;;  %v18219_v54 = vmax.f32 %v5733_v23, 0.0  ;;  %v16222_v25 = vld [vmem:[%s23856_s0 + $0x4b8] sm:$0xff]  }
 0x1eb   :  { %v15376_v43 = vunpack.i.h.bf16 %v15374_v39  ;;  %v15375_v31 = vunpack.i.l.bf16 %v15374_v39  ;;  %v5738_v22 = vadd.f32 %v18118_v32, %v5587_v38  ;;  %14339 = vmatprep.mubr.msk.bf16.mxu0 %vm2071_vm0, %v16193_v0  ;;  %v5736_v30 = vadd.f32 %v18118_v32, %v5585_v12  ;;  %v16194_v12 = vld [vmem:[%s23856_s0 + $0x3d8] sm:$0xff]  }
 0x1ec   :  { %v8600_v53 = vsel %vm8595_vm5, %v24365_v48, %v15366_v58  ;;  %v8599_v16 = vsel %vm8595_vm5, %v24366_v21, %v15365_v5  ;;  %v24371_v21 = vld [vmem:[#allocation60_spill] sm:$0xff] }
 0x1ed   :  { %v8696_v33 = vsel %vm8692_vm6, %v8599_v16, %v15370_v9  ;;  %v8697_v46 = vsel %vm8692_vm6, %v8600_v53, %v15371_v8  ;;  %v18209_v41 = vpop.permute.xlu0 %15378  ;;  %v18226_v8 = vcombine.high %v18183_v45, %v18183_v45  ;;  %v14233_v58 = vpop.f32.mrb[136].mxu0  ;;  %v18239_v0 = vmax.f32 %v5738_v22, 0.0 }
 0x1ee   :  { %v8793_v61 = vsel %vm8789_vm7, %v8696_v33, %v15375_v31  ;;  %v8794_v3 = vsel %vm8789_vm7, %v8697_v46, %v15376_v43  ;;  %v18221_v1 = vpop.permute.xlu1 %15398  ;;  %v15381_v23 = vunpack.i.h.bf16 %v18209_v41  ;;  %v3514_v43 = vpop.f32.mrb[137].mxu0  ;;  %v5444_v31 = vmax.f32 %v18069_v11, %v14230_v47 }
 0x1ef   :  { %v8889_v9 = vsel %vm2071_vm0, %v8793_v61, %v15360_v35  ;;  %v18230_v6 = vsel %vm2071_vm0, %v8794_v3, %v15361_v20  ;;  %v5447_v20 = vmax.f32 %v18078_v59, %v14233_v58  ;;  %v5445_v38 = vmax.f32 %v18060_v60, %v3514_v43  ;;  %v14234_v26 = vpop.f32.mrb[138].mxu0  ;;  %v16195_v60 = vld [vmem:[%s23856_s0 + $0x3e0] sm:$0xff]   ;;  %v24373_v3 = vld [vmem:[#allocation80_spill] sm:$0xff] }
 0x1f0   :  { %v18234_v5 = vpack.c.bf16 %v18230_v6, %v8889_v9  ;;  %v18236_v39 = vpack.c.bf16 %v8889_v9, %v8888_v13  ;;  %v15380_v13 = vunpack.i.l.bf16 %v18209_v41  ;;  %v5448_v11 = vmax.f32 %v18085_v28, %v14234_v26  ;;  %v3517_v22 = vpop.f32.mrb[139].mxu0 }
 0x1f1   :  { %v24372_v16 = vmax.f32 %v24370_v44, %v24371_v21  ;;  %v24374_v9 = vmax.f32 %v24329_v52, %v24373_v3  ;;  %v24375_v28 = vmax.f32 %v17733_v62, %v17868_v51  ;;  %v24376_v26 = vmax.f32 %v17653_v34, %v17876_v27  ;;  %v24377_v62 = vld [vmem:[#allocation78_spill] sm:$0xff] }
 0x1f2   :  { %24368 = vst [vmem:[#allocation63_spill] sm:$0xff] %v18234_v5  ;;  %24369 = vst [vmem:[#allocation100_spill] sm:$0xff] %v18236_v39  ;;  %14678 = vmatmul.mubr.msk.bf16.vlgmr.msra.gmra.mrb[108].mxu1 %vm9264_vm8, %v18234_v5  ;;  %v15404_v63 = vpop.permute.xlu1 %15403  ;;  %v18273_v44 = vcombine.high %v18239_v0, %v18239_v0  ;;  %v8224_v52 = vcombine.low %v18165_v37, %v18215_v14  ;;  %14340 = vmatmul.mubr.msk.bf16.gmra.mrb[244].mxu0 %vm2071_vm0, %v16194_v12 }
 0x1f3   :  { %v15384_v53 = vpop.permute.xlu0 %15383  ;;  %v5588_v33 = vmax.f32 %v24372_v16, %v5444_v31  ;;  %v15406_v46 = vunpack.i.h.bf16 %v15404_v63  ;;  %v15405_v61 = vunpack.i.l.bf16 %v15404_v63  ;;  %v5586_v58 = vmax.f32 %v24374_v9, %v5442_v7  ;;  %v24378_v7 = vld [vmem:[#allocation81_spill] sm:$0xff]  ;;  %14343 = vmatprep.mubr.msk.bf16.mxu0 %vm2071_vm0, %v16195_v60 }
 0x1f4   :  { %v15386_v59 = vunpack.i.h.bf16 %v15384_v53  ;;  %v15385_v47 = vunpack.i.l.bf16 %v15384_v53  ;;  %v18266_v43 = vmax.f32 %v24375_v28, %v5447_v20  ;;  %v5589_v53 = vmax.f32 %v24376_v26, %v5445_v38 }
 0x1f5   :  { %v18275_v31 = vmax.f32 %v5736_v30, 0.0  ;;  %v6165_v63 = vcombine.high %v18219_v54, %v18219_v54  ;;  %v5737_v27 = vadd.f32 %v18118_v32, %v5586_v58  ;;  %v18290_v21 = vadd.f32 %v18118_v32, %v5588_v33  ;;  %v18292_v3 = vpop.f32.mrb[140].mxu0 }
 0x1f6   :  { %v8602_v51 = vsel %vm8595_vm5, %v24377_v62, %v15386_v59  ;;  %v8601_v34 = vsel %vm8595_vm5, %v24378_v7, %v15385_v47  ;;  %v15409_v38 = vpop.permute.xlu1 %15408  ;;  %v5740_v30 = vadd.f32 %v18118_v32, %v5589_v53  ;;  %v24379_v59 = vld [vmem:[#allocation79_spill] sm:$0xff]  ;;  %v24380_v47 = vld [vmem:[#allocation68_spill] sm:$0xff]  ;;  %v3530_v53 = vpop.f32.mrb[141].mxu0 }
 0x1f7   :  { %v15389_v20 = vpop.permute.xlu0 %15388  ;;  %v15411_v12 = vunpack.i.h.bf16 %v15409_v38  ;;  %v8604_v9 = vsel %vm8595_vm5, %v24379_v59, %v15406_v46  ;;  %v8603_v58 = vsel %vm8595_vm5, %v24380_v47, %v15405_v61  ;;  %v18298_v28 = vmax.f32 %v5737_v27, 0.0  ;;  %v16196_v46 = vld [vmem:[%s23856_s0 + $0x3e8] sm:$0xff]  }
 0x1f8   :  { %v15391_v37 = vunpack.i.h.bf16 %v15389_v20  ;;  %v15390_v16 = vunpack.i.l.bf16 %v15389_v20  ;;  %v15410_v26 = vunpack.i.l.bf16 %v15409_v38  ;;  %v18302_v62 = vmax.f32 %v5740_v30, 0.0  ;;  %v18305_v20 = vpop.f32.mrb[142].mxu0 }
 0x1f9   :  { %v8225_v7 = vcombine.low %v6165_v63, %v18163_v17  ;;  %v8701_v61 = vsel %vm8692_vm6, %v8604_v9, %v15411_v12  ;;  %v18312_v38 = vcombine.low %v18219_v54, %v6165_v63  ;;  %v18321_v12 = vpop.f32.mrb[143].mxu0 }
 0x1fa   :  { %v8698_v60 = vsel %vm8692_vm6, %v8601_v34, %v15390_v16  ;;  %v8699_v33 = vsel %vm8692_vm6, %v8602_v51, %v15391_v37  ;;  %v24381_v34 = vmax.f32 %v17748_v50, %v17886_v56  ;;  %v15414_v30 = vpop.permute.xlu1 %15413  ;;  %v5446_v37 = vmax.f32 %v18064_v57, %v3517_v22  ;;  %v16197_v16 = vld [vmem:[%s23856_s0 + $0x3f0] sm:$0xff]   ;;  %14344 = vmatmul.mubr.msk.bf16.gmra.mrb[248].mxu0 %vm2071_vm0, %v16196_v46 }
 0x1fb   :  { %v15394_v27 = vpop.permute.xlu0 %15393  ;;  %v15457_v35 = vpack.i.bf16 %v8225_v7, %v8224_v52  ;;  %v15416_v48 = vunpack.i.h.bf16 %v15414_v30  ;;  %v8700_v54 = vsel %vm8692_vm6, %v8603_v58, %v15410_v26  ;;  %v15415_v9 = vunpack.i.l.bf16 %v15414_v30  ;;  %14347 = vmatprep.mubr.msk.bf16.mxu0 %vm2071_vm0, %v16197_v16  ;;  %v16198_v16 = vld [vmem:[%s23856_s0 + $0x3f8] sm:$0xff]  }
 0x1fc   :  { %v5592_v51 = vmax.f32 %v24381_v34, %v5448_v11  ;;  %v15396_v59 = vunpack.i.h.bf16 %v15394_v27  ;;  %v15395_v47 = vunpack.i.l.bf16 %v15394_v27  ;;  %v24382_v50 = vmax.f32 %v17666_v36, %v17896_v19 }
 0x1fd   :  { %15458 = vrot.lane.b32.xlu0 %v15457_v35, %s16357_s19  ;;  %v6172_v22 = vcombine.high %v18302_v62, %v18302_v62  ;;  %v6520_v52 = vrot.slane %v18175_v18, 1  ;;  %v8798_v26 = vsel %vm8789_vm7, %v8701_v61, %v15416_v48  ;;  %v6521_v19 = vrot.slane %v18215_v14, 1  ;;  %v18353_v48 = vpop.f32.mrb[144].mxu0 }
 0x1fe   :  { %v5743_v63 = vadd.f32 %v18118_v32, %v5592_v51  ;;  %v5590_v56 = vmax.f32 %v24382_v50, %v5446_v37  ;;  %v8795_v57 = vsel %vm8789_vm7, %v8698_v60, %v15395_v47  ;;  %v8796_v11 = vsel %vm8789_vm7, %v8699_v33, %v15396_v59 }
 0x1ff   :  { %v6523_v60 = vrot.slane %v18312_v38, 1  ;;  %v6524_v35 = vrot.slane %v18163_v17, 1  ;;  %v18346_v33 = vsel %vm2071_vm0, %v8795_v57, %v15380_v13  ;;  %v18351_v7 = vsel %vm2071_vm0, %v8796_v11, %v15381_v23  ;;  %v18364_v13 = vpop.f32.mrb[145].mxu0 }
 0x200   :  { %v18335_v58 = vmax.f32 %v5743_v63, 0.0  ;;  %v5741_v36 = vadd.f32 %v18118_v32, %v5590_v56  ;;  %v8797_v46 = vsel %vm8789_vm7, %v8700_v54, %v15415_v9  ;;  %v18360_v27 = vpack.c.bf16 %v18351_v7, %v18346_v33  ;;  %v18371_v37 = vpop.f32.mrb[146].mxu0 }
 0x201   :  { %v6168_v34 = vcombine.high %v18275_v31, %v18275_v31  ;;  %v6522_v41 = vsel %vm6480_vm2, %v6520_v52, %v6521_v19  ;;  %v6525_v23 = vsel %vm6480_vm2, %v6523_v60, %v6524_v35  ;;  %v5451_v51 = vmax.f32 %v18093_v4, %v18292_v3  ;;  %v16199_v3 = vld [vmem:[%s23856_s0 + $0x400] sm:$0xff]   ;;  %v24391_v60 = vld [vmem:[#allocation98_spill] sm:$0xff] }
 0x202   :  { %v18356_v61 = vmax.f32 %v5741_v36, 0.0  ;;  %24383 = vst [vmem:[#allocation85_spill] sm:$0xff] %v18360_v27  ;;  %v5449_v30 = vmax.f32 %v18076_v42, %v3530_v53  ;;  %v15462_v47 = vpack.i.bf16 %v6525_v23, %v6522_v41  ;;  %14681 = vmatprep.mubr.msk.bf16.mxu1 %vm9264_vm8, %v18360_v27  ;;  %v8226_v4 = vcombine.low %v18183_v45, %v18226_v8  ;;  %v18386_v42 = vpop.f32.mrb[147].mxu0  ;;  %v24394_v41 = vld [vmem:[#allocation97_spill] sm:$0xff] }
 0x203   :  { %v18382_v54 = vcombine.low %v18275_v31, %v6168_v34  ;;  %v8227_v53 = vcombine.low %v6168_v34, %v18298_v28  ;;  %v24385_v63 = vmax.f32 %v17769_v15, %v17928_v49  ;;  %v24386_v50 = vmax.f32 %v17725_v2, %v17940_v29  ;;  %14348 = vmatmul.mubr.msk.bf16.gmra.mrb[252].mxu0 %vm2071_vm0, %v16198_v16  ;;  %v24395_v16 = vld [vmem:[#allocation44_spill] sm:$0xff] }
 0x204   :  { %v18377_v59 = vcombine.low %v6172_v22, %v18356_v61  ;;  %v6175_v56 = vcombine.high %v18335_v58, %v18335_v58  ;;  %15463 = vrot.lane.b32.xlu0 %v15462_v47, %s16359_s30  ;;  %v24387_v45 = vunpack.i.l.bf16 %v18221_v1  ;;  %v24388_v11 = vunpack.i.h.bf16 %v18221_v1  ;;  %14351 = vmatprep.mubr.msk.bf16.mxu0 %vm2071_vm0, %v16199_v3  ;;  %v24396_v47 = vld [vmem:[#allocation92_spill] sm:$0xff] }
 0x205   :  { %v5595_v9 = vmax.f32 %v24385_v63, %v5451_v51  ;;  %v5593_v31 = vmax.f32 %v24386_v50, %v5449_v30  ;;  %v7097_v15 = vrot.slane %v18175_v18, 2  ;;  %v7098_v2 = vrot.slane %v18215_v14, 2  ;;  %v18436_v30 = vpop.f32.mrb[148].mxu0 }
 0x206   :  { %24384 = vst [vmem:[#allocation60_spill] sm:$0xff] %v18377_v59  ;;  %v18404_v57 = vsel %vm2071_vm0, %v8797_v46, %v24387_v45  ;;  %v18409_v22 = vsel %vm2071_vm0, %v8798_v26, %v24388_v11  ;;  %v15477_v49 = vpack.i.bf16 %v8227_v53, %v8226_v4  ;;  %v7100_v26 = vrot.slane %v18312_v38, 2 }
 0x207   :  { %24389 = vst [vmem:[#allocation80_spill] sm:$0xff] %v18409_v22  ;;  %v5746_v29 = vadd.f32 %v18118_v32, %v5595_v9  ;;  %v5744_v52 = vadd.f32 %v18118_v32, %v5593_v31  ;;  %v18417_v36 = vpack.c.bf16 %v18409_v22, %v18404_v57  ;;  %v7099_v1 = vsel %vm7057_vm1, %v7097_v15, %v7098_v2  ;;  %v18444_v9 = vpop.f32.mrb[149].mxu0  ;;  %v16200_v15 = vld [vmem:[%s23856_s0 + $0x408] sm:$0xff]  }
 0x208   :  { %v7101_v19 = vrot.slane %v18163_v17, 2  ;;  %v5452_v35 = vmax.f32 %v24391_v60, %v18305_v20  ;;  %15478 = vrot.lane.b32.xlu1 %v15477_v49, %s16357_s19  ;;  %v5450_v23 = vmax.f32 %v24394_v41, %v18321_v12  ;;  %v6526_v51 = vrot.slane %v18201_v10, 1  ;;  %v18452_v11 = vpop.f32.mrb[150].mxu0 }
 0x209   :  { %24390 = vst [vmem:[#allocation78_spill] sm:$0xff] %v18417_v36  ;;  %v18427_v46 = vmax.f32 %v5746_v29, 0.0  ;;  %v18429_v34 = vmax.f32 %v5744_v52, 0.0  ;;  %14682 = vmatmul.mubr.msk.bf16.gmra.mrb[112].mxu1 %vm9264_vm8, %v18417_v36  ;;  %v24397_v4 = vmax.f32 %v24395_v16, %v24396_v47  ;;  %v6527_v53 = vrot.slane %v18226_v8, 1  ;;  %v24399_v29 = vld [vmem:[#allocation47_spill] sm:$0xff] }
 0x20a   :  { %v7102_v20 = vsel %vm7057_vm1, %v7100_v26, %v7101_v19  ;;  %v6529_v63 = vrot.slane %v18382_v54, 1  ;;  %v5883_v50 = vmax.f32 %v18290_v21, 0.0  ;;  %v5742_v12 = vadd.f32 %v18118_v32, %v18266_v43  ;;  %v24400_v21 = vld [vmem:[#allocation93_spill] sm:$0xff] }
 0x20b   :  { %24392 = vst [vmem:[#allocation81_spill] sm:$0xff] %v18427_v46  ;;  %24393 = vst [vmem:[#allocation79_spill] sm:$0xff] %v18429_v34  ;;  %v5596_v3 = vmax.f32 %v24397_v4, %v5452_v35  ;;  %v18450_v31 = vcombine.low %v6175_v56, %v18429_v34  ;;  %v15467_v45 = vpack.i.bf16 %v7102_v20, %v7099_v1  ;;  %v6530_v43 = vrot.slane %v18298_v28, 1  ;;  %v18464_v56 = vpop.f32.mrb[151].mxu0  ;;  %v16201_v1 = vld [vmem:[%s23856_s0 + $0x410] sm:$0xff]  }
 0x20c   :  { %v6178_v49 = vcombine.high %v18427_v46, %v18427_v46  ;;  %v24401_v52 = vmax.f32 %v24399_v29, %v24400_v21  ;;  %v7674_v19 = vrot.slane %v18175_v18, 3  ;;  %v7675_v60 = vrot.slane %v18215_v14, 3  ;;  %14352 = vmatmul.mubr.msk.bf16.gmra.mrb[0].mxu0 %vm2071_vm0, %v16200_v15  ;;  %v16217_v46 = vld [vmem:[%s23856_s0 + $0x490] sm:$0xff]  }
 0x20d   :  { %24398 = vst [vmem:[#allocation68_spill] sm:$0xff] %v18450_v31  ;;  %v5747_v2 = vadd.f32 %v18118_v32, %v5596_v3  ;;  %15468 = vrot.lane.b32.xlu0 %v15467_v45, %s16358_s27  ;;  %v7677_v35 = vrot.slane %v18312_v38, 3  ;;  %v7678_v41 = vrot.slane %v18163_v17, 3  ;;  %v6531_v16 = vsel %vm6480_vm2, %v6529_v63, %v6530_v43  ;;  %14355 = vmatprep.mubr.msk.bf16.mxu0 %vm2071_vm0, %v16201_v1  ;;  %v16221_v34 = vld [vmem:[%s23856_s0 + $0x4b0] sm:$0xff]  }
 0x20e   :  { %v5594_v26 = vmax.f32 %v24401_v52, %v5450_v23  ;;  %v6528_v23 = vsel %vm6480_vm2, %v6526_v51, %v6527_v53  ;;  %v7103_v47 = vrot.slane %v18201_v10, 2  ;;  %v7676_v3 = vsel %vm7634_vm3, %v7674_v19, %v7675_v60 }
 0x20f   :  { %v18474_v20 = vmax.f32 %v5747_v2, 0.0  ;;  %v15482_v4 = vpack.i.bf16 %v6531_v16, %v6528_v23  ;;  %v7679_v45 = vsel %vm7634_vm3, %v7677_v35, %v7678_v41  ;;  %v7104_v29 = vrot.slane %v18226_v8, 2  ;;  %v16202_v16 = vld [vmem:[%s23856_s0 + $0x418] sm:$0xff]  }
 0x210   :  { %v5886_v14 = vmax.f32 %v5742_v12, 0.0  ;;  %v5745_v2 = vadd.f32 %v18118_v32, %v5594_v26  ;;  %v15472_v51 = vpack.i.bf16 %v7679_v45, %v7676_v3  ;;  %v18490_v53 = vcombine.high %v18356_v61, %v18356_v61  ;;  %v18495_v12 = vpop.f32.mrb[152].mxu0 }
 0x211   :  { %24402 = vst [vmem:[#allocation98_spill] sm:$0xff] %v18474_v20  ;;  %v18484_v17 = vcombine.low %v6178_v49, %v18474_v20  ;;  %15483 = vrot.lane.b32.xlu1 %v15482_v4, %s16359_s30  ;;  %v7106_v63 = vrot.slane %v18382_v54, 2  ;;  %v7107_v21 = vrot.slane %v18298_v28, 2  ;;  %v6171_v15 = vcombine.high %v5883_v50, %v5883_v50  ;;  %v18503_v1 = vpop.f32.mrb[153].mxu0 }
 0x212   :  { %15473 = vrot.lane.b32.xlu0 %v15472_v51, %s16360_s21  ;;  %v7105_v49 = vsel %vm7057_vm1, %v7103_v47, %v7104_v29  ;;  %v8228_v52 = vcombine.low %v18239_v0, %v18273_v44  ;;  %v7680_v26 = vrot.slane %v18201_v10, 3  ;;  %v7681_v43 = vrot.slane %v18226_v8, 3  ;;  %v18510_v23 = vpop.f32.mrb[154].mxu0 }
 0x213   :  { %24403 = vst [vmem:[#allocation97_spill] sm:$0xff] %v18484_v17  ;;  %v7108_v19 = vsel %vm7057_vm1, %v7106_v63, %v7107_v21  ;;  %v18506_v60 = vcombine.low %v5883_v50, %v6171_v15  ;;  %v8229_v35 = vcombine.low %v6171_v15, %v18302_v62  ;;  %v7683_v41 = vrot.slane %v18382_v54, 3  ;;  %v18519_v45 = vpop.f32.mrb[155].mxu0  ;;  %v16203_v50 = vld [vmem:[%s23856_s0 + $0x420] sm:$0xff]  }
 0x214   :  { %v18515_v47 = vmax.f32 %v5745_v2, 0.0  ;;  %v15487_v4 = vpack.i.bf16 %v7108_v19, %v7105_v49  ;;  %v7682_v8 = vsel %vm7634_vm3, %v7680_v26, %v7681_v43  ;;  %v7684_v3 = vrot.slane %v18298_v28, 3  ;;  %14356 = vmatmul.mubr.msk.bf16.gmra.mrb[4].mxu0 %vm2071_vm0, %v16202_v16 }
 0x215   :  { %v15497_v29 = vpack.i.bf16 %v8229_v35, %v8228_v52  ;;  %v6169_v51 = vcombine.high %v18298_v28, %v18298_v28  ;;  %v6533_v63 = vrot.slane %v18273_v44, 1  ;;  %v6535_v2 = vrot.slane %v18506_v60, 1  ;;  %14359 = vmatprep.mubr.msk.bf16.mxu0 %vm2071_vm0, %v16203_v50 }
 0x216   :  { %24404 = vst [vmem:[#allocation44_spill] sm:$0xff] %v18515_v47  ;;  %15488 = vrot.lane.b32.xlu1 %v15487_v4, %s16358_s27  ;;  %v7685_v21 = vsel %vm7634_vm3, %v7683_v41, %v7684_v3  ;;  %v6536_v15 = vrot.slane %v18302_v62, 1  ;;  %v6174_v49 = vcombine.high %v5886_v14, %v5886_v14  ;;  %v8230_v26 = vcombine.low %v18356_v61, %v18490_v53 }
 0x217   :  { %15498 = vrot.lane.b32.xlu0 %v15497_v29, %s16357_s19  ;;  %v15492_v52 = vpack.i.bf16 %v7685_v21, %v7682_v8  ;;  %v18535_v43 = vcombine.low %v6169_v51, %v18239_v0  ;;  %v7110_v28 = vrot.slane %v18273_v44, 2  ;;  %v7112_v19 = vrot.slane %v18506_v60, 2  ;;  %v18550_v51 = vpop.f32.mrb[156].mxu0 }
 0x218   :  { %v6537_v35 = vsel %vm6480_vm2, %v6535_v2, %v6536_v15  ;;  %v18541_v41 = vcombine.low %v5886_v14, %v6174_v49  ;;  %v8231_v4 = vcombine.low %v6174_v49, %v18335_v58  ;;  %v7113_v61 = vrot.slane %v18302_v62, 2  ;;  %24406 = vst [vmem:[#allocation47_spill] sm:$0xff] %v18550_v51  ;;  %v18556_v50 = vpop.f32.mrb[157].mxu0 }
 0x219   :  { %v6532_v8 = vrot.slane %v18535_v43, 1  ;;  %v7109_v0 = vrot.slane %v18535_v43, 2  ;;  %v6538_v3 = vrot.slane %v18377_v59, 1  ;;  %v6539_v29 = vrot.slane %v18490_v53, 1  ;;  %v18562_v5 = vpop.f32.mrb[158].mxu0 }
 0x21a   :  { %24405 = vst [vmem:[#allocation92_spill] sm:$0xff] %v18541_v41  ;;  %15493 = vrot.lane.b32.xlu1 %v15492_v52, %s16360_s21  ;;  %v15517_v14 = vpack.i.bf16 %v8231_v4, %v8230_v26  ;;  %v7114_v16 = vsel %vm7057_vm1, %v7112_v19, %v7113_v61  ;;  %v6541_v2 = vrot.slane %v18541_v41, 1  ;;  %v6542_v21 = vrot.slane %v18335_v58, 1  ;;  %24407 = vst [vmem:[#allocation93_spill] sm:$0xff] %v18562_v5  ;;  %v16204_v26 = vld [vmem:[%s23856_s0 + $0x428] sm:$0xff]   ;;  %v18569_v22 = vpop.f32.mrb[159].mxu0 }
 0x21b   :  { %v6534_v15 = vsel %vm6480_vm2, %v6532_v8, %v6533_v63  ;;  %v7111_v49 = vsel %vm7057_vm1, %v7109_v0, %v7110_v28  ;;  %v6540_v36 = vsel %vm6480_vm2, %v6538_v3, %v6539_v29  ;;  %v7686_v27 = vrot.slane %v18535_v43, 3  ;;  %v16205_v63 = vld [vmem:[%s23856_s0 + $0x430] sm:$0xff]  }
 0x21c   :  { %v15502_v52 = vpack.i.bf16 %v6537_v35, %v6534_v15  ;;  %v15507_v19 = vpack.i.bf16 %v7114_v16, %v7111_v49  ;;  %v6543_v4 = vsel %vm6480_vm2, %v6541_v2, %v6542_v21  ;;  %v7687_v61 = vrot.slane %v18273_v44, 3  ;;  %14360 = vmatmul.mubr.msk.bf16.gmra.mrb[8].mxu0 %vm2071_vm0, %v16204_v26 }
 0x21d   :  { %v15522_v28 = vpack.i.bf16 %v6543_v4, %v6540_v36  ;;  %v7689_v8 = vrot.slane %v18506_v60, 3  ;;  %v7690_v0 = vrot.slane %v18302_v62, 3  ;;  %v7115_v3 = vrot.slane %v18377_v59, 2  ;;  %14363 = vmatprep.mubr.msk.bf16.mxu0 %vm2071_vm0, %v16205_v63 }
 0x21e   :  { %15503 = vrot.lane.b32.xlu0 %v15502_v52, %s16359_s30  ;;  %15518 = vrot.lane.b32.xlu1 %v15517_v14, %s16357_s19  ;;  %v7688_v35 = vsel %vm7634_vm3, %v7686_v27, %v7687_v61  ;;  %v7116_v44 = vrot.slane %v18490_v53, 2  ;;  %v7118_v29 = vrot.slane %v18541_v41, 2  ;;  %v7119_v16 = vrot.slane %v18335_v58, 2  ;;  %v18593_v61 = vpop.f32.mrb[160].mxu0 }
 0x21f   :  { %v7691_v36 = vsel %vm7634_vm3, %v7689_v8, %v7690_v0  ;;  %v7692_v2 = vrot.slane %v18377_v59, 3  ;;  %v7693_v62 = vrot.slane %v18490_v53, 3  ;;  %v7695_v21 = vrot.slane %v18541_v41, 3  ;;  %v18600_v8 = vpop.f32.mrb[161].mxu0 }
 0x220   :  { %v15512_v15 = vpack.i.bf16 %v7691_v36, %v7688_v35  ;;  %v7117_v14 = vsel %vm7057_vm1, %v7115_v3, %v7116_v44  ;;  %v7120_v27 = vsel %vm7057_vm1, %v7118_v29, %v7119_v16  ;;  %v7696_v49 = vrot.slane %v18335_v58, 3  ;;  %24408 = vst [vmem:[#allocation101_spill] sm:$0xff] %v18600_v8  ;;  %v18604_v0 = vpop.f32.mrb[162].mxu0  ;;  %v16206_v3 = vld [vmem:[%s23856_s0 + $0x438] sm:$0xff]   ;;  %v16207_v44 = vld [vmem:[%s23856_s0 + $0x440] sm:$0xff]   ;;  %v16212_v36 = vld [vmem:[%s23856_s0 + $0x468] sm:$0xff]  }
 0x221   :  { %v15527_v52 = vpack.i.bf16 %v7120_v27, %v7117_v14  ;;  %v7694_v4 = vsel %vm7634_vm3, %v7692_v2, %v7693_v62  ;;  %v18615_v35 = vpop.f32.mrb[163].mxu0  ;;  %v18622_v29 = vpack.c.bf16 %v18346_v33, %v18230_v6  ;;  %v18628_v16 = vpack.c.bf16 %v18404_v57, %v18351_v7  ;;  %v16208_v62 = vld [vmem:[%s23856_s0 + $0x448] sm:$0xff]   ;;  %v16209_v14 = vld [vmem:[%s23856_s0 + $0x450] sm:$0xff]   ;;  %v16215_v7 = vld [vmem:[%s23856_s0 + $0x480] sm:$0xff]  }
 0x222   :  { %15508 = vrot.lane.b32.xlu0 %v15507_v19, %s16358_s27  ;;  %15523 = vrot.lane.b32.xlu1 %v15522_v28, %s16359_s30  ;;  %v7697_v53 = vsel %vm7634_vm3, %v7695_v21, %v7696_v49  ;;  %v18611_v19 = vcombine.high %v18515_v47, %v18515_v47  ;;  %24410 = vst [vmem:[#allocation103_spill] sm:$0xff] %v18615_v35  ;;  %v16214_v21 = vld [vmem:[%s23856_s0 + $0x478] sm:$0xff]   ;;  %v16219_v47 = vld [vmem:[%s23856_s0 + $0x4a0] sm:$0xff]  }
 0x223   :  { %v15532_v63 = vpack.i.bf16 %v7697_v53, %v7694_v4  ;;  %24411 = vst [vmem:[#allocation104_spill] sm:$0xff] %v18622_v29  ;;  %24412 = vst [vmem:[#allocation105_spill] sm:$0xff] %v18628_v16  ;;  %v16213_v53 = vld [vmem:[%s23856_s0 + $0x470] sm:$0xff]   ;;  %v16218_v29 = vld [vmem:[%s23856_s0 + $0x498] sm:$0xff]  }
 0x224   :  { %24409 = vst [vmem:[#allocation102_spill] sm:$0xff] %v18611_v19  ;;  %14364 = vmatmul.mubr.msk.bf16.gmra.mrb[12].mxu0 %vm2071_vm0, %v16206_v3  ;;  %v16210_v3 = vld [vmem:[%s23856_s0 + $0x458] sm:$0xff]  }
 0x225   :  { %14367 = vmatprep.mubr.msk.bf16.mxu0 %vm2071_vm0, %v16207_v44  ;;  %v18634_v2 = vpop.f32.mrb[164].mxu0 }
 0x226   :  { %15513 = vrot.lane.b32.xlu0 %v15512_v15, %s16360_s21  ;;  %15528 = vrot.lane.b32.xlu1 %v15527_v52, %s16358_s27  ;;  %v18639_v33 = vpop.f32.mrb[165].mxu0 }
 0x227   :  { %v18643_v57 = vpop.f32.mrb[166].mxu0 }
 0x228   :  { %v18650_v15 = vpop.f32.mrb[167].mxu0 }
 0x22a   :  { %15533 = vrot.lane.b32.xlu1 %v15532_v63, %s16360_s21 }
 0x22c   :  { %14368 = vmatmul.mubr.msk.bf16.gmra.mrb[16].mxu0 %vm2071_vm0, %v16208_v62 }
 0x22d   :  { %14371 = vmatprep.mubr.msk.bf16.mxu0 %vm2071_vm0, %v16209_v14  ;;  %v18659_v49 = vpop.f32.mrb[168].mxu0  ;;  %v16211_v14 = vld [vmem:[%s23856_s0 + $0x460] sm:$0xff]  }
 0x22e   :  { %v18663_v4 = vpop.f32.mrb[169].mxu0 }
 0x22f   :  { %v18667_v63 = vpop.f32.mrb[170].mxu0 }
 0x230   :  { %v18674_v62 = vpop.f32.mrb[171].mxu0 }
 0x234   :  { %14372 = vmatmul.mubr.msk.bf16.gmra.mrb[20].mxu0 %vm2071_vm0, %v16210_v3 }
 0x235   :  { %14375 = vmatprep.mubr.msk.bf16.mxu0 %vm2071_vm0, %v16211_v14  ;;  %v18683_v58 = vpop.f32.mrb[172].mxu0 }
 0x236   :  { %v18687_v52 = vpop.f32.mrb[173].mxu0 }
 0x237   :  { %v18691_v27 = vpop.f32.mrb[174].mxu0 }
 0x238   :  { %v18698_v14 = vpop.f32.mrb[175].mxu0 }
 0x23c   :  { %14376 = vmatmul.mubr.msk.bf16.gmra.mrb[24].mxu0 %vm2071_vm0, %v16212_v36  ;;  %v16216_v36 = vld [vmem:[%s23856_s0 + $0x488] sm:$0xff]  }
 0x23d   :  { %14379 = vmatprep.mubr.msk.bf16.mxu0 %vm2071_vm0, %v16213_v53  ;;  %v18707_v44 = vpop.f32.mrb[176].mxu0 }
 0x23e   :  { %24413 = vst [vmem:[#allocation106_spill] sm:$0xff] %v18707_v44  ;;  %v18711_v6 = vpop.f32.mrb[177].mxu0 }
 0x23f   :  { %24414 = vst [vmem:[#allocation107_spill] sm:$0xff] %v18711_v6  ;;  %v18715_v28 = vpop.f32.mrb[178].mxu0 }
 0x240   :  { %24415 = vst [vmem:[#allocation108_spill] sm:$0xff] %v18715_v28  ;;  %v18722_v53 = vpop.f32.mrb[179].mxu0 }
 0x241   :  { %24416 = vst [vmem:[#allocation109_spill] sm:$0xff] %v18722_v53 }
 0x244   :  { %14380 = vmatmul.mubr.msk.bf16.gmra.mrb[28].mxu0 %vm2071_vm0, %v16214_v21 }
 0x245   :  { %14383 = vmatprep.mubr.msk.bf16.mxu0 %vm2071_vm0, %v16215_v7  ;;  %v18731_v3 = vpop.f32.mrb[180].mxu0 }
 0x246   :  { %v3690_v17 = vpop.f32.mrb[181].mxu0 }
 0x247   :  { %v18733_v20 = vpop.f32.mrb[182].mxu0 }
 0x248   :  { %v3693_v16 = vpop.f32.mrb[183].mxu0 }
 0x24c   :  { %14384 = vmatmul.mubr.msk.bf16.gmra.mrb[32].mxu0 %vm2071_vm0, %v16216_v36  ;;  %v18755_v36 = vpop.permute.xlu0 %15418 }
 0x24d   :  { %14387 = vmatprep.mubr.msk.bf16.mxu0 %vm2071_vm0, %v16217_v46  ;;  %v18743_v21 = vpop.f32.mrb[184].mxu0  ;;  %24417 = vst [vmem:[#allocation110_spill] sm:$0xff] %v18755_v36  ;;  %v18782_v36 = vpop.permute.xlu1 %15438 }
 0x24e   :  { %v3706_v7 = vpop.f32.mrb[185].mxu0  ;;  %24419 = vst [vmem:[#allocation112_spill] sm:$0xff] %v18782_v36  ;;  %v16224_v36 = vld [vmem:[%s23856_s0 + $0x4c8] sm:$0xff]  }
 0x24f   :  { %v18745_v26 = vpop.f32.mrb[186].mxu0 }
 0x250   :  { %v3709_v39 = vpop.f32.mrb[187].mxu0 }
 0x254   :  { %14388 = vmatmul.mubr.msk.bf16.gmra.mrb[36].mxu0 %vm2071_vm0, %v16218_v29 }
 0x255   :  { %14391 = vmatprep.mubr.msk.bf16.mxu0 %vm2071_vm0, %v16219_v47  ;;  %v18757_v46 = vpop.f32.mrb[188].mxu0  ;;  %v18772_v47 = vpop.permute.xlu0 %15423 }
 0x256   :  { %v18759_v19 = vpop.f32.mrb[189].mxu0  ;;  %24418 = vst [vmem:[#allocation111_spill] sm:$0xff] %v18772_v47 }
 0x257   :  { %v18764_v31 = vpop.f32.mrb[190].mxu0 }
 0x258   :  { %v18769_v40 = vpop.f32.mrb[191].mxu0 }
 0x259   :  { %v18791_v47 = vpop.permute.xlu0 %15428 }
 0x25a   :  { %24421 = vst [vmem:[#allocation114_spill] sm:$0xff] %v18791_v47  ;;  %v16225_v47 = vld [vmem:[%s23856_s0 + $0x4d0] sm:$0xff]  }
 0x25c   :  { %14392 = vmatmul.mubr.msk.bf16.gmra.mrb[40].mxu0 %vm2071_vm0, %v16220_v55  ;;  %v16223_v55 = vld [vmem:[%s23856_s0 + $0x4c0] sm:$0xff]  }
 0x25d   :  { %14395 = vmatprep.mubr.msk.bf16.mxu0 %vm2071_vm0, %v16221_v34  ;;  %v18775_v29 = vpop.f32.mrb[192].mxu0  ;;  %v18795_v34 = vpop.permute.xlu1 %15443 }
 0x25e   :  { %v18777_v24 = vpop.f32.mrb[193].mxu0  ;;  %24422 = vst [vmem:[#allocation115_spill] sm:$0xff] %v18795_v34 }
 0x25f   :  { %v18784_v53 = vpop.f32.mrb[194].mxu0 }
 0x260   :  { %24420 = vst [vmem:[#allocation113_spill] sm:$0xff] %v18784_v53  ;;  %v18789_v5 = vpop.f32.mrb[195].mxu0  ;;  %v18802_v53 = vpop.permute.xlu0 %15433 }
 0x261   :  { %24423 = vst [vmem:[#allocation116_spill] sm:$0xff] %v18802_v53  ;;  %v18818_v53 = vpop.permute.xlu1 %15448 }
 0x262   :  { %24427 = vst [vmem:[#allocation118_spill] sm:$0xff] %v18818_v53 }
 0x264   :  { %14396 = vmatmul.mubr.msk.bf16.gmra.mrb[44].mxu0 %vm2071_vm0, %v16222_v25  ;;  %v24424_v25 = vmax.f32 %v18364_v13, %v18593_v61 }
 0x265   :  { %14399 = vmatprep.mubr.msk.bf16.mxu0 %vm2071_vm0, %v16223_v55  ;;  %v14293_v41 = vpop.f32.mrb[196].mxu0 }
 0x266   :  { %v5453_v28 = vmax.f32 %v3690_v17, %v14293_v41  ;;  %v18797_v35 = vpop.f32.mrb[197].mxu0  ;;  %v24426_v41 = vmax.f32 %v18386_v42, %v18604_v0 }
 0x267   :  { %v14294_v59 = vpop.f32.mrb[198].mxu0 }
 0x268   :  { %v18810_v55 = vmax.f32 %v24424_v25, %v5453_v28  ;;  %v5454_v34 = vmax.f32 %v3693_v16, %v14294_v59  ;;  %v18812_v17 = vpop.f32.mrb[199].mxu0  ;;  %v16226_v59 = vld [vmem:[%s23856_s0 + $0x4d8] sm:$0xff]   ;;  %v16227_v28 = vld [vmem:[%s23856_s0 + $0x4e0] sm:$0xff]   ;;  %v24428_v16 = vmax.f32 %v18444_v9, %v18634_v2  ;;  %v24433_v2 = vmax.f32 %v18371_v37, %v18650_v15 }
 0x26a   :  { %24425 = vst [vmem:[#allocation117_spill] sm:$0xff] %v18810_v55  ;;  %v5598_v6 = vmax.f32 %v24426_v41, %v5454_v34  ;;  %v24430_v34 = vmax.f32 %v18353_v48, %v18639_v33  ;;  %v24431_v41 = vmax.f32 %v18464_v56, %v18643_v57 }
 0x26c   :  { %14400 = vmatmul.mubr.msk.bf16.gmra.mrb[48].mxu0 %vm2071_vm0, %v16224_v36  ;;  %v5749_v61 = vadd.f32 %v18118_v32, %v5598_v6 }
 0x26d   :  { %14403 = vmatprep.mubr.msk.bf16.mxu0 %vm2071_vm0, %v16225_v47  ;;  %v14297_v44 = vpop.f32.mrb[200].mxu0 }
 0x26e   :  { %v5457_v8 = vmax.f32 %v3706_v7, %v14297_v44  ;;  %v3770_v13 = vpop.f32.mrb[201].mxu0  ;;  %v18834_v7 = vpop.permute.xlu1 %15453 }
 0x26f   :  { %v18821_v51 = vpop.permute.xlu0 %15458  ;;  %v5455_v42 = vmax.f32 %v18731_v3, %v3770_v13  ;;  %v14298_v0 = vpop.f32.mrb[202].mxu0  ;;  %24429 = vst [vmem:[#allocation119_spill] sm:$0xff] %v18834_v7  ;;  %v24492_v7 = vld [vmem:[#allocation49_spill] sm:$0xff] }
 0x270   :  { %v5601_v36 = vmax.f32 %v24428_v16, %v5457_v8  ;;  %v5458_v47 = vmax.f32 %v3709_v39, %v14298_v0  ;;  %v3773_v44 = vpop.f32.mrb[203].mxu0  ;;  %v18845_v8 = vmax.f32 %v5749_v61, 0.0  ;;  %v15461_v61 = vunpack.i.h.bf16 %v18821_v51 }
 0x271   :  { %v5599_v25 = vmax.f32 %v24430_v34, %v5455_v42  ;;  %v5456_v6 = vmax.f32 %v18733_v20, %v3773_v44 }
 0x272   :  { %v5752_v3 = vadd.f32 %v18118_v32, %v5601_v36  ;;  %v5602_v13 = vmax.f32 %v24431_v41, %v5458_v47  ;;  %24432 = vst [vmem:[#allocation120_spill] sm:$0xff] %v18845_v8  ;;  %v15460_v36 = vunpack.i.l.bf16 %v18821_v51  ;;  %v6181_v34 = vcombine.high %v18845_v8, %v18845_v8 }
 0x273   :  { %v5750_v39 = vadd.f32 %v18118_v32, %v5599_v25  ;;  %v5600_v48 = vmax.f32 %v24433_v2, %v5456_v6  ;;  %v16229_v6 = vld [vmem:[%s23856_s0 + $0x4f0] sm:$0xff]   ;;  %v24441_v51 = vmax.f32 %v18569_v22, %v18691_v27 }
 0x274   :  { %14404 = vmatmul.mubr.msk.bf16.gmra.mrb[52].mxu0 %vm2071_vm0, %v16226_v59  ;;  %v18852_v42 = vmax.f32 %v5752_v3, 0.0  ;;  %v5753_v56 = vadd.f32 %v18118_v32, %v5602_v13 }
 0x275   :  { %14407 = vmatprep.mubr.msk.bf16.mxu0 %vm2071_vm0, %v16227_v28  ;;  %v5894_v57 = vmax.f32 %v5750_v39, 0.0  ;;  %v5751_v59 = vadd.f32 %v18118_v32, %v5600_v48  ;;  %v14301_v0 = vpop.f32.mrb[204].mxu0  ;;  %v16228_v28 = vld [vmem:[%s23856_s0 + $0x4e8] sm:$0xff]  }
 0x276   :  { %v15464_v9 = vpop.permute.xlu0 %15463  ;;  %v18857_v16 = vmax.f32 %v5753_v56, 0.0  ;;  %v6184_v37 = vcombine.high %v18852_v42, %v18852_v42  ;;  %v3786_v15 = vpop.f32.mrb[205].mxu0 }
 0x277   :  { %v15466_v20 = vunpack.i.h.bf16 %v15464_v9  ;;  %v15465_v33 = vunpack.i.l.bf16 %v15464_v9  ;;  %v14302_v25 = vpop.f32.mrb[206].mxu0  ;;  %v18876_v3 = vcombine.high %v5894_v57, %v5894_v57  ;;  %v5895_v13 = vmax.f32 %v5751_v59, 0.0 }
 0x278   :  { %v18879_v41 = vcombine.low %v6184_v37, %v18857_v16  ;;  %v3789_v9 = vpop.f32.mrb[207].mxu0  ;;  %v5459_v39 = vmax.f32 %v18743_v21, %v3786_v15  ;;  %v5462_v2 = vmax.f32 %v18769_v40, %v14302_v25  ;;  %v24434_v37 = vmax.f32 %v18503_v1, %v18659_v49  ;;  %v18903_v1 = vld [vmem:[%s23857_s2] ss:$0 sm:$0xff] }
 0x279   :  { %v8610_v47 = vsel %vm8595_vm5, %v18312_v38, %v15466_v20  ;;  %v8609_v32 = vsel %vm8595_vm5, %v18175_v18, %v15465_v33  ;;  %v5461_v38 = vmax.f32 %v18759_v19, %v14301_v0  ;;  %v18882_v18 = vcombine.low %v6181_v34, %v5894_v57 }
 0x27a   :  { %v18869_v44 = vpop.permute.xlu1 %15478  ;;  %v5460_v48 = vmax.f32 %v18745_v26, %v3789_v9  ;;  %v6183_v19 = vcombine.high %v5895_v13, %v5895_v13  ;;  %v24435_v21 = vmax.f32 %v18436_v30, %v18663_v4  ;;  %v24436_v26 = vmax.f32 %v18519_v45, %v18667_v63 }
 0x27b   :  { %v15481_v20 = vunpack.i.h.bf16 %v18869_v44  ;;  %v15480_v33 = vunpack.i.l.bf16 %v18869_v44  ;;  %v5605_v59 = vmax.f32 %v24434_v37, %v5461_v38  ;;  %v8236_v30 = vcombine.low %v5894_v57, %v18876_v3  ;;  %v16230_v57 = vld [vmem:[%s23856_s0 + $0x4f8] sm:$0xff]   ;;  %v24451_v44 = vld [vmem:[#allocation60_spill] sm:$0xff] }
 0x27c   :  { %14408 = vmatmul.mubr.msk.bf16.gmra.mrb[56].mxu0 %vm2071_vm0, %v16228_v28  ;;  %v5603_v40 = vmax.f32 %v24435_v21, %v5459_v39  ;;  %v5606_v15 = vmax.f32 %v24436_v26, %v5462_v2  ;;  %v24437_v28 = vmax.f32 %v18452_v11, %v18674_v62  ;;  %v8237_v4 = vcombine.low %v6183_v19, %v18852_v42 }
 0x27d   :  { %14411 = vmatprep.mubr.msk.bf16.mxu0 %vm2071_vm0, %v16229_v6  ;;  %v5756_v49 = vadd.f32 %v18903_v1, %v5605_v59  ;;  %v18913_v45 = vcombine.high %v18857_v16, %v18857_v16  ;;  %v14305_v38 = vpop.f32.mrb[208].mxu0  ;;  %v6556_v9 = vrot.slane %v18882_v18, 1 }
 0x27e   :  { %v5604_v25 = vmax.f32 %v24437_v28, %v5460_v48  ;;  %v5754_v63 = vadd.f32 %v18903_v1, %v5603_v40  ;;  %v5757_v6 = vadd.f32 %v18903_v1, %v5606_v15  ;;  %v5465_v2 = vmax.f32 %v18777_v24, %v14305_v38  ;;  %v3802_v11 = vpop.f32.mrb[209].mxu0 }
 0x27f   :  { %v15469_v56 = vpop.permute.xlu0 %15468  ;;  %v15537_v62 = vpack.i.bf16 %v8237_v4, %v8236_v30  ;;  %v18919_v48 = vcombine.low %v5895_v13, %v6183_v19  ;;  %v18927_v40 = vmax.f32 %v5756_v49, 0.0  ;;  %v14306_v24 = vpop.f32.mrb[210].mxu0  ;;  %v16231_v13 = vld [vmem:[%s23856_s0 + $0x500] sm:$0xff]   ;;  %v5463_v49 = vmax.f32 %v18757_v46, %v3802_v11 }
 0x280   :  { %v15471_v0 = vunpack.i.h.bf16 %v15469_v56  ;;  %v15470_v34 = vunpack.i.l.bf16 %v15469_v56  ;;  %v6557_v56 = vrot.slane %v18876_v3, 1  ;;  %v5755_v26 = vadd.f32 %v18903_v1, %v5604_v25  ;;  %v3805_v4 = vpop.f32.mrb[211].mxu0 }
 0x281   :  { %15538 = vrot.lane.b32.xlu0 %v15537_v62, %s16357_s19 }
 0x282   :  { %v8706_v37 = vsel %vm8692_vm6, %v8609_v32, %v15470_v34  ;;  %v8707_v59 = vsel %vm8692_vm6, %v8610_v47, %v15471_v0  ;;  %v18934_v32 = vmax.f32 %v5754_v63, 0.0  ;;  %v18936_v47 = vmax.f32 %v5757_v6, 0.0 }
 0x283   :  { %v15484_v39 = vpop.permute.xlu1 %15483  ;;  %v24438_v0 = vmax.f32 %v18556_v50, %v18683_v58  ;;  %v18957_v58 = vmax.f32 %v5755_v26, 0.0 }
 0x284   :  { %v15474_v21 = vpop.permute.xlu0 %15473  ;;  %v15486_v19 = vunpack.i.h.bf16 %v15484_v39  ;;  %v15485_v15 = vunpack.i.l.bf16 %v15484_v39  ;;  %v5466_v39 = vmax.f32 %v18789_v5, %v14306_v24  ;;  %14412 = vmatmul.mubr.msk.bf16.gmra.mrb[60].mxu0 %vm2071_vm0, %v16230_v57  ;;  %v24440_v5 = vmax.f32 %v18495_v12, %v18687_v52  ;;  %v16232_v24 = vld [vmem:[%s23856_s0 + $0x508] sm:$0xff]  }
 0x285   :  { %v15476_v28 = vunpack.i.h.bf16 %v15474_v21  ;;  %v15475_v30 = vunpack.i.l.bf16 %v15474_v21  ;;  %v5609_v34 = vmax.f32 %v24438_v0, %v5465_v2  ;;  %v5464_v21 = vmax.f32 %v18764_v31, %v3805_v4  ;;  %14415 = vmatprep.mubr.msk.bf16.mxu0 %vm2071_vm0, %v16231_v13 }
 0x286   :  { %v5607_v46 = vmax.f32 %v24440_v5, %v5463_v49  ;;  %v8612_v62 = vsel %vm8595_vm5, %v18382_v54, %v15486_v19  ;;  %v8611_v12 = vsel %vm8595_vm5, %v18201_v10, %v15485_v15  ;;  %v24442_v54 = vmax.f32 %v18510_v23, %v18698_v14  ;;  %v16233_v23 = vld [vmem:[%s23856_s0 + $0x510] sm:$0xff]  }
 0x287   :  { %v8803_v25 = vsel %vm8789_vm7, %v8706_v37, %v15475_v30  ;;  %v8804_v38 = vsel %vm8789_vm7, %v8707_v59, %v15476_v28  ;;  %v18975_v52 = vadd.f32 %v18903_v1, %v5609_v34  ;;  %v18978_v37 = vpop.f32.mrb[212].mxu0  ;;  %v6559_v28 = vrot.slane %v18919_v48, 1 }
 0x288   :  { %v15489_v63 = vpop.permute.xlu1 %15488  ;;  %v18950_v6 = vsel %vm2071_vm0, %v8803_v25, %v15460_v36  ;;  %v18955_v50 = vsel %vm2071_vm0, %v8804_v38, %v15461_v61  ;;  %v5610_v61 = vmax.f32 %v24441_v51, %v5466_v39  ;;  %v5758_v57 = vadd.f32 %v18903_v1, %v5607_v46  ;;  %v18987_v10 = vpop.f32.mrb[213].mxu0 }
 0x289   :  { %24439 = vst [vmem:[#allocation121_spill] sm:$0xff] %v18950_v6  ;;  %v15491_v31 = vunpack.i.h.bf16 %v15489_v63  ;;  %v15490_v2 = vunpack.i.l.bf16 %v15489_v63  ;;  %v18963_v11 = vpop.permute.xlu0 %15498  ;;  %v13502_v36 = vpack.c.bf16 %v18955_v50, %v18950_v6  ;;  %v5608_v27 = vmax.f32 %v24442_v54, %v5464_v21  ;;  %v18997_v4 = vpop.f32.mrb[214].mxu0 }
 0x28a   :  { %v15501_v26 = vunpack.i.h.bf16 %v18963_v11  ;;  %v15500_v22 = vunpack.i.l.bf16 %v18963_v11  ;;  %v18993_v15 = vmax.f32 %v5758_v57, 0.0  ;;  %v6560_v30 = vrot.slane %v18852_v42, 1  ;;  %v19004_v25 = vpop.f32.mrb[215].mxu0 }
 0x28b   :  { %v8708_v59 = vsel %vm8692_vm6, %v8611_v12, %v15490_v2  ;;  %14685 = vmatprep.mubr.msk.bf16.mxu1 %vm9264_vm8, %v13502_v36  ;;  %v8709_v13 = vsel %vm8692_vm6, %v8612_v62, %v15491_v31  ;;  %v5761_v34 = vadd.f32 %v18903_v1, %v5610_v61  ;;  %v5759_v49 = vadd.f32 %v18903_v1, %v5608_v27 }
 0x28c   :  { %v15494_v19 = vpop.permute.xlu1 %15493  ;;  %v6190_v38 = vcombine.high %v18993_v15, %v18993_v15  ;;  %v6558_v39 = vsel %vm6480_vm2, %v6556_v9, %v6557_v56  ;;  %v6561_v21 = vsel %vm6480_vm2, %v6559_v28, %v6560_v30  ;;  %v6186_v63 = vcombine.high %v18934_v32, %v18934_v32  ;;  %14416 = vmatmul.mubr.msk.bf16.gmra.mrb[64].mxu0 %vm2071_vm0, %v16232_v24  ;;  %v16234_v30 = vld [vmem:[%s23856_s0 + $0x518] sm:$0xff]  }
 0x28d   :  { %v15496_v14 = vunpack.i.h.bf16 %v15494_v19  ;;  %v15495_v0 = vunpack.i.l.bf16 %v15494_v19  ;;  %v19016_v31 = vmax.f32 %v5759_v49, 0.0  ;;  %v15542_v2 = vpack.i.bf16 %v6561_v21, %v6558_v39  ;;  %14419 = vmatprep.mubr.msk.bf16.mxu0 %vm2071_vm0, %v16233_v23  ;;  %v19049_v27 = vpop.f32.mrb[216].mxu0  ;;  %v24445_v21 = vld [vmem:[#allocation101_spill] sm:$0xff] }
 0x28e   :  { %v8238_v61 = vcombine.low %v18857_v16, %v18913_v45  ;;  %v8239_v62 = vcombine.low %v6186_v63, %v18957_v58  ;;  %v5467_v19 = vmax.f32 %v18775_v29, %v18987_v10  ;;  %v19058_v28 = vpop.f32.mrb[217].mxu0  ;;  %v7134_v29 = vrot.slane %v18876_v3, 2  ;;  %v16235_v10 = vld [vmem:[%s23856_s0 + $0x520] sm:$0xff]  }
 0x28f   :  { %v8805_v5 = vsel %vm8789_vm7, %v8708_v59, %v15495_v0  ;;  %v8806_v46 = vsel %vm8789_vm7, %v8709_v13, %v15496_v14  ;;  %v19035_v59 = vmax.f32 %v5761_v34, 0.0  ;;  %15543 = vrot.lane.b32.xlu0 %v15542_v2, %s16359_s30  ;;  %v19047_v16 = vcombine.low %v6190_v38, %v19016_v31  ;;  %v19076_v38 = vpop.f32.mrb[218].mxu0  ;;  %v24448_v2 = vld [vmem:[#allocation47_spill] sm:$0xff] }
 0x290   :  { %v15504_v36 = vpop.permute.xlu0 %15503  ;;  %v19019_v51 = vpop.permute.xlu1 %15518  ;;  %v19024_v9 = vsel %vm2071_vm0, %v8805_v5, %v15480_v33  ;;  %v19029_v56 = vsel %vm2071_vm0, %v8806_v46, %v15481_v20  ;;  %v19039_v33 = vcombine.low %v18934_v32, %v6186_v63  ;;  %v15557_v54 = vpack.i.bf16 %v8239_v62, %v8238_v61  ;;  %v24446_v63 = vld [vmem:[#allocation106_spill] sm:$0xff] }
 0x291   :  { %v15506_v12 = vunpack.i.h.bf16 %v15504_v36  ;;  %v15505_v57 = vunpack.i.l.bf16 %v15504_v36  ;;  %v19044_v20 = vpack.c.bf16 %v19029_v56, %v19024_v9  ;;  %24444 = vst [vmem:[#allocation123_spill] sm:$0xff] %v19047_v16  ;;  %v5469_v32 = vmax.f32 %v18797_v35, %v18978_v37  ;;  %v24449_v36 = vld [vmem:[#allocation107_spill] sm:$0xff] }
 0x292   :  { %15558 = vrot.lane.b32.xlu1 %v15557_v54, %s16357_s19  ;;  %v7133_v35 = vrot.slane %v18882_v18, 2  ;;  %v7136_v37 = vrot.slane %v18919_v48, 2  ;;  %v6193_v49 = vcombine.high %v19035_v59, %v19035_v59  ;;  %v24447_v5 = vmax.f32 %v24445_v21, %v24446_v63 }
 0x293   :  { %24443 = vst [vmem:[#allocation122_spill] sm:$0xff] %v19044_v20  ;;  %v8614_v24 = vsel %vm8595_vm5, %v18506_v60, %v15506_v12  ;;  %v8613_v23 = vsel %vm8595_vm5, %v18535_v43, %v15505_v57  ;;  %14686 = vmatmul.mubr.msk.bf16.gmra.mrb[116].mxu1 %vm9264_vm8, %v19044_v20  ;;  %v24450_v61 = vmax.f32 %v24448_v2, %v24449_v36  ;;  %v7137_v12 = vrot.slane %v18852_v42, 2  ;;  %v19085_v57 = vpop.f32.mrb[219].mxu0 }
 0x294   :  { %v15509_v14 = vpop.permute.xlu0 %15508  ;;  %v15524_v60 = vpop.permute.xlu1 %15523  ;;  %v5613_v46 = vmax.f32 %v24447_v5, %v5469_v32  ;;  %14420 = vmatmul.mubr.msk.bf16.gmra.mrb[68].mxu0 %vm2071_vm0, %v16234_v30  ;;  %v7716_v20 = vrot.slane %v18879_v41, 3 }
 0x295   :  { %v15511_v0 = vunpack.i.h.bf16 %v15509_v14  ;;  %v15510_v34 = vunpack.i.l.bf16 %v15509_v14  ;;  %v15525_v43 = vunpack.i.l.bf16 %v15524_v60  ;;  %v15526_v39 = vunpack.i.h.bf16 %v15524_v60  ;;  %14423 = vmatprep.mubr.msk.bf16.mxu0 %vm2071_vm0, %v16235_v10 }
 0x296   :  { %v5611_v62 = vmax.f32 %v24450_v61, %v5467_v19  ;;  %v7135_v60 = vsel %vm7057_vm1, %v7133_v35, %v7134_v29  ;;  %v5764_v63 = vadd.f32 %v18903_v1, %v5613_v46  ;;  %v7138_v5 = vsel %vm7057_vm1, %v7136_v37, %v7137_v12  ;;  %v24455_v46 = vld [vmem:[#allocation108_spill] sm:$0xff]  ;;  %v19106_v61 = vpop.f32.mrb[220].mxu0 }
 0x297   :  { %v8710_v54 = vsel %vm8692_vm6, %v8613_v23, %v15510_v34  ;;  %v8711_v14 = vsel %vm8692_vm6, %v8614_v24, %v15511_v0  ;;  %v8615_v13 = vsel %vm8595_vm5, %v24451_v44, %v15525_v43  ;;  %v5470_v23 = vmax.f32 %v18812_v17, %v18997_v4  ;;  %v24454_v43 = vld [vmem:[#allocation103_spill] sm:$0xff]  ;;  %v24457_v37 = vld [vmem:[#allocation92_spill] sm:$0xff]  ;;  %v19113_v12 = vpop.f32.mrb[221].mxu0 }
 0x298   :  { %v15514_v32 = vpop.permute.xlu0 %15513  ;;  %v15529_v21 = vpop.permute.xlu1 %15528  ;;  %v5762_v19 = vadd.f32 %v18903_v1, %v5611_v62  ;;  %v19099_v35 = vmax.f32 %v5764_v63, 0.0  ;;  %v15547_v29 = vpack.i.bf16 %v7138_v5, %v7135_v60  ;;  %v24456_v2 = vmax.f32 %v24454_v43, %v24455_v46  ;;  %v16236_v60 = vld [vmem:[%s23856_s0 + $0x528] sm:$0xff]  }
 0x299   :  { %v15516_v24 = vunpack.i.h.bf16 %v15514_v32  ;;  %v15515_v0 = vunpack.i.l.bf16 %v15514_v32  ;;  %v15531_v44 = vunpack.i.h.bf16 %v15529_v21  ;;  %v15530_v34 = vunpack.i.l.bf16 %v15529_v21 }
 0x29a   :  { %24452 = vst [vmem:[#allocation101_spill] sm:$0xff] %v19099_v35  ;;  %v19101_v30 = vmax.f32 %v5762_v19, 0.0  ;;  %v5614_v36 = vmax.f32 %v24456_v2, %v5470_v23  ;;  %v8616_v17 = vsel %vm8595_vm5, %v24457_v37, %v15526_v39  ;;  %15548 = vrot.lane.b32.xlu0 %v15547_v29, %s16358_s27  ;;  %v24460_v23 = vld [vmem:[#allocation113_spill] sm:$0xff]  ;;  %v6565_v46 = vrot.slane %v19039_v33, 1 }
 0x29b   :  { %v8807_v4 = vsel %vm8789_vm7, %v8710_v54, %v15515_v0  ;;  %v8808_v10 = vsel %vm8789_vm7, %v8711_v14, %v15516_v24  ;;  %v8712_v62 = vsel %vm8692_vm6, %v8615_v13, %v15530_v34  ;;  %v8713_v32 = vsel %vm8692_vm6, %v8616_v17, %v15531_v44  ;;  %v19133_v54 = vpop.f32.mrb[222].mxu0  ;;  %v16237_v14 = vld [vmem:[%s23856_s0 + $0x530] sm:$0xff]  }
 0x29c   :  { %24453 = vst [vmem:[#allocation106_spill] sm:$0xff] %v19101_v30  ;;  %v15534_v21 = vpop.permute.xlu1 %15533  ;;  %v19122_v63 = vsel %vm2071_vm0, %v8807_v4, %v15500_v22  ;;  %v19127_v39 = vsel %vm2071_vm0, %v8808_v10, %v15501_v26  ;;  %v19130_v13 = vcombine.low %v6193_v49, %v19101_v30  ;;  %v5765_v11 = vadd.f32 %v18903_v1, %v5614_v36  ;;  %v19143_v26 = vpop.f32.mrb[223].mxu0  ;;  %v24462_v2 = vld [vmem:[#allocation93_spill] sm:$0xff] }
 0x29d   :  { %v15536_v19 = vunpack.i.h.bf16 %v15534_v21  ;;  %v15535_v5 = vunpack.i.l.bf16 %v15534_v21  ;;  %v19140_v22 = vpack.c.bf16 %v19127_v39, %v19122_v63  ;;  %v6196_v49 = vcombine.high %v19099_v35, %v19099_v35  ;;  %14424 = vmatmul.mubr.msk.bf16.gmra.mrb[72].mxu0 %vm2071_vm0, %v16236_v60  ;;  %v24463_v36 = vld [vmem:[#allocation109_spill] sm:$0xff] }
 0x29e   :  { %24458 = vst [vmem:[#allocation47_spill] sm:$0xff] %v19130_v13  ;;  %v5468_v24 = vmax.f32 %v24460_v23, %v19004_v25  ;;  %v6562_v0 = vrot.slane %v18879_v41, 1  ;;  %v6563_v44 = vrot.slane %v18913_v45, 1  ;;  %v19155_v43 = vmax.f32 %v5765_v11, 0.0  ;;  %14427 = vmatprep.mubr.msk.bf16.mxu0 %vm2071_vm0, %v16237_v14  ;;  %v19190_v14 = vpop.f32.mrb[224].mxu0 }
 0x29f   :  { %24459 = vst [vmem:[#allocation107_spill] sm:$0xff] %v19140_v22  ;;  %v8809_v34 = vsel %vm8789_vm7, %v8712_v62, %v15535_v5  ;;  %v8810_v29 = vsel %vm8789_vm7, %v8713_v32, %v15536_v19  ;;  %14689 = vmatprep.mubr.msk.bf16.mxu1 %vm9264_vm8, %v19140_v22  ;;  %v19161_v25 = vcombine.high %v18927_v40, %v18927_v40  ;;  %v6566_v4 = vrot.slane %v18957_v58, 1 }
 0x2a0   :  { %24461 = vst [vmem:[#allocation60_spill] sm:$0xff] %v19155_v43  ;;  %v24464_v37 = vmax.f32 %v24462_v2, %v24463_v36  ;;  %v24465_v10 = vunpack.i.l.bf16 %v19019_v51  ;;  %v5904_v32 = vmax.f32 %v18975_v52, 0.0  ;;  %v19175_v60 = vcombine.low %v6196_v49, %v19155_v43  ;;  %v19195_v2 = vpop.f32.mrb[225].mxu0 }
 0x2a1   :  { %v24467_v21 = vunpack.i.h.bf16 %v19019_v51  ;;  %v7710_v5 = vrot.slane %v18882_v18, 3  ;;  %v6564_v11 = vsel %vm6480_vm2, %v6562_v0, %v6563_v44  ;;  %v6567_v23 = vsel %vm6480_vm2, %v6565_v46, %v6566_v4  ;;  %v16238_v0 = vld [vmem:[%s23856_s0 + $0x538] sm:$0xff]   ;;  %v19209_v36 = vpop.f32.mrb[226].mxu0 }
 0x2a2   :  { %v5612_v17 = vmax.f32 %v24464_v37, %v5468_v24  ;;  %v19170_v62 = vsel %vm2071_vm0, %v8809_v34, %v24465_v10  ;;  %24466 = vst [vmem:[#allocation103_spill] sm:$0xff] %v19175_v60  ;;  %v7711_v52 = vrot.slane %v18876_v3, 3  ;;  %v15562_v49 = vpack.i.bf16 %v6567_v23, %v6564_v11  ;;  %v16239_v37 = vld [vmem:[%s23856_s0 + $0x540] sm:$0xff]   ;;  %v19220_v11 = vpop.f32.mrb[227].mxu0 }
 0x2a3   :  { %v19180_v19 = vsel %vm2071_vm0, %v8810_v29, %v24467_v21  ;;  %v7713_v51 = vrot.slane %v18919_v48, 3  ;;  %v7714_v34 = vrot.slane %v18852_v42, 3  ;;  %v7139_v29 = vrot.slane %v18879_v41, 2 }
 0x2a4   :  { %24468 = vst [vmem:[#allocation108_spill] sm:$0xff] %v19180_v19  ;;  %v19187_v24 = vpack.c.bf16 %v19180_v19, %v19170_v62  ;;  %v19202_v44 = vcombine.high %v19016_v31, %v19016_v31  ;;  %v5763_v3 = vadd.f32 %v18903_v1, %v5612_v17  ;;  %v7140_v46 = vrot.slane %v18913_v45, 2  ;;  %15563 = vrot.lane.b32.xlu1 %v15562_v49, %s16359_s30 }
 0x2a5   :  { %v7142_v42 = vrot.slane %v19039_v33, 2  ;;  %v7712_v4 = vsel %vm7634_vm3, %v7710_v5, %v7711_v52  ;;  %v7715_v10 = vsel %vm7634_vm3, %v7713_v51, %v7714_v34  ;;  %v7143_v17 = vrot.slane %v18957_v58, 2  ;;  %14428 = vmatmul.mubr.msk.bf16.gmra.mrb[76].mxu0 %vm2071_vm0, %v16238_v0 }
 0x2a6   :  { %24469 = vst [vmem:[#allocation92_spill] sm:$0xff] %v19187_v24  ;;  %14690 = vmatmul.mubr.msk.bf16.gmra.mrb[120].mxu1 %vm9264_vm8, %v19187_v24  ;;  %v6189_v21 = vcombine.high %v18936_v47, %v18936_v47  ;;  %v15552_v23 = vpack.i.bf16 %v7715_v10, %v7712_v4  ;;  %v7141_v24 = vsel %vm7057_vm1, %v7139_v29, %v7140_v46  ;;  %v7717_v51 = vrot.slane %v18913_v45, 3 }
 0x2a7   :  { %v8240_v22 = vcombine.low %v18927_v40, %v19161_v25  ;;  %v7144_v49 = vsel %vm7057_vm1, %v7142_v42, %v7143_v17  ;;  %v19233_v34 = vmax.f32 %v5763_v3, 0.0  ;;  %v7719_v46 = vrot.slane %v19039_v33, 3  ;;  %14431 = vmatprep.mubr.msk.bf16.mxu0 %vm2071_vm0, %v16239_v37 }
 0x2a8   :  { %v19228_v5 = vcombine.low %v18936_v47, %v6189_v21  ;;  %v8241_v52 = vcombine.low %v6189_v21, %v18993_v15  ;;  %15553 = vrot.lane.b32.xlu0 %v15552_v23, %s16360_s21  ;;  %v15567_v29 = vpack.i.bf16 %v7144_v49, %v7141_v24  ;;  %v7720_v4 = vrot.slane %v18957_v58, 3  ;;  %v19247_v21 = vpop.f32.mrb[228].mxu0  ;;  %v16240_v49 = vld [vmem:[%s23856_s0 + $0x548] sm:$0xff]  }
 0x2a9   :  { %24471 = vst [vmem:[#allocation93_spill] sm:$0xff] %v19233_v34  ;;  %v7718_v47 = vsel %vm7634_vm3, %v7716_v20, %v7717_v51  ;;  %v6187_v10 = vcombine.high %v18957_v58, %v18957_v58  ;;  %v6569_v45 = vrot.slane %v19161_v25, 1  ;;  %v6572_v3 = vrot.slane %v18993_v15, 1  ;;  %24472 = vst [vmem:[#allocation109_spill] sm:$0xff] %v19247_v21  ;;  %v19255_v23 = vpop.f32.mrb[229].mxu0 }
 0x2aa   :  { %24470 = vst [vmem:[#allocation113_spill] sm:$0xff] %v19228_v5  ;;  %v15577_v42 = vpack.i.bf16 %v8241_v52, %v8240_v22  ;;  %15568 = vrot.lane.b32.xlu1 %v15567_v29, %s16358_s27  ;;  %v7721_v0 = vsel %vm7634_vm3, %v7719_v46, %v7720_v4  ;;  %v6571_v24 = vrot.slane %v19228_v5, 1  ;;  %v6192_v17 = vcombine.high %v5904_v32, %v5904_v32  ;;  %v19266_v46 = vpop.f32.mrb[230].mxu0 }
 0x2ab   :  { %v15572_v37 = vpack.i.bf16 %v7721_v0, %v7718_v47  ;;  %v19250_v22 = vcombine.low %v6187_v10, %v18927_v40  ;;  %v8242_v58 = vcombine.low %v19016_v31, %v19202_v44  ;;  %v7146_v20 = vrot.slane %v19161_v25, 2  ;;  %24475 = vst [vmem:[#allocation126_spill] sm:$0xff] %v19266_v46  ;;  %v16241_v31 = vld [vmem:[%s23856_s0 + $0x550] sm:$0xff]  }
 0x2ac   :  { %15578 = vrot.lane.b32.xlu0 %v15577_v42, %s16357_s19  ;;  %v6573_v52 = vsel %vm6480_vm2, %v6571_v24, %v6572_v3  ;;  %v19262_v51 = vcombine.low %v5904_v32, %v6192_v17  ;;  %v8243_v40 = vcombine.low %v6192_v17, %v19035_v59  ;;  %v7148_v29 = vrot.slane %v19228_v5, 2  ;;  %v19275_v32 = vpop.f32.mrb[231].mxu0 }
 0x2ad   :  { %24473 = vst [vmem:[#allocation124_spill] sm:$0xff] %v19250_v22  ;;  %v6568_v4 = vrot.slane %v19250_v22, 1  ;;  %v7145_v47 = vrot.slane %v19250_v22, 2  ;;  %v7149_v42 = vrot.slane %v18993_v15, 2  ;;  %v6574_v10 = vrot.slane %v19047_v16, 1  ;;  %14432 = vmatmul.mubr.msk.bf16.gmra.mrb[80].mxu0 %vm2071_vm0, %v16240_v49 }
 0x2ae   :  { %24474 = vst [vmem:[#allocation125_spill] sm:$0xff] %v19262_v51  ;;  %15573 = vrot.lane.b32.xlu1 %v15572_v37, %s16360_s21  ;;  %v15597_v0 = vpack.i.bf16 %v8243_v40, %v8242_v58  ;;  %v6575_v24 = vrot.slane %v19202_v44, 1  ;;  %v6577_v3 = vrot.slane %v19262_v51, 1  ;;  %v6578_v17 = vrot.slane %v19035_v59, 1  ;;  %14435 = vmatprep.mubr.msk.bf16.mxu0 %vm2071_vm0, %v16241_v31 }
 0x2af   :  { %v6570_v19 = vsel %vm6480_vm2, %v6568_v4, %v6569_v45  ;;  %v7147_v60 = vsel %vm7057_vm1, %v7145_v47, %v7146_v20  ;;  %v7150_v43 = vsel %vm7057_vm1, %v7148_v29, %v7149_v42  ;;  %v7722_v6 = vrot.slane %v19250_v22, 3  ;;  %v16242_v4 = vld [vmem:[%s23856_s0 + $0x558] sm:$0xff]  }
 0x2b0   :  { %v15582_v13 = vpack.i.bf16 %v6573_v52, %v6570_v19  ;;  %v15587_v30 = vpack.i.bf16 %v7150_v43, %v7147_v60  ;;  %v6576_v37 = vsel %vm6480_vm2, %v6574_v10, %v6575_v24  ;;  %v6579_v58 = vsel %vm6480_vm2, %v6577_v3, %v6578_v17  ;;  %v19298_v52 = vpop.f32.mrb[232].mxu0  ;;  %v24510_v22 = vld [vmem:[#allocation90_spill] sm:$0xff] }
 0x2b1   :  { %v15602_v40 = vpack.i.bf16 %v6579_v58, %v6576_v37  ;;  %v7723_v8 = vrot.slane %v19161_v25, 3  ;;  %v7725_v45 = vrot.slane %v19228_v5, 3  ;;  %v7726_v20 = vrot.slane %v18993_v15, 3  ;;  %v19304_v31 = vpop.f32.mrb[233].mxu0  ;;  %v24487_v58 = vld [vmem:[#allocation43_spill] sm:$0xff] }
 0x2b2   :  { %15583 = vrot.lane.b32.xlu0 %v15582_v13, %s16359_s30  ;;  %15598 = vrot.lane.b32.xlu1 %v15597_v0, %s16357_s19  ;;  %v7151_v19 = vrot.slane %v19047_v16, 2  ;;  %v7152_v43 = vrot.slane %v19202_v44, 2  ;;  %v7154_v60 = vrot.slane %v19262_v51, 2  ;;  %v7155_v49 = vrot.slane %v19035_v59, 2  ;;  %24476 = vst [vmem:[#allocation127_spill] sm:$0xff] %v19304_v31 }
 0x2b3   :  { %v7724_v25 = vsel %vm7634_vm3, %v7722_v6, %v7723_v8  ;;  %v7727_v29 = vsel %vm7634_vm3, %v7725_v45, %v7726_v20  ;;  %v7728_v15 = vrot.slane %v19047_v16, 3  ;;  %v7729_v13 = vrot.slane %v19202_v44, 3  ;;  %v19312_v8 = vpop.f32.mrb[234].mxu0  ;;  %v16243_v6 = vld [vmem:[%s23856_s0 + $0x560] sm:$0xff]  }
 0x2b4   :  { %v15592_v47 = vpack.i.bf16 %v7727_v29, %v7724_v25  ;;  %v7153_v42 = vsel %vm7057_vm1, %v7151_v19, %v7152_v43  ;;  %v7156_v10 = vsel %vm7057_vm1, %v7154_v60, %v7155_v49  ;;  %v7731_v0 = vrot.slane %v19262_v51, 3  ;;  %v19321_v37 = vpop.f32.mrb[235].mxu0  ;;  %v16244_v49 = vld [vmem:[%s23856_s0 + $0x568] sm:$0xff]   ;;  %v24486_v25 = vld [vmem:[#allocation46_spill] sm:$0xff] }
 0x2b5   :  { %v15607_v44 = vpack.i.bf16 %v7156_v10, %v7153_v42  ;;  %v7730_v24 = vsel %vm7634_vm3, %v7728_v15, %v7729_v13  ;;  %v7732_v3 = vrot.slane %v19035_v59, 3  ;;  %24477 = vst [vmem:[#allocation128_spill] sm:$0xff] %v19321_v37  ;;  %14436 = vmatmul.mubr.msk.bf16.gmra.mrb[84].mxu0 %vm2071_vm0, %v16242_v4  ;;  %v19331_v20 = vcombine.high %v19233_v34, %v19233_v34  ;;  %v24491_v34 = vld [vmem:[#allocation87_spill] sm:$0xff] }
 0x2b6   :  { %15588 = vrot.lane.b32.xlu0 %v15587_v30, %s16358_s27  ;;  %15603 = vrot.lane.b32.xlu1 %v15602_v40, %s16359_s30  ;;  %v19336_v30 = vpop.f32.mrb[236].mxu0  ;;  %v19340_v40 = vpack.c.bf16 %v19024_v9, %v18955_v50  ;;  %v19344_v19 = vpack.c.bf16 %v19122_v63, %v19029_v56  ;;  %v16245_v50 = vld [vmem:[%s23856_s0 + $0x570] sm:$0xff]   ;;  %v19364_v56 = vpack.c.bf16 %v19170_v62, %v19127_v39  ;;  %v14665_v63 = vpop.f32.mrb[100].mxu1 }
 0x2b7   :  { %v7733_v45 = vsel %vm7634_vm3, %v7731_v0, %v7732_v3  ;;  %24478 = vst [vmem:[#allocation129_spill] sm:$0xff] %v19331_v20  ;;  %14439 = vmatprep.mubr.msk.bf16.mxu0 %vm2071_vm0, %v16243_v6  ;;  %v19348_v60 = vpop.f32.mrb[237].mxu0  ;;  %v16247_v0 = vld [vmem:[%s23856_s0 + $0x580] sm:$0xff]   ;;  %v5555_v43 = vmax.f32 %v24486_v25, %v14665_v63  ;;  %v5242_v39 = vpop.f32.mrb[101].mxu1  ;;  %v24495_v63 = vld [vmem:[#allocation50_spill] sm:$0xff]  ;;  %v24532_v37 = vmax.f32 %v19085_v57, %v19312_v8 }
 0x2b8   :  { %v15612_v59 = vpack.i.bf16 %v7733_v45, %v7730_v24  ;;  %24479 = vst [vmem:[#allocation130_spill] sm:$0xff] %v19340_v40  ;;  %24480 = vst [vmem:[#allocation131_spill] sm:$0xff] %v19344_v19  ;;  %v19355_v29 = vpop.f32.mrb[238].mxu0  ;;  %v5553_v17 = vmax.f32 %v24487_v58, %v5242_v39  ;;  %v24488_v19 = vld [vmem:[#allocation54_spill] sm:$0xff]  ;;  %v24489_v40 = vld [vmem:[#allocation67_spill] sm:$0xff] }
 0x2b9   :  { %24481 = vst [vmem:[#allocation132_spill] sm:$0xff] %v19364_v56  ;;  %v19368_v15 = vpop.f32.mrb[239].mxu0  ;;  %v14666_v56 = vpop.f32.mrb[102].mxu1  ;;  %v24490_v35 = vmax.f32 %v24488_v19, %v24489_v40  ;;  %v16252_v58 = vld [vmem:[%s23856_s0 + $0x5a8] sm:$0xff]  }
 0x2ba   :  { %15593 = vrot.lane.b32.xlu0 %v15592_v47, %s16360_s21  ;;  %15608 = vrot.lane.b32.xlu1 %v15607_v44, %s16358_s27  ;;  %v16246_v47 = vld [vmem:[%s23856_s0 + $0x578] sm:$0xff]   ;;  %v5556_v20 = vmax.f32 %v24491_v34, %v14666_v56  ;;  %v5245_v55 = vpop.f32.mrb[103].mxu1  ;;  %v24496_v40 = vld [vmem:[#allocation56_spill] sm:$0xff] }
 0x2bb   :  { %v5554_v16 = vmax.f32 %v24495_v63, %v5245_v55  ;;  %v24500_v55 = vld [vmem:[#allocation51_spill] sm:$0xff] }
 0x2bd   :  { %14440 = vmatmul.mubr.msk.bf16.gmra.mrb[88].mxu0 %vm2071_vm0, %v16244_v49  ;;  %v19375_v4 = vpop.f32.mrb[240].mxu0  ;;  %v16248_v49 = vld [vmem:[%s23856_s0 + $0x588] sm:$0xff]  }
 0x2be   :  { %15613 = vrot.lane.b32.xlu1 %v15612_v59, %s16360_s21  ;;  %14443 = vmatprep.mubr.msk.bf16.mxu0 %vm2071_vm0, %v16245_v50  ;;  %v19379_v62 = vpop.f32.mrb[241].mxu0 }
 0x2bf   :  { %v19386_v10 = vpop.f32.mrb[242].mxu0 }
 0x2c0   :  { %v19393_v44 = vpop.f32.mrb[243].mxu0 }
 0x2c5   :  { %14444 = vmatmul.mubr.msk.bf16.gmra.mrb[92].mxu0 %vm2071_vm0, %v16246_v47  ;;  %v19399_v3 = vpop.f32.mrb[244].mxu0  ;;  %v16249_v47 = vld [vmem:[%s23856_s0 + $0x590] sm:$0xff]  }
 0x2c6   :  { %14447 = vmatprep.mubr.msk.bf16.mxu0 %vm2071_vm0, %v16247_v0  ;;  %v19403_v59 = vpop.f32.mrb[245].mxu0  ;;  %v16250_v0 = vld [vmem:[%s23856_s0 + $0x598] sm:$0xff]  }
 0x2c7   :  { %v19410_v9 = vpop.f32.mrb[246].mxu0 }
 0x2c8   :  { %v19417_v24 = vpop.f32.mrb[247].mxu0 }
 0x2cd   :  { %14448 = vmatmul.mubr.msk.bf16.gmra.mrb[96].mxu0 %vm2071_vm0, %v16248_v49  ;;  %v19423_v6 = vpop.f32.mrb[248].mxu0  ;;  %v16251_v49 = vld [vmem:[%s23856_s0 + $0x5a0] sm:$0xff]  }
 0x2ce   :  { %14451 = vmatprep.mubr.msk.bf16.mxu0 %vm2071_vm0, %v16249_v47  ;;  %24482 = vst [vmem:[#allocation133_spill] sm:$0xff] %v19423_v6  ;;  %v19427_v42 = vpop.f32.mrb[249].mxu0  ;;  %v19452_v47 = vmax.f32 %v24490_v35, %v5555_v43  ;;  %v24497_v35 = vld [vmem:[#allocation32_spill] sm:$0xff] }
 0x2cf   :  { %24483 = vst [vmem:[#allocation134_spill] sm:$0xff] %v19427_v42  ;;  %v19434_v13 = vpop.f32.mrb[250].mxu0  ;;  %v24498_v19 = vmax.f32 %v24496_v40, %v24497_v35  ;;  %v14669_v40 = vpop.f32.mrb[104].mxu1 }
 0x2d0   :  { %24484 = vst [vmem:[#allocation135_spill] sm:$0xff] %v19434_v13  ;;  %v19441_v45 = vpop.f32.mrb[251].mxu0 }
 0x2d1   :  { %24485 = vst [vmem:[#allocation136_spill] sm:$0xff] %v19441_v45  ;;  %v19469_v43 = vmax.f32 %v24498_v19, %v5556_v20  ;;  %v24504_v20 = vld [vmem:[#allocation88_spill] sm:$0xff]  ;;  %v5258_v19 = vpop.f32.mrb[105].mxu1 }
 0x2d2   :  { %v5559_v35 = vmax.f32 %v24504_v20, %v14669_v40 }
 0x2d3   :  { %24499 = vst [vmem:[#allocation46_spill] sm:$0xff] %v19469_v43 }
 0x2d5   :  { %14452 = vmatmul.mubr.msk.bf16.gmra.mrb[100].mxu0 %vm2071_vm0, %v16250_v0  ;;  %v24493_v0 = vld [vmem:[#allocation69_spill] sm:$0xff] }
 0x2d6   :  { %14455 = vmatprep.mubr.msk.bf16.mxu0 %vm2071_vm0, %v16251_v49  ;;  %v19455_v50 = vpop.f32.mrb[252].mxu0  ;;  %v24494_v53 = vmax.f32 %v24492_v7, %v24493_v0  ;;  %v16253_v7 = vld [vmem:[%s23856_s0 + $0x5b0] sm:$0xff]  }
 0x2d7   :  { %v19461_v49 = vpop.f32.mrb[253].mxu0 }
 0x2d8   :  { %v5697_v25 = vmax.f32 %v24494_v53, %v5553_v17  ;;  %v19471_v34 = vpop.f32.mrb[254].mxu0  ;;  %v24501_v17 = vld [vmem:[#allocation48_spill] sm:$0xff] }
 0x2d9   :  { %v24502_v56 = vmax.f32 %v24500_v55, %v24501_v17  ;;  %v3981_v0 = vpop.f32.mrb[255].mxu0  ;;  %v24506_v55 = vld [vmem:[#allocation52_spill] sm:$0xff]  ;;  %v14670_v17 = vpop.f32.mrb[106].mxu1 }
 0x2da   :  { %v5848_v53 = vadd.f32 %v18903_v1, %v5697_v25  ;;  %v5560_v45 = vmax.f32 %v24510_v22, %v14670_v17  ;;  %v24518_v17 = vld [vmem:[#allocation76_spill] sm:$0xff] }
 0x2db   :  { %v5698_v39 = vmax.f32 %v24502_v56, %v5554_v16  ;;  %v5557_v16 = vmax.f32 %v24506_v55, %v5258_v19  ;;  %v24508_v56 = vld [vmem:[#allocation74_spill] sm:$0xff] }
 0x2dc   :  { %v19480_v63 = vmax.f32 %v5848_v53, 0.0  ;;  %v24507_v53 = vld [vmem:[#allocation59_spill] sm:$0xff] }
 0x2dd   :  { %v5849_v51 = vadd.f32 %v18903_v1, %v5698_v39  ;;  %14456 = vmatmul.mubr.msk.bf16.gmra.mrb[104].mxu0 %vm2071_vm0, %v16252_v58  ;;  %v24509_v5 = vmax.f32 %v24507_v53, %v24508_v56  ;;  %v5261_v58 = vpop.f32.mrb[107].mxu1 }
 0x2de   :  { %24503 = vst [vmem:[#allocation43_spill] sm:$0xff] %v19480_v63  ;;  %14459 = vmatprep.mubr.msk.bf16.mxu0 %vm2071_vm0, %v16253_v7  ;;  %v6280_v25 = vcombine.high %v19480_v63, %v19480_v63  ;;  %v24513_v7 = vld [vmem:[#allocation75_spill] sm:$0xff]  ;;  %v24516_v63 = vld [vmem:[#allocation86_spill] sm:$0xff] }
 0x2df   :  { %v19486_v43 = vmax.f32 %v5849_v51, 0.0  ;;  %v5703_v39 = vmax.f32 %v24509_v5, %v5559_v35  ;;  %v19495_v46 = vpop.f32.mrb[0].mxu0  ;;  %v24512_v51 = vld [vmem:[#allocation53_spill] sm:$0xff]  ;;  %v5558_v19 = vmax.f32 %v24516_v63, %v5261_v58  ;;  %v16254_v5 = vld [vmem:[%s23856_s0 + $0x5b8] sm:$0xff]  }
 0x2e0   :  { %v24514_v20 = vmax.f32 %v24512_v51, %v24513_v7  ;;  %v3994_v55 = vpop.f32.mrb[1].mxu0  ;;  %v24517_v35 = vld [vmem:[#allocation61_spill] sm:$0xff]  ;;  %v24520_v51 = vld [vmem:[#allocation55_spill] sm:$0xff] }
 0x2e1   :  { %24505 = vst [vmem:[#allocation54_spill] sm:$0xff] %v19486_v43  ;;  %v19498_v40 = vcombine.low %v6280_v25, %v19486_v43  ;;  %v5854_v22 = vadd.f32 %v18903_v1, %v5703_v39  ;;  %v24519_v53 = vmax.f32 %v24517_v35, %v24518_v17  ;;  %v19513_v25 = vpop.f32.mrb[2].mxu0  ;;  %v24521_v7 = vld [vmem:[#allocation77_spill] sm:$0xff] }
 0x2e2   :  { %v19503_v13 = vmax.f32 %v24514_v20, %v5557_v16  ;;  %v16255_v16 = vld [vmem:[%s23856_s0 + $0x5c0] sm:$0xff]   ;;  %v24522_v63 = vmax.f32 %v24520_v51, %v24521_v7  ;;  %v3997_v20 = vpop.f32.mrb[3].mxu0 }
 0x2e3   :  { %24511 = vst [vmem:[#allocation67_spill] sm:$0xff] %v19498_v40  ;;  %v5704_v56 = vmax.f32 %v24519_v53, %v5560_v45  ;;  %v16260_v40 = vld [vmem:[%s23856_s0 + $0x5e8] sm:$0xff]  }
 0x2e4   :  { %24515 = vst [vmem:[#allocation87_spill] sm:$0xff] %v19503_v13  ;;  %v19521_v58 = vmax.f32 %v24522_v63, %v5558_v19  ;;  %v19523_v13 = vmax.f32 %v5854_v22, 0.0  ;;  %v16256_v22 = vld [vmem:[%s23856_s0 + $0x5c8] sm:$0xff]   ;;  %v16258_v63 = vld [vmem:[%s23856_s0 + $0x5d8] sm:$0xff]  }
 0x2e5   :  { %v5855_v39 = vadd.f32 %v18903_v1, %v5704_v56  ;;  %14460 = vmatmul.mubr.msk.bf16.gmra.mrb[108].mxu0 %vm2071_vm0, %v16254_v5  ;;  %v16257_v5 = vld [vmem:[%s23856_s0 + $0x5d0] sm:$0xff]  }
 0x2e6   :  { %24523 = vst [vmem:[#allocation49_spill] sm:$0xff] %v19521_v58  ;;  %24524 = vst [vmem:[#allocation69_spill] sm:$0xff] %v19523_v13  ;;  %v6286_v45 = vcombine.high %v19523_v13, %v19523_v13  ;;  %14463 = vmatprep.mubr.msk.bf16.mxu0 %vm2071_vm0, %v16255_v16  ;;  %v24529_v13 = vld [vmem:[#allocation84_spill] sm:$0xff] }
 0x2e7   :  { %v19527_v35 = vmax.f32 %v5855_v39, 0.0  ;;  %v19535_v53 = vpop.f32.mrb[4].mxu0  ;;  %v5847_v58 = vadd.f32 %v18903_v1, %v24529_v13 }
 0x2e8   :  { %v19537_v19 = vpop.f32.mrb[5].mxu0 }
 0x2e9   :  { %24525 = vst [vmem:[#allocation50_spill] sm:$0xff] %v19527_v35  ;;  %v19533_v17 = vcombine.low %v6286_v45, %v19527_v35  ;;  %v19542_v56 = vpop.f32.mrb[6].mxu0  ;;  %v16259_v45 = vld [vmem:[%s23856_s0 + $0x5e0] sm:$0xff]   ;;  %v5991_v13 = vmax.f32 %v5847_v58, 0.0 }
 0x2ea   :  { %v19547_v51 = vpop.f32.mrb[7].mxu0 }
 0x2eb   :  { %24526 = vst [vmem:[#allocation56_spill] sm:$0xff] %v19533_v17 }
 0x2ed   :  { %14464 = vmatmul.mubr.msk.bf16.gmra.mrb[112].mxu0 %vm2071_vm0, %v16256_v22 }
 0x2ee   :  { %14467 = vmatprep.mubr.msk.bf16.mxu0 %vm2071_vm0, %v16257_v5 }
 0x2ef   :  { %v19551_v16 = vpop.f32.mrb[8].mxu0 }
 0x2f0   :  { %24527 = vst [vmem:[#allocation32_spill] sm:$0xff] %v19551_v16  ;;  %v19553_v7 = vpop.f32.mrb[9].mxu0 }
 0x2f1   :  { %v19558_v39 = vpop.f32.mrb[10].mxu0 }
 0x2f2   :  { %24528 = vst [vmem:[#allocation51_spill] sm:$0xff] %v19558_v39  ;;  %v19563_v17 = vpop.f32.mrb[11].mxu0  ;;  %v16261_v39 = vld [vmem:[%s23856_s0 + $0x5f0] sm:$0xff]  }
 0x2f3   :  { %v19589_v21 = vpop.permute.xlu0 %15538 }
 0x2f5   :  { %14468 = vmatmul.mubr.msk.bf16.gmra.mrb[116].mxu0 %vm2071_vm0, %v16258_v63  ;;  %v24530_v63 = vmax.f32 %v19058_v28, %v19298_v52  ;;  %v16262_v28 = vld [vmem:[%s23856_s0 + $0x5f8] sm:$0xff]   ;;  %v19595_v52 = vcombine.high %v5991_v13, %v5991_v13 }
 0x2f6   :  { %14471 = vmatprep.mubr.msk.bf16.mxu0 %vm2071_vm0, %v16259_v45 }
 0x2f7   :  { %v14365_v22 = vpop.f32.mrb[12].mxu0 }
 0x2f8   :  { %v5471_v5 = vmax.f32 %v19461_v49, %v14365_v22  ;;  %v19568_v35 = vpop.f32.mrb[13].mxu0 }
 0x2f9   :  { %v14366_v43 = vpop.f32.mrb[14].mxu0 }
 0x2fa   :  { %v19581_v45 = vmax.f32 %v24530_v63, %v5471_v5  ;;  %v5472_v49 = vmax.f32 %v3981_v0, %v14366_v43  ;;  %v19583_v22 = vpop.f32.mrb[15].mxu0  ;;  %v24533_v0 = vmax.f32 %v19113_v12, %v19336_v30  ;;  %v24535_v63 = vld [vmem:[#allocation94_spill] sm:$0xff]  ;;  %v19619_v30 = vcombine.low %v5991_v13, %v19595_v52 }
 0x2fb   :  { %v15541_v13 = vunpack.i.h.bf16 %v19589_v21 }
 0x2fc   :  { %24531 = vst [vmem:[#allocation48_spill] sm:$0xff] %v19581_v45  ;;  %v5616_v42 = vmax.f32 %v24532_v37, %v5472_v49  ;;  %v16263_v37 = vld [vmem:[%s23856_s0 + $0x600] sm:$0xff]   ;;  %v24536_v49 = vmax.f32 %v19143_v26, %v19355_v29  ;;  %24537 = vst [vmem:[#allocation88_spill] sm:$0xff] %v19619_v30  ;;  %v19633_v29 = vadd.f32 %v18903_v1, %v19452_v47  ;;  %v16264_v47 = vld [vmem:[%s23856_s0 + $0x608] sm:$0xff]  }
 0x2fd   :  { %14472 = vmatmul.mubr.msk.bf16.gmra.mrb[120].mxu0 %vm2071_vm0, %v16260_v40 }
 0x2fe   :  { %14475 = vmatprep.mubr.msk.bf16.mxu0 %vm2071_vm0, %v16261_v39  ;;  %v5767_v43 = vadd.f32 %v18903_v1, %v5616_v42  ;;  %v24534_v39 = vmax.f32 %v19049_v27, %v19348_v60  ;;  %v24539_v60 = vmax.f32 %v19076_v38, %v19368_v15  ;;  %v15540_v38 = vunpack.i.l.bf16 %v19589_v21 }
 0x2ff   :  { %v14369_v16 = vpop.f32.mrb[16].mxu0 }
 0x300   :  { %v5475_v6 = vmax.f32 %v3994_v55, %v14369_v16  ;;  %v4058_v31 = vpop.f32.mrb[17].mxu0 }
 0x301   :  { %v5473_v57 = vmax.f32 %v19455_v50, %v4058_v31  ;;  %v14370_v8 = vpop.f32.mrb[18].mxu0  ;;  %v15544_v16 = vpop.permute.xlu0 %15543  ;;  %v19611_v31 = vcombine.high %v24535_v63, %v24535_v63 }
 0x302   :  { %v5619_v40 = vmax.f32 %v24533_v0, %v5475_v6  ;;  %v5476_v55 = vmax.f32 %v3997_v20, %v14370_v8  ;;  %v4061_v58 = vpop.f32.mrb[19].mxu0  ;;  %v19621_v6 = vmax.f32 %v5767_v43, 0.0  ;;  %v15546_v20 = vunpack.i.h.bf16 %v15544_v16 }
 0x303   :  { %v5617_v5 = vmax.f32 %v24534_v39, %v5473_v57  ;;  %v5474_v42 = vmax.f32 %v19471_v34, %v4061_v58 }
 0x304   :  { %v5770_v50 = vadd.f32 %v18903_v1, %v5619_v40  ;;  %v5620_v12 = vmax.f32 %v24536_v49, %v5476_v55  ;;  %24538 = vst [vmem:[#allocation52_spill] sm:$0xff] %v19621_v6  ;;  %v6199_v58 = vcombine.high %v19621_v6, %v19621_v6 }
 0x305   :  { %14476 = vmatmul.mubr.msk.bf16.gmra.mrb[124].mxu0 %vm2071_vm0, %v16262_v28  ;;  %v5768_v27 = vadd.f32 %v18903_v1, %v5617_v5  ;;  %v5618_v34 = vmax.f32 %v24539_v60, %v5474_v42  ;;  %v15545_v28 = vunpack.i.l.bf16 %v15544_v16 }
 0x306   :  { %14479 = vmatprep.mubr.msk.bf16.mxu0 %vm2071_vm0, %v16263_v37  ;;  %v19628_v57 = vmax.f32 %v5770_v50, 0.0  ;;  %v5771_v26 = vadd.f32 %v18903_v1, %v5620_v12  ;;  %v16265_v50 = vld [vmem:[%s23856_s0 + $0x610] sm:$0xff]   ;;  %v24540_v12 = vmax.f32 %v19195_v2, %v19375_v4  ;;  %v24542_v4 = vmax.f32 %v19220_v11, %v19386_v10 }
 0x307   :  { %v5912_v43 = vmax.f32 %v5768_v27, 0.0  ;;  %v5769_v8 = vadd.f32 %v18903_v1, %v5618_v34  ;;  %v14373_v0 = vpop.f32.mrb[20].mxu0 }
 0x308   :  { %v19638_v15 = vmax.f32 %v5771_v26, 0.0  ;;  %v6202_v37 = vcombine.high %v19628_v57, %v19628_v57  ;;  %v5479_v40 = vmax.f32 %v19537_v19, %v14373_v0  ;;  %v4074_v55 = vpop.f32.mrb[21].mxu0  ;;  %v8622_v19 = vsel %vm8595_vm5, %v18919_v48, %v15546_v20  ;;  %v19665_v26 = vpop.permute.xlu1 %15558 }
 0x309   :  { %v19648_v16 = vcombine.high %v5912_v43, %v5912_v43  ;;  %v5913_v39 = vmax.f32 %v5769_v8, 0.0  ;;  %v5477_v5 = vmax.f32 %v19495_v46, %v4074_v55  ;;  %v14374_v42 = vpop.f32.mrb[22].mxu0  ;;  %v8621_v46 = vsel %vm8595_vm5, %v18882_v18, %v15545_v28 }
 0x30a   :  { %v19657_v49 = vcombine.low %v6202_v37, %v19638_v15  ;;  %v5623_v27 = vmax.f32 %v24540_v12, %v5479_v40  ;;  %v5480_v60 = vmax.f32 %v19547_v51, %v14374_v42  ;;  %v4077_v34 = vpop.f32.mrb[23].mxu0  ;;  %v24541_v0 = vmax.f32 %v19106_v61, %v19379_v62 }
 0x30b   :  { %v6201_v8 = vcombine.high %v5913_v39, %v5913_v39  ;;  %v5478_v20 = vmax.f32 %v19513_v25, %v4077_v34  ;;  %v19671_v55 = vcombine.low %v6199_v58, %v5912_v43  ;;  %v8248_v18 = vcombine.low %v5912_v43, %v19648_v16  ;;  %v16266_v34 = vld [vmem:[%s23856_s0 + $0x618] sm:$0xff]  }
 0x30c   :  { %v5621_v48 = vmax.f32 %v24541_v0, %v5477_v5  ;;  %v15549_v37 = vpop.permute.xlu0 %15548  ;;  %v5774_v2 = vadd.f32 %v18903_v1, %v5623_v27  ;;  %v5624_v51 = vmax.f32 %v24542_v4, %v5480_v60  ;;  %v24543_v62 = vmax.f32 %v19133_v54, %v19393_v44 }
 0x30d   :  { %14480 = vmatmul.mubr.msk.bf16.gmra.mrb[128].mxu0 %vm2071_vm0, %v16264_v47  ;;  %v19679_v28 = vcombine.low %v5913_v39, %v6201_v8  ;;  %v8249_v40 = vcombine.low %v6201_v8, %v19628_v57  ;;  %v15561_v58 = vunpack.i.h.bf16 %v19665_v26  ;;  %v15560_v11 = vunpack.i.l.bf16 %v19665_v26 }
 0x30e   :  { %v5772_v61 = vadd.f32 %v18903_v1, %v5621_v48  ;;  %v5622_v25 = vmax.f32 %v24543_v62, %v5478_v20  ;;  %14483 = vmatprep.mubr.msk.bf16.mxu0 %vm2071_vm0, %v16265_v50  ;;  %v5775_v10 = vadd.f32 %v18903_v1, %v5624_v51  ;;  %v6596_v43 = vrot.slane %v19628_v57, 1 }
 0x30f   :  { %v15551_v47 = vunpack.i.h.bf16 %v15549_v37  ;;  %v14377_v42 = vpop.f32.mrb[24].mxu0  ;;  %v15617_v12 = vpack.i.bf16 %v8249_v40, %v8248_v18  ;;  %v15550_v54 = vunpack.i.l.bf16 %v15549_v37  ;;  %v19692_v44 = vmax.f32 %v5774_v2, 0.0 }
 0x310   :  { %v5916_v39 = vmax.f32 %v5772_v61, 0.0  ;;  %v5773_v5 = vadd.f32 %v18903_v1, %v5622_v25  ;;  %v5919_v27 = vmax.f32 %v5775_v10, 0.0  ;;  %v5483_v50 = vmax.f32 %v19553_v7, %v14377_v42  ;;  %v4090_v60 = vpop.f32.mrb[25].mxu0  ;;  %v16267_v7 = vld [vmem:[%s23856_s0 + $0x620] sm:$0xff]  }
 0x311   :  { %v5481_v8 = vmax.f32 %v19535_v53, %v4090_v60  ;;  %15618 = vrot.lane.b32.xlu0 %v15617_v12, %s16357_s19  ;;  %v14378_v0 = vpop.f32.mrb[26].mxu0  ;;  %v6592_v1 = vrot.slane %v19671_v55, 1  ;;  %v6593_v48 = vrot.slane %v19648_v16, 1  ;;  %v6595_v20 = vrot.slane %v19679_v28, 1 }
 0x312   :  { %v19706_v37 = vcombine.high %v5916_v39, %v5916_v39  ;;  %v19708_v2 = vmax.f32 %v5773_v5, 0.0  ;;  %v24544_v53 = vmax.f32 %v19255_v23, %v19399_v3  ;;  %v5484_v51 = vmax.f32 %v19563_v17, %v14378_v0  ;;  %v4093_v18 = vpop.f32.mrb[27].mxu0  ;;  %v19728_v23 = vld [vmem:[%s23857_s2] ss:$0 sm:$0xff] }
 0x313   :  { %v19716_v61 = vcombine.high %v19638_v15, %v19638_v15  ;;  %v19718_v62 = vcombine.high %v5919_v27, %v5919_v27  ;;  %v24545_v25 = vmax.f32 %v19190_v14, %v19403_v59  ;;  %v5482_v10 = vmax.f32 %v19542_v56, %v4093_v18 }
 0x314   :  { %v5627_v4 = vmax.f32 %v24544_v53, %v5483_v50  ;;  %v8718_v5 = vsel %vm8692_vm6, %v8621_v46, %v15550_v54  ;;  %v24546_v17 = vmax.f32 %v19275_v32, %v19410_v9  ;;  %v6597_v14 = vsel %vm6480_vm2, %v6595_v20, %v6596_v43 }
 0x315   :  { %v5625_v40 = vmax.f32 %v24545_v25, %v5481_v8  ;;  %14484 = vmatmul.mubr.msk.bf16.gmra.mrb[132].mxu0 %vm2071_vm0, %v16266_v34  ;;  %v8719_v59 = vsel %vm8692_vm6, %v8622_v19, %v15551_v47  ;;  %v24547_v46 = vmax.f32 %v19209_v36, %v19417_v24  ;;  %v6594_v50 = vsel %vm6480_vm2, %v6592_v1, %v6593_v48 }
 0x316   :  { %v15564_v42 = vpop.permute.xlu1 %15563  ;;  %v5778_v3 = vadd.f32 %v19728_v23, %v5627_v4  ;;  %v5628_v12 = vmax.f32 %v24546_v17, %v5484_v51  ;;  %14487 = vmatprep.mubr.msk.bf16.mxu0 %vm2071_vm0, %v16267_v7  ;;  %v19745_v32 = vcombine.high %v19692_v44, %v19692_v44  ;;  %v19748_v9 = vcombine.low %v5916_v39, %v19706_v37  ;;  %v16268_v7 = vld [vmem:[%s23856_s0 + $0x628] sm:$0xff]  }
 0x317   :  { %v5776_v56 = vadd.f32 %v19728_v23, %v5625_v40  ;;  %v5626_v54 = vmax.f32 %v24547_v46, %v5482_v10  ;;  %v15622_v43 = vpack.i.bf16 %v6597_v14, %v6594_v50  ;;  %v15565_v47 = vunpack.i.l.bf16 %v15564_v42  ;;  %v14381_v8 = vpop.f32.mrb[28].mxu0  ;;  %v16269_v40 = vld [vmem:[%s23856_s0 + $0x630] sm:$0xff]  }
 0x318   :  { %v19753_v36 = vcombine.low %v5919_v27, %v19718_v62  ;;  %v15566_v0 = vunpack.i.h.bf16 %v15564_v42  ;;  %v5922_v20 = vmax.f32 %v5778_v3, 0.0  ;;  %v4106_v39 = vpop.f32.mrb[29].mxu0  ;;  %v8251_v51 = vcombine.low %v19706_v37, %v19708_v2 }
 0x319   :  { %v19755_v24 = vmax.f32 %v5776_v56, 0.0  ;;  %v5777_v34 = vadd.f32 %v19728_v23, %v5626_v54  ;;  %15623 = vrot.lane.b32.xlu0 %v15622_v43, %s16359_s30  ;;  %v5487_v18 = vmax.f32 %v19568_v35, %v14381_v8  ;;  %v19769_v25 = vpop.f32.mrb[30].mxu0  ;;  %v8623_v56 = vsel %vm8595_vm5, %v18879_v41, %v15565_v47  ;;  %v24552_v47 = vld [vmem:[#allocation133_spill] sm:$0xff] }
 0x31a   :  { %v15554_v60 = vpop.permute.xlu0 %15553  ;;  %24548 = vst [vmem:[#allocation59_spill] sm:$0xff] %v19753_v36  ;;  %v19776_v14 = vpop.f32.mrb[31].mxu0  ;;  %v8624_v46 = vsel %vm8595_vm5, %v19039_v33, %v15566_v0  ;;  %v19797_v54 = vcombine.high %v5922_v20, %v5922_v20  ;;  %v5779_v50 = vadd.f32 %v19728_v23, %v5628_v12  ;;  %v24554_v0 = vld [vmem:[#allocation32_spill] sm:$0xff] }
 0x31b   :  { %v15556_v1 = vunpack.i.h.bf16 %v15554_v60  ;;  %v15555_v48 = vunpack.i.l.bf16 %v15554_v60  ;;  %v19762_v4 = vmax.f32 %v5777_v34, 0.0  ;;  %v6208_v27 = vcombine.high %v19755_v24, %v19755_v24 }
 0x31c   :  { %v15569_v53 = vpop.permute.xlu1 %15568 }
 0x31d   :  { %v8815_v10 = vsel %vm8789_vm7, %v8718_v5, %v15555_v48  ;;  %v8816_v42 = vsel %vm8789_vm7, %v8719_v59, %v15556_v1  ;;  %v15571_v3 = vunpack.i.h.bf16 %v15569_v53  ;;  %v15570_v17 = vunpack.i.l.bf16 %v15569_v53  ;;  %14488 = vmatmul.mubr.msk.bf16.gmra.mrb[136].mxu0 %vm2071_vm0, %v16268_v7 }
 0x31e   :  { %v19780_v37 = vpop.permute.xlu0 %15578  ;;  %v19785_v35 = vsel %vm2071_vm0, %v8815_v10, %v15540_v38  ;;  %v19790_v5 = vsel %vm2071_vm0, %v8816_v42, %v15541_v13  ;;  %v8250_v59 = vcombine.low %v19638_v15, %v19716_v61  ;;  %v19804_v13 = vcombine.low %v6208_v27, %v19762_v4  ;;  %v24551_v15 = vld [vmem:[#allocation127_spill] sm:$0xff]  ;;  %14491 = vmatprep.mubr.msk.bf16.mxu0 %vm2071_vm0, %v16269_v40  ;;  %v24556_v42 = vld [vmem:[#allocation134_spill] sm:$0xff] }
 0x31f   :  { %24549 = vst [vmem:[#allocation74_spill] sm:$0xff] %v19785_v35  ;;  %v8720_v41 = vsel %vm8692_vm6, %v8623_v56, %v15570_v17  ;;  %v13506_v21 = vpack.c.bf16 %v19790_v5, %v19785_v35  ;;  %v24553_v60 = vmax.f32 %v24551_v15, %v24552_v47  ;;  %v8721_v34 = vsel %vm8692_vm6, %v8624_v46, %v15571_v3  ;;  %v16271_v15 = vld [vmem:[%s23856_s0 + $0x640] sm:$0xff]  }
 0x320   :  { %v15574_v38 = vpop.permute.xlu1 %15573  ;;  %24550 = vst [vmem:[#allocation90_spill] sm:$0xff] %v19804_v13  ;;  %v15637_v43 = vpack.i.bf16 %v8251_v51, %v8250_v59  ;;  %v5485_v1 = vmax.f32 %v24554_v0, %v4106_v39  ;;  %v7169_v7 = vrot.slane %v19671_v55, 2  ;;  %v7170_v53 = vrot.slane %v19648_v16, 2  ;;  %v19818_v51 = vpop.f32.mrb[32].mxu0  ;;  %v24555_v39 = vld [vmem:[#allocation109_spill] sm:$0xff]  ;;  %v16270_v59 = vld [vmem:[%s23856_s0 + $0x638] sm:$0xff]  }
 0x321   :  { %v5631_v33 = vmax.f32 %v24553_v60, %v5487_v18  ;;  %v15576_v8 = vunpack.i.h.bf16 %v15574_v38  ;;  %v15575_v12 = vunpack.i.l.bf16 %v15574_v38  ;;  %14693 = vmatprep.mubr.msk.bf16.mxu1 %vm9264_vm8, %v13506_v21  ;;  %v7172_v27 = vrot.slane %v19679_v28, 2  ;;  %v19827_v56 = vpop.f32.mrb[33].mxu0 }
 0x322   :  { %15638 = vrot.lane.b32.xlu1 %v15637_v43, %s16357_s19  ;;  %v19822_v10 = vmax.f32 %v5779_v50, 0.0  ;;  %v24557_v3 = vmax.f32 %v24555_v39, %v24556_v42  ;;  %v19845_v21 = vcombine.low %v5922_v20, %v19797_v54  ;;  %v7173_v43 = vrot.slane %v19628_v57, 2 }
 0x323   :  { %v5782_v48 = vadd.f32 %v19728_v23, %v5631_v33  ;;  %v8817_v18 = vsel %vm8789_vm7, %v8720_v41, %v15575_v12  ;;  %v8818_v40 = vsel %vm8789_vm7, %v8721_v34, %v15576_v8  ;;  %v7171_v26 = vsel %vm7057_vm1, %v7169_v7, %v7170_v53 }
 0x324   :  { %v5629_v17 = vmax.f32 %v24557_v3, %v5485_v1  ;;  %v15584_v46 = vpop.permute.xlu0 %15583  ;;  %v19832_v38 = vpop.permute.xlu1 %15598  ;;  %v19837_v41 = vsel %vm2071_vm0, %v8817_v18, %v15560_v11  ;;  %v19842_v50 = vsel %vm2071_vm0, %v8818_v40, %v15561_v58  ;;  %24560 = vst [vmem:[#allocation86_spill] sm:$0xff] %v19845_v21  ;;  %v19854_v11 = vcombine.high %v19762_v4, %v19762_v4  ;;  %v24567_v3 = vld [vmem:[#allocation51_spill] sm:$0xff] }
 0x325   :  { %24558 = vst [vmem:[#allocation53_spill] sm:$0xff] %v19837_v41  ;;  %24559 = vst [vmem:[#allocation75_spill] sm:$0xff] %v19842_v50  ;;  %v19856_v60 = vmax.f32 %v5782_v48, 0.0  ;;  %v19859_v58 = vpop.f32.mrb[34].mxu0  ;;  %v19863_v20 = vpack.c.bf16 %v19842_v50, %v19837_v41  ;;  %v7174_v34 = vsel %vm7057_vm1, %v7172_v27, %v7173_v43  ;;  %v5488_v8 = vmax.f32 %v19583_v22, %v19769_v25  ;;  %v24564_v22 = vld [vmem:[#allocation128_spill] sm:$0xff]  ;;  %v24565_v25 = vld [vmem:[#allocation135_spill] sm:$0xff] }
 0x326   :  { %v5780_v33 = vadd.f32 %v19728_v23, %v5629_v17  ;;  %v19869_v12 = vpop.f32.mrb[35].mxu0  ;;  %v15580_v0 = vunpack.i.l.bf16 %v19780_v37  ;;  %v15585_v1 = vunpack.i.l.bf16 %v15584_v46  ;;  %v6211_v48 = vcombine.high %v19822_v10, %v19822_v10  ;;  %14492 = vmatmul.mubr.msk.bf16.gmra.mrb[140].mxu0 %vm2071_vm0, %v16270_v59  ;;  %v24577_v50 = vld [vmem:[#allocation123_spill] sm:$0xff] }
 0x327   :  { %24561 = vst [vmem:[#allocation61_spill] sm:$0xff] %v19856_v60  ;;  %24562 = vst [vmem:[#allocation76_spill] sm:$0xff] %v19863_v20  ;;  %v15627_v7 = vpack.i.bf16 %v7174_v34, %v7171_v26  ;;  %v15586_v53 = vunpack.i.h.bf16 %v15584_v46  ;;  %14694 = vmatmul.mubr.msk.bf16.gmra.mrb[124].mxu1 %vm9264_vm8, %v19863_v20  ;;  %v24566_v39 = vmax.f32 %v24564_v22, %v24565_v25  ;;  %14495 = vmatprep.mubr.msk.bf16.mxu0 %vm2071_vm0, %v16271_v15  ;;  %v24569_v22 = vld [vmem:[#allocation126_spill] sm:$0xff]  ;;  %v24570_v25 = vld [vmem:[#allocation136_spill] sm:$0xff]  ;;  %v19898_v15 = vpop.f32.mrb[36].mxu0 }
 0x328   :  { %v15589_v18 = vpop.permute.xlu0 %15588  ;;  %v15604_v27 = vpop.permute.xlu1 %15603  ;;  %v19877_v40 = vmax.f32 %v5780_v33, 0.0  ;;  %v5486_v17 = vmax.f32 %v24567_v3, %v19776_v14  ;;  %v15601_v43 = vunpack.i.h.bf16 %v19832_v38  ;;  %v6214_v26 = vcombine.high %v19856_v60, %v19856_v60  ;;  %v24572_v3 = vld [vmem:[#allocation124_spill] sm:$0xff]  ;;  %v16293_v60 = vld [vmem:[%s23856_s0 + $0x6f0] sm:$0xff]  }
 0x329   :  { %v5632_v42 = vmax.f32 %v24566_v39, %v5488_v8  ;;  %v15591_v59 = vunpack.i.h.bf16 %v15589_v18  ;;  %v15590_v46 = vunpack.i.l.bf16 %v15589_v18  ;;  %15628 = vrot.lane.b32.xlu0 %v15627_v7, %s16358_s27  ;;  %v15606_v33 = vunpack.i.h.bf16 %v15604_v27  ;;  %v19904_v20 = vpop.f32.mrb[37].mxu0 }
 0x32a   :  { %24563 = vst [vmem:[#allocation55_spill] sm:$0xff] %v19877_v40  ;;  %v19890_v34 = vcombine.low %v6211_v48, %v19877_v40  ;;  %v24571_v14 = vmax.f32 %v24569_v22, %v24570_v25  ;;  %v8625_v18 = vsel %vm8595_vm5, %v24572_v3, %v15585_v1  ;;  %v15600_v7 = vunpack.i.l.bf16 %v19832_v38  ;;  %v16272_v48 = vld [vmem:[%s23856_s0 + $0x648] sm:$0xff]   ;;  %v16273_v1 = vld [vmem:[%s23856_s0 + $0x650] sm:$0xff]   ;;  %v19919_v6 = vpop.f32.mrb[38].mxu0 }
 0x32b   :  { %v5783_v8 = vadd.f32 %v19728_v23, %v5632_v42  ;;  %v15605_v19 = vunpack.i.l.bf16 %v15604_v27  ;;  %v6598_v47 = vrot.slane %v19657_v49, 1  ;;  %v24573_v42 = vld [vmem:[#allocation113_spill] sm:$0xff]  ;;  %v8722_v22 = vsel %vm8692_vm6, %v8625_v18, %v15590_v46  ;;  %v19927_v45 = vpop.f32.mrb[39].mxu0 }
 0x32c   :  { %24568 = vst [vmem:[#allocation77_spill] sm:$0xff] %v19890_v34  ;;  %v19896_v39 = vmax.f32 %v24571_v14, %v5486_v17  ;;  %v8626_v17 = vsel %vm8595_vm5, %v24573_v42, %v15586_v53  ;;  %v15594_v25 = vpop.permute.xlu0 %15593  ;;  %v15609_v14 = vpop.permute.xlu1 %15608  ;;  %v6599_v38 = vrot.slane %v19716_v61, 1  ;;  %v24575_v53 = vld [vmem:[#allocation125_spill] sm:$0xff]  ;;  %v6601_v42 = vrot.slane %v19748_v9, 1 }
 0x32d   :  { %v19912_v35 = vmax.f32 %v5783_v8, 0.0  ;;  %v8723_v27 = vsel %vm8692_vm6, %v8626_v17, %v15591_v59  ;;  %v15596_v3 = vunpack.i.h.bf16 %v15594_v25  ;;  %v15595_v34 = vunpack.i.l.bf16 %v15594_v25 }
 0x32e   :  { %v15610_v40 = vunpack.i.l.bf16 %v15609_v14  ;;  %v8628_v46 = vsel %vm8595_vm5, %v24575_v53, %v15606_v33  ;;  %v15611_v18 = vunpack.i.h.bf16 %v15609_v14  ;;  %v8627_v41 = vsel %vm8595_vm5, %v24577_v50, %v15605_v19  ;;  %14496 = vmatmul.mubr.msk.bf16.gmra.mrb[144].mxu0 %vm2071_vm0, %v16272_v48 }
 0x32f   :  { %24574 = vst [vmem:[#allocation84_spill] sm:$0xff] %v19912_v35  ;;  %v19924_v8 = vcombine.low %v6214_v26, %v19912_v35  ;;  %v8819_v59 = vsel %vm8789_vm7, %v8722_v22, %v15595_v34  ;;  %v8820_v17 = vsel %vm8789_vm7, %v8723_v27, %v15596_v3  ;;  %v6600_v25 = vsel %vm6480_vm2, %v6598_v47, %v6599_v38  ;;  %v19955_v22 = vpop.f32.mrb[40].mxu0 }
 0x330   :  { %v8724_v33 = vsel %vm8692_vm6, %v8627_v41, %v15610_v40  ;;  %v15614_v14 = vpop.permute.xlu1 %15613  ;;  %v19937_v26 = vsel %vm2071_vm0, %v8819_v59, %v15580_v0  ;;  %v24578_v53 = vunpack.i.h.bf16 %v19780_v37  ;;  %v6602_v19 = vrot.slane %v19708_v2, 1  ;;  %14499 = vmatprep.mubr.msk.bf16.mxu0 %vm2071_vm0, %v16273_v1  ;;  %v19962_v59 = vpop.f32.mrb[41].mxu0 }
 0x331   :  { %24576 = vst [vmem:[#allocation94_spill] sm:$0xff] %v19924_v8  ;;  %v15616_v50 = vunpack.i.h.bf16 %v15614_v14  ;;  %v15615_v34 = vunpack.i.l.bf16 %v15614_v14  ;;  %v7746_v41 = vrot.slane %v19671_v55, 3  ;;  %v8725_v0 = vsel %vm8692_vm6, %v8628_v46, %v15611_v18 }
 0x332   :  { %v19942_v8 = vsel %vm2071_vm0, %v8820_v17, %v24578_v53  ;;  %v6603_v40 = vsel %vm6480_vm2, %v6601_v42, %v6602_v19  ;;  %v7747_v37 = vrot.slane %v19648_v16, 3  ;;  %v7749_v48 = vrot.slane %v19679_v28, 3  ;;  %v16274_v16 = vld [vmem:[%s23856_s0 + $0x658] sm:$0xff]  }
 0x333   :  { %v19948_v47 = vpack.c.bf16 %v19942_v8, %v19937_v26  ;;  %v8821_v38 = vsel %vm8789_vm7, %v8724_v33, %v15615_v34  ;;  %v8822_v1 = vsel %vm8789_vm7, %v8725_v0, %v15616_v50  ;;  %v15642_v27 = vpack.i.bf16 %v6603_v40, %v6600_v25  ;;  %v19975_v33 = vpop.f32.mrb[42].mxu0 }
 0x334   :  { %v7750_v3 = vrot.slane %v19628_v57, 3  ;;  %v19968_v46 = vsel %vm2071_vm0, %v8821_v38, %v15600_v7  ;;  %v19971_v18 = vsel %vm2071_vm0, %v8822_v1, %v15601_v43  ;;  %v7748_v42 = vsel %vm7634_vm3, %v7746_v41, %v7747_v37  ;;  %v16275_v57 = vld [vmem:[%s23856_s0 + $0x660] sm:$0xff]   ;;  %v19988_v53 = vpop.f32.mrb[43].mxu0 }
 0x335   :  { %24579 = vst [vmem:[#allocation127_spill] sm:$0xff] %v19948_v47  ;;  %14697 = vmatprep.mubr.msk.bf16.mxu1 %vm9264_vm8, %v19948_v47  ;;  %24580 = vst [vmem:[#allocation133_spill] sm:$0xff] %v19971_v18  ;;  %v7175_v17 = vrot.slane %v19657_v49, 2  ;;  %15643 = vrot.lane.b32.xlu1 %v15642_v27, %s16359_s30  ;;  %v19983_v25 = vpack.c.bf16 %v19971_v18, %v19968_v46  ;;  %v7176_v43 = vrot.slane %v19716_v61, 2  ;;  %v7178_v14 = vrot.slane %v19748_v9, 2 }
 0x336   :  { %v7751_v7 = vsel %vm7634_vm3, %v7749_v48, %v7750_v3  ;;  %v7179_v50 = vrot.slane %v19708_v2, 2  ;;  %v8252_v34 = vcombine.low %v19692_v44, %v19745_v32  ;;  %v8253_v41 = vcombine.low %v19718_v62, %v19755_v24  ;;  %14500 = vmatmul.mubr.msk.bf16.gmra.mrb[148].mxu0 %vm2071_vm0, %v16274_v16 }
 0x337   :  { %24581 = vst [vmem:[#allocation32_spill] sm:$0xff] %v19983_v25  ;;  %v15632_v19 = vpack.i.bf16 %v7751_v7, %v7748_v42  ;;  %14698 = vmatmul.mubr.msk.bf16.gmra.mrb[128].mxu1 %vm9264_vm8, %v19983_v25  ;;  %v7177_v0 = vsel %vm7057_vm1, %v7175_v17, %v7176_v43  ;;  %v7752_v40 = vrot.slane %v19657_v49, 3  ;;  %v7753_v37 = vrot.slane %v19716_v61, 3  ;;  %14503 = vmatprep.mubr.msk.bf16.mxu0 %vm2071_vm0, %v16275_v57 }
 0x338   :  { %v7755_v48 = vrot.slane %v19748_v9, 3  ;;  %v7180_v38 = vsel %vm7057_vm1, %v7178_v14, %v7179_v50  ;;  %v15657_v1 = vpack.i.bf16 %v8253_v41, %v8252_v34  ;;  %v7756_v62 = vrot.slane %v19708_v2, 3 }
 0x339   :  { %15633 = vrot.lane.b32.xlu0 %v15632_v19, %s16360_s21  ;;  %v24582_v27 = vcombine.high %v19708_v2, %v19708_v2  ;;  %v15647_v61 = vpack.i.bf16 %v7180_v38, %v7177_v0  ;;  %v7754_v42 = vsel %vm7634_vm3, %v7752_v40, %v7753_v37  ;;  %v6605_v16 = vrot.slane %v19745_v32, 1  ;;  %v16276_v0 = vld [vmem:[%s23856_s0 + $0x668] sm:$0xff]   ;;  %v16277_v38 = vld [vmem:[%s23856_s0 + $0x670] sm:$0xff]  }
 0x33a   :  { %v6607_v17 = vrot.slane %v19753_v36, 1  ;;  %v7757_v7 = vsel %vm7634_vm3, %v7755_v48, %v7756_v62  ;;  %v6608_v14 = vrot.slane %v19755_v24, 1  ;;  %v8254_v2 = vcombine.low %v19762_v4, %v19854_v11 }
 0x33b   :  { %v20009_v3 = vcombine.low %v24582_v27, %v19692_v44  ;;  %v20020_v44 = vpop.f32.mrb[44].mxu0  ;;  %15648 = vrot.lane.b32.xlu1 %v15647_v61, %s16358_s27  ;;  %v15652_v57 = vpack.i.bf16 %v7757_v7, %v7754_v42  ;;  %v8255_v19 = vcombine.low %v19797_v54, %v19822_v10  ;;  %v7182_v34 = vrot.slane %v19745_v32, 2 }
 0x33c   :  { %24584 = vst [vmem:[#allocation134_spill] sm:$0xff] %v20020_v44  ;;  %v20027_v41 = vpop.f32.mrb[45].mxu0  ;;  %v6609_v40 = vsel %vm6480_vm2, %v6607_v17, %v6608_v14  ;;  %v7184_v37 = vrot.slane %v19753_v36, 2  ;;  %v7185_v54 = vrot.slane %v19755_v24, 2  ;;  %v6611_v17 = vrot.slane %v19854_v11, 1 }
 0x33d   :  { %24583 = vst [vmem:[#allocation109_spill] sm:$0xff] %v20009_v3  ;;  %v6604_v43 = vrot.slane %v20009_v3, 1  ;;  %v7181_v50 = vrot.slane %v20009_v3, 2  ;;  %15658 = vrot.lane.b32.xlu0 %v15657_v1, %s16357_s19  ;;  %v20037_v48 = vpop.f32.mrb[46].mxu0  ;;  %v15677_v27 = vpack.i.bf16 %v8255_v19, %v8254_v2  ;;  %v6610_v1 = vrot.slane %v19804_v13, 1 }
 0x33e   :  { %24585 = vst [vmem:[#allocation128_spill] sm:$0xff] %v20037_v48  ;;  %v20044_v42 = vpop.f32.mrb[47].mxu0  ;;  %v6613_v7 = vrot.slane %v19845_v21, 1  ;;  %v7759_v2 = vrot.slane %v19745_v32, 3  ;;  %v7761_v19 = vrot.slane %v19753_v36, 3  ;;  %14504 = vmatmul.mubr.msk.bf16.gmra.mrb[152].mxu0 %vm2071_vm0, %v16276_v0  ;;  %v7188_v32 = vrot.slane %v19854_v11, 2 }
 0x33f   :  { %v6606_v4 = vsel %vm6480_vm2, %v6604_v43, %v6605_v16  ;;  %v7183_v61 = vsel %vm7057_vm1, %v7181_v50, %v7182_v34  ;;  %v7186_v16 = vsel %vm7057_vm1, %v7184_v37, %v7185_v54  ;;  %v6614_v43 = vrot.slane %v19822_v10, 1  ;;  %15653 = vrot.lane.b32.xlu1 %v15652_v57, %s16360_s21  ;;  %14507 = vmatprep.mubr.msk.bf16.mxu0 %vm2071_vm0, %v16277_v38 }
 0x340   :  { %v15662_v62 = vpack.i.bf16 %v6609_v40, %v6606_v4  ;;  %v15667_v14 = vpack.i.bf16 %v7186_v16, %v7183_v61  ;;  %v7758_v4 = vrot.slane %v20009_v3, 3  ;;  %v6612_v50 = vsel %vm6480_vm2, %v6610_v1, %v6611_v17 }
 0x341   :  { %v6615_v34 = vsel %vm6480_vm2, %v6613_v7, %v6614_v43  ;;  %v7762_v40 = vrot.slane %v19755_v24, 3  ;;  %v7187_v37 = vrot.slane %v19804_v13, 2  ;;  %v7190_v61 = vrot.slane %v19845_v21, 2  ;;  %v20068_v24 = vpop.f32.mrb[48].mxu0 }
 0x342   :  { %15663 = vrot.lane.b32.xlu0 %v15662_v62, %s16359_s30  ;;  %v15682_v57 = vpack.i.bf16 %v6615_v34, %v6612_v50  ;;  %v7760_v54 = vsel %vm7634_vm3, %v7758_v4, %v7759_v2  ;;  %v7191_v62 = vrot.slane %v19822_v10, 2  ;;  %v7764_v1 = vrot.slane %v19804_v13, 3  ;;  %v20074_v4 = vpop.f32.mrb[49].mxu0  ;;  %v16278_v2 = vld [vmem:[%s23856_s0 + $0x678] sm:$0xff]   ;;  %v24586_v34 = vld [vmem:[#allocation96_spill] sm:$0xff] }
 0x343   :  { %v7763_v0 = vsel %vm7634_vm3, %v7761_v19, %v7762_v40  ;;  %v7765_v16 = vrot.slane %v19854_v11, 3  ;;  %15678 = vrot.lane.b32.xlu1 %v15677_v27, %s16357_s19  ;;  %v7189_v17 = vsel %vm7057_vm1, %v7187_v37, %v7188_v32  ;;  %v7767_v7 = vrot.slane %v19845_v21, 3  ;;  %v20084_v50 = vpop.f32.mrb[50].mxu0  ;;  %v24616_v13 = vld [vmem:[#allocation112_spill] sm:$0xff] }
 0x344   :  { %v15672_v38 = vpack.i.bf16 %v7763_v0, %v7760_v54  ;;  %v7768_v43 = vrot.slane %v19822_v10, 3  ;;  %v7192_v11 = vsel %vm7057_vm1, %v7190_v61, %v7191_v62  ;;  %v16279_v10 = vld [vmem:[%s23856_s0 + $0x680] sm:$0xff]   ;;  %v6748_v40 = vrot.slane %v24586_v34, 1  ;;  %v20093_v32 = vpop.f32.mrb[51].mxu0 }
 0x345   :  { %v7766_v19 = vsel %vm7634_vm3, %v7764_v1, %v7765_v16  ;;  %v15687_v37 = vpack.i.bf16 %v7192_v11, %v7189_v17  ;;  %24587 = vst [vmem:[#allocation135_spill] sm:$0xff] %v20093_v32  ;;  %v6749_v61 = vrot.slane %v19611_v31, 1  ;;  %v6751_v62 = vrot.slane %v19619_v30, 1  ;;  %v24588_v1 = vld [vmem:[#allocation43_spill] sm:$0xff]  ;;  %v16297_v32 = vld [vmem:[%s23856_s0 + $0x710] sm:$0xff]  }
 0x346   :  { %15668 = vrot.lane.b32.xlu0 %v15667_v14, %s16358_s27  ;;  %v7769_v54 = vsel %vm7634_vm3, %v7767_v7, %v7768_v43  ;;  %v6752_v16 = vrot.slane %v24588_v1, 1  ;;  %v7325_v27 = vrot.slane %v24586_v34, 2  ;;  %14508 = vmatmul.mubr.msk.bf16.gmra.mrb[156].mxu0 %vm2071_vm0, %v16278_v2  ;;  %v7326_v7 = vrot.slane %v19611_v31, 2  ;;  %v24592_v2 = vld [vmem:[#allocation46_spill] sm:$0xff] }
 0x347   :  { %v15692_v0 = vpack.i.bf16 %v7769_v54, %v7766_v19  ;;  %15683 = vrot.lane.b32.xlu1 %v15682_v57, %s16359_s30  ;;  %v20102_v17 = vsel %vm6480_vm2, %v6748_v40, %v6749_v61  ;;  %v7328_v43 = vrot.slane %v19619_v30, 2  ;;  %v7329_v11 = vrot.slane %v24588_v1, 2  ;;  %14511 = vmatprep.mubr.msk.bf16.mxu0 %vm2071_vm0, %v16279_v10  ;;  %v24595_v54 = vld [vmem:[#allocation54_spill] sm:$0xff] }
 0x348   :  { %24589 = vst [vmem:[#allocation51_spill] sm:$0xff] %v20102_v17  ;;  %v20110_v19 = vmax.f32 %v19633_v29, 0.0  ;;  %v20113_v57 = vsel %vm6480_vm2, %v6751_v62, %v6752_v16  ;;  %v5851_v40 = vadd.f32 %v19728_v23, %v24592_v2  ;;  %v20120_v61 = vsel %vm7057_vm1, %v7325_v27, %v7326_v7  ;;  %v16280_v27 = vld [vmem:[%s23856_s0 + $0x688] sm:$0xff]  }
 0x349   :  { %24591 = vst [vmem:[#allocation136_spill] sm:$0xff] %v20113_v57  ;;  %24593 = vst [vmem:[#allocation124_spill] sm:$0xff] %v20120_v61  ;;  %v20123_v14 = vsel %vm7057_vm1, %v7328_v43, %v7329_v11  ;;  %v7902_v10 = vrot.slane %v24586_v34, 3  ;;  %v7903_v62 = vrot.slane %v19611_v31, 3  ;;  %v7905_v7 = vrot.slane %v19619_v30, 3 }
 0x34a   :  { %15673 = vrot.lane.b32.xlu0 %v15672_v38, %s16360_s21  ;;  %24590 = vst [vmem:[#allocation126_spill] sm:$0xff] %v20110_v19  ;;  %24594 = vst [vmem:[#allocation113_spill] sm:$0xff] %v20123_v14  ;;  %v20125_v38 = vpop.f32.mrb[52].mxu0  ;;  %v7906_v43 = vrot.slane %v24588_v1, 3  ;;  %v20150_v16 = vcombine.high %v24595_v54, %v24595_v54  ;;  %v20161_v11 = vcombine.high %v20110_v19, %v20110_v19  ;;  %v20163_v35 = vmax.f32 %v5851_v40, 0.0  ;;  %v24615_v19 = vld [vmem:[#allocation110_spill] sm:$0xff] }
 0x34b   :  { %15688 = vrot.lane.b32.xlu1 %v15687_v37, %s16358_s27  ;;  %v20134_v2 = vpop.f32.mrb[53].mxu0  ;;  %v16281_v37 = vld [vmem:[%s23856_s0 + $0x690] sm:$0xff]   ;;  %v20153_v25 = vsel %vm7634_vm3, %v7902_v10, %v7903_v62  ;;  %v8300_v62 = vcombine.low %v24535_v63, %v19611_v31  ;;  %v8301_v40 = vcombine.low %v19595_v52, %v24588_v1  ;;  %v16282_v52 = vld [vmem:[%s23856_s0 + $0x698] sm:$0xff]   ;;  %v5781_v1 = vadd.f32 %v19728_v23, %v19896_v39  ;;  %v24603_v63 = vld [vmem:[#allocation111_spill] sm:$0xff] }
 0x34c   :  { %v20143_v29 = vpop.f32.mrb[54].mxu0  ;;  %24596 = vst [vmem:[#allocation125_spill] sm:$0xff] %v20150_v16  ;;  %24597 = vst [vmem:[#allocation123_spill] sm:$0xff] %v20153_v25  ;;  %v20166_v34 = vsel %vm7634_vm3, %v7905_v7, %v7906_v43  ;;  %v8302_v7 = vcombine.low %v24595_v54, %v20150_v16  ;;  %v8303_v10 = vcombine.low %v20161_v11, %v20163_v35  ;;  %v24604_v39 = vld [vmem:[#allocation115_spill] sm:$0xff]  ;;  %v24607_v25 = vld [vmem:[#allocation49_spill] sm:$0xff] }
 0x34d   :  { %v20157_v18 = vpop.f32.mrb[55].mxu0  ;;  %24598 = vst [vmem:[#allocation43_spill] sm:$0xff] %v20161_v11  ;;  %24599 = vst [vmem:[#allocation46_spill] sm:$0xff] %v20163_v35  ;;  %v20181_v43 = vpack.i.bf16 %v8301_v40, %v8300_v62  ;;  %v15445_v47 = vunpack.i.l.bf16 %v24604_v39  ;;  %v20214_v54 = vmax.f32 %v5781_v1, 0.0  ;;  %v5853_v62 = vadd.f32 %v19728_v23, %v24607_v25  ;;  %v24611_v25 = vld [vmem:[#allocation116_spill] sm:$0xff] }
 0x34e   :  { %24600 = vst [vmem:[#allocation54_spill] sm:$0xff] %v20166_v34  ;;  %14512 = vmatmul.mubr.msk.bf16.gmra.mrb[160].mxu0 %vm2071_vm0, %v16280_v27  ;;  %v24608_v34 = vld [vmem:[#allocation91_spill] sm:$0xff]  ;;  %v15421_v11 = vunpack.i.h.bf16 %v24615_v19 }
 0x34f   :  { %15693 = vrot.lane.b32.xlu1 %v15692_v0, %s16360_s21  ;;  %14515 = vmatprep.mubr.msk.bf16.mxu0 %vm2071_vm0, %v16281_v37  ;;  %24601 = vst [vmem:[#allocation137_spill] sm:$0xff] %v20181_v43  ;;  %v20185_v30 = vpop.f32.mrb[56].mxu0  ;;  %v20194_v0 = vpack.i.bf16 %v8303_v10, %v8302_v7  ;;  %v16283_v37 = vld [vmem:[%s23856_s0 + $0x6a0] sm:$0xff]   ;;  %v15426_v10 = vunpack.i.h.bf16 %v24603_v63  ;;  %24605 = vst [vmem:[#allocation139_spill] sm:$0xff] %v20214_v54  ;;  %v24609_v63 = vld [vmem:[#allocation118_spill] sm:$0xff] }
 0x350   :  { %v20189_v31 = vpop.f32.mrb[57].mxu0  ;;  %v15450_v14 = vunpack.i.l.bf16 %v24609_v63  ;;  %v24610_v7 = vld [vmem:[#allocation83_spill] sm:$0xff] }
 0x351   :  { %24602 = vst [vmem:[#allocation138_spill] sm:$0xff] %v20194_v0  ;;  %v20200_v27 = vpop.f32.mrb[58].mxu0  ;;  %v24606_v0 = vld [vmem:[#allocation114_spill] sm:$0xff]  ;;  %v8682_v61 = vsel %vm8595_vm5, %v24608_v34, %v15426_v10  ;;  %v8683_v39 = vsel %vm8595_vm5, %v24610_v7, %v15445_v47  ;;  %v20237_v34 = vcombine.high %v20214_v54, %v20214_v54  ;;  %v16285_v47 = vld [vmem:[%s23856_s0 + $0x6b0] sm:$0xff]   ;;  %v20252_v54 = vmax.f32 %v5853_v62, 0.0 }
 0x352   :  { %v20207_v40 = vpop.f32.mrb[59].mxu0  ;;  %v15431_v43 = vunpack.i.h.bf16 %v24606_v0  ;;  %v15436_v0 = vunpack.i.h.bf16 %v24611_v25  ;;  %v8780_v16 = vsel %vm8692_vm6, %v8683_v39, %v15450_v14  ;;  %v24617_v62 = vld [vmem:[#allocation53_spill] sm:$0xff] }
 0x353   :  { %24612 = vst [vmem:[#allocation49_spill] sm:$0xff] %v20237_v34  ;;  %24614 = vst [vmem:[#allocation91_spill] sm:$0xff] %v20252_v54  ;;  %v20271_v39 = vcombine.high %v20252_v54, %v20252_v54 }
 0x354   :  { %v8779_v7 = vsel %vm8692_vm6, %v8682_v61, %v15431_v43  ;;  %v15440_v61 = vunpack.i.l.bf16 %v24616_v13  ;;  %v16295_v13 = vld [vmem:[%s23856_s0 + $0x700] sm:$0xff]  }
 0x355   :  { %v8876_v43 = vsel %vm8789_vm7, %v8779_v7, %v15436_v0  ;;  %24619 = vst [vmem:[#allocation53_spill] sm:$0xff] %v20271_v39  ;;  %v20279_v0 = vpack.c.bf16 %v19968_v46, %v19942_v8  ;;  %v16287_v8 = vld [vmem:[%s23856_s0 + $0x6c0] sm:$0xff]  }
 0x356   :  { %14516 = vmatmul.mubr.msk.bf16.gmra.mrb[164].mxu0 %vm2071_vm0, %v16282_v52  ;;  %v24613_v52 = vld [vmem:[#allocation119_spill] sm:$0xff]  ;;  %v20300_v46 = vsel %vm2071_vm0, %v8876_v43, %v15421_v11 }
 0x357   :  { %14519 = vmatprep.mubr.msk.bf16.mxu0 %vm2071_vm0, %v16283_v37  ;;  %v20223_v17 = vpop.f32.mrb[60].mxu0  ;;  %v16284_v37 = vld [vmem:[%s23856_s0 + $0x6a8] sm:$0xff]   ;;  %v15455_v57 = vunpack.i.l.bf16 %v24613_v52  ;;  %v20266_v52 = vpack.c.bf16 %v24617_v62, %v19790_v5  ;;  %24622 = vst [vmem:[#allocation140_spill] sm:$0xff] %v20279_v0  ;;  %24627 = vst [vmem:[#allocation144_spill] sm:$0xff] %v20300_v46  ;;  %v16289_v62 = vld [vmem:[%s23856_s0 + $0x6d0] sm:$0xff]  }
 0x358   :  { %v20229_v1 = vpop.f32.mrb[61].mxu0  ;;  %v16291_v39 = vld [vmem:[%s23856_s0 + $0x6e0] sm:$0xff]  }
 0x359   :  { %v20241_v63 = vpop.f32.mrb[62].mxu0  ;;  %24618 = vst [vmem:[#allocation83_spill] sm:$0xff] %v20266_v52  ;;  %v8877_v14 = vsel %vm8789_vm7, %v8780_v16, %v15455_v57  ;;  %v16286_v57 = vld [vmem:[%s23856_s0 + $0x6b8] sm:$0xff]  }
 0x35a   :  { %v20250_v35 = vpop.f32.mrb[63].mxu0  ;;  %v20303_v25 = vsel %vm2071_vm0, %v8877_v14, %v15440_v61  ;;  %v16288_v61 = vld [vmem:[%s23856_s0 + $0x6c8] sm:$0xff]  }
 0x35b   :  { %24628 = vst [vmem:[#allocation145_spill] sm:$0xff] %v20303_v25 }
 0x35e   :  { %14520 = vmatmul.mubr.msk.bf16.gmra.mrb[168].mxu0 %vm2071_vm0, %v16284_v37  ;;  %v24620_v37 = vld [vmem:[#allocation75_spill] sm:$0xff] }
 0x35f   :  { %14523 = vmatprep.mubr.msk.bf16.mxu0 %vm2071_vm0, %v16285_v47  ;;  %v20275_v10 = vpack.c.bf16 %v19937_v26, %v24620_v37  ;;  %v20281_v47 = vpop.f32.mrb[64].mxu0  ;;  %v20314_v26 = vpack.c.bf16 %v20303_v25, %v20300_v46  ;;  %v16294_v25 = vld [vmem:[%s23856_s0 + $0x6f8] sm:$0xff]  }
 0x360   :  { %24623 = vst [vmem:[#allocation141_spill] sm:$0xff] %v20281_v47  ;;  %v20285_v7 = vpop.f32.mrb[65].mxu0 }
 0x361   :  { %24621 = vst [vmem:[#allocation75_spill] sm:$0xff] %v20275_v10  ;;  %24624 = vst [vmem:[#allocation142_spill] sm:$0xff] %v20285_v7  ;;  %v20294_v37 = vpop.f32.mrb[66].mxu0  ;;  %v16292_v10 = vld [vmem:[%s23856_s0 + $0x6e8] sm:$0xff]  }
 0x362   :  { %24626 = vst [vmem:[#allocation143_spill] sm:$0xff] %v20294_v37  ;;  %v20307_v54 = vpop.f32.mrb[67].mxu0  ;;  %24630 = vst [vmem:[#allocation147_spill] sm:$0xff] %v20314_v26  ;;  %v16290_v26 = vld [vmem:[%s23856_s0 + $0x6d8] sm:$0xff]  }
 0x363   :  { %24629 = vst [vmem:[#allocation146_spill] sm:$0xff] %v20307_v54  ;;  %v16296_v54 = vld [vmem:[%s23856_s0 + $0x708] sm:$0xff]  }
 0x366   :  { %14524 = vmatmul.mubr.msk.bf16.gmra.mrb[172].mxu0 %vm2071_vm0, %v16286_v57 }
 0x367   :  { %14527 = vmatprep.mubr.msk.bf16.mxu0 %vm2071_vm0, %v16287_v8  ;;  %v14421_v11 = vpop.f32.mrb[68].mxu0 }
 0x368   :  { %v4266_v43 = vpop.f32.mrb[69].mxu0 }
 0x369   :  { %v20320_v14 = vpop.f32.mrb[70].mxu0 }
 0x36a   :  { %v4269_v5 = vpop.f32.mrb[71].mxu0 }
 0x36e   :  { %14528 = vmatmul.mubr.msk.bf16.gmra.mrb[176].mxu0 %vm2071_vm0, %v16288_v61 }
 0x36f   :  { %14531 = vmatprep.mubr.msk.bf16.mxu0 %vm2071_vm0, %v16289_v62 }
 0x370   :  { %v20327_v57 = vpop.f32.mrb[72].mxu0 }
 0x371   :  { %v4282_v8 = vpop.f32.mrb[73].mxu0 }
 0x372   :  { %v20332_v16 = vpop.f32.mrb[74].mxu0 }
 0x373   :  { %v4285_v0 = vpop.f32.mrb[75].mxu0 }
 0x376   :  { %14532 = vmatmul.mubr.msk.bf16.gmra.mrb[180].mxu0 %vm2071_vm0, %v16290_v26 }
 0x377   :  { %14535 = vmatprep.mubr.msk.bf16.mxu0 %vm2071_vm0, %v16291_v39 }
 0x378   :  { %v20339_v61 = vpop.f32.mrb[76].mxu0 }
 0x379   :  { %v20341_v62 = vpop.f32.mrb[77].mxu0 }
 0x37a   :  { %v20346_v52 = vpop.f32.mrb[78].mxu0 }
 0x37b   :  { %v20351_v34 = vpop.f32.mrb[79].mxu0 }
 0x37e   :  { %14536 = vmatmul.mubr.msk.bf16.gmra.mrb[184].mxu0 %vm2071_vm0, %v16292_v10 }
 0x37f   :  { %14539 = vmatprep.mubr.msk.bf16.mxu0 %vm2071_vm0, %v16293_v60 }
 0x380   :  { %v20355_v39 = vpop.f32.mrb[80].mxu0 }
 0x381   :  { %24631 = vst [vmem:[#allocation148_spill] sm:$0xff] %v20355_v39  ;;  %v20357_v26 = vpop.f32.mrb[81].mxu0 }
 0x382   :  { %v20362_v46 = vpop.f32.mrb[82].mxu0 }
 0x383   :  { %24632 = vst [vmem:[#allocation149_spill] sm:$0xff] %v20362_v46  ;;  %v20367_v19 = vpop.f32.mrb[83].mxu0  ;;  %v20376_v48 = vpop.permute.xlu0 %15618 }
 0x386   :  { %14540 = vmatmul.mubr.msk.bf16.gmra.mrb[188].mxu0 %vm2071_vm0, %v16294_v25  ;;  %v24633_v25 = vmax.f32 %v19827_v56, %v20068_v24  ;;  %v16298_v24 = vld [vmem:[%s23856_s0 + $0x718] sm:$0xff]  }
 0x387   :  { %14543 = vmatprep.mubr.msk.bf16.mxu0 %vm2071_vm0, %v16295_v13 }
 0x388   :  { %v14437_v60 = vpop.f32.mrb[84].mxu0 }
 0x389   :  { %v5489_v10 = vmax.f32 %v4266_v43, %v14437_v60  ;;  %v20371_v21 = vpop.f32.mrb[85].mxu0  ;;  %v24634_v43 = vmax.f32 %v19869_v12, %v20084_v50  ;;  %v16299_v12 = vld [vmem:[%s23856_s0 + $0x720] sm:$0xff]  }
 0x38a   :  { %v14438_v37 = vpop.f32.mrb[86].mxu0 }
 0x38b   :  { %v5633_v46 = vmax.f32 %v24633_v25, %v5489_v10  ;;  %v5490_v13 = vmax.f32 %v4269_v5, %v14438_v37  ;;  %v20384_v3 = vpop.f32.mrb[87].mxu0  ;;  %v15624_v36 = vpop.permute.xlu0 %15623 }
 0x38c   :  { %v15626_v50 = vunpack.i.h.bf16 %v15624_v36 }
 0x38d   :  { %v5634_v60 = vmax.f32 %v24634_v43, %v5490_v13  ;;  %v5784_v39 = vadd.f32 %v19728_v23, %v5633_v46  ;;  %v15625_v13 = vunpack.i.l.bf16 %v15624_v36  ;;  %v15621_v36 = vunpack.i.h.bf16 %v20376_v48 }
 0x38e   :  { %14544 = vmatmul.mubr.msk.bf16.gmra.mrb[192].mxu0 %vm2071_vm0, %v16296_v54 }
 0x38f   :  { %14547 = vmatprep.mubr.msk.bf16.mxu0 %vm2071_vm0, %v16297_v32  ;;  %v5785_v7 = vadd.f32 %v19728_v23, %v5634_v60  ;;  %v24635_v32 = vmax.f32 %v19904_v20, %v20125_v38  ;;  %v20408_v43 = vmax.f32 %v5784_v39, 0.0  ;;  %v24639_v38 = vmax.f32 %v19927_v45, %v20143_v29 }
 0x390   :  { %v14441_v44 = vpop.f32.mrb[88].mxu0 }
 0x391   :  { %v5493_v47 = vmax.f32 %v4282_v8, %v14441_v44  ;;  %v4346_v56 = vpop.f32.mrb[89].mxu0  ;;  %v20402_v25 = vmax.f32 %v5785_v7, 0.0  ;;  %v24637_v44 = vmax.f32 %v19818_v51, %v20134_v2  ;;  %24638 = vst [vmem:[#allocation151_spill] sm:$0xff] %v20408_v43  ;;  %v24640_v51 = vmax.f32 %v19859_v58, %v20157_v18 }
 0x392   :  { %v5491_v5 = vmax.f32 %v14421_v11, %v4346_v56  ;;  %v14442_v37 = vpop.f32.mrb[90].mxu0  ;;  %v20424_v7 = vsel %vm8595_vm5, %v19679_v28, %v15626_v50  ;;  %v20438_v28 = vcombine.high %v20408_v43, %v20408_v43  ;;  %v16300_v50 = vld [vmem:[%s23856_s0 + $0x728] sm:$0xff]  }
 0x393   :  { %v5637_v54 = vmax.f32 %v24635_v32, %v5493_v47  ;;  %v4349_v10 = vpop.f32.mrb[91].mxu0  ;;  %24636 = vst [vmem:[#allocation150_spill] sm:$0xff] %v20402_v25  ;;  %v5494_v8 = vmax.f32 %v4285_v0, %v14442_v37  ;;  %v15620_v0 = vunpack.i.l.bf16 %v20376_v48  ;;  %v6217_v29 = vcombine.high %v20402_v25, %v20402_v25 }
 0x394   :  { %v5635_v46 = vmax.f32 %v24637_v44, %v5491_v5  ;;  %v5492_v11 = vmax.f32 %v20320_v14, %v4349_v10  ;;  %v20426_v14 = vpop.permute.xlu1 %15638  ;;  %24641 = vst [vmem:[#allocation152_spill] sm:$0xff] %v20438_v28 }
 0x395   :  { %v5788_v60 = vadd.f32 %v19728_v23, %v5637_v54  ;;  %v5638_v47 = vmax.f32 %v24639_v38, %v5494_v8  ;;  %v15641_v32 = vunpack.i.h.bf16 %v20426_v14  ;;  %v15640_v54 = vunpack.i.l.bf16 %v20426_v14 }
 0x396   :  { %14548 = vmatmul.mubr.msk.bf16.gmra.mrb[196].mxu0 %vm2071_vm0, %v16298_v24  ;;  %v5786_v20 = vadd.f32 %v19728_v23, %v5635_v46  ;;  %v5636_v2 = vmax.f32 %v24640_v51, %v5492_v11  ;;  %v8633_v24 = vsel %vm8595_vm5, %v19671_v55, %v15625_v13  ;;  %v24642_v13 = vmax.f32 %v19962_v59, %v20185_v30 }
 0x397   :  { %14551 = vmatprep.mubr.msk.bf16.mxu0 %vm2071_vm0, %v16299_v12  ;;  %v20428_v39 = vmax.f32 %v5788_v60, 0.0  ;;  %v5789_v58 = vadd.f32 %v19728_v23, %v5638_v47 }
 0x398   :  { %v5930_v45 = vmax.f32 %v5786_v20, 0.0  ;;  %v5787_v18 = vadd.f32 %v19728_v23, %v5636_v2  ;;  %v14445_v56 = vpop.f32.mrb[92].mxu0 }
 0x399   :  { %v6220_v5 = vcombine.high %v20428_v39, %v20428_v39  ;;  %v5497_v37 = vmax.f32 %v20341_v62, %v14445_v56  ;;  %v4362_v12 = vpop.f32.mrb[93].mxu0  ;;  %v16301_v62 = vld [vmem:[%s23856_s0 + $0x730] sm:$0xff]   ;;  %v20457_v8 = vmax.f32 %v5789_v58, 0.0  ;;  %v6632_v2 = vrot.slane %v20428_v39, 1 }
 0x39a   :  { %v20450_v55 = vcombine.high %v5930_v45, %v5930_v45  ;;  %v20452_v44 = vcombine.low %v6217_v29, %v5930_v45  ;;  %v14446_v46 = vpop.f32.mrb[94].mxu0  ;;  %v5931_v11 = vmax.f32 %v5787_v18, 0.0  ;;  %v5495_v20 = vmax.f32 %v20327_v57, %v4362_v12 }
 0x39b   :  { %v20448_v10 = vpop.permute.xlu0 %15628  ;;  %v5641_v60 = vmax.f32 %v24642_v13, %v5497_v37  ;;  %v4365_v38 = vpop.f32.mrb[95].mxu0  ;;  %v5498_v47 = vmax.f32 %v20351_v34, %v14446_v46  ;;  %v7209_v29 = vrot.slane %v20428_v39, 2  ;;  %v20469_v58 = vcombine.low %v6220_v5, %v20457_v8 }
 0x39c   :  { %v5496_v51 = vmax.f32 %v20332_v16, %v4365_v38  ;;  %v15631_v56 = vunpack.i.h.bf16 %v20448_v10  ;;  %v6219_v18 = vcombine.high %v5931_v11, %v5931_v11  ;;  %v15630_v59 = vunpack.i.l.bf16 %v20448_v10 }
 0x39d   :  { %v5792_v30 = vadd.f32 %v19728_v23, %v5641_v60  ;;  %v24643_v34 = vmax.f32 %v19898_v15, %v20189_v31  ;;  %v24644_v57 = vmax.f32 %v19988_v53, %v20200_v27  ;;  %v24645_v12 = vmax.f32 %v19919_v6, %v20207_v40 }
 0x39e   :  { %14552 = vmatmul.mubr.msk.bf16.gmra.mrb[200].mxu0 %vm2071_vm0, %v16300_v50  ;;  %v20484_v46 = vcombine.low %v5931_v11, %v6219_v18  ;;  %v8260_v50 = vcombine.low %v5930_v45, %v20450_v55  ;;  %v8261_v10 = vcombine.low %v6219_v18, %v20428_v39  ;;  %v6628_v13 = vrot.slane %v20452_v44, 1  ;;  %v16302_v45 = vld [vmem:[%s23856_s0 + $0x738] sm:$0xff]  }
 0x39f   :  { %v5639_v16 = vmax.f32 %v24643_v34, %v5495_v20  ;;  %v5642_v37 = vmax.f32 %v24644_v57, %v5498_v47  ;;  %v5640_v5 = vmax.f32 %v24645_v12, %v5496_v51  ;;  %14555 = vmatprep.mubr.msk.bf16.mxu0 %vm2071_vm0, %v16301_v62  ;;  %v6629_v6 = vrot.slane %v20450_v55, 1 }
 0x3a0   :  { %v14449_v27 = vpop.f32.mrb[96].mxu0  ;;  %v20493_v40 = vmax.f32 %v5792_v30, 0.0  ;;  %v15697_v60 = vpack.i.bf16 %v8261_v10, %v8260_v50  ;;  %v6631_v20 = vrot.slane %v20484_v46, 1  ;;  %v16303_v30 = vld [vmem:[%s23856_s0 + $0x740] sm:$0xff]   ;;  %v24646_v34 = vmax.f32 %v20027_v41, %v20223_v17 }
 0x3a1   :  { %v5790_v15 = vadd.f32 %v19728_v23, %v5639_v16  ;;  %v5793_v31 = vadd.f32 %v19728_v23, %v5642_v37  ;;  %v5791_v53 = vadd.f32 %v19728_v23, %v5640_v5  ;;  %v5501_v62 = vmax.f32 %v20357_v26, %v14449_v27  ;;  %v4378_v11 = vpop.f32.mrb[97].mxu0  ;;  %v20524_v17 = vld [vmem:[%s23857_s2] ss:$0 sm:$0xff] }
 0x3a2   :  { %v5499_v23 = vmax.f32 %v20339_v61, %v4378_v11  ;;  %v14450_v18 = vpop.f32.mrb[98].mxu0  ;;  %v8730_v26 = vsel %vm8692_vm6, %v8633_v24, %v15630_v59  ;;  %15698 = vrot.lane.b32.xlu0 %v15697_v60, %s16357_s19  ;;  %v6633_v12 = vsel %vm6480_vm2, %v6631_v20, %v6632_v2  ;;  %v20515_v61 = vcombine.high %v20457_v8, %v20457_v8 }
 0x3a3   :  { %v5934_v38 = vmax.f32 %v5790_v15, 0.0  ;;  %v5937_v47 = vmax.f32 %v5793_v31, 0.0  ;;  %v20500_v51 = vmax.f32 %v5791_v53, 0.0  ;;  %v5645_v16 = vmax.f32 %v24646_v34, %v5501_v62  ;;  %v4381_v37 = vpop.f32.mrb[99].mxu0 }
 0x3a4   :  { %v5502_v57 = vmax.f32 %v20367_v19, %v14450_v18  ;;  %v24647_v50 = vmax.f32 %v19955_v22, %v20229_v1  ;;  %v6630_v59 = vsel %vm6480_vm2, %v6628_v13, %v6629_v6  ;;  %v24648_v2 = vmax.f32 %v20044_v42, %v20241_v63 }
 0x3a5   :  { %v6222_v5 = vcombine.high %v5934_v38, %v5934_v38  ;;  %v5796_v19 = vadd.f32 %v20524_v17, %v5645_v16  ;;  %v5500_v15 = vmax.f32 %v20346_v52, %v4381_v37  ;;  %v15702_v22 = vpack.i.bf16 %v6633_v12, %v6630_v59 }
 0x3a6   :  { %v5643_v24 = vmax.f32 %v24647_v50, %v5499_v23  ;;  %v5646_v10 = vmax.f32 %v24648_v2, %v5502_v57  ;;  %14556 = vmatmul.mubr.msk.bf16.gmra.mrb[204].mxu0 %vm2071_vm0, %v16302_v45  ;;  %v8731_v1 = vsel %vm8692_vm6, %v20424_v7, %v15631_v56  ;;  %v20536_v13 = vcombine.high %v20493_v40, %v20493_v40 }
 0x3a7   :  { %v15644_v41 = vpop.permute.xlu1 %15643  ;;  %v20538_v31 = vcombine.high %v5937_v47, %v5937_v47  ;;  %14559 = vmatprep.mubr.msk.bf16.mxu0 %vm2071_vm0, %v16303_v30  ;;  %v5940_v63 = vmax.f32 %v5796_v19, 0.0  ;;  %v24649_v27 = vmax.f32 %v19975_v33, %v20250_v35  ;;  %15703 = vrot.lane.b32.xlu0 %v15702_v22, %s16359_s30  ;;  %v20548_v62 = vcombine.low %v5934_v38, %v6222_v5  ;;  %v16304_v33 = vld [vmem:[%s23856_s0 + $0x748] sm:$0xff]  }
 0x3a8   :  { %v15646_v42 = vunpack.i.h.bf16 %v15644_v41  ;;  %v5794_v52 = vadd.f32 %v20524_v17, %v5643_v24  ;;  %v15645_v7 = vunpack.i.l.bf16 %v15644_v41  ;;  %v8262_v11 = vcombine.low %v20457_v8, %v20515_v61  ;;  %v14453_v45 = vpop.f32.mrb[100].mxu0 }
 0x3a9   :  { %v5644_v6 = vmax.f32 %v24649_v27, %v5500_v15  ;;  %v8263_v60 = vcombine.low %v6222_v5, %v20500_v51  ;;  %v5797_v30 = vadd.f32 %v20524_v17, %v5646_v10  ;;  %v4394_v35 = vpop.f32.mrb[101].mxu0  ;;  %v20559_v34 = vcombine.high %v5940_v63, %v5940_v63 }
 0x3aa   :  { %v20553_v18 = vmax.f32 %v5794_v52, 0.0  ;;  %v5505_v8 = vmax.f32 %v20371_v21, %v14453_v45  ;;  %v20563_v57 = vpop.f32.mrb[102].mxu0  ;;  %v20568_v50 = vcombine.low %v5937_v47, %v20538_v31  ;;  %v8636_v41 = vsel %vm8595_vm5, %v19748_v9, %v15646_v42  ;;  %v24655_v42 = vld [vmem:[#allocation148_spill] sm:$0xff]  ;;  %v24657_v45 = vld [vmem:[#allocation134_spill] sm:$0xff] }
 0x3ab   :  { %v15634_v56 = vpop.permute.xlu0 %15633  ;;  %v5795_v38 = vadd.f32 %v20524_v17, %v5644_v6  ;;  %v15717_v16 = vpack.i.bf16 %v8263_v60, %v8262_v11  ;;  %v20572_v59 = vpop.f32.mrb[103].mxu0  ;;  %v8635_v2 = vsel %vm8595_vm5, %v19657_v49, %v15645_v7  ;;  %v20599_v48 = vmax.f32 %v5797_v30, 0.0 }
 0x3ac   :  { %v15636_v20 = vunpack.i.h.bf16 %v15634_v56  ;;  %v15635_v23 = vunpack.i.l.bf16 %v15634_v56  ;;  %24650 = vst [vmem:[#allocation153_spill] sm:$0xff] %v20568_v50  ;;  %v6226_v24 = vcombine.high %v20553_v18, %v20553_v18  ;;  %v5503_v52 = vmax.f32 %v24655_v42, %v4394_v35 }
 0x3ad   :  { %v15649_v5 = vpop.permute.xlu1 %15648  ;;  %15718 = vrot.lane.b32.xlu1 %v15717_v16, %s16357_s19  ;;  %v20593_v15 = vmax.f32 %v5795_v38, 0.0  ;;  %v7205_v38 = vrot.slane %v20452_v44, 2  ;;  %v7206_v16 = vrot.slane %v20450_v55, 2  ;;  %v6229_v14 = vcombine.high %v20599_v48, %v20599_v48 }
 0x3ae   :  { %v8827_v37 = vsel %vm8789_vm7, %v8730_v26, %v15635_v23  ;;  %v8828_v12 = vsel %vm8789_vm7, %v8731_v1, %v15636_v20  ;;  %v15650_v19 = vunpack.i.l.bf16 %v15649_v5  ;;  %v15651_v10 = vunpack.i.h.bf16 %v15649_v5  ;;  %14560 = vmatmul.mubr.msk.bf16.gmra.mrb[208].mxu0 %vm2071_vm0, %v16304_v33  ;;  %v24658_v20 = vld [vmem:[#allocation142_spill] sm:$0xff] }
 0x3af   :  { %v20576_v21 = vpop.permute.xlu0 %15658  ;;  %v20581_v26 = vsel %vm2071_vm0, %v8827_v37, %v15620_v0  ;;  %v20586_v47 = vsel %vm2071_vm0, %v8828_v12, %v15621_v36  ;;  %v20597_v0 = vcombine.low %v5940_v63, %v20559_v34  ;;  %v24653_v36 = vld [vmem:[#allocation141_spill] sm:$0xff]  ;;  %v20610_v63 = vcombine.low %v6226_v24, %v20593_v15 }
 0x3b0   :  { %24651 = vst [vmem:[#allocation154_spill] sm:$0xff] %v20581_v26  ;;  %v13510_v9 = vpack.c.bf16 %v20586_v47, %v20581_v26  ;;  %v24654_v22 = vmax.f32 %v20074_v4, %v24653_v36  ;;  %v8732_v49 = vsel %vm8692_vm6, %v8635_v2, %v15650_v19  ;;  %v15661_v27 = vunpack.i.h.bf16 %v20576_v21  ;;  %v20616_v35 = vpop.f32.mrb[104].mxu0 }
 0x3b1   :  { %24652 = vst [vmem:[#allocation155_spill] sm:$0xff] %v20597_v0  ;;  %v15660_v6 = vunpack.i.l.bf16 %v20576_v21  ;;  %v15654_v7 = vpop.permute.xlu1 %15653  ;;  %24656 = vst [vmem:[#allocation141_spill] sm:$0xff] %v20610_v63  ;;  %v24659_v23 = vmax.f32 %v24657_v45, %v24658_v20  ;;  %v8733_v33 = vsel %vm8692_vm6, %v8636_v41, %v15651_v10  ;;  %v20622_v37 = vpop.f32.mrb[105].mxu0  ;;  %v7782_v21 = vrot.slane %v20452_v44, 3 }
 0x3b2   :  { %v5649_v1 = vmax.f32 %v24654_v22, %v5505_v8  ;;  %14701 = vmatprep.mubr.msk.bf16.mxu1 %vm9264_vm8, %v13510_v9  ;;  %v15656_v56 = vunpack.i.h.bf16 %v15654_v7  ;;  %v15655_v11 = vunpack.i.l.bf16 %v15654_v7  ;;  %v7208_v8 = vrot.slane %v20484_v46, 2  ;;  %v20627_v2 = vpop.f32.mrb[106].mxu0 }
 0x3b3   :  { %v5647_v30 = vmax.f32 %v24659_v23, %v5503_v52  ;;  %v20643_v22 = vcombine.high %v20593_v15, %v20593_v15  ;;  %v5506_v23 = vmax.f32 %v20384_v3, %v20563_v57  ;;  %v24668_v3 = vld [vmem:[#allocation143_spill] sm:$0xff] }
 0x3b4   :  { %v15664_v60 = vpop.permute.xlu0 %15663  ;;  %v5800_v4 = vadd.f32 %v20524_v17, %v5649_v1  ;;  %v8829_v12 = vsel %vm8789_vm7, %v8732_v49, %v15655_v11  ;;  %v8830_v5 = vsel %vm8789_vm7, %v8733_v33, %v15656_v56  ;;  %v20645_v1 = vpop.f32.mrb[107].mxu0  ;;  %v7207_v56 = vsel %vm7057_vm1, %v7205_v38, %v7206_v16 }
 0x3b5   :  { %v15666_v24 = vunpack.i.h.bf16 %v15664_v60  ;;  %v5798_v19 = vadd.f32 %v20524_v17, %v5647_v30  ;;  %v15665_v9 = vunpack.i.l.bf16 %v15664_v60  ;;  %v20629_v36 = vpop.permute.xlu1 %15678  ;;  %v20634_v41 = vsel %vm2071_vm0, %v8829_v12, %v15640_v54  ;;  %v24663_v60 = vld [vmem:[#allocation59_spill] sm:$0xff]  ;;  %v24665_v30 = vld [vmem:[#allocation109_spill] sm:$0xff] }
 0x3b6   :  { %v20639_v10 = vsel %vm2071_vm0, %v8830_v5, %v15641_v32  ;;  %v20651_v49 = vmax.f32 %v5800_v4, 0.0  ;;  %v7210_v11 = vsel %vm7057_vm1, %v7208_v8, %v7209_v29  ;;  %v15680_v29 = vunpack.i.l.bf16 %v20629_v36  ;;  %v24666_v8 = vld [vmem:[#allocation149_spill] sm:$0xff] }
 0x3b7   :  { %v20649_v52 = vpack.c.bf16 %v20639_v10, %v20634_v41  ;;  %v20653_v54 = vmax.f32 %v5798_v19, 0.0  ;;  %v8638_v45 = vsel %vm8595_vm5, %v24663_v60, %v15666_v24  ;;  %v15707_v20 = vpack.i.bf16 %v7210_v11, %v7207_v56 }
 0x3b8   :  { %v15669_v42 = vpop.permute.xlu0 %15668  ;;  %24661 = vst [vmem:[#allocation134_spill] sm:$0xff] %v20651_v49  ;;  %v8637_v33 = vsel %vm8595_vm5, %v24665_v30, %v15665_v9  ;;  %v5504_v12 = vmax.f32 %v24666_v8, %v20572_v59  ;;  %v6232_v9 = vcombine.high %v20651_v49, %v20651_v49  ;;  %v20684_v56 = vpop.f32.mrb[108].mxu0  ;;  %v24670_v59 = vld [vmem:[#allocation128_spill] sm:$0xff]  ;;  %v24671_v8 = vld [vmem:[#allocation146_spill] sm:$0xff] }
 0x3b9   :  { %24660 = vst [vmem:[#allocation148_spill] sm:$0xff] %v20649_v52  ;;  %24662 = vst [vmem:[#allocation142_spill] sm:$0xff] %v20653_v54  ;;  %v15671_v32 = vunpack.i.h.bf16 %v15669_v42  ;;  %v15670_v7 = vunpack.i.l.bf16 %v15669_v42  ;;  %14702 = vmatmul.mubr.msk.bf16.gmra.mrb[132].mxu1 %vm9264_vm8, %v20649_v52  ;;  %v20666_v4 = vcombine.low %v6229_v14, %v20653_v54  ;;  %v15684_v16 = vpop.permute.xlu1 %15683  ;;  %15708 = vrot.lane.b32.xlu0 %v15707_v20, %s16358_s27  ;;  %v24667_v42 = vld [vmem:[#allocation135_spill] sm:$0xff] }
 0x3ba   :  { %v24669_v57 = vmax.f32 %v24667_v42, %v24668_v3  ;;  %v15686_v11 = vunpack.i.h.bf16 %v15684_v16  ;;  %v6634_v42 = vrot.slane %v20469_v58, 1 }
 0x3bb   :  { %24664 = vst [vmem:[#allocation59_spill] sm:$0xff] %v20666_v4  ;;  %v8734_v5 = vsel %vm8692_vm6, %v8637_v33, %v15670_v7  ;;  %v8735_v24 = vsel %vm8692_vm6, %v8638_v45, %v15671_v32  ;;  %v24672_v7 = vmax.f32 %v24670_v59, %v24671_v8  ;;  %v20689_v32 = vpop.f32.mrb[109].mxu0  ;;  %v15685_v45 = vunpack.i.l.bf16 %v15684_v16 }
 0x3bc   :  { %v15674_v19 = vpop.permute.xlu0 %15673  ;;  %v5650_v14 = vmax.f32 %v24669_v57, %v5506_v23  ;;  %v6635_v23 = vrot.slane %v20515_v61, 1  ;;  %v20694_v3 = vpop.f32.mrb[110].mxu0 }
 0x3bd   :  { %v15676_v60 = vunpack.i.h.bf16 %v15674_v19  ;;  %v15675_v30 = vunpack.i.l.bf16 %v15674_v19  ;;  %v5648_v33 = vmax.f32 %v24672_v7, %v5504_v12  ;;  %v15689_v19 = vpop.permute.xlu1 %15688  ;;  %v6637_v12 = vrot.slane %v20548_v62, 1  ;;  %v20700_v59 = vpop.f32.mrb[111].mxu0 }
 0x3be   :  { %v5801_v20 = vadd.f32 %v20524_v17, %v5650_v14  ;;  %v15691_v16 = vunpack.i.h.bf16 %v15689_v19  ;;  %v15690_v8 = vunpack.i.l.bf16 %v15689_v19  ;;  %v24676_v19 = vld [vmem:[#allocation90_spill] sm:$0xff] }
 0x3bf   :  { %v8831_v57 = vsel %vm8789_vm7, %v8734_v5, %v15675_v30  ;;  %v8832_v53 = vsel %vm8789_vm7, %v8735_v24, %v15676_v60  ;;  %v5799_v38 = vadd.f32 %v20524_v17, %v5648_v33  ;;  %v24673_v24 = vld [vmem:[#allocation86_spill] sm:$0xff]  ;;  %v6638_v33 = vrot.slane %v20500_v51, 1 }
 0x3c0   :  { %v20705_v14 = vsel %vm2071_vm0, %v8831_v57, %v15660_v6  ;;  %v20710_v5 = vsel %vm2071_vm0, %v8832_v53, %v15661_v27  ;;  %v8640_v60 = vsel %vm8595_vm5, %v24673_v24, %v15686_v11  ;;  %v20718_v7 = vmax.f32 %v5801_v20, 0.0  ;;  %v20736_v26 = vpop.f32.mrb[112].mxu0 }
 0x3c1   :  { %v20716_v30 = vpack.c.bf16 %v20710_v5, %v20705_v14  ;;  %v8639_v6 = vsel %vm8595_vm5, %v24676_v19, %v15685_v45  ;;  %v6636_v57 = vsel %vm6480_vm2, %v6634_v42, %v6635_v23  ;;  %v7783_v53 = vrot.slane %v20450_v55, 3  ;;  %v15694_v11 = vpop.permute.xlu1 %15693 }
 0x3c2   :  { %24675 = vst [vmem:[#allocation149_spill] sm:$0xff] %v20718_v7  ;;  %v8736_v27 = vsel %vm8692_vm6, %v8639_v6, %v15690_v8  ;;  %v20730_v20 = vcombine.low %v6232_v9, %v20718_v7  ;;  %v20732_v24 = vmax.f32 %v5799_v38, 0.0  ;;  %v6639_v52 = vsel %vm6480_vm2, %v6637_v12, %v6638_v33 }
 0x3c3   :  { %24674 = vst [vmem:[#allocation109_spill] sm:$0xff] %v20716_v30  ;;  %14705 = vmatprep.mubr.msk.bf16.mxu1 %vm9264_vm8, %v20716_v30  ;;  %v8737_v45 = vsel %vm8692_vm6, %v8640_v60, %v15691_v16  ;;  %v15696_v42 = vunpack.i.h.bf16 %v15694_v11  ;;  %v15695_v23 = vunpack.i.l.bf16 %v15694_v11  ;;  %v15722_v19 = vpack.i.bf16 %v6639_v52, %v6636_v57  ;;  %v20742_v30 = vpop.f32.mrb[113].mxu0 }
 0x3c4   :  { %24677 = vst [vmem:[#allocation135_spill] sm:$0xff] %v20730_v20  ;;  %24678 = vst [vmem:[#allocation143_spill] sm:$0xff] %v20732_v24  ;;  %v7784_v55 = vsel %vm7634_vm3, %v7782_v21, %v7783_v53  ;;  %v7785_v8 = vrot.slane %v20484_v46, 3  ;;  %v7786_v6 = vrot.slane %v20428_v39, 3  ;;  %v7211_v9 = vrot.slane %v20469_v58, 2  ;;  %v20749_v60 = vpop.f32.mrb[114].mxu0 }
 0x3c5   :  { %v8833_v38 = vsel %vm8789_vm7, %v8736_v27, %v15695_v23  ;;  %v8834_v12 = vsel %vm8789_vm7, %v8737_v45, %v15696_v42  ;;  %15723 = vrot.lane.b32.xlu1 %v15722_v19, %s16359_s30  ;;  %v7212_v52 = vrot.slane %v20515_v61, 2  ;;  %v7214_v16 = vrot.slane %v20548_v62, 2  ;;  %v20761_v27 = vpop.f32.mrb[115].mxu0 }
 0x3c6   :  { %v20752_v33 = vsel %vm2071_vm0, %v8833_v38, %v15680_v29  ;;  %v24679_v39 = vunpack.i.h.bf16 %v20629_v36  ;;  %v7787_v21 = vsel %vm7634_vm3, %v7785_v8, %v7786_v6  ;;  %v7215_v53 = vrot.slane %v20500_v51, 2 }
 0x3c7   :  { %v15712_v45 = vpack.i.bf16 %v7787_v21, %v7784_v55  ;;  %v7213_v42 = vsel %vm7057_vm1, %v7211_v9, %v7212_v52  ;;  %v8264_v29 = vcombine.low %v20493_v40, %v20536_v13  ;;  %v8265_v23 = vcombine.low %v20538_v31, %v20553_v18 }
 0x3c8   :  { %v20757_v57 = vsel %vm2071_vm0, %v8834_v12, %v24679_v39  ;;  %v7216_v36 = vsel %vm7057_vm1, %v7214_v16, %v7215_v53  ;;  %v7788_v19 = vrot.slane %v20469_v58, 3  ;;  %v7789_v8 = vrot.slane %v20515_v61, 3 }
 0x3c9   :  { %24680 = vst [vmem:[#allocation128_spill] sm:$0xff] %v20757_v57  ;;  %v20765_v11 = vpack.c.bf16 %v20757_v57, %v20752_v33  ;;  %15713 = vrot.lane.b32.xlu0 %v15712_v45, %s16360_s21  ;;  %v15727_v55 = vpack.i.bf16 %v7216_v36, %v7213_v42  ;;  %v7791_v6 = vrot.slane %v20548_v62, 3  ;;  %v7792_v9 = vrot.slane %v20500_v51, 3 }
 0x3ca   :  { %v24682_v38 = vcombine.high %v20500_v51, %v20500_v51  ;;  %v15737_v31 = vpack.i.bf16 %v8265_v23, %v8264_v29  ;;  %v7790_v52 = vsel %vm7634_vm3, %v7788_v19, %v7789_v8  ;;  %v6641_v61 = vrot.slane %v20536_v13, 1 }
 0x3cb   :  { %24681 = vst [vmem:[#allocation146_spill] sm:$0xff] %v20765_v11  ;;  %14706 = vmatmul.mubr.msk.bf16.gmra.mrb[136].mxu1 %vm9264_vm8, %v20765_v11  ;;  %v6643_v16 = vrot.slane %v20568_v50, 1  ;;  %15728 = vrot.lane.b32.xlu1 %v15727_v55, %s16358_s27  ;;  %v7793_v39 = vsel %vm7634_vm3, %v7791_v6, %v7792_v9  ;;  %v6644_v53 = vrot.slane %v20553_v18, 1  ;;  %v8266_v51 = vcombine.low %v20593_v15, %v20643_v22 }
 0x3cc   :  { %v20784_v12 = vcombine.low %v24682_v38, %v20493_v40  ;;  %v20795_v40 = vpop.f32.mrb[116].mxu0  ;;  %v15732_v45 = vpack.i.bf16 %v7793_v39, %v7790_v52  ;;  %v8267_v42 = vcombine.low %v20559_v34, %v20599_v48  ;;  %v7218_v36 = vrot.slane %v20536_v13, 2 }
 0x3cd   :  { %24684 = vst [vmem:[#allocation90_spill] sm:$0xff] %v20795_v40  ;;  %v20801_v23 = vpop.f32.mrb[117].mxu0  ;;  %15738 = vrot.lane.b32.xlu0 %v15737_v31, %s16357_s19  ;;  %v6645_v8 = vsel %vm6480_vm2, %v6643_v16, %v6644_v53  ;;  %v7220_v15 = vrot.slane %v20568_v50, 2  ;;  %v7221_v55 = vrot.slane %v20553_v18, 2  ;;  %v6646_v52 = vrot.slane %v20610_v63, 1 }
 0x3ce   :  { %24683 = vst [vmem:[#allocation86_spill] sm:$0xff] %v20784_v12  ;;  %v6640_v21 = vrot.slane %v20784_v12, 1  ;;  %v7217_v29 = vrot.slane %v20784_v12, 2  ;;  %v20808_v6 = vpop.f32.mrb[118].mxu0  ;;  %v15757_v34 = vpack.i.bf16 %v8267_v42, %v8266_v51  ;;  %v6649_v16 = vrot.slane %v20597_v0, 1 }
 0x3cf   :  { %24685 = vst [vmem:[#allocation156_spill] sm:$0xff] %v20808_v6  ;;  %v20812_v39 = vpop.f32.mrb[119].mxu0  ;;  %15733 = vrot.lane.b32.xlu1 %v15732_v45, %s16360_s21  ;;  %v7222_v31 = vsel %vm7057_vm1, %v7220_v15, %v7221_v55  ;;  %v7795_v51 = vrot.slane %v20536_v13, 3  ;;  %v7797_v42 = vrot.slane %v20568_v50, 3 }
 0x3d0   :  { %v6642_v19 = vsel %vm6480_vm2, %v6640_v21, %v6641_v61  ;;  %v7219_v38 = vsel %vm7057_vm1, %v7217_v29, %v7218_v36  ;;  %v6647_v61 = vrot.slane %v20643_v22, 1  ;;  %v6650_v21 = vrot.slane %v20599_v48, 1 }
 0x3d1   :  { %v15742_v9 = vpack.i.bf16 %v6645_v8, %v6642_v19  ;;  %v15747_v53 = vpack.i.bf16 %v7222_v31, %v7219_v38  ;;  %v7794_v19 = vrot.slane %v20784_v12, 3  ;;  %v7798_v36 = vrot.slane %v20553_v18, 3  ;;  %v20835_v18 = vpop.f32.mrb[120].mxu0 }
 0x3d2   :  { %v6648_v29 = vsel %vm6480_vm2, %v6646_v52, %v6647_v61  ;;  %v6651_v45 = vsel %vm6480_vm2, %v6649_v16, %v6650_v21  ;;  %v7223_v8 = vrot.slane %v20610_v63, 2  ;;  %v7224_v38 = vrot.slane %v20643_v22, 2 }
 0x3d3   :  { %15743 = vrot.lane.b32.xlu0 %v15742_v9, %s16359_s30  ;;  %v15762_v15 = vpack.i.bf16 %v6651_v45, %v6648_v29  ;;  %v7796_v55 = vsel %vm7634_vm3, %v7794_v19, %v7795_v51  ;;  %v7226_v31 = vrot.slane %v20597_v0, 2  ;;  %15758 = vrot.lane.b32.xlu1 %v15757_v34, %s16357_s19  ;;  %v7799_v13 = vsel %vm7634_vm3, %v7797_v42, %v7798_v36  ;;  %v20840_v29 = vpop.f32.mrb[121].mxu0 }
 0x3d4   :  { %v7227_v9 = vrot.slane %v20599_v48, 2  ;;  %v7800_v52 = vrot.slane %v20610_v63, 3  ;;  %v7801_v61 = vrot.slane %v20643_v22, 3  ;;  %v15752_v16 = vpack.i.bf16 %v7799_v13, %v7796_v55  ;;  %v20847_v45 = vpop.f32.mrb[122].mxu0 }
 0x3d5   :  { %v7225_v21 = vsel %vm7057_vm1, %v7223_v8, %v7224_v38  ;;  %v7803_v19 = vrot.slane %v20597_v0, 3  ;;  %v7804_v51 = vrot.slane %v20599_v48, 3  ;;  %v20852_v48 = vpop.f32.mrb[123].mxu0  ;;  %v20858_v38 = vcombine.high %v20732_v24, %v20732_v24 }
 0x3d6   :  { %v7228_v34 = vsel %vm7057_vm1, %v7226_v31, %v7227_v9  ;;  %v7802_v42 = vsel %vm7634_vm3, %v7800_v52, %v7801_v61  ;;  %24686 = vst [vmem:[#allocation157_spill] sm:$0xff] %v20852_v48  ;;  %v20869_v52 = vpack.c.bf16 %v20634_v41, %v20586_v47  ;;  %v24696_v0 = vmax.f32 %v20622_v37, %v20835_v18 }
 0x3d7   :  { %15748 = vrot.lane.b32.xlu0 %v15747_v53, %s16358_s27  ;;  %v15767_v36 = vpack.i.bf16 %v7228_v34, %v7225_v21  ;;  %v7805_v8 = vsel %vm7634_vm3, %v7803_v19, %v7804_v51  ;;  %24687 = vst [vmem:[#allocation158_spill] sm:$0xff] %v20858_v38  ;;  %15763 = vrot.lane.b32.xlu1 %v15762_v15, %s16359_s30 }
 0x3d8   :  { %v15772_v31 = vpack.i.bf16 %v7805_v8, %v7802_v42  ;;  %v20863_v13 = vpop.f32.mrb[124].mxu0  ;;  %24688 = vst [vmem:[#allocation159_spill] sm:$0xff] %v20869_v52  ;;  %v20877_v15 = vpack.c.bf16 %v20705_v14, %v20639_v10 }
 0x3d9   :  { %v20873_v21 = vpop.f32.mrb[125].mxu0 }
 0x3da   :  { %24689 = vst [vmem:[#allocation160_spill] sm:$0xff] %v20877_v15  ;;  %v20885_v51 = vpop.f32.mrb[126].mxu0 }
 0x3db   :  { %15753 = vrot.lane.b32.xlu0 %v15752_v16, %s16360_s21  ;;  %15768 = vrot.lane.b32.xlu1 %v15767_v36, %s16358_s27  ;;  %v20881_v16 = vpack.c.bf16 %v20752_v33, %v20710_v5  ;;  %v20889_v41 = vpop.f32.mrb[127].mxu0 }
 0x3dd   :  { %24690 = vst [vmem:[#allocation161_spill] sm:$0xff] %v20881_v16 }
 0x3df   :  { %15773 = vrot.lane.b32.xlu1 %v15772_v31, %s16360_s21 }
 0x3e0   :  { %v20894_v14 = vpop.f32.mrb[128].mxu0 }
 0x3e1   :  { %v20898_v33 = vpop.f32.mrb[129].mxu0 }
 0x3e2   :  { %v20902_v42 = vpop.f32.mrb[130].mxu0 }
 0x3e3   :  { %v20906_v8 = vpop.f32.mrb[131].mxu0 }
 0x3e8   :  { %v20910_v9 = vpop.f32.mrb[132].mxu0 }
 0x3e9   :  { %v20914_v5 = vpop.f32.mrb[133].mxu0 }
 0x3ea   :  { %v20918_v10 = vpop.f32.mrb[134].mxu0 }
 0x3eb   :  { %v20922_v47 = vpop.f32.mrb[135].mxu0 }
 0x3f0   :  { %v20926_v19 = vpop.f32.mrb[136].mxu0 }
 0x3f1   :  { %24691 = vst [vmem:[#allocation162_spill] sm:$0xff] %v20926_v19  ;;  %v20930_v61 = vpop.f32.mrb[137].mxu0 }
 0x3f2   :  { %24692 = vst [vmem:[#allocation163_spill] sm:$0xff] %v20930_v61  ;;  %v20934_v55 = vpop.f32.mrb[138].mxu0 }
 0x3f3   :  { %24693 = vst [vmem:[#allocation164_spill] sm:$0xff] %v20934_v55  ;;  %v20938_v22 = vpop.f32.mrb[139].mxu0 }
 0x3f4   :  { %24694 = vst [vmem:[#allocation165_spill] sm:$0xff] %v20938_v22 }
 0x3f9   :  { %v14493_v11 = vpop.f32.mrb[140].mxu0 }
 0x3fa   :  { %v4554_v57 = vpop.f32.mrb[141].mxu0 }
 0x3fb   :  { %v14494_v20 = vpop.f32.mrb[142].mxu0 }
 0x3fc   :  { %v4557_v7 = vpop.f32.mrb[143].mxu0 }
 0x401   :  { %v20942_v53 = vpop.f32.mrb[144].mxu0 }
 0x402   :  { %v4570_v16 = vpop.f32.mrb[145].mxu0 }
 0x403   :  { %v20944_v15 = vpop.f32.mrb[146].mxu0 }
 0x404   :  { %v4573_v34 = vpop.f32.mrb[147].mxu0 }
 0x409   :  { %v20946_v52 = vpop.f32.mrb[148].mxu0 }
 0x40a   :  { %v20948_v49 = vpop.f32.mrb[149].mxu0 }
 0x40b   :  { %v20950_v36 = vpop.f32.mrb[150].mxu0 }
 0x40c   :  { %v20952_v24 = vpop.f32.mrb[151].mxu0 }
 0x411   :  { %v20954_v38 = vpop.f32.mrb[152].mxu0 }
 0x412   :  { %v20956_v31 = vpop.f32.mrb[153].mxu0 }
 0x413   :  { %v20958_v4 = vpop.f32.mrb[154].mxu0 }
 0x414   :  { %24695 = vst [vmem:[#allocation166_spill] sm:$0xff] %v20958_v4  ;;  %v20960_v54 = vpop.f32.mrb[155].mxu0  ;;  %v20969_v48 = vpop.permute.xlu0 %15698  ;;  %v24697_v4 = vmax.f32 %v20645_v1, %v20847_v45 }
 0x419   :  { %v14509_v25 = vpop.f32.mrb[156].mxu0  ;;  %v15704_v37 = vpop.permute.xlu0 %15703 }
 0x41a   :  { %v5507_v43 = vmax.f32 %v4554_v57, %v14509_v25  ;;  %v20962_v28 = vpop.f32.mrb[157].mxu0  ;;  %v15706_v45 = vunpack.i.h.bf16 %v15704_v37 }
 0x41b   :  { %v14510_v63 = vpop.f32.mrb[158].mxu0 }
 0x41c   :  { %v5651_v22 = vmax.f32 %v24696_v0, %v5507_v43  ;;  %v5508_v6 = vmax.f32 %v4557_v7, %v14510_v63  ;;  %v20967_v55 = vpop.f32.mrb[159].mxu0  ;;  %v24698_v63 = vmax.f32 %v20689_v32, %v20863_v13  ;;  %v24700_v32 = vmax.f32 %v20700_v59, %v20885_v51 }
 0x41d   :  { %v15705_v13 = vunpack.i.l.bf16 %v15704_v37 }
 0x41e   :  { %v5802_v12 = vadd.f32 %v20524_v17, %v5651_v22  ;;  %v5652_v50 = vmax.f32 %v24697_v4, %v5508_v6 }
 0x420   :  { %v20975_v61 = vmax.f32 %v5802_v12, 0.0  ;;  %v5803_v25 = vadd.f32 %v20524_v17, %v5652_v50  ;;  %v24699_v50 = vmax.f32 %v20616_v35, %v20873_v21  ;;  %v15700_v35 = vunpack.i.l.bf16 %v20969_v48 }
 0x421   :  { %v14513_v57 = vpop.f32.mrb[160].mxu0 }
 0x422   :  { %v5511_v40 = vmax.f32 %v4570_v16, %v14513_v57  ;;  %v4634_v19 = vpop.f32.mrb[161].mxu0  ;;  %v20983_v1 = vcombine.high %v20975_v61, %v20975_v61  ;;  %v20985_v4 = vmax.f32 %v5803_v25, 0.0  ;;  %v15701_v25 = vunpack.i.h.bf16 %v20969_v48  ;;  %v21003_v57 = vpop.permute.xlu1 %15718 }
 0x423   :  { %v5509_v43 = vmax.f32 %v14493_v11, %v4634_v19  ;;  %v14514_v0 = vpop.f32.mrb[162].mxu0  ;;  %v24701_v19 = vmax.f32 %v20627_v2, %v20889_v41  ;;  %v8646_v41 = vsel %vm8595_vm5, %v20484_v46, %v15706_v45  ;;  %v15720_v45 = vunpack.i.l.bf16 %v21003_v57 }
 0x424   :  { %v5655_v7 = vmax.f32 %v24698_v63, %v5511_v40  ;;  %v5512_v18 = vmax.f32 %v4573_v34, %v14514_v0  ;;  %v4637_v22 = vpop.f32.mrb[163].mxu0  ;;  %v6235_v59 = vcombine.high %v20985_v4, %v20985_v4 }
 0x425   :  { %v5653_v12 = vmax.f32 %v24699_v50, %v5509_v43  ;;  %v5510_v6 = vmax.f32 %v14494_v20, %v4637_v22  ;;  %v8645_v22 = vsel %vm8595_vm5, %v20452_v44, %v15705_v13  ;;  %v24702_v44 = vmax.f32 %v20742_v30, %v20894_v14 }
 0x426   :  { %v5806_v11 = vadd.f32 %v20524_v17, %v5655_v7  ;;  %v5656_v40 = vmax.f32 %v24700_v32, %v5512_v18  ;;  %v24704_v30 = vmax.f32 %v20761_v27, %v20902_v42 }
 0x427   :  { %v5804_v16 = vadd.f32 %v20524_v17, %v5653_v12  ;;  %v5654_v34 = vmax.f32 %v24701_v19, %v5510_v6 }
 0x428   :  { %v21000_v21 = vmax.f32 %v5806_v11, 0.0  ;;  %v5807_v20 = vadd.f32 %v20524_v17, %v5656_v40 }
 0x429   :  { %v5948_v43 = vmax.f32 %v5804_v16, 0.0  ;;  %v5805_v51 = vadd.f32 %v20524_v17, %v5654_v34  ;;  %v14517_v37 = vpop.f32.mrb[164].mxu0  ;;  %v24703_v34 = vmax.f32 %v20684_v56, %v20898_v33  ;;  %v24705_v56 = vmax.f32 %v20694_v3, %v20906_v8 }
 0x42a   :  { %v21012_v0 = vmax.f32 %v5807_v20, 0.0  ;;  %v6238_v63 = vcombine.high %v21000_v21, %v21000_v21  ;;  %v5515_v7 = vmax.f32 %v20948_v49, %v14517_v37  ;;  %v4650_v18 = vpop.f32.mrb[165].mxu0 }
 0x42b   :  { %v15709_v50 = vpop.permute.xlu0 %15708  ;;  %v21019_v12 = vcombine.low %v6235_v59, %v5948_v43  ;;  %v5949_v6 = vmax.f32 %v5805_v51, 0.0  ;;  %v5513_v11 = vmax.f32 %v20942_v53, %v4650_v18  ;;  %v14518_v32 = vpop.f32.mrb[166].mxu0  ;;  %v21024_v40 = vcombine.high %v5948_v43, %v5948_v43 }
 0x42c   :  { %v21027_v16 = vcombine.low %v6238_v63, %v21012_v0  ;;  %v4653_v49 = vpop.f32.mrb[167].mxu0  ;;  %v5659_v13 = vmax.f32 %v24702_v44, %v5515_v7  ;;  %v5516_v20 = vmax.f32 %v20952_v24, %v14518_v32  ;;  %v15711_v59 = vunpack.i.h.bf16 %v15709_v50 }
 0x42d   :  { %v6237_v19 = vcombine.high %v5949_v6, %v5949_v6  ;;  %v5657_v53 = vmax.f32 %v24703_v34, %v5513_v11  ;;  %v15710_v51 = vunpack.i.l.bf16 %v15709_v50  ;;  %v5514_v37 = vmax.f32 %v20944_v15, %v4653_v49 }
 0x42e   :  { %v6668_v18 = vrot.slane %v21000_v21, 1  ;;  %v5810_v2 = vadd.f32 %v20524_v17, %v5659_v13  ;;  %v5660_v14 = vmax.f32 %v24704_v30, %v5516_v20  ;;  %v8272_v33 = vcombine.low %v5948_v43, %v21024_v40 }
 0x42f   :  { %v21038_v63 = vcombine.low %v5949_v6, %v6237_v19  ;;  %v5808_v46 = vadd.f32 %v20524_v17, %v5657_v53  ;;  %v5658_v24 = vmax.f32 %v24705_v56, %v5514_v37  ;;  %v8273_v15 = vcombine.low %v6237_v19, %v21000_v21 }
 0x430   :  { %v6664_v7 = vrot.slane %v21019_v12, 1  ;;  %v21051_v50 = vmax.f32 %v5810_v2, 0.0  ;;  %v5811_v11 = vadd.f32 %v20524_v17, %v5660_v14  ;;  %v6665_v49 = vrot.slane %v21024_v40, 1 }
 0x431   :  { %v5952_v6 = vmax.f32 %v5808_v46, 0.0  ;;  %v14521_v32 = vpop.f32.mrb[168].mxu0  ;;  %v5809_v27 = vadd.f32 %v20524_v17, %v5658_v24  ;;  %v15777_v8 = vpack.i.bf16 %v8273_v15, %v8272_v33  ;;  %v6667_v43 = vrot.slane %v21038_v63, 1 }
 0x432   :  { %v5519_v42 = vmax.f32 %v20956_v31, %v14521_v32  ;;  %v4666_v3 = vpop.f32.mrb[169].mxu0  ;;  %v8742_v19 = vsel %vm8692_vm6, %v8645_v22, %v15710_v51  ;;  %v21061_v2 = vcombine.high %v21012_v0, %v21012_v0  ;;  %v5955_v46 = vmax.f32 %v5811_v11, 0.0  ;;  %v16305_v51 = vld [vmem:[%s23858_s3] sm:$0xff]  }
 0x433   :  { %v5517_v44 = vmax.f32 %v20946_v52, %v4666_v3  ;;  %v14522_v13 = vpop.f32.mrb[170].mxu0  ;;  %v6240_v34 = vcombine.high %v5952_v6, %v5952_v6  ;;  %v21064_v53 = vmax.f32 %v5809_v27, 0.0  ;;  %v24706_v31 = vmax.f32 %v20801_v23, %v20910_v9  ;;  %15778 = vrot.lane.b32.xlu0 %v15777_v8, %s16357_s19  ;;  %14741 = vmatprep.subr.bf16.mxu1 %v16305_v51 }
 0x434   :  { %v5520_v37 = vmax.f32 %v20960_v54, %v14522_v13  ;;  %v4669_v22 = vpop.f32.mrb[171].mxu0  ;;  %v8743_v30 = vsel %vm8692_vm6, %v8646_v41, %v15711_v59  ;;  %v24707_v14 = vmax.f32 %v20736_v26, %v20914_v5  ;;  %v6666_v23 = vsel %vm6480_vm2, %v6664_v7, %v6665_v49  ;;  %14742 = vmatpush3.bf16.msra.mxu1 %v16305_v51 }
 0x435   :  { %v5663_v20 = vmax.f32 %v24706_v31, %v5519_v42  ;;  %v5518_v24 = vmax.f32 %v20950_v36, %v4669_v22  ;;  %v21082_v9 = vcombine.high %v21051_v50, %v21051_v50  ;;  %v6241_v54 = vcombine.high %v21064_v53, %v21064_v53 }
 0x436   :  { %v5661_v56 = vmax.f32 %v24707_v14, %v5517_v44  ;;  %v6669_v41 = vsel %vm6480_vm2, %v6667_v43, %v6668_v18  ;;  %v21088_v59 = vcombine.high %v5955_v46, %v5955_v46  ;;  %v24708_v5 = vmax.f32 %v20812_v39, %v20918_v10 }
 0x437   :  { %v15724_v52 = vpop.permute.xlu1 %15723  ;;  %v5814_v33 = vadd.f32 %v20524_v17, %v5663_v20  ;;  %v24709_v15 = vmax.f32 %v20749_v60, %v20922_v47  ;;  %v21097_v32 = vcombine.low %v5952_v6, %v6240_v34  ;;  %v21100_v49 = vcombine.low %v6241_v54, %v21051_v50 }
 0x438   :  { %v5812_v26 = vadd.f32 %v20524_v17, %v5661_v56  ;;  %v5664_v36 = vmax.f32 %v24708_v5, %v5520_v37  ;;  %v15726_v11 = vunpack.i.h.bf16 %v15724_v52  ;;  %v15725_v27 = vunpack.i.l.bf16 %v15724_v52 }
 0x439   :  { %v5662_v7 = vmax.f32 %v24709_v15, %v5518_v24  ;;  %v5958_v18 = vmax.f32 %v5814_v33, 0.0  ;;  %v15782_v39 = vpack.i.bf16 %v6669_v41, %v6666_v23  ;;  %v14525_v10 = vpop.f32.mrb[172].mxu0  ;;  %v21109_v31 = vcombine.low %v5955_v46, %v21088_v59 }
 0x43a   :  { %v21102_v3 = vmax.f32 %v5812_v26, 0.0  ;;  %v5815_v47 = vadd.f32 %v20524_v17, %v5664_v36  ;;  %v4682_v6 = vpop.f32.mrb[173].mxu0  ;;  %v8275_v22 = vcombine.low %v6240_v34, %v21064_v53  ;;  %v8648_v52 = vsel %vm8595_vm5, %v20548_v62, %v15726_v11 }
 0x43b   :  { %v15714_v42 = vpop.permute.xlu0 %15713  ;;  %v5813_v8 = vadd.f32 %v20524_v17, %v5662_v7  ;;  %v21105_v60 = vcombine.high %v5958_v18, %v5958_v18  ;;  %15783 = vrot.lane.b32.xlu0 %v15782_v39, %s16359_s30  ;;  %v21117_v51 = vpop.f32.mrb[174].mxu0  ;;  %v8274_v62 = vcombine.low %v21012_v0, %v21061_v2  ;;  %v5523_v5 = vmax.f32 %v20962_v28, %v14525_v10 }
 0x43c   :  { %v15716_v43 = vunpack.i.h.bf16 %v15714_v42  ;;  %v15715_v44 = vunpack.i.l.bf16 %v15714_v42  ;;  %v6244_v37 = vcombine.high %v21102_v3, %v21102_v3  ;;  %v21123_v24 = vpop.f32.mrb[175].mxu0  ;;  %v21144_v41 = vmax.f32 %v5815_v47, 0.0 }
 0x43d   :  { %v15729_v13 = vpop.permute.xlu1 %15728  ;;  %v21111_v20 = vmax.f32 %v5813_v8, 0.0  ;;  %v15797_v0 = vpack.i.bf16 %v8275_v22, %v8274_v62  ;;  %v5521_v7 = vmax.f32 %v20954_v38, %v4682_v6  ;;  %v24711_v8 = vld [vmem:[#allocation162_spill] sm:$0xff] }
 0x43e   :  { %v8839_v14 = vsel %vm8789_vm7, %v8742_v19, %v15715_v44  ;;  %v8840_v56 = vsel %vm8789_vm7, %v8743_v30, %v15716_v43  ;;  %v15730_v46 = vunpack.i.l.bf16 %v15729_v13  ;;  %v15731_v23 = vunpack.i.h.bf16 %v15729_v13 }
 0x43f   :  { %v21125_v54 = vpop.permute.xlu0 %15738  ;;  %v21130_v33 = vsel %vm2071_vm0, %v8839_v14, %v15700_v35  ;;  %v21135_v34 = vsel %vm2071_vm0, %v8840_v56, %v15701_v25  ;;  %v8647_v19 = vsel %vm8595_vm5, %v20469_v58, %v15725_v27  ;;  %v21142_v30 = vcombine.low %v5958_v18, %v21105_v60  ;;  %15798 = vrot.lane.b32.xlu1 %v15797_v0, %s16357_s19  ;;  %v24715_v14 = vld [vmem:[#allocation90_spill] sm:$0xff]  ;;  %v24716_v56 = vld [vmem:[#allocation163_spill] sm:$0xff]  ;;  %v24718_v0 = vld [vmem:[#allocation153_spill] sm:$0xff] }
 0x440   :  { %24710 = vst [vmem:[#allocation167_spill] sm:$0xff] %v21130_v33  ;;  %v21148_v35 = vcombine.high %v21111_v20, %v21111_v20  ;;  %v13514_v48 = vpack.c.bf16 %v21135_v34, %v21130_v33  ;;  %v21153_v25 = vcombine.low %v6244_v37, %v21111_v20  ;;  %v8744_v58 = vsel %vm8692_vm6, %v8647_v19, %v15730_v46  ;;  %v24726_v33 = vld [vmem:[#allocation156_spill] sm:$0xff] }
 0x441   :  { %v15734_v26 = vpop.permute.xlu1 %15733  ;;  %v8745_v11 = vsel %vm8692_vm6, %v8648_v52, %v15731_v23  ;;  %v24712_v28 = vmax.f32 %v20840_v29, %v24711_v8  ;;  %v21166_v10 = vpop.f32.mrb[176].mxu0  ;;  %v24713_v29 = vunpack.i.h.bf16 %v21003_v57  ;;  %v24717_v46 = vmax.f32 %v24715_v14, %v24716_v56 }
 0x442   :  { %v15736_v36 = vunpack.i.h.bf16 %v15734_v26  ;;  %v15735_v15 = vunpack.i.l.bf16 %v15734_v26  ;;  %14709 = vmatprep.mubr.msk.bf16.mxu1 %vm9264_vm8, %v13514_v48  ;;  %v21170_v6 = vpop.f32.mrb[177].mxu0  ;;  %v6247_v19 = vcombine.high %v21144_v41, %v21144_v41  ;;  %v7241_v26 = vrot.slane %v21019_v12, 2 }
 0x443   :  { %v5667_v39 = vmax.f32 %v24712_v28, %v5523_v5  ;;  %v5665_v23 = vmax.f32 %v24717_v46, %v5521_v7  ;;  %v21188_v62 = vpop.f32.mrb[178].mxu0  ;;  %v7244_v57 = vrot.slane %v21038_v63, 2 }
 0x444   :  { %v8841_v43 = vsel %vm8789_vm7, %v8744_v58, %v15735_v15  ;;  %v8842_v38 = vsel %vm8789_vm7, %v8745_v11, %v15736_v36  ;;  %v21195_v48 = vpop.f32.mrb[179].mxu0  ;;  %v24720_v11 = vld [vmem:[#allocation86_spill] sm:$0xff] }
 0x445   :  { %v15744_v42 = vpop.permute.xlu0 %15743  ;;  %v21172_v13 = vpop.permute.xlu1 %15758  ;;  %v21177_v37 = vsel %vm2071_vm0, %v8841_v43, %v15720_v45  ;;  %v21182_v22 = vsel %vm2071_vm0, %v8842_v38, %v24713_v29  ;;  %v5818_v52 = vadd.f32 %v20524_v17, %v5667_v39  ;;  %v7242_v45 = vrot.slane %v21024_v40, 2 }
 0x446   :  { %v15746_v44 = vunpack.i.h.bf16 %v15744_v42  ;;  %v15745_v47 = vunpack.i.l.bf16 %v15744_v42  ;;  %24714 = vst [vmem:[#allocation162_spill] sm:$0xff] %v21182_v22  ;;  %v21201_v36 = vpack.c.bf16 %v21182_v22, %v21177_v37  ;;  %v5816_v7 = vadd.f32 %v20524_v17, %v5665_v23 }
 0x447   :  { %v21203_v15 = vmax.f32 %v5818_v52, 0.0  ;;  %v5524_v39 = vmax.f32 %v20967_v55, %v21117_v51  ;;  %v7245_v29 = vrot.slane %v21000_v21, 2  ;;  %v24721_v52 = vld [vmem:[#allocation166_spill] sm:$0xff]  ;;  %v7243_v56 = vsel %vm7057_vm1, %v7241_v26, %v7242_v45 }
 0x448   :  { %v8650_v5 = vsel %vm8595_vm5, %v24718_v0, %v15746_v44  ;;  %24719 = vst [vmem:[#allocation90_spill] sm:$0xff] %v21201_v36  ;;  %v8649_v42 = vsel %vm8595_vm5, %v24720_v11, %v15745_v47  ;;  %14710 = vmatmul.mubr.msk.bf16.gmra.mrb[140].mxu1 %vm9264_vm8, %v21201_v36  ;;  %v21213_v44 = vmax.f32 %v5816_v7, 0.0  ;;  %v5522_v14 = vmax.f32 %v24721_v52, %v21123_v24  ;;  %v24723_v7 = vld [vmem:[#allocation157_spill] sm:$0xff]  ;;  %v24724_v11 = vld [vmem:[#allocation164_spill] sm:$0xff] }
 0x449   :  { %v15749_v58 = vpop.permute.xlu0 %15748  ;;  %v15764_v38 = vpop.permute.xlu1 %15763  ;;  %v15760_v47 = vunpack.i.l.bf16 %v21172_v13  ;;  %v6250_v46 = vcombine.high %v21203_v15, %v21203_v15  ;;  %v6670_v55 = vrot.slane %v21027_v16, 1  ;;  %v24725_v24 = vmax.f32 %v24723_v7, %v24724_v11 }
 0x44a   :  { %v15750_v28 = vunpack.i.l.bf16 %v15749_v58  ;;  %v15751_v43 = vunpack.i.h.bf16 %v15749_v58  ;;  %v21225_v0 = vcombine.low %v6247_v19, %v21213_v44  ;;  %v7246_v58 = vsel %vm7057_vm1, %v7244_v57, %v7245_v29  ;;  %v21231_v8 = vpop.f32.mrb[180].mxu0  ;;  %v24727_v57 = vld [vmem:[#allocation165_spill] sm:$0xff] }
 0x44b   :  { %v5668_v52 = vmax.f32 %v24725_v24, %v5524_v39  ;;  %v15766_v26 = vunpack.i.h.bf16 %v15764_v38  ;;  %v15765_v45 = vunpack.i.l.bf16 %v15764_v38  ;;  %v21233_v36 = vpop.f32.mrb[181].mxu0  ;;  %v15787_v22 = vpack.i.bf16 %v7246_v58, %v7243_v56 }
 0x44c   :  { %v8746_v51 = vsel %vm8692_vm6, %v8649_v42, %v15750_v28  ;;  %24722 = vst [vmem:[#allocation163_spill] sm:$0xff] %v21225_v0  ;;  %v8747_v42 = vsel %vm8692_vm6, %v8650_v5, %v15751_v43  ;;  %v24728_v29 = vmax.f32 %v24726_v33, %v24727_v57  ;;  %v21240_v7 = vpop.f32.mrb[182].mxu0  ;;  %v24729_v5 = vunpack.i.l.bf16 %v21125_v54 }
 0x44d   :  { %v15754_v23 = vpop.permute.xlu0 %15753  ;;  %v15769_v28 = vpop.permute.xlu1 %15768  ;;  %v5819_v19 = vadd.f32 %v20524_v17, %v5668_v52  ;;  %v24731_v17 = vunpack.i.h.bf16 %v21125_v54  ;;  %15788 = vrot.lane.b32.xlu0 %v15787_v22, %s16358_s27  ;;  %v21271_v54 = vld [vmem:[%s23857_s2] ss:$0 sm:$0xff] }
 0x44e   :  { %v15756_v18 = vunpack.i.h.bf16 %v15754_v23  ;;  %v15755_v27 = vunpack.i.l.bf16 %v15754_v23  ;;  %v5666_v0 = vmax.f32 %v24728_v29, %v5522_v14  ;;  %v15771_v11 = vunpack.i.h.bf16 %v15769_v28  ;;  %v21244_v24 = vpop.f32.mrb[183].mxu0 }
 0x44f   :  { %v15770_v23 = vunpack.i.l.bf16 %v15769_v28  ;;  %v21257_v14 = vmax.f32 %v5819_v19, 0.0 }
 0x450   :  { %v8843_v39 = vsel %vm8789_vm7, %v8746_v51, %v15755_v27  ;;  %v8844_v38 = vsel %vm8789_vm7, %v8747_v42, %v15756_v18  ;;  %v6671_v18 = vrot.slane %v21061_v2, 1  ;;  %v24734_v27 = vld [vmem:[#allocation155_spill] sm:$0xff]  ;;  %v24735_v51 = vld [vmem:[#allocation141_spill] sm:$0xff]  ;;  %v5817_v22 = vadd.f32 %v21271_v54, %v5666_v0 }
 0x451   :  { %v21249_v43 = vsel %vm2071_vm0, %v8843_v39, %v24729_v5  ;;  %v21254_v33 = vsel %vm2071_vm0, %v8844_v38, %v24731_v17  ;;  %24733 = vst [vmem:[#allocation166_spill] sm:$0xff] %v21257_v14  ;;  %v8652_v56 = vsel %vm8595_vm5, %v24734_v27, %v15766_v26  ;;  %v8651_v58 = vsel %vm8595_vm5, %v24735_v51, %v15765_v45  ;;  %v15774_v19 = vpop.permute.xlu1 %15773  ;;  %v21288_v5 = vpop.f32.mrb[184].mxu0 }
 0x452   :  { %24730 = vst [vmem:[#allocation153_spill] sm:$0xff] %v21249_v43  ;;  %24732 = vst [vmem:[#allocation86_spill] sm:$0xff] %v21254_v33  ;;  %v21266_v52 = vpack.c.bf16 %v21254_v33, %v21249_v43  ;;  %v8748_v42 = vsel %vm8692_vm6, %v8651_v58, %v15770_v23  ;;  %v8749_v28 = vsel %vm8692_vm6, %v8652_v56, %v15771_v11  ;;  %v6673_v45 = vrot.slane %v21097_v32, 1  ;;  %v21294_v58 = vpop.f32.mrb[185].mxu0 }
 0x453   :  { %v21277_v26 = vcombine.low %v6250_v46, %v21257_v14  ;;  %v15776_v57 = vunpack.i.h.bf16 %v15774_v19  ;;  %v15775_v29 = vunpack.i.l.bf16 %v15774_v19  ;;  %v6674_v39 = vrot.slane %v21064_v53, 1 }
 0x454   :  { %24736 = vst [vmem:[#allocation157_spill] sm:$0xff] %v21266_v52  ;;  %14713 = vmatprep.mubr.msk.bf16.mxu1 %vm9264_vm8, %v21266_v52  ;;  %v7818_v38 = vrot.slane %v21019_v12, 3  ;;  %v6672_v0 = vsel %vm6480_vm2, %v6670_v55, %v6671_v18  ;;  %v7819_v23 = vrot.slane %v21024_v40, 3  ;;  %v7821_v11 = vrot.slane %v21038_v63, 3 }
 0x455   :  { %24737 = vst [vmem:[#allocation164_spill] sm:$0xff] %v21277_v26  ;;  %v7822_v46 = vrot.slane %v21000_v21, 3  ;;  %v8845_v17 = vsel %vm8789_vm7, %v8748_v42, %v15775_v29  ;;  %v8846_v27 = vsel %vm8789_vm7, %v8749_v28, %v15776_v57  ;;  %v6675_v56 = vsel %vm6480_vm2, %v6673_v45, %v6674_v39  ;;  %v21306_v42 = vpop.f32.mrb[186].mxu0 }
 0x456   :  { %v7247_v51 = vrot.slane %v21027_v16, 2  ;;  %v21296_v19 = vmax.f32 %v5817_v22, 0.0  ;;  %v15802_v55 = vpack.i.bf16 %v6675_v56, %v6672_v0  ;;  %v21299_v40 = vsel %vm2071_vm0, %v8845_v17, %v15760_v47  ;;  %v21315_v29 = vpop.f32.mrb[187].mxu0 }
 0x457   :  { %24738 = vst [vmem:[#allocation156_spill] sm:$0xff] %v21299_v40  ;;  %v24739_v21 = vunpack.i.h.bf16 %v21172_v13  ;;  %v7820_v45 = vsel %vm7634_vm3, %v7818_v38, %v7819_v23  ;;  %v7823_v22 = vsel %vm7634_vm3, %v7821_v11, %v7822_v46  ;;  %v7248_v57 = vrot.slane %v21061_v2, 2 }
 0x458   :  { %15803 = vrot.lane.b32.xlu1 %v15802_v55, %s16359_s30  ;;  %v15792_v13 = vpack.i.bf16 %v7823_v22, %v7820_v45  ;;  %v7250_v47 = vrot.slane %v21097_v32, 2  ;;  %v7251_v39 = vrot.slane %v21064_v53, 2  ;;  %v8276_v0 = vcombine.low %v21051_v50, %v21082_v9 }
 0x459   :  { %v21304_v18 = vsel %vm2071_vm0, %v8846_v27, %v24739_v21  ;;  %v7249_v38 = vsel %vm7057_vm1, %v7247_v51, %v7248_v57  ;;  %v8277_v23 = vcombine.low %v21088_v59, %v21102_v3  ;;  %v7824_v11 = vrot.slane %v21027_v16, 3 }
 0x45a   :  { %24740 = vst [vmem:[#allocation165_spill] sm:$0xff] %v21304_v18  ;;  %v21310_v28 = vpack.c.bf16 %v21304_v18, %v21299_v40  ;;  %v7825_v46 = vrot.slane %v21061_v2, 3  ;;  %15793 = vrot.lane.b32.xlu0 %v15792_v13, %s16360_s21  ;;  %v7252_v17 = vsel %vm7057_vm1, %v7250_v47, %v7251_v39  ;;  %v7827_v27 = vrot.slane %v21097_v32, 3  ;;  %v21341_v13 = vpop.f32.mrb[188].mxu0  ;;  %v24828_v40 = vld [vmem:[#allocation52_spill] sm:$0xff] }
 0x45b   :  { %v7828_v50 = vrot.slane %v21064_v53, 3  ;;  %v6676_v56 = vrot.slane %v21100_v49, 1  ;;  %v15807_v55 = vpack.i.bf16 %v7252_v17, %v7249_v38  ;;  %v15817_v21 = vpack.i.bf16 %v8277_v23, %v8276_v0  ;;  %v21348_v38 = vpop.f32.mrb[189].mxu0 }
 0x45c   :  { %24741 = vst [vmem:[#allocation155_spill] sm:$0xff] %v21310_v28  ;;  %14714 = vmatmul.mubr.msk.bf16.gmra.mrb[144].mxu1 %vm9264_vm8, %v21310_v28  ;;  %v7826_v51 = vsel %vm7634_vm3, %v7824_v11, %v7825_v46  ;;  %v6677_v59 = vrot.slane %v21082_v9, 1  ;;  %v6679_v2 = vrot.slane %v21109_v31, 1  ;;  %v6680_v22 = vrot.slane %v21102_v3, 1  ;;  %v21355_v17 = vpop.f32.mrb[190].mxu0 }
 0x45d   :  { %v7829_v45 = vsel %vm7634_vm3, %v7827_v27, %v7828_v50  ;;  %v8278_v57 = vcombine.low %v21111_v20, %v21148_v35  ;;  %15808 = vrot.lane.b32.xlu1 %v15807_v55, %s16358_s27  ;;  %v8279_v39 = vcombine.low %v21105_v60, %v21144_v41  ;;  %v7253_v0 = vrot.slane %v21100_v49, 2  ;;  %v21359_v55 = vpop.f32.mrb[191].mxu0 }
 0x45e   :  { %v15812_v53 = vpack.i.bf16 %v7829_v45, %v7826_v51  ;;  %v6678_v47 = vsel %vm6480_vm2, %v6676_v56, %v6677_v59  ;;  %15818 = vrot.lane.b32.xlu0 %v15817_v21, %s16357_s19  ;;  %v6681_v23 = vsel %vm6480_vm2, %v6679_v2, %v6680_v22  ;;  %v7254_v20 = vrot.slane %v21082_v9, 2 }
 0x45f   :  { %v7256_v11 = vrot.slane %v21109_v31, 2  ;;  %v7257_v46 = vrot.slane %v21102_v3, 2  ;;  %v15822_v27 = vpack.i.bf16 %v6681_v23, %v6678_v47  ;;  %v15837_v50 = vpack.i.bf16 %v8279_v39, %v8278_v57 }
 0x460   :  { %v6682_v60 = vrot.slane %v21153_v25, 1  ;;  %v6683_v56 = vrot.slane %v21148_v35, 1  ;;  %v7255_v21 = vsel %vm7057_vm1, %v7253_v0, %v7254_v20  ;;  %v6685_v59 = vrot.slane %v21142_v30, 1 }
 0x461   :  { %v7258_v51 = vsel %vm7057_vm1, %v7256_v11, %v7257_v46  ;;  %v6686_v45 = vrot.slane %v21144_v41, 1  ;;  %15813 = vrot.lane.b32.xlu1 %v15812_v53, %s16360_s21  ;;  %v7830_v57 = vrot.slane %v21100_v49, 3  ;;  %v7831_v47 = vrot.slane %v21082_v9, 3 }
 0x462   :  { %v15827_v2 = vpack.i.bf16 %v7258_v51, %v7255_v21  ;;  %v6684_v22 = vsel %vm6480_vm2, %v6682_v60, %v6683_v56  ;;  %15823 = vrot.lane.b32.xlu0 %v15822_v27, %s16359_s30  ;;  %v7833_v0 = vrot.slane %v21109_v31, 3  ;;  %v7834_v23 = vrot.slane %v21102_v3, 3  ;;  %v14545_v51 = vpop.f32.mrb[192].mxu0 }
 0x463   :  { %v6687_v39 = vsel %vm6480_vm2, %v6685_v59, %v6686_v45  ;;  %v7259_v20 = vrot.slane %v21153_v25, 2  ;;  %v7832_v53 = vsel %vm7634_vm3, %v7830_v57, %v7831_v47  ;;  %v7260_v46 = vrot.slane %v21148_v35, 2  ;;  %v21385_v57 = vpop.f32.mrb[193].mxu0 }
 0x464   :  { %v15842_v11 = vpack.i.bf16 %v6687_v39, %v6684_v22  ;;  %v7262_v60 = vrot.slane %v21142_v30, 2  ;;  %v7835_v56 = vsel %vm7634_vm3, %v7833_v0, %v7834_v23  ;;  %v7263_v9 = vrot.slane %v21144_v41, 2  ;;  %v14546_v0 = vpop.f32.mrb[194].mxu0 }
 0x465   :  { %v7836_v27 = vrot.slane %v21153_v25, 3  ;;  %v7837_v21 = vrot.slane %v21148_v35, 3  ;;  %15838 = vrot.lane.b32.xlu1 %v15837_v50, %s16357_s19  ;;  %v15832_v3 = vpack.i.bf16 %v7835_v56, %v7832_v53  ;;  %v7261_v59 = vsel %vm7057_vm1, %v7259_v20, %v7260_v46  ;;  %v21393_v53 = vpop.f32.mrb[195].mxu0  ;;  %v24743_v56 = vld [vmem:[#allocation20_spill] sm:$0xff] }
 0x466   :  { %v7839_v45 = vrot.slane %v21142_v30, 3  ;;  %v7840_v22 = vrot.slane %v21144_v41, 3  ;;  %15828 = vrot.lane.b32.xlu0 %v15827_v2, %s16358_s27  ;;  %v7264_v47 = vsel %vm7057_vm1, %v7262_v60, %v7263_v9  ;;  %v5381_v35 = vmax.f32 %v21170_v6, %v14545_v51  ;;  %v24742_v41 = vld [vmem:[#allocation5_spill] sm:$0xff]  ;;  %v24745_v6 = vld [vmem:[#allocation7_spill] sm:$0xff]  ;;  %v24746_v60 = vld [vmem:[#allocation22_spill] sm:$0xff] }
 0x467   :  { %v7838_v39 = vsel %vm7634_vm3, %v7836_v27, %v7837_v21  ;;  %v15847_v23 = vpack.i.bf16 %v7264_v47, %v7261_v59  ;;  %v5382_v20 = vmax.f32 %v21195_v48, %v14546_v0  ;;  %v24744_v28 = vmax.f32 %v24742_v41, %v24743_v56  ;;  %v16306_v21 = vld [vmem:[%s23858_s3 + $0x8] sm:$0xff]   ;;  %v24752_v56 = vld [vmem:[#allocation25_spill] sm:$0xff] }
 0x468   :  { %v7841_v50 = vsel %vm7634_vm3, %v7839_v45, %v7840_v22  ;;  %v21400_v2 = vcombine.high %v21296_v19, %v21296_v19  ;;  %v24747_v9 = vmax.f32 %v24745_v6, %v24746_v60  ;;  %14743 = vmatprep.subr.bf16.mxu1 %v16306_v21  ;;  %v24749_v0 = vld [vmem:[#allocation24_spill] sm:$0xff]  ;;  %v6590_v33 = vrot.slane %v24828_v40, 1 }
 0x469   :  { %v15852_v46 = vpack.i.bf16 %v7841_v50, %v7838_v39  ;;  %v5669_v52 = vmax.f32 %v5381_v35, %v24744_v28  ;;  %15843 = vrot.lane.b32.xlu1 %v15842_v11, %s16359_s30  ;;  %v14549_v59 = vpop.f32.mrb[196].mxu0  ;;  %14744 = vmatpush3.bf16.msra.mxu1 %v16306_v21  ;;  %v24748_v35 = vld [vmem:[#allocation9_spill] sm:$0xff] }
 0x46a   :  { %v5670_v27 = vmax.f32 %v5382_v20, %v24747_v9  ;;  %15833 = vrot.lane.b32.xlu0 %v15832_v3, %s16360_s21  ;;  %v5385_v45 = vmax.f32 %v21233_v36, %v14549_v59  ;;  %v4778_v22 = vpop.f32.mrb[197].mxu0  ;;  %v24750_v50 = vmax.f32 %v24748_v35, %v24749_v0  ;;  %v24751_v36 = vld [vmem:[#allocation4_spill] sm:$0xff] }
 0x46b   :  { %v5820_v48 = vadd.f32 %v21271_v54, %v5669_v52  ;;  %v5383_v47 = vmax.f32 %v21166_v10, %v4778_v22  ;;  %v14550_v39 = vpop.f32.mrb[198].mxu0  ;;  %v24753_v6 = vmax.f32 %v24751_v36, %v24752_v56  ;;  %v24755_v10 = vld [vmem:[#allocation26_spill] sm:$0xff]  ;;  %v24758_v22 = vld [vmem:[#allocation27_spill] sm:$0xff] }
 0x46c   :  { %v5821_v28 = vadd.f32 %v21271_v54, %v5670_v27  ;;  %v5386_v20 = vmax.f32 %v21244_v24, %v14550_v39  ;;  %v4781_v41 = vpop.f32.mrb[199].mxu0 }
 0x46d   :  { %v21412_v51 = vmax.f32 %v5820_v48, 0.0  ;;  %15848 = vrot.lane.b32.xlu1 %v15847_v23, %s16358_s27  ;;  %v5673_v23 = vmax.f32 %v5385_v45, %v24750_v50  ;;  %v5671_v60 = vmax.f32 %v5383_v47, %v24753_v6  ;;  %v5384_v9 = vmax.f32 %v21188_v62, %v4781_v41  ;;  %v24754_v48 = vld [vmem:[#allocation11_spill] sm:$0xff]  ;;  %v24757_v45 = vld [vmem:[#allocation6_spill] sm:$0xff] }
 0x46e   :  { %v21415_v11 = vmax.f32 %v5821_v28, 0.0  ;;  %v24756_v21 = vmax.f32 %v24754_v48, %v24755_v10  ;;  %v24759_v39 = vmax.f32 %v24757_v45, %v24758_v22  ;;  %v24761_v10 = vld [vmem:[#allocation13_spill] sm:$0xff] }
 0x46f   :  { %v21422_v3 = vcombine.high %v21412_v51, %v21412_v51  ;;  %v5824_v27 = vadd.f32 %v21271_v54, %v5673_v23  ;;  %v5822_v24 = vadd.f32 %v21271_v54, %v5671_v60 }
 0x470   :  { %v5674_v28 = vmax.f32 %v5386_v20, %v24756_v21  ;;  %v5672_v35 = vmax.f32 %v5384_v9, %v24759_v39  ;;  %v6253_v50 = vcombine.high %v21415_v11, %v21415_v11  ;;  %v24762_v21 = vld [vmem:[#allocation28_spill] sm:$0xff] }
 0x471   :  { %15853 = vrot.lane.b32.xlu1 %v15852_v46, %s16360_s21  ;;  %v21444_v47 = vmax.f32 %v5824_v27, 0.0  ;;  %v21449_v46 = vpack.c.bf16 %v21177_v37, %v21135_v34  ;;  %v5966_v0 = vmax.f32 %v5822_v24, 0.0  ;;  %v14553_v20 = vpop.f32.mrb[200].mxu0  ;;  %v24764_v39 = vld [vmem:[#allocation8_spill] sm:$0xff] }
 0x472   :  { %v5825_v62 = vadd.f32 %v21271_v54, %v5674_v28  ;;  %v5823_v23 = vadd.f32 %v21271_v54, %v5672_v35  ;;  %v5389_v56 = vmax.f32 %v21294_v58, %v14553_v20  ;;  %v4794_v6 = vpop.f32.mrb[201].mxu0  ;;  %v24763_v28 = vmax.f32 %v24761_v10, %v24762_v21  ;;  %v24765_v35 = vld [vmem:[#allocation29_spill] sm:$0xff]  ;;  %v24770_v21 = vld [vmem:[#allocation10_spill] sm:$0xff] }
 0x473   :  { %24760 = vst [vmem:[#allocation141_spill] sm:$0xff] %v21449_v46  ;;  %v6256_v36 = vcombine.high %v21444_v47, %v21444_v47  ;;  %v21459_v60 = vcombine.high %v5966_v0, %v5966_v0  ;;  %v21461_v9 = vcombine.low %v6253_v50, %v5966_v0  ;;  %v5387_v37 = vmax.f32 %v21231_v8, %v4794_v6  ;;  %v14554_v27 = vpop.f32.mrb[202].mxu0  ;;  %v24768_v6 = vld [vmem:[#allocation30_spill] sm:$0xff]  ;;  %v24829_v46 = vld [vmem:[#allocation89_spill] sm:$0xff] }
 0x474   :  { %v21454_v41 = vmax.f32 %v5825_v62, 0.0  ;;  %v5967_v34 = vmax.f32 %v5823_v23, 0.0  ;;  %v5677_v24 = vmax.f32 %v5389_v56, %v24763_v28  ;;  %v5390_v45 = vmax.f32 %v21315_v29, %v14554_v27  ;;  %v4797_v22 = vpop.f32.mrb[203].mxu0 }
 0x475   :  { %v24766_v62 = vmax.f32 %v24764_v39, %v24765_v35  ;;  %v5388_v23 = vmax.f32 %v21240_v7, %v4797_v22  ;;  %v8284_v8 = vcombine.low %v5966_v0, %v21459_v60  ;;  %v6700_v56 = vrot.slane %v21461_v9, 1  ;;  %v24771_v7 = vld [vmem:[#allocation31_spill] sm:$0xff] }
 0x476   :  { %v21465_v48 = vcombine.low %v6256_v36, %v21454_v41  ;;  %v6255_v58 = vcombine.high %v5967_v34, %v5967_v34  ;;  %v5828_v20 = vadd.f32 %v21271_v54, %v5677_v24  ;;  %v24767_v36 = vld [vmem:[#allocation15_spill] sm:$0xff]  ;;  %v6701_v29 = vrot.slane %v21459_v60, 1 }
 0x477   :  { %v5675_v50 = vmax.f32 %v5387_v37, %v24766_v62  ;;  %v24769_v52 = vmax.f32 %v24767_v36, %v24768_v6  ;;  %v24772_v28 = vmax.f32 %v24770_v21, %v24771_v7  ;;  %v21491_v24 = vcombine.high %v21454_v41, %v21454_v41 }
 0x478   :  { %v21482_v27 = vcombine.low %v5967_v34, %v6255_v58  ;;  %v8285_v10 = vcombine.low %v6255_v58, %v21444_v47  ;;  %v21497_v62 = vmax.f32 %v5828_v20, 0.0  ;;  %v6702_v36 = vsel %vm6480_vm2, %v6700_v56, %v6701_v29 }
 0x479   :  { %v5678_v59 = vmax.f32 %v5390_v45, %v24769_v52  ;;  %v5826_v37 = vadd.f32 %v21271_v54, %v5675_v50  ;;  %v5676_v0 = vmax.f32 %v5388_v23, %v24772_v28  ;;  %v6704_v45 = vrot.slane %v21444_v47, 1  ;;  %v14557_v39 = vpop.f32.mrb[204].mxu0 }
 0x47a   :  { %v15857_v35 = vpack.i.bf16 %v8285_v10, %v8284_v8  ;;  %v6703_v58 = vrot.slane %v21482_v27, 1  ;;  %v5393_v50 = vmax.f32 %v21348_v38, %v14557_v39  ;;  %v4810_v23 = vpop.f32.mrb[205].mxu0  ;;  %v24773_v8 = vld [vmem:[#allocation17_spill] sm:$0xff]  ;;  %v24774_v10 = vld [vmem:[#allocation34_spill] sm:$0xff]  ;;  %v8286_v56 = vcombine.low %v21454_v41, %v21491_v24 }
 0x47b   :  { %v5829_v52 = vadd.f32 %v21271_v54, %v5678_v59  ;;  %v5970_v22 = vmax.f32 %v5826_v37, 0.0  ;;  %v5827_v34 = vadd.f32 %v21271_v54, %v5676_v0  ;;  %v5391_v59 = vmax.f32 %v21288_v5, %v4810_v23  ;;  %v14558_v37 = vpop.f32.mrb[206].mxu0 }
 0x47c   :  { %15858 = vrot.lane.b32.xlu0 %v15857_v35, %s16357_s19  ;;  %v6705_v7 = vsel %vm6480_vm2, %v6703_v58, %v6704_v45  ;;  %v24775_v28 = vmax.f32 %v24773_v8, %v24774_v10  ;;  %v5394_v0 = vmax.f32 %v21359_v55, %v14558_v37  ;;  %v4813_v38 = vpop.f32.mrb[207].mxu0  ;;  %v24777_v35 = vld [vmem:[#allocation35_spill] sm:$0xff]  ;;  %v24780_v8 = vld [vmem:[#allocation36_spill] sm:$0xff]  ;;  %v7277_v41 = vrot.slane %v21461_v9, 2  ;;  %v24782_v10 = vld [vmem:[#allocation14_spill] sm:$0xff] }
 0x47d   :  { %v6258_v6 = vcombine.high %v5970_v22, %v5970_v22  ;;  %v21501_v21 = vmax.f32 %v5827_v34, 0.0  ;;  %v15862_v39 = vpack.i.bf16 %v6705_v7, %v6702_v36  ;;  %v5973_v29 = vmax.f32 %v5829_v52, 0.0  ;;  %v24776_v34 = vld [vmem:[#allocation12_spill] sm:$0xff] }
 0x47e   :  { %v5681_v20 = vmax.f32 %v5393_v50, %v24775_v28  ;;  %v24778_v23 = vmax.f32 %v24776_v34, %v24777_v35  ;;  %v5392_v45 = vmax.f32 %v21306_v42, %v4813_v38  ;;  %v24779_v50 = vld [vmem:[#allocation19_spill] sm:$0xff]  ;;  %v24783_v28 = vld [vmem:[#allocation37_spill] sm:$0xff]  ;;  %v7278_v42 = vrot.slane %v21459_v60, 2 }
 0x47f   :  { %v6259_v5 = vcombine.high %v21501_v21, %v21501_v21  ;;  %v24781_v55 = vmax.f32 %v24779_v50, %v24780_v8  ;;  %v8287_v36 = vcombine.low %v6258_v6, %v21501_v21  ;;  %v7280_v35 = vrot.slane %v21482_v27, 2 }
 0x480   :  { %v5679_v18 = vmax.f32 %v5391_v59, %v24778_v23  ;;  %v5832_v58 = vadd.f32 %v21271_v54, %v5681_v20  ;;  %v24784_v59 = vmax.f32 %v24782_v10, %v24783_v28  ;;  %15863 = vrot.lane.b32.xlu0 %v15862_v39, %s16359_s30  ;;  %v21535_v23 = vcombine.high %v5973_v29, %v5973_v29  ;;  %v24785_v28 = vld [vmem:[#allocation21_spill] sm:$0xff] }
 0x481   :  { %v5682_v37 = vmax.f32 %v5394_v0, %v24781_v55  ;;  %v21525_v52 = vcombine.low %v6259_v5, %v21497_v62  ;;  %v15877_v38 = vpack.i.bf16 %v8287_v36, %v8286_v56  ;;  %v14561_v50 = vpop.f32.mrb[208].mxu0  ;;  %v7281_v8 = vrot.slane %v21444_v47, 2 }
 0x482   :  { %v5830_v7 = vadd.f32 %v21271_v54, %v5679_v18  ;;  %v5680_v34 = vmax.f32 %v5392_v45, %v24784_v59  ;;  %v5976_v20 = vmax.f32 %v5832_v58, 0.0  ;;  %v21541_v45 = vcombine.low %v5970_v22, %v6258_v6  ;;  %v4826_v56 = vpop.f32.mrb[209].mxu0  ;;  %v24786_v59 = vld [vmem:[#allocation38_spill] sm:$0xff] }
 0x483   :  { %v5833_v0 = vadd.f32 %v21271_v54, %v5682_v37  ;;  %15878 = vrot.lane.b32.xlu1 %v15877_v38, %s16357_s19  ;;  %v5397_v58 = vmax.f32 %v21385_v57, %v14561_v50  ;;  %v7279_v55 = vsel %vm7057_vm1, %v7277_v41, %v7278_v42  ;;  %v7282_v10 = vsel %vm7057_vm1, %v7280_v35, %v7281_v8  ;;  %v14562_v22 = vpop.f32.mrb[210].mxu0  ;;  %v24789_v50 = vld [vmem:[#allocation39_spill] sm:$0xff] }
 0x484   :  { %v21537_v5 = vmax.f32 %v5830_v7, 0.0  ;;  %v5831_v18 = vadd.f32 %v21271_v54, %v5680_v34  ;;  %v5395_v7 = vmax.f32 %v21341_v13, %v4826_v56  ;;  %v21554_v6 = vcombine.high %v5976_v20, %v5976_v20  ;;  %v4829_v38 = vpop.f32.mrb[211].mxu0 }
 0x485   :  { %v21543_v39 = vmax.f32 %v5833_v0, 0.0  ;;  %v24787_v34 = vmax.f32 %v24785_v28, %v24786_v59  ;;  %v15867_v57 = vpack.i.bf16 %v7282_v10, %v7279_v55  ;;  %v6706_v41 = vrot.slane %v21465_v48, 1  ;;  %v24791_v28 = vld [vmem:[#allocation23_spill] sm:$0xff]  ;;  %v24792_v59 = vld [vmem:[#allocation40_spill] sm:$0xff] }
 0x486   :  { %v21548_v37 = vmax.f32 %v5831_v18, 0.0  ;;  %v6262_v36 = vcombine.high %v21537_v5, %v21537_v5  ;;  %v24788_v18 = vld [vmem:[#allocation16_spill] sm:$0xff]  ;;  %v5398_v8 = vmax.f32 %v21393_v53, %v14562_v22  ;;  %v6707_v55 = vrot.slane %v21491_v24, 1 }
 0x487   :  { %v5685_v0 = vmax.f32 %v5397_v58, %v24787_v34  ;;  %v24790_v26 = vmax.f32 %v24788_v18, %v24789_v50  ;;  %v6265_v35 = vcombine.high %v21543_v39, %v21543_v39  ;;  %15868 = vrot.lane.b32.xlu0 %v15867_v57, %s16358_s27  ;;  %v5396_v58 = vmax.f32 %v21355_v17, %v4829_v38  ;;  %v24796_v57 = vld [vmem:[#allocation41_spill] sm:$0xff] }
 0x488   :  { %v21561_v42 = vcombine.low %v6262_v36, %v21548_v37  ;;  %v6709_v36 = vrot.slane %v21541_v45, 1  ;;  %v6710_v34 = vrot.slane %v21501_v21, 1  ;;  %v7854_v53 = vrot.slane %v21461_v9, 3 }
 0x489   :  { %v5683_v13 = vmax.f32 %v5395_v7, %v24790_v26  ;;  %v5836_v56 = vadd.f32 %v21271_v54, %v5685_v0  ;;  %v24793_v26 = vmax.f32 %v24791_v28, %v24792_v59  ;;  %v24795_v0 = vld [vmem:[#allocation18_spill] sm:$0xff]  ;;  %v6708_v38 = vsel %vm6480_vm2, %v6706_v41, %v6707_v55 }
 0x48a   :  { %v24797_v18 = vmax.f32 %v24795_v0, %v24796_v57  ;;  %v7855_v50 = vrot.slane %v21459_v60, 3  ;;  %v7857_v28 = vrot.slane %v21482_v27, 3  ;;  %v21597_v59 = vcombine.low %v5973_v29, %v21535_v23 }
 0x48b   :  { %v5834_v10 = vadd.f32 %v21271_v54, %v5683_v13  ;;  %v5686_v7 = vmax.f32 %v5398_v8, %v24793_v26  ;;  %v21580_v22 = vmax.f32 %v5836_v56, 0.0  ;;  %v6711_v8 = vsel %vm6480_vm2, %v6709_v36, %v6710_v34 }
 0x48c   :  { %v5684_v17 = vmax.f32 %v5396_v58, %v24797_v18  ;;  %v21594_v56 = vcombine.high %v21497_v62, %v21497_v62  ;;  %v15882_v58 = vpack.i.bf16 %v6711_v8, %v6708_v38  ;;  %v21602_v60 = vcombine.low %v5976_v20, %v21554_v6 }
 0x48d   :  { %24794 = vst [vmem:[#allocation5_spill] sm:$0xff] %v21580_v22  ;;  %v21587_v14 = vmax.f32 %v5834_v10, 0.0  ;;  %v5837_v13 = vadd.f32 %v21271_v54, %v5686_v7  ;;  %v6268_v41 = vcombine.high %v21580_v22, %v21580_v22  ;;  %v7858_v10 = vrot.slane %v21444_v47, 3  ;;  %v21624_v47 = vld [vmem:[%s23858_s3 + $0x10] ss:$0 sps:$4 sm:$0xff]   ;;  %v24830_v22 = vld [vmem:[#allocation152_spill] sm:$0xff] }
 0x48e   :  { %v5835_v26 = vadd.f32 %v21271_v54, %v5684_v17  ;;  %15883 = vrot.lane.b32.xlu1 %v15882_v58, %s16359_s30  ;;  %v7283_v29 = vrot.slane %v21465_v48, 2  ;;  %v7284_v7 = vrot.slane %v21491_v24, 2  ;;  %v7286_v34 = vrot.slane %v21541_v45, 2  ;;  %15322 = vmatprep.subr.msk.bf16.mxu1 %vm9361_vm4, %v21624_v47 }
 0x48f   :  { %v21605_v55 = vcombine.low %v6265_v35, %v21587_v14  ;;  %v21607_v36 = vmax.f32 %v5837_v13, 0.0  ;;  %v7856_v35 = vsel %vm7634_vm3, %v7854_v53, %v7855_v50  ;;  %v7859_v0 = vsel %vm7634_vm3, %v7857_v28, %v7858_v10 }
 0x490   :  { %v7287_v57 = vrot.slane %v21501_v21, 2  ;;  %v21628_v18 = vcombine.high %v21548_v37, %v21548_v37  ;;  %v15872_v17 = vpack.i.bf16 %v7859_v0, %v7856_v35  ;;  %v7285_v38 = vsel %vm7057_vm1, %v7283_v29, %v7284_v7 }
 0x491   :  { %24798 = vst [vmem:[#allocation20_spill] sm:$0xff] %v21607_v36  ;;  %v21616_v20 = vcombine.low %v6268_v41, %v21607_v36  ;;  %v8288_v13 = vcombine.low %v21497_v62, %v21594_v56  ;;  %v8289_v50 = vcombine.low %v21535_v23, %v21537_v5  ;;  %v7860_v8 = vrot.slane %v21465_v48, 3 }
 0x492   :  { %v7288_v53 = vsel %vm7057_vm1, %v7286_v34, %v7287_v57  ;;  %v7861_v28 = vrot.slane %v21491_v24, 3  ;;  %v21640_v41 = vmax.f32 %v5835_v26, 0.0  ;;  %15873 = vrot.lane.b32.xlu0 %v15872_v17, %s16360_s21  ;;  %v7863_v10 = vrot.slane %v21541_v45, 3 }
 0x493   :  { %24799 = vst [vmem:[#allocation7_spill] sm:$0xff] %v21616_v20  ;;  %v15887_v58 = vpack.i.bf16 %v7288_v53, %v7285_v38  ;;  %v7864_v62 = vrot.slane %v21501_v21, 3  ;;  %v15897_v29 = vpack.i.bf16 %v8289_v50, %v8288_v13  ;;  %v6712_v23 = vrot.slane %v21525_v52, 1 }
 0x494   :  { %24800 = vst [vmem:[#allocation22_spill] sm:$0xff] %v21640_v41  ;;  %v7862_v7 = vsel %vm7634_vm3, %v7860_v8, %v7861_v28  ;;  %v6713_v34 = vrot.slane %v21594_v56, 1  ;;  %v6715_v26 = vrot.slane %v21597_v59, 1  ;;  %v6716_v35 = vrot.slane %v21537_v5, 1 }
 0x495   :  { %15888 = vrot.lane.b32.xlu1 %v15887_v58, %s16358_s27  ;;  %v7865_v24 = vsel %vm7634_vm3, %v7863_v10, %v7864_v62  ;;  %v8290_v0 = vcombine.low %v21548_v37, %v21628_v18  ;;  %v8291_v17 = vcombine.low %v21554_v6, %v21543_v39  ;;  %v7289_v38 = vrot.slane %v21525_v52, 2 }
 0x496   :  { %v15892_v57 = vpack.i.bf16 %v7865_v24, %v7862_v7  ;;  %v6714_v21 = vsel %vm6480_vm2, %v6712_v23, %v6713_v34  ;;  %15898 = vrot.lane.b32.xlu0 %v15897_v29, %s16357_s19  ;;  %v6717_v13 = vsel %vm6480_vm2, %v6715_v26, %v6716_v35  ;;  %v7290_v53 = vrot.slane %v21594_v56, 2 }
 0x497   :  { %v7292_v50 = vrot.slane %v21597_v59, 2  ;;  %v7293_v8 = vrot.slane %v21537_v5, 2  ;;  %v15902_v28 = vpack.i.bf16 %v6717_v13, %v6714_v21  ;;  %v15922_v37 = vpack.i.bf16 %v8291_v17, %v8290_v0 }
 0x498   :  { %v6718_v58 = vrot.slane %v21561_v42, 1  ;;  %v6719_v10 = vrot.slane %v21628_v18, 1  ;;  %v7291_v6 = vsel %vm7057_vm1, %v7289_v38, %v7290_v53  ;;  %v6721_v29 = vrot.slane %v21602_v60, 1 }
 0x499   :  { %15893 = vrot.lane.b32.xlu1 %v15892_v57, %s16360_s21  ;;  %v7294_v62 = vsel %vm7057_vm1, %v7292_v50, %v7293_v8  ;;  %v6722_v7 = vrot.slane %v21543_v39, 1  ;;  %v7866_v24 = vrot.slane %v21525_v52, 3  ;;  %v7867_v26 = vrot.slane %v21594_v56, 3 }
 0x49a   :  { %v15907_v23 = vpack.i.bf16 %v7294_v62, %v7291_v6  ;;  %v6720_v34 = vsel %vm6480_vm2, %v6718_v58, %v6719_v10  ;;  %15903 = vrot.lane.b32.xlu0 %v15902_v28, %s16359_s30  ;;  %v7869_v0 = vrot.slane %v21597_v59, 3  ;;  %v7870_v57 = vrot.slane %v21537_v5, 3 }
 0x49b   :  { %v6723_v35 = vsel %vm6480_vm2, %v6721_v29, %v6722_v7  ;;  %v7295_v21 = vrot.slane %v21561_v42, 2  ;;  %v7868_v38 = vsel %vm7634_vm3, %v7866_v24, %v7867_v26  ;;  %v7296_v13 = vrot.slane %v21628_v18, 2  ;;  %v24801_v7 = vld [vmem:[#allocation43_spill] sm:$0xff] }
 0x49c   :  { %v15927_v17 = vpack.i.bf16 %v6723_v35, %v6720_v34  ;;  %v7298_v53 = vrot.slane %v21602_v60, 2  ;;  %v7871_v56 = vsel %vm7634_vm3, %v7869_v0, %v7870_v57  ;;  %v7299_v50 = vrot.slane %v21543_v39, 2  ;;  %v24802_v34 = vld [vmem:[#allocation126_spill] sm:$0xff]  ;;  %v24803_v35 = vld [vmem:[#allocation67_spill] sm:$0xff] }
 0x49d   :  { %15923 = vrot.lane.b32.xlu1 %v15922_v37, %s16357_s19  ;;  %v7872_v8 = vrot.slane %v21561_v42, 3  ;;  %v7873_v28 = vrot.slane %v21628_v18, 3  ;;  %v15912_v5 = vpack.i.bf16 %v7871_v56, %v7868_v38  ;;  %v7297_v58 = vsel %vm7057_vm1, %v7295_v21, %v7296_v13  ;;  %v24805_v38 = vld [vmem:[#allocation46_spill] sm:$0xff]  ;;  %v24806_v56 = vld [vmem:[#allocation136_spill] sm:$0xff] }
 0x49e   :  { %v7875_v10 = vrot.slane %v21602_v60, 3  ;;  %v7876_v6 = vrot.slane %v21543_v39, 3  ;;  %15908 = vrot.lane.b32.xlu0 %v15907_v23, %s16358_s27  ;;  %v7300_v62 = vsel %vm7057_vm1, %v7298_v53, %v7299_v50  ;;  %v9814_v29 = vsel %vm9361_vm4, %v21624_v47, 0  ;;  %v24804_v47 = vld [vmem:[#allocation125_spill] sm:$0xff]  ;;  %v24807_v50 = vld [vmem:[#allocation51_spill] sm:$0xff]  ;;  %v24826_v53 = vld [vmem:[#allocation120_spill] sm:$0xff] }
 0x49f   :  { %v7874_v37 = vsel %vm7634_vm3, %v7872_v8, %v7873_v28  ;;  %v21696_v24 = vcombine.low %v24802_v34, %v24801_v7  ;;  %v21700_v18 = vcombine.high %v21640_v41, %v21640_v41  ;;  %v15932_v26 = vpack.i.bf16 %v7300_v62, %v7297_v58  ;;  %14746 = vmatpush3.bf16.msra.mxu1 %v9814_v29  ;;  %v24809_v62 = vld [vmem:[#allocation113_spill] sm:$0xff]  ;;  %v24831_v41 = vld [vmem:[#allocation151_spill] sm:$0xff] }
 0x4a0   :  { %v7877_v39 = vsel %vm7634_vm3, %v7875_v10, %v7876_v6  ;;  %v6754_v0 = vrot.slane %v24803_v35, 1  ;;  %v6755_v57 = vrot.slane %v24804_v47, 1  ;;  %v6758_v13 = vrot.slane %v24805_v38, 1 }
 0x4a1   :  { %15928 = vrot.lane.b32.xlu1 %v15927_v17, %s16359_s30  ;;  %v15937_v23 = vpack.i.bf16 %v7877_v39, %v7874_v37  ;;  %v6757_v21 = vrot.slane %v21696_v24, 1  ;;  %v24808_v17 = vpack.i.bf16 %v24806_v56, %v24807_v50  ;;  %v7331_v8 = vrot.slane %v24803_v35, 2  ;;  %v24810_v37 = vld [vmem:[#allocation124_spill] sm:$0xff]  ;;  %v24814_v50 = vld [vmem:[#allocation54_spill] sm:$0xff] }
 0x4a2   :  { %15913 = vrot.lane.b32.xlu0 %v15912_v5, %s16360_s21  ;;  %v7332_v28 = vrot.slane %v24804_v47, 2  ;;  %v6756_v5 = vsel %vm6480_vm2, %v6754_v0, %v6755_v57  ;;  %v7334_v10 = vrot.slane %v21696_v24, 2  ;;  %v7335_v6 = vrot.slane %v24805_v38, 2 }
 0x4a3   :  { %v6759_v58 = vsel %vm6480_vm2, %v6757_v21, %v6758_v13  ;;  %v24811_v29 = vpack.i.bf16 %v24809_v62, %v24810_v37  ;;  %v7909_v0 = vrot.slane %v24804_v47, 3  ;;  %v7911_v57 = vrot.slane %v21696_v24, 3  ;;  %v24813_v13 = vld [vmem:[#allocation65_spill] sm:$0xff] }
 0x4a4   :  { %v15942_v7 = vpack.i.bf16 %v6759_v58, %v6756_v5  ;;  %v7333_v34 = vsel %vm7057_vm1, %v7331_v8, %v7332_v28  ;;  %v7336_v39 = vsel %vm7057_vm1, %v7334_v10, %v7335_v6  ;;  %v7912_v21 = vrot.slane %v24805_v38, 3  ;;  %v24817_v58 = vld [vmem:[#allocation117_spill] sm:$0xff] }
 0x4a5   :  { %15933 = vrot.lane.b32.xlu1 %v15932_v26, %s16358_s27  ;;  %v7908_v26 = vrot.slane %v24803_v35, 3  ;;  %v15952_v28 = vpack.i.bf16 %v7336_v39, %v7333_v34  ;;  %v5748_v10 = vadd.f32 %v21271_v54, %v24817_v58  ;;  %v24818_v62 = vld [vmem:[#allocation137_spill] sm:$0xff]  ;;  %v24820_v34 = vld [vmem:[#allocation66_spill] sm:$0xff]  ;;  %v24821_v39 = vld [vmem:[#allocation99_spill] sm:$0xff]  ;;  %v21770_v58 = vpop.permute.xlu0 %15778  ;;  %v6554_v20 = vrot.slane %v24826_v53, 1 }
 0x4a6   :  { %15918 = vrot.lane.b32.xlu0 %v24808_v17, %s16359_s30  ;;  %v24815_v17 = vld [vmem:[#allocation123_spill] sm:$0xff]  ;;  %v7913_v47 = vsel %vm7634_vm3, %v7911_v57, %v7912_v21  ;;  %v5838_v43 = vadd.f32 %v21271_v54, %v24829_v46 }
 0x4a7   :  { %v24816_v8 = vpack.i.bf16 %v24814_v50, %v24815_v17  ;;  %v7910_v5 = vsel %vm7634_vm3, %v7908_v26, %v7909_v0  ;;  %v21754_v26 = vcombine.low %v24821_v39, %v24820_v34  ;;  %v5892_v0 = vmax.f32 %v5748_v10, 0.0  ;;  %v24824_v39 = vld [vmem:[#allocation64_spill] sm:$0xff] }
 0x4a8   :  { %v15962_v37 = vpack.i.bf16 %v7913_v47, %v7910_v5  ;;  %v24823_v5 = vld [vmem:[#allocation138_spill] sm:$0xff] }
 0x4a9   :  { %15938 = vrot.lane.b32.xlu1 %v15937_v23, %s16360_s21  ;;  %v24812_v23 = vld [vmem:[#allocation71_spill] sm:$0xff]  ;;  %v21768_v47 = vcombine.high %v5892_v0, %v5892_v0 }
 0x4aa   :  { %15948 = vrot.lane.b32.xlu0 %v24811_v29, %s16358_s27  ;;  %v21736_v56 = vcombine.low %v24813_v13, %v24812_v23  ;;  %v24819_v29 = vld [vmem:[#allocation58_spill] sm:$0xff]  ;;  %v24822_v13 = vld [vmem:[#allocation48_spill] sm:$0xff] }
 0x4ab   :  { %v5766_v50 = vadd.f32 %v21271_v54, %v24822_v13  ;;  %v7636_v17 = vrot.slane %v24819_v29, 3  ;;  %v21780_v13 = vcombine.low %v5892_v0, %v21768_v47 }
 0x4ac   :  { %v6481_v6 = vrot.slane %v21736_v56, 1  ;;  %v7635_v21 = vrot.slane %v21736_v56, 3 }
 0x4ad   :  { %15943 = vrot.lane.b32.xlu1 %v15942_v7, %s16359_s30  ;;  %v6482_v7 = vrot.slane %v24819_v29, 1 }
 0x4ae   :  { %15958 = vrot.lane.b32.xlu0 %v24816_v8, %s16360_s21  ;;  %v7058_v8 = vrot.slane %v21736_v56, 2  ;;  %v7637_v10 = vsel %vm7634_vm3, %v7635_v21, %v7636_v17  ;;  %v7671_v21 = vrot.slane %v21754_v26, 3 }
 0x4af   :  { %v6483_v57 = vsel %vm6480_vm2, %v6481_v6, %v6482_v7  ;;  %v7059_v6 = vrot.slane %v24819_v29, 2 }
 0x4b1   :  { %15953 = vrot.lane.b32.xlu1 %v15952_v28, %s16358_s27  ;;  %v16308_v28 = vld [vmem:[%s23858_s3 + $0x28] sm:$0xff]   ;;  %v7060_v7 = vsel %vm7057_vm1, %v7058_v8, %v7059_v6  ;;  %v7094_v8 = vrot.slane %v21754_v26, 2  ;;  %v7095_v6 = vrot.slane %v24824_v39, 2 }
 0x4b2   :  { %15968 = vrot.lane.b32.xlu0 %v24818_v62, %s16357_s19  ;;  %v6517_v62 = vrot.slane %v21754_v26, 1  ;;  %14811 = vmatprep.subr.bf16.mxu1 %v16308_v28  ;;  %v15784_v28 = vpop.permute.xlu0 %15783 }
 0x4b3   :  { %v15785_v36 = vunpack.i.l.bf16 %v15784_v28 }
 0x4b5   :  { %15963 = vrot.lane.b32.xlu1 %v15962_v37, %s16360_s21  ;;  %v5910_v37 = vmax.f32 %v5766_v50, 0.0  ;;  %v7672_v50 = vrot.slane %v24824_v39, 3  ;;  %v8657_v54 = vsel %vm8595_vm5, %v21019_v12, %v15785_v36  ;;  %v7744_v12 = vrot.slane %v24828_v40, 3 }
 0x4b6   :  { %6769 = vrot.lane.b32.xlu0 %v6483_v57, %s16359_s30  ;;  %v6518_v57 = vrot.slane %v24824_v39, 1 }
 0x4b7   :  { %v21785_v17 = vcombine.high %v5910_v37, %v5910_v37  ;;  %v7673_v0 = vsel %vm7634_vm3, %v7671_v21, %v7672_v50  ;;  %v7707_v21 = vrot.slane %v21780_v13, 3  ;;  %v7130_v50 = vrot.slane %v21780_v13, 2 }
 0x4b9   :  { %15973 = vrot.lane.b32.xlu1 %v24823_v5, %s16357_s19  ;;  %v6519_v5 = vsel %vm6480_vm2, %v6517_v62, %v6518_v57  ;;  %v6553_v62 = vrot.slane %v21780_v13, 1  ;;  %v21800_v57 = vpop.permute.xlu1 %15798 }
 0x4ba   :  { %7923 = vrot.lane.b32.xlu0 %v7637_v10, %s16360_s21  ;;  %v24825_v10 = vcombine.low %v24812_v23, %v24819_v29 }
 0x4bb   :  { %v6555_v29 = vsel %vm6480_vm2, %v6553_v62, %v6554_v20 }
 0x4bd   :  { %7346 = vrot.lane.b32.xlu1 %v7060_v7, %s16358_s27  ;;  %v21798_v7 = vcombine.low %v5910_v37, %v21785_v17  ;;  %v7708_v37 = vrot.slane %v24826_v53, 3 }
 0x4be   :  { %6793 = vrot.lane.b32.xlu0 %v6519_v5, %s16359_s30  ;;  %v7096_v5 = vsel %vm7057_vm1, %v7094_v8, %v7095_v6  ;;  %v24827_v8 = vcombine.low %v24820_v34, %v24824_v39  ;;  %v7131_v6 = vrot.slane %v24826_v53, 2  ;;  %v21824_v34 = vcombine.low %v24831_v41, %v24830_v22 }
 0x4bf   :  { %v15789_v23 = vpop.permute.xlu0 %15788  ;;  %v15781_v41 = vunpack.i.h.bf16 %v21770_v58  ;;  %v7166_v36 = vrot.slane %v21798_v7, 2 }
 0x4c0   :  { %v15791_v20 = vunpack.i.h.bf16 %v15789_v23  ;;  %v15790_v62 = vunpack.i.l.bf16 %v15789_v23  ;;  %v8235_v23 = vcombine.low %v21768_v47, %v24826_v53 }
 0x4c1   :  { %8307 = vrot.lane.b32.xlu1 %v24825_v10, %s16357_s19  ;;  %v6589_v10 = vrot.slane %v21798_v7, 1 }
 0x4c2   :  { %7947 = vrot.lane.b32.xlu0 %v7673_v0, %s16360_s21  ;;  %v15786_v0 = vunpack.i.h.bf16 %v15784_v28  ;;  %v7132_v28 = vsel %vm7057_vm1, %v7130_v50, %v7131_v6  ;;  %v15780_v6 = vunpack.i.l.bf16 %v21770_v58 }
 0x4c5   :  { %7370 = vrot.lane.b32.xlu1 %v7096_v5, %s16358_s27 }
 0x4c6   :  { %6817 = vrot.lane.b32.xlu0 %v6555_v29, %s16359_s30  ;;  %v7709_v29 = vsel %vm7634_vm3, %v7707_v21, %v7708_v37  ;;  %v7743_v21 = vrot.slane %v21798_v7, 3  ;;  %v8658_v37 = vsel %vm8595_vm5, %v21038_v63, %v15786_v0 }
 0x4c7   :  { %v8755_v53 = vsel %vm8692_vm6, %v8658_v37, %v15791_v20 }
 0x4c9   :  { %8331 = vrot.lane.b32.xlu1 %v24827_v8, %s16357_s19  ;;  %v6591_v8 = vsel %vm6480_vm2, %v6589_v10, %v6590_v33  ;;  %v8754_v33 = vsel %vm8692_vm6, %v8657_v54, %v15790_v62  ;;  %v7745_v54 = vsel %vm7634_vm3, %v7743_v21, %v7744_v12 }
 0x4ca   :  { %v15804_v5 = vpop.permute.xlu1 %15803  ;;  %7971 = vrot.lane.b32.xlu0 %v7709_v29, %s16360_s21 }
 0x4cb   :  { %v15806_v0 = vunpack.i.h.bf16 %v15804_v5  ;;  %v15805_v29 = vunpack.i.l.bf16 %v15804_v5  ;;  %v21855_v5 = vmax.f32 %v5838_v43, 0.0 }
 0x4cc   :  { %v15794_v39 = vpop.permute.xlu0 %15793 }
 0x4cd   :  { %v15796_v46 = vunpack.i.h.bf16 %v15794_v39  ;;  %v15795_v50 = vunpack.i.l.bf16 %v15794_v39  ;;  %7394 = vrot.lane.b32.xlu1 %v7132_v28, %s16358_s27  ;;  %v8660_v21 = vsel %vm8595_vm5, %v21097_v32, %v15806_v0  ;;  %v8659_v43 = vsel %vm8595_vm5, %v21027_v16, %v15805_v29 }
 0x4ce   :  { %6841 = vrot.lane.b32.xlu0 %v6591_v8, %s16359_s30  ;;  %v7167_v8 = vrot.slane %v24828_v40, 2  ;;  %v7779_v16 = vrot.slane %v21824_v34, 3 }
 0x4cf   :  { %v8851_v47 = vsel %vm8789_vm7, %v8754_v33, %v15795_v50  ;;  %v8852_v10 = vsel %vm8789_vm7, %v8755_v53, %v15796_v46  ;;  %v15809_v63 = vpop.permute.xlu1 %15808  ;;  %v6625_v46 = vrot.slane %v21824_v34, 1  ;;  %v21859_v50 = vcombine.low %v20975_v61, %v20983_v1 }
 0x4d0   :  { %v21844_v28 = vpop.permute.xlu0 %15818  ;;  %v21847_v58 = vsel %vm2071_vm0, %v8851_v47, %v15780_v6  ;;  %v8948_v20 = vsel %vm2071_vm0, %v8852_v10, %v15781_v41  ;;  %v15811_v62 = vunpack.i.h.bf16 %v15809_v63  ;;  %v15810_v39 = vunpack.i.l.bf16 %v15809_v63 }
 0x4d1   :  { %v13518_v37 = vpack.c.bf16 %v8948_v20, %v21847_v58  ;;  %8355 = vrot.lane.b32.xlu1 %v8235_v23, %s16357_s19  ;;  %v7168_v41 = vsel %vm7057_vm1, %v7166_v36, %v7167_v8  ;;  %v24832_v23 = vld [vmem:[#allocation150_spill] sm:$0xff]  ;;  %v15801_v61 = vunpack.i.h.bf16 %v21800_v57  ;;  %v15800_v63 = vunpack.i.l.bf16 %v21800_v57 }
 0x4d2   :  { %7995 = vrot.lane.b32.xlu0 %v7745_v54, %s16360_s21  ;;  %v6626_v33 = vrot.slane %v24832_v23, 1  ;;  %v8756_v12 = vsel %vm8692_vm6, %v8659_v43, %v15810_v39  ;;  %v7202_v39 = vrot.slane %v21824_v34, 2 }
 0x4d3   :  { %v15814_v6 = vpop.permute.xlu1 %15813  ;;  %14717 = vmatprep.mubr.msk.bf16.mxu1 %vm9264_vm8, %v13518_v37  ;;  %v8757_v37 = vsel %vm8692_vm6, %v8660_v21, %v15811_v62  ;;  %v8247_v62 = vcombine.low %v21785_v17, %v24828_v40  ;;  %v6662_v17 = vrot.slane %v20985_v4, 1 }
 0x4d4   :  { %v15816_v53 = vunpack.i.h.bf16 %v15814_v6  ;;  %v15815_v47 = vunpack.i.l.bf16 %v15814_v6  ;;  %v15824_v10 = vpop.permute.xlu0 %15823  ;;  %v6627_v0 = vsel %vm6480_vm2, %v6625_v46, %v6626_v33  ;;  %v7780_v46 = vrot.slane %v24832_v23, 3 }
 0x4d5   :  { %7418 = vrot.lane.b32.xlu1 %v7168_v41, %s16358_s27  ;;  %v6661_v41 = vrot.slane %v21859_v50, 1  ;;  %v15826_v21 = vunpack.i.h.bf16 %v15824_v10  ;;  %v15825_v43 = vunpack.i.l.bf16 %v15824_v10 }
 0x4d6   :  { %v8853_v36 = vsel %vm8789_vm7, %v8756_v12, %v15815_v47  ;;  %v8854_v32 = vsel %vm8789_vm7, %v8757_v37, %v15816_v53  ;;  %6865 = vrot.lane.b32.xlu0 %v6627_v0, %s16359_s30  ;;  %v7203_v53 = vrot.slane %v24832_v23, 2  ;;  %v7781_v40 = vsel %vm7634_vm3, %v7779_v16, %v7780_v46 }
 0x4d7   :  { %v21878_v29 = vpop.permute.xlu1 %15838  ;;  %v8949_v8 = vsel %vm2071_vm0, %v8853_v36, %v15800_v63  ;;  %v8950_v57 = vsel %vm2071_vm0, %v8854_v32, %v15801_v61  ;;  %v21900_v63 = vcombine.high %v21855_v5, %v21855_v5  ;;  %v21906_v12 = vcombine.low %v21412_v51, %v21422_v3 }
 0x4d8   :  { %v15829_v54 = vpop.permute.xlu0 %15828  ;;  %v21886_v6 = vpack.c.bf16 %v8950_v57, %v8949_v8  ;;  %v21890_v33 = vpack.c.bf16 %v8949_v8, %v8948_v20  ;;  %v7204_v10 = vsel %vm7057_vm1, %v7202_v39, %v7203_v53  ;;  %v6663_v36 = vsel %vm6480_vm2, %v6661_v41, %v6662_v17 }
 0x4d9   :  { %8379 = vrot.lane.b32.xlu1 %v8247_v62, %s16357_s19  ;;  %v15831_v47 = vunpack.i.h.bf16 %v15829_v54  ;;  %v15830_v61 = vunpack.i.l.bf16 %v15829_v54  ;;  %v7815_v32 = vrot.slane %v21859_v50, 3  ;;  %v7816_v0 = vrot.slane %v20985_v4, 3 }
 0x4da   :  { %24833 = vst [vmem:[#allocation9_spill] sm:$0xff] %v21886_v6  ;;  %14718 = vmatmul.mubr.msk.bf16.gmra.mrb[148].mxu1 %vm9264_vm8, %v21886_v6  ;;  %8019 = vrot.lane.b32.xlu0 %v7781_v40, %s16360_s21  ;;  %v8662_v16 = vsel %vm8595_vm5, %v21109_v31, %v15826_v21  ;;  %v8661_v8 = vsel %vm8595_vm5, %v21100_v49, %v15825_v43  ;;  %v15821_v51 = vunpack.i.h.bf16 %v21844_v28  ;;  %v15820_v39 = vunpack.i.l.bf16 %v21844_v28 }
 0x4db   :  { %v15844_v20 = vpop.permute.xlu1 %15843  ;;  %v8758_v46 = vsel %vm8692_vm6, %v8661_v8, %v15830_v61  ;;  %v8759_v41 = vsel %vm8692_vm6, %v8662_v16, %v15831_v47  ;;  %v7238_v49 = vrot.slane %v21859_v50, 2  ;;  %v7239_v21 = vrot.slane %v20985_v4, 2 }
 0x4dc   :  { %v15834_v37 = vpop.permute.xlu0 %15833  ;;  %v15846_v43 = vunpack.i.h.bf16 %v15844_v20  ;;  %v15845_v17 = vunpack.i.l.bf16 %v15844_v20  ;;  %v24835_v16 = vcombine.low %v24830_v22, %v24832_v23  ;;  %v7817_v8 = vsel %vm7634_vm3, %v7815_v32, %v7816_v0 }
 0x4dd   :  { %v15836_v62 = vunpack.i.h.bf16 %v15834_v37  ;;  %v15835_v54 = vunpack.i.l.bf16 %v15834_v37  ;;  %7442 = vrot.lane.b32.xlu1 %v7204_v10, %s16358_s27  ;;  %v21939_v20 = vcombine.low %v21855_v5, %v21900_v63  ;;  %v6698_v22 = vrot.slane %v21415_v11, 1 }
 0x4de   :  { %6889 = vrot.lane.b32.xlu0 %v6663_v36, %s16359_s30  ;;  %v8664_v23 = vsel %vm8595_vm5, %v21142_v30, %v15846_v43  ;;  %v15841_v5 = vunpack.i.h.bf16 %v21878_v29  ;;  %v7274_v43 = vrot.slane %v21906_v12, 2 }
 0x4df   :  { %v8855_v53 = vsel %vm8789_vm7, %v8758_v46, %v15835_v54  ;;  %v8856_v40 = vsel %vm8789_vm7, %v8759_v41, %v15836_v62  ;;  %v15849_v31 = vpop.permute.xlu1 %15848  ;;  %v6697_v62 = vrot.slane %v21906_v12, 1 }
 0x4e0   :  { %v8951_v10 = vsel %vm2071_vm0, %v8855_v53, %v15820_v39  ;;  %v8952_v28 = vsel %vm2071_vm0, %v8856_v40, %v15821_v51  ;;  %v15851_v61 = vunpack.i.h.bf16 %v15849_v31  ;;  %v15850_v37 = vunpack.i.l.bf16 %v15849_v31 }
 0x4e1   :  { %v21927_v47 = vpack.c.bf16 %v8952_v28, %v8951_v10  ;;  %8403 = vrot.lane.b32.xlu1 %v24835_v16, %s16357_s19  ;;  %v21933_v36 = vpack.c.bf16 %v8951_v10, %v8950_v57  ;;  %v7240_v51 = vsel %vm7057_vm1, %v7238_v49, %v7239_v21  ;;  %v8663_v57 = vsel %vm8595_vm5, %v21153_v25, %v15845_v17 }
 0x4e2   :  { %8043 = vrot.lane.b32.xlu0 %v7817_v8, %s16360_s21  ;;  %v15840_v39 = vunpack.i.l.bf16 %v21878_v29  ;;  %v8760_v46 = vsel %vm8692_vm6, %v8663_v57, %v15850_v37  ;;  %v8761_v41 = vsel %vm8692_vm6, %v8664_v23, %v15851_v61  ;;  %v6699_v30 = vsel %vm6480_vm2, %v6697_v62, %v6698_v22  ;;  %v24839_v8 = vld [vmem:[#allocation57_spill] sm:$0xff] }
 0x4e3   :  { %24834 = vst [vmem:[#allocation24_spill] sm:$0xff] %v21927_v47  ;;  %v15854_v54 = vpop.permute.xlu1 %15853  ;;  %14721 = vmatprep.mubr.msk.bf16.mxu1 %vm9264_vm8, %v21927_v47  ;;  %v7851_v25 = vrot.slane %v21906_v12, 3  ;;  %v7852_v21 = vrot.slane %v21415_v11, 3  ;;  %v24838_v10 = vcombine.low %v20983_v1, %v20985_v4  ;;  %v7275_v37 = vrot.slane %v21415_v11, 2 }
 0x4e4   :  { %v15856_v32 = vunpack.i.h.bf16 %v15854_v54  ;;  %v15855_v0 = vunpack.i.l.bf16 %v15854_v54  ;;  %v6733_v16 = vrot.slane %v21939_v20, 1  ;;  %v6734_v62 = vrot.slane %v24839_v8, 1  ;;  %v24840_v54 = vld [vmem:[#allocation3_spill] sm:$0xff] }
 0x4e5   :  { %7466 = vrot.lane.b32.xlu1 %v7240_v51, %s16358_s27  ;;  %v7853_v61 = vsel %vm7634_vm3, %v7851_v25, %v7852_v21  ;;  %v6158_v1 = vcombine.high %v24840_v54, %v24840_v54  ;;  %v7887_v51 = vrot.slane %v21939_v20, 3  ;;  %v7888_v22 = vrot.slane %v24839_v8, 3 }
 0x4e6   :  { %v8857_v53 = vsel %vm8789_vm7, %v8760_v46, %v15855_v0  ;;  %v8858_v40 = vsel %vm8789_vm7, %v8761_v41, %v15856_v32  ;;  %6913 = vrot.lane.b32.xlu0 %v6699_v30, %s16359_s30  ;;  %v6735_v4 = vsel %vm6480_vm2, %v6733_v16, %v6734_v62  ;;  %v7310_v23 = vrot.slane %v21939_v20, 2 }
 0x4e7   :  { %v8953_v31 = vsel %vm2071_vm0, %v8857_v53, %v15840_v39  ;;  %v21961_v49 = vsel %vm2071_vm0, %v8858_v40, %v15841_v5  ;;  %v7311_v57 = vrot.slane %v24839_v8, 2  ;;  %v24841_v32 = vcombine.low %v21422_v3, %v21415_v11  ;;  %v24842_v5 = vld [vmem:[#allocation72_spill] sm:$0xff]  ;;  %v24843_v40 = vld [vmem:[#allocation79_spill] sm:$0xff] }
 0x4e8   :  { %24836 = vst [vmem:[#allocation4_spill] sm:$0xff] %v21961_v49  ;;  %v21965_v29 = vpack.c.bf16 %v21961_v49, %v8953_v31  ;;  %v21969_v17 = vpack.c.bf16 %v8953_v31, %v8952_v28  ;;  %v7276_v28 = vsel %vm7057_vm1, %v7274_v43, %v7275_v37  ;;  %v7889_v0 = vsel %vm7634_vm3, %v7887_v51, %v7888_v22  ;;  %v24844_v37 = vld [vmem:[#allocation68_spill] sm:$0xff]  ;;  %v24846_v22 = vld [vmem:[#allocation115_spill] sm:$0xff] }
 0x4e9   :  { %8427 = vrot.lane.b32.xlu1 %v24838_v10, %s16357_s19  ;;  %v6508_v39 = vrot.slane %v24842_v5, 1  ;;  %v6509_v46 = vrot.slane %v6158_v1, 1  ;;  %v7312_v53 = vsel %vm7057_vm1, %v7310_v23, %v7311_v57  ;;  %v22005_v30 = vcombine.high %v24843_v40, %v24843_v40  ;;  %v24847_v57 = vld [vmem:[#allocation106_spill] sm:$0xff] }
 0x4ea   :  { %24837 = vst [vmem:[#allocation25_spill] sm:$0xff] %v21965_v29  ;;  %14722 = vmatmul.mubr.msk.bf16.gmra.mrb[152].mxu1 %vm9264_vm8, %v21965_v29  ;;  %8067 = vrot.lane.b32.xlu0 %v7853_v61, %s16360_s21  ;;  %v7662_v3 = vrot.slane %v24842_v5, 3  ;;  %v7663_v25 = vrot.slane %v6158_v1, 3  ;;  %v8295_v31 = vcombine.low %v21900_v63, %v24839_v8  ;;  %v7085_v21 = vrot.slane %v24842_v5, 2 }
 0x4eb   :  { %v6510_v11 = vsel %vm6480_vm2, %v6508_v39, %v6509_v46  ;;  %v7086_v43 = vrot.slane %v6158_v1, 2  ;;  %v6544_v16 = vrot.slane %v24844_v37, 1  ;;  %v6545_v62 = vrot.slane %v22005_v30, 1 }
 0x4ec   :  { %v7664_v61 = vsel %vm7634_vm3, %v7662_v3, %v7663_v25  ;;  %v15446_v63 = vunpack.i.h.bf16 %v24846_v22  ;;  %v7698_v23 = vrot.slane %v24844_v37, 3  ;;  %v7121_v39 = vrot.slane %v24844_v37, 2  ;;  %v24849_v25 = vld [vmem:[#allocation82_spill] sm:$0xff]  ;;  %v24851_v22 = vld [vmem:[#allocation95_spill] sm:$0xff] }
 0x4ed   :  { %7490 = vrot.lane.b32.xlu1 %v7276_v28, %s16358_s27  ;;  %v24845_v28 = vld [vmem:[#allocation111_spill] sm:$0xff]  ;;  %v7087_v8 = vsel %vm7057_vm1, %v7085_v21, %v7086_v43  ;;  %v7122_v46 = vrot.slane %v22005_v30, 2  ;;  %v6546_v3 = vsel %vm6480_vm2, %v6544_v16, %v6545_v62  ;;  %v24850_v21 = vld [vmem:[#allocation118_spill] sm:$0xff]  ;;  %v8232_v29 = vcombine.low %v24843_v40, %v22005_v30 }
 0x4ee   :  { %6937 = vrot.lane.b32.xlu0 %v6735_v4, %s16359_s30  ;;  %v21999_v41 = vpop.permute.xlu0 %15858  ;;  %v15425_v4 = vunpack.i.l.bf16 %v24845_v28  ;;  %v15451_v43 = vunpack.i.h.bf16 %v24850_v21  ;;  %v8220_v28 = vcombine.low %v24840_v54, %v6158_v1  ;;  %v24853_v21 = vld [vmem:[#allocation110_spill] sm:$0xff] }
 0x4ef   :  { %v7123_v62 = vsel %vm7057_vm1, %v7121_v39, %v7122_v46  ;;  %v15860_v37 = vunpack.i.l.bf16 %v21999_v41 }
 0x4f1   :  { %8451 = vrot.lane.b32.xlu1 %v24841_v32, %s16357_s19  ;;  %v22026_v32 = vcombine.high %v24847_v57, %v24847_v57 }
 0x4f2   :  { %8091 = vrot.lane.b32.xlu0 %v7889_v0, %s16360_s21  ;;  %v15864_v10 = vpop.permute.xlu0 %15863  ;;  %v7699_v0 = vrot.slane %v22005_v30, 3 }
 0x4f3   :  { %v15866_v1 = vunpack.i.h.bf16 %v15864_v10  ;;  %v7735_v47 = vrot.slane %v22026_v32, 3 }
 0x4f4   :  { %v7700_v16 = vsel %vm7634_vm3, %v7698_v23, %v7699_v0  ;;  %v24855_v0 = vld [vmem:[#allocation119_spill] sm:$0xff] }
 0x4f5   :  { %7514 = vrot.lane.b32.xlu1 %v7312_v53, %s16358_s27  ;;  %v22019_v51 = vpop.permute.xlu1 %15878  ;;  %v24848_v53 = vld [vmem:[#allocation114_spill] sm:$0xff] }
 0x4f6   :  { %6787 = vrot.lane.b32.xlu0 %v6510_v11, %s16359_s30  ;;  %v15430_v11 = vunpack.i.l.bf16 %v24848_v53 }
 0x4f9   :  { %8475 = vrot.lane.b32.xlu1 %v8295_v31, %s16357_s19  ;;  %v8681_v31 = vsel %vm8595_vm5, %v24849_v25, %v15425_v4  ;;  %v24852_v4 = vld [vmem:[#allocation47_spill] sm:$0xff] }
 0x4fa   :  { %7941 = vrot.lane.b32.xlu0 %v7664_v61, %s16360_s21  ;;  %v15869_v61 = vpop.permute.xlu0 %15868  ;;  %v6580_v25 = vrot.slane %v24852_v4, 1  ;;  %v22050_v54 = vsel %vm8692_vm6, %v8681_v31, %v15430_v11  ;;  %v7734_v46 = vrot.slane %v24852_v4, 3  ;;  %v7157_v11 = vrot.slane %v24852_v4, 2  ;;  %v24856_v31 = vld [vmem:[#allocation55_spill] sm:$0xff] }
 0x4fb   :  { %v15870_v23 = vunpack.i.l.bf16 %v15869_v61  ;;  %v15861_v4 = vunpack.i.h.bf16 %v21999_v41 }
 0x4fd   :  { %7364 = vrot.lane.b32.xlu1 %v7087_v8, %s16358_s27  ;;  %v8684_v8 = vsel %vm8595_vm5, %v24851_v22, %v15446_v63  ;;  %v15865_v63 = vunpack.i.l.bf16 %v15864_v10  ;;  %v24854_v22 = vld [vmem:[#allocation116_spill] sm:$0xff]  ;;  %v22063_v10 = vcombine.high %v24856_v31, %v24856_v31 }
 0x4fe   :  { %6811 = vrot.lane.b32.xlu0 %v6546_v3, %s16359_s30  ;;  %v6581_v3 = vrot.slane %v22026_v32, 1  ;;  %v22054_v30 = vsel %vm8692_vm6, %v8684_v8, %v15451_v43  ;;  %v8244_v8 = vcombine.low %v24847_v57, %v22026_v32 }
 0x4ff   :  { %v8669_v39 = vsel %vm8595_vm5, %v21461_v9, %v15865_v63 }
 0x500   :  { %v15884_v53 = vpop.permute.xlu1 %15883  ;;  %v6582_v43 = vsel %vm6480_vm2, %v6580_v25, %v6581_v3 }
 0x501   :  { %8325 = vrot.lane.b32.xlu1 %v8220_v28, %s16357_s19  ;;  %v15871_v28 = vunpack.i.h.bf16 %v15869_v61  ;;  %v7158_v61 = vrot.slane %v22026_v32, 2  ;;  %v15886_v57 = vunpack.i.h.bf16 %v15884_v53  ;;  %v15885_v32 = vunpack.i.l.bf16 %v15884_v53  ;;  %v24857_v53 = vld [vmem:[#allocation77_spill] sm:$0xff] }
 0x502   :  { %7965 = vrot.lane.b32.xlu0 %v7700_v16, %s16360_s21  ;;  %v8670_v16 = vsel %vm8595_vm5, %v21482_v27, %v15866_v1 }
 0x503   :  { %v8767_v25 = vsel %vm8692_vm6, %v8670_v16, %v15871_v28  ;;  %v24858_v16 = vld [vmem:[#allocation87_spill] sm:$0xff] }
 0x504   :  { %v15874_v40 = vpop.permute.xlu0 %15873 }
 0x505   :  { %7388 = vrot.lane.b32.xlu1 %v7123_v62, %s16358_s27  ;;  %v15876_v6 = vunpack.i.h.bf16 %v15874_v40  ;;  %v15875_v49 = vunpack.i.l.bf16 %v15874_v40  ;;  %v8766_v62 = vsel %vm8692_vm6, %v8669_v39, %v15870_v23  ;;  %v7736_v23 = vsel %vm7634_vm3, %v7734_v46, %v7735_v47 }
 0x506   :  { %6835 = vrot.lane.b32.xlu0 %v6582_v43, %s16359_s30  ;;  %v7159_v39 = vsel %vm7057_vm1, %v7157_v11, %v7158_v61  ;;  %v6616_v43 = vrot.slane %v24857_v53, 1  ;;  %v8672_v46 = vsel %vm8595_vm5, %v21541_v45, %v15886_v57  ;;  %v8671_v11 = vsel %vm8595_vm5, %v21465_v48, %v15885_v32 }
 0x507   :  { %v15889_v3 = vpop.permute.xlu1 %15888  ;;  %v8863_v27 = vsel %vm8789_vm7, %v8766_v62, %v15875_v49  ;;  %v8864_v1 = vsel %vm8789_vm7, %v8767_v25, %v15876_v6  ;;  %v6617_v49 = vrot.slane %v22063_v10, 1  ;;  %v16354_v6 = vld [vmem:[%s23857_s2] ss:$0 sm:$0xff]  ;;  %v7771_v32 = vrot.slane %v22063_v10, 3 }
 0x508   :  { %v15891_v9 = vunpack.i.h.bf16 %v15889_v3  ;;  %v15890_v63 = vunpack.i.l.bf16 %v15889_v3  ;;  %v22081_v40 = vpop.permute.xlu0 %15898  ;;  %v22085_v41 = vsel %vm2071_vm0, %v8863_v27, %v15860_v37  ;;  %v8960_v28 = vsel %vm2071_vm0, %v8864_v1, %v15861_v4 }
 0x509   :  { %8349 = vrot.lane.b32.xlu1 %v8232_v29, %s16357_s19  ;;  %v5852_v62 = vadd.f32 %v16354_v6, %v24858_v16  ;;  %v24859_v29 = vld [vmem:[#allocation142_spill] sm:$0xff]  ;;  %v13522_v47 = vpack.c.bf16 %v8960_v28, %v22085_v41  ;;  %v7770_v4 = vrot.slane %v24857_v53, 3  ;;  %v15881_v27 = vunpack.i.h.bf16 %v22019_v51 }
 0x50a   :  { %v22098_v37 = vcombine.high %v24859_v29, %v24859_v29  ;;  %7989 = vrot.lane.b32.xlu0 %v7736_v23, %s16360_s21  ;;  %v15880_v1 = vunpack.i.l.bf16 %v22019_v51  ;;  %v8768_v6 = vsel %vm8692_vm6, %v8671_v11, %v15890_v63  ;;  %v8769_v23 = vsel %vm8692_vm6, %v8672_v46, %v15891_v9 }
 0x50b   :  { %v15894_v25 = vpop.permute.xlu1 %15893  ;;  %14725 = vmatprep.mubr.msk.bf16.mxu1 %vm9264_vm8, %v13522_v47  ;;  %v6618_v48 = vsel %vm6480_vm2, %v6616_v43, %v6617_v49  ;;  %v6283_v51 = vcombine.high %v24805_v38, %v24805_v38  ;;  %v24860_v47 = vld [vmem:[#allocation112_spill] sm:$0xff]  ;;  %v24861_v11 = vunpack.i.l.bf16 %v24854_v22  ;;  %v7193_v49 = vrot.slane %v24857_v53, 2 }
 0x50c   :  { %v15896_v61 = vunpack.i.h.bf16 %v15894_v25  ;;  %v15895_v3 = vunpack.i.l.bf16 %v15894_v25  ;;  %v15904_v16 = vpop.permute.xlu0 %15903  ;;  %v22117_v25 = vmax.f32 %v5852_v62, 0.0  ;;  %v7194_v38 = vrot.slane %v22063_v10, 2 }
 0x50d   :  { %7412 = vrot.lane.b32.xlu1 %v7159_v39, %s16358_s27  ;;  %v22131_v43 = vsel %vm8789_vm7, %v22050_v54, %v24861_v11  ;;  %v24864_v22 = vunpack.i.h.bf16 %v24855_v0  ;;  %v15901_v46 = vunpack.i.h.bf16 %v22081_v40 }
 0x50e   :  { %v8865_v45 = vsel %vm8789_vm7, %v8768_v6, %v15895_v3  ;;  %v8866_v57 = vsel %vm8789_vm7, %v8769_v23, %v15896_v61  ;;  %6859 = vrot.lane.b32.xlu0 %v6618_v48, %s16359_s30  ;;  %v24863_v3 = vld [vmem:[#allocation59_spill] sm:$0xff]  ;;  %v15906_v23 = vunpack.i.h.bf16 %v15904_v16  ;;  %v22154_v48 = vcombine.low %v6283_v51, %v22117_v25 }
 0x50f   :  { %v22122_v9 = vpop.permute.xlu1 %15923  ;;  %v8961_v63 = vsel %vm2071_vm0, %v8865_v45, %v15880_v1  ;;  %v8962_v39 = vsel %vm2071_vm0, %v8866_v57, %v15881_v27  ;;  %v6652_v1 = vrot.slane %v24863_v3, 1  ;;  %v6653_v27 = vrot.slane %v22098_v37, 1 }
 0x510   :  { %v15909_v62 = vpop.permute.xlu0 %15908  ;;  %v22136_v61 = vpack.c.bf16 %v8962_v39, %v8961_v63  ;;  %v22140_v6 = vpack.c.bf16 %v8961_v63, %v8960_v28  ;;  %v22146_v54 = vsel %vm8789_vm7, %v22054_v30, %v24864_v22  ;;  %v15905_v45 = vunpack.i.l.bf16 %v15904_v16 }
 0x511   :  { %8373 = vrot.lane.b32.xlu1 %v8244_v8, %s16357_s19  ;;  %v7772_v57 = vsel %vm7634_vm3, %v7770_v4, %v7771_v32  ;;  %v22151_v8 = vcombine.high %v22117_v25, %v22117_v25  ;;  %v15911_v11 = vunpack.i.h.bf16 %v15909_v62  ;;  %v15910_v28 = vunpack.i.l.bf16 %v15909_v62 }
 0x512   :  { %24862 = vst [vmem:[#allocation11_spill] sm:$0xff] %v22136_v61  ;;  %14726 = vmatmul.mubr.msk.bf16.gmra.mrb[156].mxu1 %vm9264_vm8, %v22136_v61  ;;  %8013 = vrot.lane.b32.xlu0 %v7772_v57, %s16360_s21  ;;  %v7195_v0 = vsel %vm7057_vm1, %v7193_v49, %v7194_v38  ;;  %v8256_v4 = vcombine.low %v24856_v31, %v22063_v10  ;;  %v7806_v16 = vrot.slane %v24863_v3, 3  ;;  %v7807_v32 = vrot.slane %v22098_v37, 3 }
 0x513   :  { %v15929_v30 = vpop.permute.xlu1 %15928  ;;  %v22166_v51 = vcombine.high %v21213_v44, %v21213_v44  ;;  %v6654_v62 = vsel %vm6480_vm2, %v6652_v1, %v6653_v27  ;;  %v7229_v22 = vrot.slane %v24863_v3, 2  ;;  %v7230_v49 = vrot.slane %v22098_v37, 2 }
 0x514   :  { %v15914_v63 = vpop.permute.xlu0 %15913  ;;  %v8674_v31 = vsel %vm8595_vm5, %v21597_v59, %v15906_v23  ;;  %v8673_v10 = vsel %vm8595_vm5, %v21525_v52, %v15905_v45  ;;  %v15900_v61 = vunpack.i.l.bf16 %v22081_v40  ;;  %v15931_v3 = vunpack.i.h.bf16 %v15929_v30 }
 0x515   :  { %7436 = vrot.lane.b32.xlu1 %v7195_v0, %s16358_s27  ;;  %v15916_v38 = vunpack.i.h.bf16 %v15914_v63  ;;  %v15915_v57 = vunpack.i.l.bf16 %v15914_v63  ;;  %v8770_v0 = vsel %vm8692_vm6, %v8673_v10, %v15910_v28  ;;  %v8771_v1 = vsel %vm8692_vm6, %v8674_v31, %v15911_v11  ;;  %v24865_v31 = vld [vmem:[#allocation163_spill] sm:$0xff] }
 0x516   :  { %6883 = vrot.lane.b32.xlu0 %v6654_v62, %s16359_s30  ;;  %v15930_v53 = vunpack.i.l.bf16 %v15929_v30  ;;  %v7808_v11 = vsel %vm7634_vm3, %v7806_v16, %v7807_v32  ;;  %v7231_v62 = vsel %vm7057_vm1, %v7229_v22, %v7230_v49  ;;  %v6688_v30 = vrot.slane %v24865_v31, 1 }
 0x517   :  { %v15934_v27 = vpop.permute.xlu1 %15933  ;;  %v8867_v59 = vsel %vm8789_vm7, %v8770_v0, %v15915_v57  ;;  %v8868_v23 = vsel %vm8789_vm7, %v8771_v1, %v15916_v38  ;;  %v6689_v10 = vrot.slane %v22166_v51, 1  ;;  %v22194_v38 = vcombine.high %v21587_v14, %v21587_v14 }
 0x518   :  { %v15936_v52 = vunpack.i.h.bf16 %v15934_v27  ;;  %v15935_v45 = vunpack.i.l.bf16 %v15934_v27  ;;  %v22183_v63 = vpop.permute.xlu0 %15918  ;;  %v8963_v40 = vsel %vm2071_vm0, %v8867_v59, %v15900_v61  ;;  %v8964_v28 = vsel %vm2071_vm0, %v8868_v23, %v15901_v46 }
 0x519   :  { %8397 = vrot.lane.b32.xlu1 %v8256_v4, %s16357_s19  ;;  %v22197_v4 = vpack.c.bf16 %v8964_v28, %v8963_v40  ;;  %v7842_v61 = vrot.slane %v24865_v31, 3  ;;  %v22200_v46 = vpack.c.bf16 %v8963_v40, %v8962_v39  ;;  %v8676_v16 = vsel %vm8595_vm5, %v21602_v60, %v15931_v3 }
 0x51a   :  { %8037 = vrot.lane.b32.xlu0 %v7808_v11, %s16360_s21  ;;  %v8675_v32 = vsel %vm8595_vm5, %v21561_v42, %v15930_v53  ;;  %v15926_v0 = vunpack.i.h.bf16 %v22122_v9  ;;  %v15925_v1 = vunpack.i.l.bf16 %v22122_v9  ;;  %v8773_v59 = vsel %vm8692_vm6, %v8676_v16, %v15936_v52 }
 0x51b   :  { %v15939_v57 = vpop.permute.xlu1 %15938  ;;  %24866 = vst [vmem:[#allocation26_spill] sm:$0xff] %v22197_v4  ;;  %v8772_v27 = vsel %vm8692_vm6, %v8675_v32, %v15935_v45  ;;  %14729 = vmatprep.mubr.msk.bf16.mxu1 %vm9264_vm8, %v22197_v4  ;;  %v6690_v53 = vsel %vm6480_vm2, %v6688_v30, %v6689_v10  ;;  %v7843_v3 = vrot.slane %v22166_v51, 3  ;;  %v8268_v23 = vcombine.low %v24859_v29, %v22098_v37  ;;  %v24930_v4 = vld [vmem:[#allocation141_spill] sm:$0xff] }
 0x51c   :  { %v15941_v22 = vunpack.i.h.bf16 %v15939_v57  ;;  %v15940_v49 = vunpack.i.l.bf16 %v15939_v57  ;;  %v15949_v39 = vpop.permute.xlu0 %15948  ;;  %v24867_v40 = vunpack.i.l.bf16 %v24853_v21  ;;  %v7266_v30 = vrot.slane %v22166_v51, 2 }
 0x51d   :  { %7460 = vrot.lane.b32.xlu1 %v7231_v62, %s16358_s27  ;;  %v7265_v62 = vrot.slane %v24865_v31, 2  ;;  %v6724_v10 = vrot.slane %v21605_v55, 1  ;;  %v6725_v57 = vrot.slane %v22194_v38, 1  ;;  %v15921_v29 = vunpack.i.h.bf16 %v22183_v63 }
 0x51e   :  { %v8869_v60 = vsel %vm8789_vm7, %v8772_v27, %v15940_v49  ;;  %v8870_v42 = vsel %vm8789_vm7, %v8773_v59, %v15941_v22  ;;  %6907 = vrot.lane.b32.xlu0 %v6690_v53, %s16359_s30  ;;  %v22228_v11 = vsel %vm2071_vm0, %v22131_v43, %v24867_v40  ;;  %v15920_v37 = vunpack.i.l.bf16 %v22183_v63 }
 0x51f   :  { %v15944_v9 = vpop.permute.xlu1 %15943  ;;  %v8965_v52 = vsel %vm2071_vm0, %v8869_v60, %v15925_v1  ;;  %v22222_v45 = vsel %vm2071_vm0, %v8870_v42, %v15926_v0  ;;  %v15951_v32 = vunpack.i.h.bf16 %v15949_v39  ;;  %v15950_v22 = vunpack.i.l.bf16 %v15949_v39  ;;  %v24869_v0 = vld [vmem:[#allocation144_spill] sm:$0xff] }
 0x520   :  { %v15959_v16 = vpop.permute.xlu0 %15958  ;;  %v22238_v21 = vpack.c.bf16 %v22222_v45, %v8965_v52  ;;  %v22240_v43 = vpack.c.bf16 %v8965_v52, %v8964_v28  ;;  %v7844_v49 = vsel %vm7634_vm3, %v7842_v61, %v7843_v3  ;;  %v13526_v1 = vpack.c.bf16 %v24869_v0, %v22228_v11 }
 0x521   :  { %8421 = vrot.lane.b32.xlu1 %v8268_v23, %s16357_s19  ;;  %v15961_v27 = vunpack.i.h.bf16 %v15959_v16  ;;  %v15960_v59 = vunpack.i.l.bf16 %v15959_v16  ;;  %v8280_v60 = vcombine.low %v21213_v44, %v22166_v51  ;;  %v24870_v28 = vunpack.i.h.bf16 %v24860_v47  ;;  %v24871_v23 = vld [vmem:[#allocation88_spill] sm:$0xff] }
 0x522   :  { %24868 = vst [vmem:[#allocation6_spill] sm:$0xff] %v22238_v21  ;;  %14730 = vmatmul.mubr.msk.bf16.gmra.mrb[160].mxu1 %vm9264_vm8, %v22238_v21  ;;  %8061 = vrot.lane.b32.xlu0 %v7844_v49, %s16360_s21  ;;  %v7267_v61 = vsel %vm7057_vm1, %v7265_v62, %v7266_v30  ;;  %v7878_v42 = vrot.slane %v21605_v55, 3  ;;  %v7879_v53 = vrot.slane %v22194_v38, 3  ;;  %v7301_v3 = vrot.slane %v21605_v55, 2  ;;  %v24872_v44 = vld [vmem:[#allocation96_spill] sm:$0xff]  ;;  %v24924_v21 = vld [vmem:[#allocation161_spill] sm:$0xff] }
 0x523   :  { %v15954_v63 = vpop.permute.xlu1 %15953  ;;  %v22254_v39 = vsel %vm2071_vm0, %v22146_v54, %v24870_v28  ;;  %14733 = vmatprep.mubr.msk.bf16.mxu1 %vm9264_vm8, %v13526_v1  ;;  %v8686_v52 = vsel %vm8595_vm5, %v24871_v23, %v15921_v29  ;;  %v8685_v47 = vsel %vm8595_vm5, %v24872_v44, %v15920_v37  ;;  %v6726_v54 = vsel %vm6480_vm2, %v6724_v10, %v6725_v57 }
 0x524   :  { %v15969_v51 = vpop.permute.xlu0 %15968  ;;  %v7302_v40 = vrot.slane %v22194_v38, 2  ;;  %v8782_v62 = vsel %vm8692_vm6, %v8685_v47, %v15950_v22  ;;  %v8783_v30 = vsel %vm8692_vm6, %v8686_v52, %v15951_v32  ;;  %v15946_v0 = vunpack.i.h.bf16 %v15944_v9  ;;  %v24873_v52 = vld [vmem:[#allocation145_spill] sm:$0xff] }
 0x525   :  { %7484 = vrot.lane.b32.xlu1 %v7267_v61, %s16358_s27  ;;  %v15971_v16 = vunpack.i.h.bf16 %v15969_v51  ;;  %v15970_v49 = vunpack.i.l.bf16 %v15969_v51  ;;  %v15945_v1 = vunpack.i.l.bf16 %v15944_v9  ;;  %v8879_v29 = vsel %vm8789_vm7, %v8782_v62, %v15960_v59 }
 0x526   :  { %v8880_v28 = vsel %vm8789_vm7, %v8783_v30, %v15961_v27  ;;  %6931 = vrot.lane.b32.xlu0 %v6726_v54, %s16359_s30  ;;  %v15956_v61 = vunpack.i.h.bf16 %v15954_v63  ;;  %v15955_v23 = vunpack.i.l.bf16 %v15954_v63  ;;  %v22280_v9 = vpack.c.bf16 %v22254_v39, %v24873_v52 }
 0x527   :  { %v15964_v37 = vpop.permute.xlu1 %15963  ;;  %v22274_v10 = vsel %vm2071_vm0, %v8879_v29, %v15970_v49  ;;  %v8976_v57 = vsel %vm2071_vm0, %v8880_v28, %v15971_v16  ;;  %v7880_v59 = vsel %vm7634_vm3, %v7878_v42, %v7879_v53  ;;  %v6760_v63 = vrot.slane %v22154_v48, 1 }
 0x528   :  { %v15966_v22 = vunpack.i.h.bf16 %v15964_v37  ;;  %v15965_v32 = vunpack.i.l.bf16 %v15964_v37  ;;  %24874 = vst [vmem:[#allocation27_spill] sm:$0xff] %v22280_v9  ;;  %v22283_v27 = vpack.c.bf16 %v8976_v57, %v22274_v10  ;;  %v6761_v44 = vrot.slane %v22151_v8, 1 }
 0x529   :  { %8445 = vrot.lane.b32.xlu1 %v8280_v60, %s16357_s19  ;;  %v8688_v47 = vsel %vm8595_vm5, %v21696_v24, %v15946_v0  ;;  %v8687_v51 = vsel %vm8595_vm5, %v24803_v35, %v15945_v1  ;;  %v6770_v60 = vpop.permute.xlu0 %6769  ;;  %v7303_v62 = vsel %vm7057_vm1, %v7301_v3, %v7302_v40  ;;  %v24876_v24 = vld [vmem:[#allocation42_spill] sm:$0xff]  ;;  %v24877_v35 = vld [vmem:[#allocation45_spill] sm:$0xff]  ;;  %v7914_v3 = vrot.slane %v22154_v48, 3 }
 0x52a   :  { %24875 = vst [vmem:[#allocation13_spill] sm:$0xff] %v22283_v27  ;;  %14734 = vmatmul.mubr.msk.bf16.gmra.mrb[164].mxu1 %vm9264_vm8, %v22280_v9  ;;  %8085 = vrot.lane.b32.xlu0 %v7880_v59, %s16360_s21  ;;  %v8784_v42 = vsel %vm8692_vm6, %v8687_v51, %v15955_v23  ;;  %v8785_v53 = vsel %vm8692_vm6, %v8688_v47, %v15956_v61  ;;  %v7915_v37 = vrot.slane %v22151_v8, 3 }
 0x52b   :  { %v15974_v54 = vpop.permute.xlu1 %15973  ;;  %14737 = vmatprep.mubr.msk.bf16.mxu1 %vm9264_vm8, %v22283_v27  ;;  %v22302_v49 = vcombine.low %v24877_v35, %v24876_v24  ;;  %v8881_v0 = vsel %vm8789_vm7, %v8784_v42, %v15965_v32  ;;  %v8882_v1 = vsel %vm8789_vm7, %v8785_v53, %v15966_v22  ;;  %v6762_v28 = vsel %vm6480_vm2, %v6760_v63, %v6761_v44  ;;  %v24880_v42 = vld [vmem:[#allocation62_spill] sm:$0xff] }
 0x52c   :  { %v15976_v30 = vunpack.i.h.bf16 %v15974_v54  ;;  %v15975_v16 = vunpack.i.l.bf16 %v15974_v54  ;;  %v8596_v61 = vsel %vm8595_vm5, %v21736_v56, %v6770_v60  ;;  %v8292_v22 = vcombine.low %v21587_v14, %v22194_v38  ;;  %v24879_v54 = vld [vmem:[#allocation70_spill] sm:$0xff] }
 0x52d   :  { %7508 = vrot.lane.b32.xlu1 %v7303_v62, %s16358_s27  ;;  %v7337_v63 = vrot.slane %v22154_v48, 2  ;;  %v7338_v44 = vrot.slane %v22151_v8, 2  ;;  %v7924_v47 = vpop.permute.xlu0 %7923  ;;  %v7916_v56 = vsel %vm7634_vm3, %v7914_v3, %v7915_v37  ;;  %v6511_v51 = vrot.slane %v22302_v49, 1 }
 0x52e   :  { %v8977_v40 = vsel %vm2071_vm0, %v8881_v0, %v15975_v16  ;;  %v22310_v29 = vsel %vm2071_vm0, %v8882_v1, %v15976_v30  ;;  %6955 = vrot.lane.b32.xlu0 %v6762_v28, %s16359_s30  ;;  %v6512_v62 = vrot.slane %v24879_v54, 1  ;;  %v24881_v30 = vld [vmem:[#allocation102_spill] sm:$0xff]  ;;  %v24882_v16 = vld [vmem:[#allocation44_spill] sm:$0xff]  ;;  %v7665_v1 = vrot.slane %v22302_v49, 3 }
 0x52f   :  { %v7347_v23 = vpop.permute.xlu1 %7346  ;;  %v22320_v32 = vpack.c.bf16 %v22310_v29, %v8977_v40  ;;  %v22322_v52 = vpack.c.bf16 %v8977_v40, %v8976_v57  ;;  %v7339_v60 = vsel %vm7057_vm1, %v7337_v63, %v7338_v44  ;;  %v22341_v35 = vcombine.low %v24882_v16, %v24881_v30 }
 0x530   :  { %v8693_v59 = vsel %vm8692_vm6, %v8596_v61, %v7347_v23  ;;  %v6513_v0 = vsel %vm6480_vm2, %v6511_v51, %v6512_v62  ;;  %v8304_v28 = vcombine.low %v22117_v25, %v22151_v8  ;;  %v7666_v37 = vrot.slane %v24879_v54, 3  ;;  %v16309_v23 = vld [vmem:[%s23858_s3 + $0x30] sm:$0xff]   ;;  %v24883_v8 = vld [vmem:[#allocation100_spill] sm:$0xff] }
 0x531   :  { %24878 = vst [vmem:[#allocation28_spill] sm:$0xff] %v22320_v32  ;;  %8469 = vrot.lane.b32.xlu1 %v8292_v22, %s16357_s19  ;;  %v8790_v14 = vsel %vm8789_vm7, %v8693_v59, %v7924_v47  ;;  %v6794_v3 = vpop.permute.xlu0 %6793  ;;  %v7088_v61 = vrot.slane %v22302_v49, 2  ;;  %v7089_v63 = vrot.slane %v24879_v54, 2  ;;  %v6547_v44 = vrot.slane %v22341_v35, 1  ;;  %v16355_v47 = vld [vmem:[%s23858_s3 + $0x28] sm:$0xff]   ;;  %v24886_v62 = vld [vmem:[#allocation129_spill] sm:$0xff] }
 0x532   :  { %14738 = vmatmul.mubr.msk.bf16.gmra.mrb[168].mxu1 %vm9264_vm8, %v22320_v32  ;;  %8109 = vrot.lane.b32.xlu0 %v7916_v56, %s16360_s21  ;;  %v8608_v22 = vsel %vm8595_vm5, %v21754_v26, %v6794_v3  ;;  %v7667_v59 = vsel %vm7634_vm3, %v7665_v1, %v7666_v37  ;;  %v24884_v26 = vld [vmem:[#allocation104_spill] sm:$0xff]  ;;  %v7701_v1 = vrot.slane %v22341_v35, 3  ;;  %v24888_v37 = vcombine.low %v24876_v24, %v24879_v54  ;;  %v24891_v54 = vld [vmem:[#allocation101_spill] sm:$0xff] }
 0x533   :  { %v8308_v38 = vpop.permute.xlu1 %8307  ;;  %v7090_v51 = vsel %vm7057_vm1, %v7088_v61, %v7089_v63 }
 0x534   :  { %v8886_v57 = vsel %vm2071_vm0, %v8790_v14, %v8308_v38  ;;  %v24885_v14 = vld [vmem:[#allocation81_spill] sm:$0xff] }
 0x535   :  { %v13530_v53 = vpack.c.bf16 %v24880_v42, %v8886_v57  ;;  %7532 = vrot.lane.b32.xlu1 %v7339_v60, %s16358_s27  ;;  %v6548_v38 = vrot.slane %v24885_v14, 1  ;;  %v7948_v57 = vpop.permute.xlu0 %7947  ;;  %v16310_v60 = vld [vmem:[%s23858_s3 + $0x38] ss:$0 sps:$4 sm:$0xff]   ;;  %v24887_v42 = vld [vmem:[#allocation93_spill] sm:$0xff] }
 0x536   :  { %6789 = vrot.lane.b32.xlu0 %v6513_v0, %s16359_s30  ;;  %v10175_v61 = vsel %vm9361_vm4, %v16310_v60, 0 }
 0x537   :  { %v7371_v40 = vpop.permute.xlu1 %7370  ;;  %14747 = vmatprep.mubr.msk.bf16.mxu1 %vm9264_vm8, %v13530_v53  ;;  %v22377_v53 = vcombine.low %v24887_v42, %v24886_v62  ;;  %v6549_v0 = vsel %vm6480_vm2, %v6547_v44, %v6548_v38  ;;  %v24893_v38 = vld [vmem:[#allocation139_spill] sm:$0xff] }
 0x538   :  { %v8705_v25 = vsel %vm8692_vm6, %v8608_v22, %v7371_v40  ;;  %v7702_v40 = vrot.slane %v24885_v14, 3  ;;  %v22395_v22 = vld [vmem:[%s23858_s3 + $0x3c] sm:$0xff]  }
 0x539   :  { %8493 = vrot.lane.b32.xlu1 %v8304_v28, %s16357_s19  ;;  %v8802_v16 = vsel %vm8789_vm7, %v8705_v25, %v7948_v57  ;;  %v7124_v28 = vrot.slane %v22341_v35, 2  ;;  %v6583_v25 = vrot.slane %v22377_v53, 1 }
 0x53a   :  { %14748 = vmatmul.mubr.msk.bf16.vlgmr.msra.gmra.mrb[108].mxu1 %vm9264_vm8, %v24883_v8  ;;  %7943 = vrot.lane.b32.xlu0 %v7667_v59, %s16360_s21  ;;  %v24889_v59 = vld [vmem:[#allocation121_spill] sm:$0xff]  ;;  %v7703_v44 = vsel %vm7634_vm3, %v7701_v1, %v7702_v40  ;;  %v7738_v1 = vrot.slane %v24891_v54, 3  ;;  %v24894_v40 = vcombine.low %v24881_v30, %v24885_v14 }
 0x53b   :  { %14812 = vmatpush3.bf16.msra.mxu1 %v16355_v47  ;;  %v8332_v56 = vpop.permute.xlu1 %8331  ;;  %14751 = vmatprep.mubr.msk.bf16.mxu1 %vm9264_vm8, %v24884_v26  ;;  %v24890_v47 = vld [vmem:[#allocation105_spill] sm:$0xff] }
 0x53c   :  { %14813 = vmatprep.subr.bf16.mxu1 %v16309_v23  ;;  %v8898_v3 = vsel %vm2071_vm0, %v8802_v16, %v8332_v56  ;;  %v6584_v56 = vrot.slane %v24891_v54, 1  ;;  %v7737_v16 = vrot.slane %v22377_v53, 3 }
 0x53d   :  { %7366 = vrot.lane.b32.xlu1 %v7090_v51, %s16358_s27  ;;  %v13534_v63 = vpack.c.bf16 %v24889_v59, %v8898_v3  ;;  %v24892_v51 = vld [vmem:[#allocation49_spill] sm:$0xff]  ;;  %v7160_v3 = vrot.slane %v22377_v53, 2 }
 0x53e   :  { %6813 = vrot.lane.b32.xlu0 %v6549_v0, %s16359_s30  ;;  %v22411_v57 = vcombine.low %v24893_v38, %v24892_v51  ;;  %v6585_v42 = vsel %vm6480_vm2, %v6583_v25, %v6584_v56  ;;  %v6818_v0 = vpop.permute.xlu0 %6817  ;;  %v24896_v25 = vld [vmem:[#allocation131_spill] sm:$0xff]  ;;  %v24898_v56 = vld [vmem:[#allocation158_spill] sm:$0xff] }
 0x53f   :  { %14814 = vmatpush3.bf16.msra.mxu1 %v16309_v23  ;;  %v7125_v23 = vrot.slane %v24885_v14, 2  ;;  %v24899_v38 = vld [vmem:[#allocation143_spill] sm:$0xff] }
 0x540   :  { %15323 = vmatprep.subr.msk.bf16.mxu1 %vm9361_vm4, %v16310_v60  ;;  %v7395_v60 = vpop.permute.xlu1 %7394  ;;  %v6619_v59 = vrot.slane %v22411_v57, 1 }
 0x541   :  { %8327 = vrot.lane.b32.xlu1 %v24888_v37, %s16357_s19  ;;  %v7126_v24 = vsel %vm7057_vm1, %v7124_v28, %v7125_v23  ;;  %v8620_v28 = vsel %vm8595_vm5, %v21780_v13, %v6818_v0  ;;  %v7739_v37 = vsel %vm7634_vm3, %v7737_v16, %v7738_v1  ;;  %v24897_v13 = vld [vmem:[#allocation61_spill] sm:$0xff]  ;;  %v7773_v0 = vrot.slane %v22411_v57, 3 }
 0x542   :  { %14752 = vmatmul.mubr.msk.bf16.gmra.mrb[112].mxu1 %vm9264_vm8, %v24890_v47  ;;  %7967 = vrot.lane.b32.xlu0 %v7703_v44, %s16360_s21  ;;  %v24895_v44 = vld [vmem:[#allocation130_spill] sm:$0xff]  ;;  %v6620_v14 = vrot.slane %v24897_v13, 1 }
 0x543   :  { %14755 = vmatprep.mubr.msk.bf16.mxu1 %vm9264_vm8, %v13534_v63  ;;  %14816 = vmatpush3.bf16.msra.mxu1 %v10175_v61  ;;  %v7161_v61 = vrot.slane %v24891_v54, 2  ;;  %v8717_v63 = vsel %vm8692_vm6, %v8620_v28, %v7395_v60  ;;  %v24900_v28 = vcombine.low %v24886_v62, %v24891_v54  ;;  %v22464_v54 = vcombine.low %v21296_v19, %v21400_v2 }
 0x544   :  { %14881 = vmatprep.subr.bf16.mxu1 %v22395_v22  ;;  %v8356_v23 = vpop.permute.xlu1 %8355  ;;  %v6621_v16 = vsel %vm6480_vm2, %v6619_v59, %v6620_v14  ;;  %v7197_v59 = vrot.slane %v24897_v13, 2 }
 0x545   :  { %7390 = vrot.lane.b32.xlu1 %v7126_v24, %s16358_s27  ;;  %v7162_v30 = vsel %vm7057_vm1, %v7160_v3, %v7161_v61  ;;  %v7972_v24 = vpop.permute.xlu0 %7971  ;;  %v7774_v3 = vrot.slane %v24897_v13, 3 }
 0x546   :  { %6837 = vrot.lane.b32.xlu0 %v6585_v42, %s16359_s30  ;;  %v22438_v42 = vcombine.low %v24899_v38, %v24898_v56  ;;  %v8814_v60 = vsel %vm8789_vm7, %v8717_v63, %v7972_v24  ;;  %v24903_v24 = vld [vmem:[#allocation134_spill] sm:$0xff] }
 0x547   :  { %v8910_v1 = vsel %vm2071_vm0, %v8814_v60, %v8356_v23  ;;  %v7775_v63 = vsel %vm7634_vm3, %v7773_v0, %v7774_v3  ;;  %v24902_v23 = vld [vmem:[#allocation132_spill] sm:$0xff]  ;;  %v6656_v62 = vrot.slane %v24903_v24, 1 }
 0x548   :  { %v7419_v38 = vpop.permute.xlu1 %7418  ;;  %v7232_v3 = vrot.slane %v22438_v42, 2 }
 0x549   :  { %8351 = vrot.lane.b32.xlu1 %v24894_v40, %s16357_s19  ;;  %v7196_v40 = vrot.slane %v22411_v57, 2  ;;  %v6842_v0 = vpop.permute.xlu0 %6841 }
 0x54a   :  { %14756 = vmatmul.mubr.msk.bf16.gmra.mrb[116].mxu1 %vm9264_vm8, %v24895_v44  ;;  %7991 = vrot.lane.b32.xlu0 %v7739_v37, %s16360_s21  ;;  %v24901_v37 = vld [vmem:[#allocation74_spill] sm:$0xff]  ;;  %v8632_v19 = vsel %vm8595_vm5, %v21798_v7, %v6842_v0  ;;  %v6692_v7 = vrot.slane %v21203_v15, 1  ;;  %v7845_v0 = vrot.slane %v22464_v54, 3 }
 0x54b   :  { %14759 = vmatprep.mubr.msk.bf16.mxu1 %vm9264_vm8, %v24896_v25  ;;  %v13538_v61 = vpack.c.bf16 %v24901_v37, %v8910_v1  ;;  %v7198_v14 = vsel %vm7057_vm1, %v7196_v40, %v7197_v59  ;;  %v7810_v1 = vrot.slane %v24903_v24, 3  ;;  %v24904_v40 = vcombine.low %v24892_v51, %v24897_v13  ;;  %v24905_v59 = vld [vmem:[#allocation83_spill] sm:$0xff] }
 0x54c   :  { %v7233_v37 = vrot.slane %v24903_v24, 2 }
 0x54d   :  { %7414 = vrot.lane.b32.xlu1 %v7162_v30, %s16358_s27  ;;  %v6655_v30 = vrot.slane %v22438_v42, 1  ;;  %v7996_v13 = vpop.permute.xlu0 %7995 }
 0x54e   :  { %6861 = vrot.lane.b32.xlu0 %v6621_v16, %s16359_s30  ;;  %v7809_v16 = vrot.slane %v22438_v42, 3  ;;  %v7234_v51 = vsel %vm7057_vm1, %v7232_v3, %v7233_v37  ;;  %v7846_v3 = vrot.slane %v21203_v15, 3 }
 0x54f   :  { %v6657_v60 = vsel %vm6480_vm2, %v6655_v30, %v6656_v62  ;;  %v8380_v30 = vpop.permute.xlu1 %8379  ;;  %v24907_v62 = vld [vmem:[#allocation22_spill] sm:$0xff] }
 0x551   :  { %8375 = vrot.lane.b32.xlu1 %v24900_v28, %s16357_s19  ;;  %v7811_v28 = vsel %vm7634_vm3, %v7809_v16, %v7810_v1 }
 0x552   :  { %14760 = vmatmul.mubr.msk.bf16.gmra.mrb[120].mxu1 %vm9264_vm8, %v24902_v23  ;;  %8015 = vrot.lane.b32.xlu0 %v7775_v63, %s16360_s21  ;;  %v8729_v63 = vsel %vm8692_vm6, %v8632_v19, %v7419_v38  ;;  %v24909_v19 = vcombine.low %v24898_v56, %v24903_v24  ;;  %v24913_v24 = vld [vmem:[#allocation53_spill] sm:$0xff] }
 0x553   :  { %14763 = vmatprep.mubr.msk.bf16.mxu1 %vm9264_vm8, %v13538_v61  ;;  %v6691_v61 = vrot.slane %v22464_v54, 1  ;;  %v8826_v38 = vsel %vm8789_vm7, %v8729_v63, %v7996_v13  ;;  %v7847_v63 = vsel %vm7634_vm3, %v7845_v0, %v7846_v3  ;;  %v24912_v13 = vld [vmem:[#allocation5_spill] sm:$0xff]  ;;  %v6866_v3 = vpop.permute.xlu0 %6865 }
 0x554   :  { %v8922_v1 = vsel %vm2071_vm0, %v8826_v38, %v8380_v30  ;;  %v24911_v30 = vld [vmem:[#allocation140_spill] sm:$0xff]  ;;  %v6728_v56 = vrot.slane %v24912_v13, 1 }
 0x555   :  { %7438 = vrot.lane.b32.xlu1 %v7198_v14, %s16358_s27  ;;  %v24906_v14 = vld [vmem:[#allocation75_spill] sm:$0xff]  ;;  %v6693_v16 = vsel %vm6480_vm2, %v6691_v61, %v6692_v7  ;;  %v7269_v61 = vrot.slane %v21203_v15, 2 }
 0x556   :  { %6885 = vrot.lane.b32.xlu0 %v6657_v60, %s16359_s30  ;;  %v22491_v60 = vcombine.low %v24907_v62, %v21700_v18  ;;  %v24914_v62 = vld [vmem:[#allocation91_spill] sm:$0xff] }
 0x557   :  { %v22516_v38 = vcombine.low %v24914_v62, %v24913_v24 }
 0x558   :  { %24908 = vst [vmem:[#allocation8_spill] sm:$0xff] %v22491_v60 }
 0x559   :  { %8399 = vrot.lane.b32.xlu1 %v24904_v40, %s16357_s19  ;;  %v7268_v40 = vrot.slane %v22464_v54, 2  ;;  %24915 = vst [vmem:[#allocation29_spill] sm:$0xff] %v22516_v38 }
 0x55a   :  { %14764 = vmatmul.mubr.msk.bf16.gmra.mrb[124].mxu1 %vm9264_vm8, %v24905_v59  ;;  %8039 = vrot.lane.b32.xlu0 %v7811_v28, %s16360_s21  ;;  %v24910_v28 = vld [vmem:[#allocation154_spill] sm:$0xff] }
 0x55b   :  { %14767 = vmatprep.mubr.msk.bf16.mxu1 %vm9264_vm8, %v24906_v14  ;;  %v13542_v37 = vpack.c.bf16 %v24910_v28, %v8922_v1  ;;  %v7270_v7 = vsel %vm7057_vm1, %v7268_v40, %v7269_v61  ;;  %v7881_v1 = vrot.slane %v22491_v60, 3  ;;  %v7304_v40 = vrot.slane %v22491_v60, 2 }
 0x55c   :  { %v24916_v28 = vcombine.low %v21400_v2, %v21203_v15  ;;  %v24919_v2 = vld [vmem:[#allocation160_spill] sm:$0xff] }
 0x55d   :  { %7462 = vrot.lane.b32.xlu1 %v7234_v51, %s16358_s27  ;;  %v6727_v51 = vrot.slane %v22491_v60, 1 }
 0x55e   :  { %6909 = vrot.lane.b32.xlu0 %v6693_v16, %s16359_s30  ;;  %v7443_v16 = vpop.permute.xlu1 %7442 }
 0x55f   :  { %v6729_v0 = vsel %vm6480_vm2, %v6727_v51, %v6728_v56  ;;  %v7305_v51 = vrot.slane %v24912_v13, 2 }
 0x561   :  { %8423 = vrot.lane.b32.xlu1 %v24909_v19, %s16357_s19  ;;  %v7882_v19 = vrot.slane %v24912_v13, 3 }
 0x562   :  { %14768 = vmatmul.mubr.msk.bf16.gmra.mrb[128].mxu1 %vm9264_vm8, %v24911_v30  ;;  %8063 = vrot.lane.b32.xlu0 %v7847_v63, %s16360_s21  ;;  %v8644_v63 = vsel %vm8595_vm5, %v21824_v34, %v6866_v3  ;;  %v8404_v15 = vpop.permute.xlu1 %8403  ;;  %v24920_v34 = vld [vmem:[#allocation33_spill] sm:$0xff]  ;;  %v8020_v3 = vpop.permute.xlu0 %8019 }
 0x563   :  { %14771 = vmatprep.mubr.msk.bf16.mxu1 %vm9264_vm8, %v13542_v37  ;;  %v6763_v37 = vrot.slane %v22516_v38, 1  ;;  %v7883_v61 = vsel %vm7634_vm3, %v7881_v1, %v7882_v19  ;;  %v8741_v62 = vsel %vm8692_vm6, %v8644_v63, %v7443_v16  ;;  %v6161_v1 = vcombine.high %v24920_v34, %v24920_v34 }
 0x564   :  { %v8838_v19 = vsel %vm8789_vm7, %v8741_v62, %v8020_v3  ;;  %v7917_v63 = vrot.slane %v22516_v38, 3  ;;  %v24922_v62 = vld [vmem:[#allocation167_spill] sm:$0xff] }
 0x565   :  { %7486 = vrot.lane.b32.xlu1 %v7270_v7, %s16358_s27  ;;  %v24917_v7 = vld [vmem:[#allocation69_spill] sm:$0xff]  ;;  %v8934_v32 = vsel %vm2071_vm0, %v8838_v19, %v8404_v15  ;;  %v6515_v9 = vrot.slane %v6161_v1, 1 }
 0x566   :  { %6933 = vrot.lane.b32.xlu0 %v6729_v0, %s16359_s30  ;;  %v6764_v56 = vrot.slane %v24917_v7, 1  ;;  %v24918_v0 = vld [vmem:[#allocation159_spill] sm:$0xff]  ;;  %v13546_v3 = vpack.c.bf16 %v24922_v62, %v8934_v32  ;;  %v24925_v32 = vld [vmem:[#allocation98_spill] sm:$0xff]  ;;  %v7092_v62 = vrot.slane %v6161_v1, 2 }
 0x567   :  { %v6179_v19 = vcombine.high %v24925_v32, %v24925_v32 }
 0x568   :  { %v6765_v16 = vsel %vm6480_vm2, %v6763_v37, %v6764_v56  ;;  %v24923_v56 = vld [vmem:[#allocation73_spill] sm:$0xff] }
 0x569   :  { %8447 = vrot.lane.b32.xlu1 %v24916_v28, %s16357_s19  ;;  %v7306_v28 = vsel %vm7057_vm1, %v7304_v40, %v7305_v51  ;;  %v7340_v40 = vrot.slane %v22516_v38, 2  ;;  %v7341_v51 = vrot.slane %v24917_v7, 2  ;;  %v6514_v27 = vrot.slane %v24923_v56, 1 }
 0x56a   :  { %14772 = vmatmul.mubr.msk.bf16.gmra.mrb[132].mxu1 %vm9264_vm8, %v24918_v0  ;;  %8087 = vrot.lane.b32.xlu0 %v7883_v61, %s16360_s21  ;;  %v7918_v61 = vrot.slane %v24917_v7, 3 }
 0x56b   :  { %14775 = vmatprep.mubr.msk.bf16.mxu1 %vm9264_vm8, %v24919_v2  ;;  %v7342_v15 = vsel %vm7057_vm1, %v7340_v40, %v7341_v51  ;;  %v24926_v40 = vcombine.low %v24913_v24, %v24917_v7 }
 0x56c   :  { %v7919_v37 = vsel %vm7634_vm3, %v7917_v63, %v7918_v61  ;;  %v6516_v63 = vsel %vm6480_vm2, %v6514_v27, %v6515_v9  ;;  %v6890_v61 = vpop.permute.xlu0 %6889  ;;  %v24929_v9 = vld [vmem:[#allocation97_spill] sm:$0xff] }
 0x56d   :  { %7510 = vrot.lane.b32.xlu1 %v7306_v28, %s16358_s27  ;;  %v24921_v28 = vcombine.low %v21700_v18, %v24912_v13  ;;  %v7668_v18 = vrot.slane %v24923_v56, 3  ;;  %v7669_v13 = vrot.slane %v6161_v1, 3  ;;  %v6550_v27 = vrot.slane %v24929_v9, 1 }
 0x56e   :  { %6957 = vrot.lane.b32.xlu0 %v6765_v16, %s16359_s30  ;;  %v7467_v16 = vpop.permute.xlu1 %7466 }
 0x56f   :  { %v7670_v51 = vsel %vm7634_vm3, %v7668_v18, %v7669_v13  ;;  %v7704_v18 = vrot.slane %v24929_v9, 3  ;;  %v24931_v13 = vld [vmem:[#allocation60_spill] sm:$0xff] }
 0x570   :  { %v8044_v7 = vpop.permute.xlu0 %8043 }
 0x571   :  { %8471 = vrot.lane.b32.xlu1 %v24921_v28, %s16357_s19  ;;  %v7091_v28 = vrot.slane %v24923_v56, 2 }
 0x572   :  { %14776 = vmatmul.mubr.msk.bf16.gmra.mrb[136].mxu1 %vm9264_vm8, %v24924_v21  ;;  %8111 = vrot.lane.b32.xlu0 %v7919_v37, %s16360_s21  ;;  %v24927_v37 = vld [vmem:[#allocation162_spill] sm:$0xff]  ;;  %v8428_v24 = vpop.permute.xlu1 %8427 }
 0x573   :  { %14779 = vmatprep.mubr.msk.bf16.mxu1 %vm9264_vm8, %v13546_v3  ;;  %v8656_v3 = vsel %vm8595_vm5, %v21859_v50, %v6890_v61  ;;  %v7093_v50 = vsel %vm7057_vm1, %v7091_v28, %v7092_v62  ;;  %v6197_v61 = vcombine.high %v24931_v13, %v24931_v13  ;;  %v7127_v28 = vrot.slane %v24929_v9, 2 }
 0x574   :  { %v8753_v56 = vsel %vm8692_vm6, %v8656_v3, %v7467_v16  ;;  %v7705_v3 = vrot.slane %v6179_v19, 3  ;;  %v7128_v62 = vrot.slane %v6179_v19, 2 }
 0x575   :  { %7534 = vrot.lane.b32.xlu1 %v7342_v15, %s16358_s27  ;;  %v24928_v15 = vld [vmem:[#allocation153_spill] sm:$0xff]  ;;  %v8850_v16 = vsel %vm8789_vm7, %v8753_v56, %v8044_v7 }
 0x576   :  { %6791 = vrot.lane.b32.xlu0 %v6516_v63, %s16359_s30  ;;  %v22580_v38 = vpack.c.bf16 %v24928_v15, %v24927_v37  ;;  %v6551_v63 = vrot.slane %v6179_v19, 1  ;;  %v8222_v37 = vcombine.low %v24920_v34, %v6161_v1  ;;  %v24932_v15 = vld [vmem:[#allocation86_spill] sm:$0xff]  ;;  %v7129_v34 = vsel %vm7057_vm1, %v7127_v28, %v7128_v62  ;;  %v24935_v1 = vld [vmem:[#allocation84_spill] sm:$0xff] }
 0x579   :  { %8495 = vrot.lane.b32.xlu1 %v24926_v40, %s16357_s19  ;;  %v6552_v40 = vsel %vm6480_vm2, %v6550_v27, %v6551_v63  ;;  %v7706_v27 = vsel %vm7634_vm3, %v7704_v18, %v7705_v3  ;;  %v24934_v63 = vld [vmem:[#allocation103_spill] sm:$0xff]  ;;  %v7741_v3 = vrot.slane %v6197_v61, 3 }
 0x57a   :  { %14780 = vmatmul.mubr.msk.bf16.gmra.mrb[140].mxu1 %vm9264_vm8, %v24930_v4  ;;  %7945 = vrot.lane.b32.xlu0 %v7670_v51, %s16360_s21  ;;  %v8946_v51 = vsel %vm2071_vm0, %v8850_v16, %v8428_v24  ;;  %v6586_v7 = vrot.slane %v24934_v63, 1  ;;  %v6587_v24 = vrot.slane %v6197_v61, 1  ;;  %v6215_v16 = vcombine.high %v24935_v1, %v24935_v1 }
 0x57b   :  { %14783 = vmatprep.mubr.msk.bf16.mxu1 %vm9264_vm8, %v22580_v38  ;;  %v13550_v56 = vpack.c.bf16 %v21847_v58, %v8946_v51  ;;  %v7491_v58 = vpop.permute.xlu1 %7490  ;;  %v6914_v51 = vpop.permute.xlu0 %6913 }
 0x57c   :  { %v6588_v18 = vsel %vm6480_vm2, %v6586_v7, %v6587_v24  ;;  %v8668_v28 = vsel %vm8595_vm5, %v21906_v12, %v6914_v51  ;;  %v6623_v7 = vrot.slane %v6215_v16, 1  ;;  %v7777_v51 = vrot.slane %v6215_v16, 3 }
 0x57d   :  { %7368 = vrot.lane.b32.xlu1 %v7093_v50, %s16358_s27  ;;  %v24933_v50 = vld [vmem:[#allocation156_spill] sm:$0xff]  ;;  %v8765_v24 = vsel %vm8692_vm6, %v8668_v28, %v7491_v58  ;;  %v8246_v28 = vcombine.low %v24931_v13, %v6197_v61 }
 0x57e   :  { %6815 = vrot.lane.b32.xlu0 %v6552_v40, %s16359_s30  ;;  %v22603_v60 = vpack.c.bf16 %v24933_v50, %v24932_v15  ;;  %v7740_v40 = vrot.slane %v24934_v63, 3  ;;  %v7163_v15 = vrot.slane %v24934_v63, 2  ;;  %v7164_v50 = vrot.slane %v6197_v61, 2  ;;  %v24938_v63 = vld [vmem:[#allocation135_spill] sm:$0xff]  ;;  %v24939_v61 = vld [vmem:[#allocation166_spill] sm:$0xff] }
 0x580   :  { %v7742_v62 = vsel %vm7634_vm3, %v7740_v40, %v7741_v3 }
 0x581   :  { %8329 = vrot.lane.b32.xlu1 %v8222_v37, %s16357_s19  ;;  %v8234_v37 = vcombine.low %v24925_v32, %v6179_v19  ;;  %v8452_v32 = vpop.permute.xlu1 %8451  ;;  %v7165_v19 = vsel %vm7057_vm1, %v7163_v15, %v7164_v50  ;;  %v7200_v50 = vrot.slane %v6215_v16, 2 }
 0x582   :  { %14784 = vmatmul.mubr.msk.bf16.gmra.mrb[144].mxu1 %vm9264_vm8, %v22603_v60  ;;  %7969 = vrot.lane.b32.xlu0 %v7706_v27, %s16360_s21 }
 0x583   :  { %14787 = vmatprep.mubr.msk.bf16.mxu1 %vm9264_vm8, %v13550_v56  ;;  %v24936_v56 = vld [vmem:[#allocation94_spill] sm:$0xff] }
 0x584   :  { %v6622_v27 = vrot.slane %v24936_v56, 1  ;;  %v7776_v12 = vrot.slane %v24936_v56, 3  ;;  %v7199_v15 = vrot.slane %v24936_v56, 2 }
 0x585   :  { %7392 = vrot.lane.b32.xlu1 %v7129_v34, %s16358_s27  ;;  %v8068_v34 = vpop.permute.xlu0 %8067 }
 0x586   :  { %6839 = vrot.lane.b32.xlu0 %v6588_v18, %s16359_s30  ;;  %v24937_v18 = vld [vmem:[#allocation149_spill] sm:$0xff]  ;;  %v8862_v58 = vsel %vm8789_vm7, %v8765_v24, %v8068_v34  ;;  %v6624_v3 = vsel %vm6480_vm2, %v6622_v27, %v6623_v7  ;;  %v6658_v24 = vrot.slane %v24938_v63, 1  ;;  %v7201_v13 = vsel %vm7057_vm1, %v7199_v15, %v7200_v50  ;;  %v24940_v50 = vld [vmem:[#allocation164_spill] sm:$0xff] }
 0x587   :  { %v6233_v40 = vcombine.high %v24937_v18, %v24937_v18  ;;  %v6251_v27 = vcombine.high %v24939_v61, %v24939_v61 }
 0x589   :  { %8353 = vrot.lane.b32.xlu1 %v8234_v37, %s16357_s19  ;;  %v8958_v37 = vsel %vm2071_vm0, %v8862_v58, %v8452_v32  ;;  %v6659_v34 = vrot.slane %v6233_v40, 1  ;;  %v7812_v32 = vrot.slane %v24938_v63, 3  ;;  %v6938_v58 = vpop.permute.xlu0 %6937 }
 0x58a   :  { %14788 = vmatmul.mubr.msk.bf16.gmra.mrb[148].mxu1 %vm9264_vm8, %v21890_v33  ;;  %7993 = vrot.lane.b32.xlu0 %v7742_v62, %s16360_s21  ;;  %v13554_v62 = vpack.c.bf16 %v22085_v41, %v8958_v37  ;;  %v7515_v41 = vpop.permute.xlu1 %7514  ;;  %v7236_v37 = vrot.slane %v6233_v40, 2 }
 0x58b   :  { %14791 = vmatprep.mubr.msk.bf16.mxu1 %vm9264_vm8, %v21933_v36  ;;  %v6660_v7 = vsel %vm6480_vm2, %v6658_v24, %v6659_v34  ;;  %v24941_v34 = vld [vmem:[#allocation20_spill] sm:$0xff] }
 0x58d   :  { %7416 = vrot.lane.b32.xlu1 %v7165_v19, %s16358_s27  ;;  %v7778_v19 = vsel %vm7634_vm3, %v7776_v12, %v7777_v51  ;;  %v7813_v12 = vrot.slane %v6233_v40, 3  ;;  %v7235_v51 = vrot.slane %v24938_v63, 2 }
 0x58e   :  { %6863 = vrot.lane.b32.xlu0 %v6624_v3, %s16359_s30  ;;  %v8258_v3 = vcombine.low %v24935_v1, %v6215_v16  ;;  %v8476_v1 = vpop.permute.xlu1 %8475 }
 0x58f   :  { %v7814_v15 = vsel %vm7634_vm3, %v7812_v32, %v7813_v12  ;;  %v7237_v16 = vsel %vm7057_vm1, %v7235_v51, %v7236_v37  ;;  %v7848_v32 = vrot.slane %v24940_v50, 3  ;;  %v7849_v12 = vrot.slane %v6251_v27, 3 }
 0x590   :  { %v7271_v51 = vrot.slane %v24940_v50, 2  ;;  %v7272_v37 = vrot.slane %v6251_v27, 2 }
 0x591   :  { %8377 = vrot.lane.b32.xlu1 %v8246_v28, %s16357_s19  ;;  %v8680_v28 = vsel %vm8595_vm5, %v21939_v20, %v6938_v58  ;;  %v6269_v20 = vcombine.high %v24941_v34, %v24941_v34 }
 0x592   :  { %14792 = vmatmul.mubr.msk.bf16.gmra.mrb[152].mxu1 %vm9264_vm8, %v21969_v17  ;;  %8017 = vrot.lane.b32.xlu0 %v7778_v19, %s16360_s21  ;;  %v6695_v19 = vrot.slane %v6251_v27, 1  ;;  %v8777_v24 = vsel %vm8692_vm6, %v8680_v28, %v7515_v41 }
 0x593   :  { %14795 = vmatprep.mubr.msk.bf16.mxu1 %vm9264_vm8, %v13554_v62  ;;  %v6694_v62 = vrot.slane %v24940_v50, 1 }
 0x595   :  { %7440 = vrot.lane.b32.xlu1 %v7201_v13, %s16358_s27  ;;  %v8092_v13 = vpop.permute.xlu0 %8091  ;;  %v6696_v41 = vsel %vm6480_vm2, %v6694_v62, %v6695_v19  ;;  %v6731_v19 = vrot.slane %v6269_v20, 1 }
 0x596   :  { %6887 = vrot.lane.b32.xlu0 %v6660_v7, %s16359_s30  ;;  %v8874_v7 = vsel %vm8789_vm7, %v8777_v24, %v8092_v13  ;;  %v24942_v24 = vld [vmem:[#allocation7_spill] sm:$0xff]  ;;  %v24943_v13 = vld [vmem:[#allocation50_spill] sm:$0xff] }
 0x597   :  { %v8970_v58 = vsel %vm2071_vm0, %v8874_v7, %v8476_v1  ;;  %v6730_v62 = vrot.slane %v24942_v24, 1  ;;  %v7885_v1 = vrot.slane %v6269_v20, 3  ;;  %v6287_v7 = vcombine.high %v24943_v13, %v24943_v13 }
 0x598   :  { %v13558_v28 = vpack.c.bf16 %v22228_v11, %v8970_v58  ;;  %v7884_v11 = vrot.slane %v24942_v24, 3 }
 0x599   :  { %8401 = vrot.lane.b32.xlu1 %v8258_v3, %s16357_s19  ;;  %v8270_v3 = vcombine.low %v24937_v18, %v6233_v40  ;;  %v7273_v18 = vsel %vm7057_vm1, %v7271_v51, %v7272_v37  ;;  %v6732_v40 = vsel %vm6480_vm2, %v6730_v62, %v6731_v19  ;;  %v6767_v37 = vrot.slane %v6287_v7, 1 }
 0x59a   :  { %14796 = vmatmul.mubr.msk.bf16.gmra.mrb[156].mxu1 %vm9264_vm8, %v22140_v6  ;;  %8041 = vrot.lane.b32.xlu0 %v7814_v15, %s16360_s21  ;;  %v7850_v15 = vsel %vm7634_vm3, %v7848_v32, %v7849_v12  ;;  %v7308_v32 = vrot.slane %v6269_v20, 2  ;;  %v22702_v12 = vpack.c.bf16 %v22274_v10, %v22254_v39  ;;  %v7886_v58 = vsel %vm7634_vm3, %v7884_v11, %v7885_v1  ;;  %v7365_v11 = vpop.permute.xlu1 %7364 }
 0x59b   :  { %14799 = vmatprep.mubr.msk.bf16.mxu1 %vm9264_vm8, %v22200_v46  ;;  %v7344_v19 = vrot.slane %v6287_v7, 2 }
 0x59d   :  { %7464 = vrot.lane.b32.xlu1 %v7237_v16, %s16358_s27  ;;  %v8282_v16 = vcombine.low %v24939_v61, %v6251_v27  ;;  %v7921_v27 = vrot.slane %v6287_v7, 3 }
 0x59e   :  { %6911 = vrot.lane.b32.xlu0 %v6696_v41, %s16359_s30  ;;  %v7307_v41 = vrot.slane %v24942_v24, 2 }
 0x5a0   :  { %v7309_v61 = vsel %vm7057_vm1, %v7307_v41, %v7308_v32 }
 0x5a1   :  { %8425 = vrot.lane.b32.xlu1 %v8270_v3, %s16357_s19  ;;  %v24944_v3 = vld [vmem:[#allocation56_spill] sm:$0xff] }
 0x5a2   :  { %14800 = vmatmul.mubr.msk.bf16.gmra.mrb[160].mxu1 %vm9264_vm8, %v22240_v43  ;;  %8065 = vrot.lane.b32.xlu0 %v7850_v15, %s16360_s21  ;;  %v6766_v51 = vrot.slane %v24944_v3, 1  ;;  %v7920_v10 = vrot.slane %v24944_v3, 3  ;;  %v8294_v15 = vcombine.low %v24941_v34, %v6269_v20  ;;  %v7343_v62 = vrot.slane %v24944_v3, 2  ;;  %v6788_v34 = vpop.permute.xlu0 %6787 }
 0x5a3   :  { %14803 = vmatprep.mubr.msk.bf16.mxu1 %vm9264_vm8, %v13558_v28  ;;  %v24945_v28 = vld [vmem:[#allocation147_spill] sm:$0xff]  ;;  %v8306_v20 = vcombine.low %v24943_v13, %v6287_v7  ;;  %v8605_v1 = vsel %vm8595_vm5, %v24842_v5, %v6788_v34  ;;  %v16313_v13 = vld [vmem:[%s23858_s3 + $0x4c] ss:$0 sps:$4 sm:$0xff]  }
 0x5a4   :  { %v6768_v39 = vsel %vm6480_vm2, %v6766_v51, %v6767_v37  ;;  %v8702_v41 = vsel %vm8692_vm6, %v8605_v1, %v7365_v11  ;;  %v22756_v37 = vld [vmem:[%s23858_s3 + $0x50] sm:$0xff]   ;;  %v24949_v1 = vld [vmem:[#allocation47_spill] sm:$0xff]  ;;  %vm12177_vm2 = vcmask 523264  }
 0x5a5   :  { %7488 = vrot.lane.b32.xlu1 %v7273_v18, %s16358_s27  ;;  %v7922_v18 = vsel %vm7634_vm3, %v7920_v10, %v7921_v27  ;;  %v24947_v10 = vld [vmem:[#allocation68_spill] sm:$0xff]  ;;  %vm12179_vm3 = vcmask 654336  }
 0x5a6   :  { %6935 = vrot.lane.b32.xlu0 %v6732_v40, %s16359_s30  ;;  %v7345_v40 = vsel %vm7057_vm1, %v7343_v62, %v7344_v19  ;;  %v7942_v32 = vpop.permute.xlu0 %7941  ;;  %vm12175_vm1 = vcmask 392192  }
 0x5a7   :  { %v8799_v5 = vsel %vm8789_vm7, %v8702_v41, %v7942_v32 }
 0x5a9   :  { %8449 = vrot.lane.b32.xlu1 %v8282_v16, %s16357_s19  ;;  %v16312_v16 = vld [vmem:[%s23858_s3 + $0x44] sm:$0xff]  }
 0x5aa   :  { %14804 = vmatmul.mubr.msk.bf16.gmra.mrb[164].mxu1 %vm9264_vm8, %v24945_v28  ;;  %8089 = vrot.lane.b32.xlu0 %v7886_v58, %s16360_s21  ;;  %v24946_v58 = vld [vmem:[#allocation80_spill] sm:$0xff] }
 0x5ab   :  { %14807 = vmatprep.mubr.msk.bf16.mxu1 %vm9264_vm8, %v22702_v12 }
 0x5ad   :  { %7512 = vrot.lane.b32.xlu1 %v7309_v61, %s16358_s27 }
 0x5ae   :  { %6959 = vrot.lane.b32.xlu0 %v6768_v39, %s16359_s30  ;;  %v6812_v39 = vpop.permute.xlu0 %6811 }
 0x5af   :  { %v8617_v27 = vsel %vm8595_vm5, %v24947_v10, %v6812_v39  ;;  %v24951_v39 = vld [vmem:[#allocation77_spill] sm:$0xff] }
 0x5b1   :  { %8473 = vrot.lane.b32.xlu1 %v8294_v15, %s16357_s19 }
 0x5b2   :  { %14808 = vmatmul.mubr.msk.bf16.gmra.mrb[168].mxu1 %vm9264_vm8, %v22322_v52  ;;  %8113 = vrot.lane.b32.xlu0 %v7922_v18, %s16360_s21  ;;  %v7966_v19 = vpop.permute.xlu0 %7965 }
 0x5b3   :  { %14817 = vmatprep.mubr.msk.bf16.mxu1 %vm9264_vm8, %v24883_v8  ;;  %v8326_v8 = vpop.permute.xlu1 %8325 }
 0x5b4   :  { %v22745_v7 = vsel %vm2071_vm0, %v8799_v5, %v8326_v8 }
 0x5b5   :  { %7536 = vrot.lane.b32.xlu1 %v7345_v40, %s16358_s27  ;;  %v22749_v51 = vpack.c.bf16 %v22745_v7, %v24946_v58  ;;  %v24948_v40 = vld [vmem:[#allocation108_spill] sm:$0xff] }
 0x5b7   :  { %v7389_v61 = vpop.permute.xlu1 %7388 }
 0x5b8   :  { %v8714_v15 = vsel %vm8692_vm6, %v8617_v27, %v7389_v61 }
 0x5b9   :  { %8497 = vrot.lane.b32.xlu1 %v8306_v20, %s16357_s19  ;;  %v6836_v20 = vpop.permute.xlu0 %6835 }
 0x5ba   :  { %14818 = vmatmul.mubr.msk.bf16.vlgmr.msra.gmra.mrb[108].mxu1 %vm9264_vm8, %v24884_v26 }
 0x5bb   :  { %14882 = vmatpush3.bf16.msra.mxu1 %v22395_v22  ;;  %14821 = vmatprep.mubr.msk.bf16.mxu1 %vm9264_vm8, %v24890_v47  ;;  %v10600_v22 = vsel %vm9361_vm4, %v16313_v13, 0  ;;  %v8350_v62 = vpop.permute.xlu1 %8349 }
 0x5bc   :  { %14883 = vmatprep.subr.bf16.mxu1 %v16312_v16 }
 0x5bd   :  { %v7990_v32 = vpop.permute.xlu0 %7989 }
 0x5bf   :  { %14884 = vmatpush3.bf16.msra.mxu1 %v16312_v16  ;;  %v7413_v34 = vpop.permute.xlu1 %7412  ;;  %v8629_v16 = vsel %vm8595_vm5, %v24949_v1, %v6836_v20  ;;  %v24953_v1 = vld [vmem:[#allocation59_spill] sm:$0xff] }
 0x5c0   :  { %15324 = vmatprep.subr.msk.bf16.mxu1 %vm9361_vm4, %v16313_v13  ;;  %v8726_v41 = vsel %vm8692_vm6, %v8629_v16, %v7413_v34 }
 0x5c1   :  { %v8823_v5 = vsel %vm8789_vm7, %v8726_v41, %v7990_v32  ;;  %v6860_v61 = vpop.permute.xlu0 %6859 }
 0x5c2   :  { %14822 = vmatmul.mubr.msk.bf16.gmra.mrb[112].mxu1 %vm9264_vm8, %v22749_v51  ;;  %v8641_v10 = vsel %vm8595_vm5, %v24951_v39, %v6860_v61 }
 0x5c3   :  { %14825 = vmatprep.mubr.msk.bf16.mxu1 %vm9264_vm8, %v24895_v44  ;;  %14886 = vmatpush3.bf16.msra.mxu1 %v10600_v22  ;;  %v8811_v44 = vsel %vm8789_vm7, %v8714_v15, %v7966_v19  ;;  %v8374_v8 = vpop.permute.xlu1 %8373 }
 0x5c4   :  { %14951 = vmatprep.subr.bf16.mxu1 %v22756_v37  ;;  %v22772_v18 = vsel %vm2071_vm0, %v8811_v44, %v8350_v62  ;;  %v22791_v13 = vsel %vm2071_vm0, %v8823_v5, %v8374_v8 }
 0x5c5   :  { %v22776_v11 = vpack.c.bf16 %v22772_v18, %v24948_v40  ;;  %v8014_v62 = vpop.permute.xlu0 %8013 }
 0x5c7   :  { %v7437_v22 = vpop.permute.xlu1 %7436 }
 0x5c8   :  { %v8738_v27 = vsel %vm8692_vm6, %v8641_v10, %v7437_v22 }
 0x5c9   :  { %v8835_v19 = vsel %vm8789_vm7, %v8738_v27, %v8014_v62  ;;  %v6884_v20 = vpop.permute.xlu0 %6883 }
 0x5ca   :  { %14826 = vmatmul.mubr.msk.bf16.gmra.mrb[116].mxu1 %vm9264_vm8, %v24896_v25  ;;  %v8653_v16 = vsel %vm8595_vm5, %v24953_v1, %v6884_v20 }
 0x5cb   :  { %14829 = vmatprep.mubr.msk.bf16.mxu1 %vm9264_vm8, %v24902_v23  ;;  %v8398_v15 = vpop.permute.xlu1 %8397 }
 0x5cc   :  { %v22810_v44 = vsel %vm2071_vm0, %v8835_v19, %v8398_v15 }
 0x5cd   :  { %v8038_v32 = vpop.permute.xlu0 %8037 }
 0x5cf   :  { %v7461_v34 = vpop.permute.xlu1 %7460 }
 0x5d0   :  { %v8750_v41 = vsel %vm8692_vm6, %v8653_v16, %v7461_v34 }
 0x5d1   :  { %v8847_v5 = vsel %vm8789_vm7, %v8750_v41, %v8038_v32  ;;  %v6908_v39 = vpop.permute.xlu0 %6907 }
 0x5d2   :  { %14830 = vmatmul.mubr.msk.bf16.gmra.mrb[120].mxu1 %vm9264_vm8, %v22776_v11  ;;  %v8665_v10 = vsel %vm8595_vm5, %v24865_v31, %v6908_v39 }
 0x5d3   :  { %14833 = vmatprep.mubr.msk.bf16.mxu1 %vm9264_vm8, %v24905_v59  ;;  %v24950_v59 = vld [vmem:[#allocation133_spill] sm:$0xff]  ;;  %v8422_v8 = vpop.permute.xlu1 %8421 }
 0x5d4   :  { %v22795_v58 = vpack.c.bf16 %v22791_v13, %v24950_v59  ;;  %v22829_v59 = vsel %vm2071_vm0, %v8847_v5, %v8422_v8 }
 0x5d5   :  { %v8062_v62 = vpop.permute.xlu0 %8061 }
 0x5d7   :  { %v7485_v61 = vpop.permute.xlu1 %7484 }
 0x5d8   :  { %v8762_v27 = vsel %vm8692_vm6, %v8665_v10, %v7485_v61 }
 0x5d9   :  { %v8859_v19 = vsel %vm8789_vm7, %v8762_v27, %v8062_v62  ;;  %v6932_v20 = vpop.permute.xlu0 %6931 }
 0x5da   :  { %14834 = vmatmul.mubr.msk.bf16.gmra.mrb[124].mxu1 %vm9264_vm8, %v24906_v14  ;;  %v8677_v1 = vsel %vm8595_vm5, %v21605_v55, %v6932_v20 }
 0x5db   :  { %14837 = vmatprep.mubr.msk.bf16.mxu1 %vm9264_vm8, %v24911_v30  ;;  %v8446_v15 = vpop.permute.xlu1 %8445 }
 0x5dd   :  { %v8086_v8 = vpop.permute.xlu0 %8085 }
 0x5df   :  { %v7509_v31 = vpop.permute.xlu1 %7508 }
 0x5e0   :  { %v8774_v16 = vsel %vm8692_vm6, %v8677_v1, %v7509_v31  ;;  %v16315_v31 = vld [vmem:[%s23858_s3 + $0x58] sm:$0xff]  }
 0x5e1   :  { %v8871_v32 = vsel %vm8789_vm7, %v8774_v16, %v8086_v8 }
 0x5e2   :  { %14838 = vmatmul.mubr.msk.bf16.gmra.mrb[128].mxu1 %vm9264_vm8, %v22795_v58 }
 0x5e3   :  { %14841 = vmatprep.mubr.msk.bf16.mxu1 %vm9264_vm8, %v24918_v0  ;;  %v24952_v0 = vld [vmem:[#allocation128_spill] sm:$0xff]  ;;  %v8470_v41 = vpop.permute.xlu1 %8469 }
 0x5e4   :  { %v22814_v40 = vpack.c.bf16 %v22810_v44, %v24952_v0  ;;  %v22848_v0 = vsel %vm2071_vm0, %v8859_v19, %v8446_v15  ;;  %v22867_v5 = vsel %vm2071_vm0, %v8871_v32, %v8470_v41  ;;  %v24958_v41 = vld [vmem:[#allocation78_spill] sm:$0xff] }
 0x5e7   :  { %v7533_v55 = vpop.permute.xlu1 %7532 }
 0x5ea   :  { %14842 = vmatmul.mubr.msk.bf16.gmra.mrb[132].mxu1 %vm9264_vm8, %v24919_v2 }
 0x5eb   :  { %14845 = vmatprep.mubr.msk.bf16.mxu1 %vm9264_vm8, %v24924_v21  ;;  %v8494_v10 = vpop.permute.xlu1 %8493 }
 0x5ef   :  { %v7367_v62 = vpop.permute.xlu1 %7366 }
 0x5f2   :  { %14846 = vmatmul.mubr.msk.bf16.gmra.mrb[136].mxu1 %vm9264_vm8, %v22814_v40 }
 0x5f3   :  { %14849 = vmatprep.mubr.msk.bf16.mxu1 %vm9264_vm8, %v24930_v4  ;;  %v24954_v4 = vld [vmem:[#allocation165_spill] sm:$0xff]  ;;  %v8328_v1 = vpop.permute.xlu1 %8327 }
 0x5f4   :  { %v22833_v22 = vpack.c.bf16 %v22829_v59, %v24954_v4  ;;  %v6956_v4 = vpop.permute.xlu0 %6955 }
 0x5f5   :  { %v8689_v61 = vsel %vm8595_vm5, %v22154_v48, %v6956_v4  ;;  %v24956_v48 = vld [vmem:[#allocation63_spill] sm:$0xff]  ;;  %v24959_v4 = vld [vmem:[#allocation122_spill] sm:$0xff] }
 0x5f6   :  { %v8786_v39 = vsel %vm8692_vm6, %v8689_v61, %v7533_v55 }
 0x5f7   :  { %v7391_v61 = vpop.permute.xlu1 %7390 }
 0x5f8   :  { %v8110_v27 = vpop.permute.xlu0 %8109 }
 0x5fa   :  { %14850 = vmatmul.mubr.msk.bf16.gmra.mrb[140].mxu1 %vm9264_vm8, %v22580_v38 }
 0x5fb   :  { %14853 = vmatprep.mubr.msk.bf16.mxu1 %vm9264_vm8, %v22603_v60 }
 0x5fc   :  { %v6790_v19 = vpop.permute.xlu0 %6789 }
 0x600   :  { %v7944_v16 = vpop.permute.xlu0 %7943 }
 0x602   :  { %14854 = vmatmul.mubr.msk.bf16.gmra.mrb[144].mxu1 %vm9264_vm8, %v22833_v22 }
 0x603   :  { %14857 = vmatprep.mubr.msk.bf16.mxu1 %vm9264_vm8, %v21890_v33  ;;  %v24955_v33 = vld [vmem:[#allocation4_spill] sm:$0xff] }
 0x604   :  { %v22852_v34 = vpack.c.bf16 %v22848_v0, %v24955_v33  ;;  %v8606_v33 = vsel %vm8595_vm5, %v22302_v49, %v6790_v19  ;;  %v16316_v49 = vld [vmem:[%s23858_s3 + $0x60] ss:$0 sps:$4 sm:$0xff]  }
 0x605   :  { %v8703_v20 = vsel %vm8692_vm6, %v8606_v33, %v7367_v62  ;;  %v24961_v62 = vld [vmem:[#allocation92_spill] sm:$0xff] }
 0x606   :  { %v8800_v8 = vsel %vm8789_vm7, %v8703_v20, %v7944_v16 }
 0x607   :  { %v22912_v32 = vsel %vm2071_vm0, %v8800_v8, %v8328_v1  ;;  %v24963_v8 = vld [vmem:[#allocation127_spill] sm:$0xff] }
 0x608   :  { %v13570_v55 = vpack.c.bf16 %v22912_v32, %v22745_v7 }
 0x60a   :  { %14858 = vmatmul.mubr.msk.bf16.gmra.mrb[148].mxu1 %vm9264_vm8, %v21933_v36 }
 0x60b   :  { %14861 = vmatprep.mubr.msk.bf16.mxu1 %vm9264_vm8, %v21969_v17 }
 0x612   :  { %14862 = vmatmul.mubr.msk.bf16.gmra.mrb[152].mxu1 %vm9264_vm8, %v22852_v34 }
 0x613   :  { %14865 = vmatprep.mubr.msk.bf16.mxu1 %vm9264_vm8, %v22140_v6  ;;  %v22871_v6 = vpack.c.bf16 %v22867_v5, %v22222_v45  ;;  %v8883_v45 = vsel %vm8789_vm7, %v8786_v39, %v8110_v27  ;;  %v6814_v39 = vpop.permute.xlu0 %6813 }
 0x614   :  { %v22886_v15 = vsel %vm2071_vm0, %v8883_v45, %v8494_v10  ;;  %v8618_v10 = vsel %vm8595_vm5, %v22341_v35, %v6814_v39  ;;  %v8352_v45 = vpop.permute.xlu1 %8351  ;;  %v24962_v35 = vld [vmem:[#allocation76_spill] sm:$0xff] }
 0x615   :  { %v8715_v27 = vsel %vm8692_vm6, %v8618_v10, %v7391_v61 }
 0x617   :  { %v7968_v7 = vpop.permute.xlu0 %7967 }
 0x618   :  { %v8812_v19 = vsel %vm8789_vm7, %v8715_v27, %v7968_v7  ;;  %v7415_v20 = vpop.permute.xlu1 %7414 }
 0x619   :  { %v22930_v33 = vsel %vm2071_vm0, %v8812_v19, %v8352_v45 }
 0x61a   :  { %14866 = vmatmul.mubr.msk.bf16.gmra.mrb[156].mxu1 %vm9264_vm8, %v22200_v46 }
 0x61b   :  { %14869 = vmatprep.mubr.msk.bf16.mxu1 %vm9264_vm8, %v22240_v43  ;;  %v6838_v1 = vpop.permute.xlu0 %6837 }
 0x622   :  { %14870 = vmatmul.mubr.msk.bf16.gmra.mrb[160].mxu1 %vm9264_vm8, %v22871_v6 }
 0x623   :  { %14873 = vmatprep.mubr.msk.bf16.mxu1 %vm9264_vm8, %v24945_v28  ;;  %v22890_v28 = vpack.c.bf16 %v22886_v15, %v22310_v29  ;;  %v24957_v29 = vld [vmem:[#allocation85_spill] sm:$0xff] }
 0x62a   :  { %14874 = vmatmul.mubr.msk.bf16.gmra.mrb[164].mxu1 %vm9264_vm8, %v22702_v12 }
 0x62b   :  { %14877 = vmatprep.mubr.msk.bf16.mxu1 %vm9264_vm8, %v22322_v52 }
 0x632   :  { %14878 = vmatmul.mubr.msk.bf16.gmra.mrb[168].mxu1 %vm9264_vm8, %v22890_v28 }
 0x633   :  { %14887 = vmatprep.mubr.msk.bf16.mxu1 %vm9264_vm8, %v24956_v48  ;;  %v24960_v48 = vld [vmem:[#allocation107_spill] sm:$0xff] }
 0x63a   :  { %14888 = vmatmul.mubr.msk.bf16.vlgmr.msra.gmra.mrb[108].mxu1 %vm9264_vm8, %v24957_v29  ;;  %v8630_v29 = vsel %vm8595_vm5, %v22377_v53, %v6838_v1  ;;  %v24965_v53 = vld [vmem:[#allocation148_spill] sm:$0xff] }
 0x63b   :  { %14952 = vmatpush3.bf16.msra.mxu1 %v22756_v37  ;;  %14891 = vmatprep.mubr.msk.bf16.mxu1 %vm9264_vm8, %v24958_v41  ;;  %v11025_v37 = vsel %vm9361_vm4, %v16316_v49, 0  ;;  %v8727_v16 = vsel %vm8692_vm6, %v8630_v29, %v7415_v20  ;;  %v8376_v41 = vpop.permute.xlu1 %8375 }
 0x63c   :  { %14953 = vmatprep.subr.bf16.mxu1 %v16315_v31 }
 0x63f   :  { %14954 = vmatpush3.bf16.msra.mxu1 %v16315_v31  ;;  %v13571_v31 = vpack.c.bf16 %v22930_v33, %v22772_v18  ;;  %v7439_v61 = vpop.permute.xlu1 %7438 }
 0x640   :  { %15325 = vmatprep.subr.msk.bf16.mxu1 %vm9361_vm4, %v16316_v49  ;;  %v7992_v49 = vpop.permute.xlu0 %7991  ;;  %vm12181_vm4 = vcmask 785408  }
 0x641   :  { %v8824_v18 = vsel %vm8789_vm7, %v8727_v16, %v7992_v49  ;;  %v24970_v49 = vld [vmem:[#allocation155_spill] sm:$0xff] }
 0x642   :  { %14892 = vmatmul.mubr.msk.bf16.gmra.mrb[112].mxu1 %vm9264_vm8, %v13570_v55  ;;  %v24964_v55 = vld [vmem:[#allocation32_spill] sm:$0xff] }
 0x643   :  { %14895 = vmatprep.mubr.msk.bf16.mxu1 %vm9264_vm8, %v24959_v4  ;;  %14956 = vmatpush3.bf16.msra.mxu1 %v11025_v37  ;;  %v22946_v37 = vsel %vm2071_vm0, %v8824_v18, %v8376_v41  ;;  %v8400_v45 = vpop.permute.xlu1 %8399  ;;  %v24969_v41 = vld [vmem:[#allocation157_spill] sm:$0xff] }
 0x644   :  { %v13572_v4 = vpack.c.bf16 %v22946_v37, %v22791_v13  ;;  %v6862_v39 = vpop.permute.xlu0 %6861 }
 0x645   :  { %v8642_v10 = vsel %vm8595_vm5, %v22411_v57, %v6862_v39  ;;  %v24968_v57 = vld [vmem:[#allocation90_spill] sm:$0xff] }
 0x646   :  { %v8739_v27 = vsel %vm8692_vm6, %v8642_v10, %v7439_v61 }
 0x648   :  { %v8016_v7 = vpop.permute.xlu0 %8015 }
 0x649   :  { %v8836_v13 = vsel %vm8789_vm7, %v8739_v27, %v8016_v7  ;;  %v24972_v27 = vld [vmem:[#allocation24_spill] sm:$0xff] }
 0x64a   :  { %14896 = vmatmul.mubr.msk.bf16.gmra.mrb[116].mxu1 %vm9264_vm8, %v24960_v48  ;;  %v24966_v48 = vld [vmem:[#allocation109_spill] sm:$0xff]  ;;  %v22962_v19 = vsel %vm2071_vm0, %v8836_v13, %v8400_v45 }
 0x64b   :  { %14899 = vmatprep.mubr.msk.bf16.mxu1 %vm9264_vm8, %v24961_v62  ;;  %v24967_v62 = vld [vmem:[#allocation146_spill] sm:$0xff] }
 0x64c   :  { %v6886_v20 = vpop.permute.xlu0 %6885 }
 0x64d   :  { %v8654_v1 = vsel %vm8595_vm5, %v22438_v42, %v6886_v20  ;;  %v24971_v42 = vld [vmem:[#allocation9_spill] sm:$0xff] }
 0x652   :  { %14900 = vmatmul.mubr.msk.bf16.gmra.mrb[120].mxu1 %vm9264_vm8, %v13571_v31  ;;  %v13573_v31 = vpack.c.bf16 %v22962_v19, %v22810_v44 }
 0x653   :  { %14903 = vmatprep.mubr.msk.bf16.mxu1 %vm9264_vm8, %v24962_v35  ;;  %v7463_v35 = vpop.permute.xlu1 %7462 }
 0x654   :  { %v8751_v29 = vsel %vm8692_vm6, %v8654_v1, %v7463_v35 }
 0x657   :  { %v8424_v16 = vpop.permute.xlu1 %8423 }
 0x65a   :  { %14904 = vmatmul.mubr.msk.bf16.gmra.mrb[124].mxu1 %vm9264_vm8, %v24963_v8  ;;  %v8040_v8 = vpop.permute.xlu0 %8039 }
 0x65b   :  { %14907 = vmatprep.mubr.msk.bf16.mxu1 %vm9264_vm8, %v24964_v55  ;;  %v8848_v44 = vsel %vm8789_vm7, %v8751_v29, %v8040_v8  ;;  %v24976_v29 = vld [vmem:[#allocation26_spill] sm:$0xff] }
 0x65c   :  { %v22978_v55 = vsel %vm2071_vm0, %v8848_v44, %v8424_v16  ;;  %v24978_v44 = vld [vmem:[#allocation27_spill] sm:$0xff] }
 0x65d   :  { %v13574_v18 = vpack.c.bf16 %v22978_v55, %v22829_v59 }
 0x662   :  { %14908 = vmatmul.mubr.msk.bf16.gmra.mrb[128].mxu1 %vm9264_vm8, %v13572_v4  ;;  %v7487_v4 = vpop.permute.xlu1 %7486 }
 0x663   :  { %14911 = vmatprep.mubr.msk.bf16.mxu1 %vm9264_vm8, %v24965_v53  ;;  %v6910_v53 = vpop.permute.xlu0 %6909 }
 0x664   :  { %v8666_v61 = vsel %vm8595_vm5, %v22464_v54, %v6910_v53  ;;  %v24974_v54 = vld [vmem:[#allocation11_spill] sm:$0xff] }
 0x665   :  { %v8763_v39 = vsel %vm8692_vm6, %v8666_v61, %v7487_v4  ;;  %v24979_v4 = vld [vmem:[#allocation29_spill] sm:$0xff] }
 0x666   :  { %v8448_v10 = vpop.permute.xlu1 %8447 }
 0x667   :  { %v8064_v45 = vpop.permute.xlu0 %8063 }
 0x668   :  { %v8860_v59 = vsel %vm8789_vm7, %v8763_v39, %v8064_v45  ;;  %v24981_v45 = vld [vmem:[#allocation28_spill] sm:$0xff] }
 0x669   :  { %v22994_v7 = vsel %vm2071_vm0, %v8860_v59, %v8448_v10  ;;  %v24980_v10 = vld [vmem:[#allocation13_spill] sm:$0xff] }
 0x66a   :  { %14912 = vmatmul.mubr.msk.bf16.gmra.mrb[132].mxu1 %vm9264_vm8, %v24966_v48  ;;  %v24973_v48 = vld [vmem:[#allocation25_spill] sm:$0xff]  ;;  %v7511_v13 = vpop.permute.xlu1 %7510 }
 0x66b   :  { %14915 = vmatprep.mubr.msk.bf16.mxu1 %vm9264_vm8, %v24967_v62  ;;  %v13575_v62 = vpack.c.bf16 %v22994_v7, %v22848_v0 }
 0x66e   :  { %v8472_v1 = vpop.permute.xlu1 %8471 }
 0x672   :  { %14916 = vmatmul.mubr.msk.bf16.gmra.mrb[136].mxu1 %vm9264_vm8, %v13573_v31  ;;  %v6934_v31 = vpop.permute.xlu0 %6933 }
 0x673   :  { %14919 = vmatprep.mubr.msk.bf16.mxu1 %vm9264_vm8, %v24968_v57  ;;  %v24975_v57 = vld [vmem:[#allocation8_spill] sm:$0xff] }
 0x674   :  { %v8678_v35 = vsel %vm8595_vm5, %v24975_v57, %v6934_v31 }
 0x675   :  { %v8775_v20 = vsel %vm8692_vm6, %v8678_v35, %v7511_v13  ;;  %v24982_v13 = vld [vmem:[#allocation73_spill] sm:$0xff] }
 0x676   :  { %v8088_v16 = vpop.permute.xlu0 %8087 }
 0x677   :  { %v8872_v0 = vsel %vm8789_vm7, %v8775_v20, %v8088_v16 }
 0x678   :  { %v23010_v8 = vsel %vm2071_vm0, %v8872_v0, %v8472_v1 }
 0x67a   :  { %14920 = vmatmul.mubr.msk.bf16.gmra.mrb[140].mxu1 %vm9264_vm8, %v24969_v41  ;;  %v24977_v41 = vld [vmem:[#allocation6_spill] sm:$0xff] }
 0x67b   :  { %14923 = vmatprep.mubr.msk.bf16.mxu1 %vm9264_vm8, %v24970_v49  ;;  %v13576_v49 = vpack.c.bf16 %v23010_v8, %v22867_v5 }
 0x682   :  { %14924 = vmatmul.mubr.msk.bf16.gmra.mrb[144].mxu1 %vm9264_vm8, %v13574_v18  ;;  %v7535_v18 = vpop.permute.xlu1 %7534 }
 0x683   :  { %14927 = vmatprep.mubr.msk.bf16.mxu1 %vm9264_vm8, %v24971_v42  ;;  %v6958_v42 = vpop.permute.xlu0 %6957 }
 0x684   :  { %v8690_v53 = vsel %vm8595_vm5, %v24979_v4, %v6958_v42 }
 0x685   :  { %v8787_v61 = vsel %vm8692_vm6, %v8690_v53, %v7535_v18  ;;  %v24983_v18 = vld [vmem:[#allocation103_spill] sm:$0xff] }
 0x686   :  { %v8496_v39 = vpop.permute.xlu1 %8495 }
 0x68a   :  { %14928 = vmatmul.mubr.msk.bf16.gmra.mrb[148].mxu1 %vm9264_vm8, %v24972_v27  ;;  %v8112_v27 = vpop.permute.xlu0 %8111 }
 0x68b   :  { %14931 = vmatprep.mubr.msk.bf16.mxu1 %vm9264_vm8, %v24973_v48  ;;  %v8884_v5 = vsel %vm8789_vm7, %v8787_v61, %v8112_v27 }
 0x68c   :  { %v23026_v48 = vsel %vm2071_vm0, %v8884_v5, %v8496_v39 }
 0x68d   :  { %v13577_v59 = vpack.c.bf16 %v23026_v48, %v22886_v15 }
 0x692   :  { %14932 = vmatmul.mubr.msk.bf16.gmra.mrb[152].mxu1 %vm9264_vm8, %v13575_v62  ;;  %v7369_v62 = vpop.permute.xlu1 %7368 }
 0x693   :  { %14935 = vmatprep.mubr.msk.bf16.mxu1 %vm9264_vm8, %v24974_v54  ;;  %v6792_v54 = vpop.permute.xlu0 %6791 }
 0x694   :  { %v8607_v31 = vsel %vm8595_vm5, %v24982_v13, %v6792_v54 }
 0x695   :  { %v8704_v57 = vsel %vm8692_vm6, %v8607_v31, %v7369_v62 }
 0x696   :  { %v8330_v35 = vpop.permute.xlu1 %8329 }
 0x697   :  { %v7946_v20 = vpop.permute.xlu0 %7945 }
 0x698   :  { %v8801_v15 = vsel %vm8789_vm7, %v8704_v57, %v7946_v20 }
 0x699   :  { %v8897_v1 = vsel %vm2071_vm0, %v8801_v15, %v8330_v35 }
 0x69a   :  { %14936 = vmatmul.mubr.msk.bf16.gmra.mrb[156].mxu1 %vm9264_vm8, %v24976_v29  ;;  %v7393_v29 = vpop.permute.xlu1 %7392 }
 0x69b   :  { %14939 = vmatprep.mubr.msk.bf16.mxu1 %vm9264_vm8, %v24977_v41  ;;  %v6816_v16 = vpop.permute.xlu0 %6815 }
 0x69e   :  { %v8354_v0 = vpop.permute.xlu1 %8353 }
 0x6a2   :  { %14940 = vmatmul.mubr.msk.bf16.gmra.mrb[160].mxu1 %vm9264_vm8, %v13576_v49 }
 0x6a3   :  { %14943 = vmatprep.mubr.msk.bf16.mxu1 %vm9264_vm8, %v24978_v44 }
 0x6aa   :  { %14944 = vmatmul.mubr.msk.bf16.gmra.mrb[164].mxu1 %vm9264_vm8, %v24980_v10 }
 0x6ab   :  { %14947 = vmatprep.mubr.msk.bf16.mxu1 %vm9264_vm8, %v24981_v45 }
 0x6b2   :  { %14948 = vmatmul.mubr.msk.bf16.gmra.mrb[168].mxu1 %vm9264_vm8, %v13577_v59 }
 0x6b3   :  { %14957 = vmatprep.mubr.msk.bf16.mxu1 %vm9264_vm8, %v24884_v26  ;;  %v13578_v26 = vpack.c.bf16 %v8897_v1, %v22912_v32 }
 0x6ba   :  { %14958 = vmatmul.mubr.msk.bf16.vlgmr.msra.gmra.mrb[108].mxu1 %vm9264_vm8, %v24890_v47  ;;  %v8619_v47 = vsel %vm8595_vm5, %v24929_v9, %v6816_v16  ;;  %v7417_v9 = vpop.permute.xlu1 %7416 }
 0x6bb   :  { %14961 = vmatprep.mubr.msk.bf16.mxu1 %vm9264_vm8, %v22749_v51  ;;  %v8716_v41 = vsel %vm8692_vm6, %v8619_v47, %v7393_v29  ;;  %v7970_v51 = vpop.permute.xlu0 %7969 }
 0x6bc   :  { %v8813_v32 = vsel %vm8789_vm7, %v8716_v41, %v7970_v51 }
 0x6bd   :  { %v8909_v49 = vsel %vm2071_vm0, %v8813_v32, %v8354_v0 }
 0x6be   :  { %v8378_v4 = vpop.permute.xlu1 %8377 }
 0x6bf   :  { %v6840_v44 = vpop.permute.xlu0 %6839 }
 0x6c2   :  { %14962 = vmatmul.mubr.msk.bf16.gmra.mrb[112].mxu1 %vm9264_vm8, %v13578_v26  ;;  %v7441_v61 = vpop.permute.xlu1 %7440 }
 0x6c3   :  { %14965 = vmatprep.mubr.msk.bf16.mxu1 %vm9264_vm8, %v24896_v25  ;;  %v13579_v25 = vpack.c.bf16 %v8909_v49, %v22930_v33 }
 0x6c6   :  { %v8402_v27 = vpop.permute.xlu1 %8401 }
 0x6ca   :  { %14966 = vmatmul.mubr.msk.bf16.gmra.mrb[116].mxu1 %vm9264_vm8, %v24902_v23  ;;  %v8631_v23 = vsel %vm8595_vm5, %v24983_v18, %v6840_v44  ;;  %v16317_v18 = vld [vmem:[%s23859_s5 + $0x40] sm:$0xff]  }
 0x6cb   :  { %14969 = vmatprep.mubr.msk.bf16.mxu1 %vm9264_vm8, %v22776_v11  ;;  %v8728_v42 = vsel %vm8692_vm6, %v8631_v23, %v7417_v9  ;;  %v7994_v11 = vpop.permute.xlu0 %7993  ;;  %14051 = vmatprep.subr.bf16.mxu1 %v16317_v18 }
 0x6cc   :  { %v8825_v33 = vsel %vm8789_vm7, %v8728_v42, %v7994_v11 }
 0x6cd   :  { %v8921_v53 = vsel %vm2071_vm0, %v8825_v33, %v8378_v4  ;;  %v16318_v4 = vld [vmem:[%s23859_s5] sm:$0xff]  }
 0x6ce   :  { %14052 = vmatpush3.bf16.msra.mxu1 %v16318_v4 }
 0x6cf   :  { %v6864_v39 = vpop.permute.xlu0 %6863 }
 0x6d2   :  { %14970 = vmatmul.mubr.msk.bf16.gmra.mrb[120].mxu1 %vm9264_vm8, %v13579_v25 }
 0x6d3   :  { %14973 = vmatprep.mubr.msk.bf16.mxu1 %vm9264_vm8, %v24906_v14  ;;  %v13580_v14 = vpack.c.bf16 %v8921_v53, %v22946_v37  ;;  %v16319_v53 = vld [vmem:[%s23859_s5 + $0x48] sm:$0xff]  }
 0x6d4   :  { %14053 = vmatprep.subr.bf16.mxu1 %v16319_v53 }
 0x6da   :  { %14974 = vmatmul.mubr.msk.bf16.gmra.mrb[124].mxu1 %vm9264_vm8, %v24911_v30  ;;  %v8643_v30 = vsel %vm8595_vm5, %v24936_v56, %v6864_v39  ;;  %v7465_v56 = vpop.permute.xlu1 %7464 }
 0x6db   :  { %14977 = vmatprep.mubr.msk.bf16.mxu1 %vm9264_vm8, %v22795_v58  ;;  %v8740_v10 = vsel %vm8692_vm6, %v8643_v30, %v7441_v61  ;;  %v8018_v58 = vpop.permute.xlu0 %8017 }
 0x6dc   :  { %v8837_v37 = vsel %vm8789_vm7, %v8740_v10, %v8018_v58  ;;  %v16321_v58 = vld [vmem:[%s23859_s5 + $0x50] sm:$0xff]  }
 0x6dd   :  { %v8933_v45 = vsel %vm2071_vm0, %v8837_v37, %v8402_v27  ;;  %v16322_v37 = vld [vmem:[%s23859_s5 + $0x10] sm:$0xff]  }
 0x6de   :  { %v8426_v62 = vpop.permute.xlu1 %8425 }
 0x6df   :  { %v6888_v5 = vpop.permute.xlu0 %6887 }
 0x6e2   :  { %14978 = vmatmul.mubr.msk.bf16.gmra.mrb[128].mxu1 %vm9264_vm8, %v13580_v14  ;;  %v16320_v14 = vld [vmem:[%s23859_s5 + $0x8] sm:$0xff]  }
 0x6e3   :  { %14981 = vmatprep.mubr.msk.bf16.mxu1 %vm9264_vm8, %v24919_v2  ;;  %v13581_v2 = vpack.c.bf16 %v8933_v45, %v22962_v19  ;;  %14054 = vmatpush3.bf16.msra.mxu1 %v16320_v14 }
 0x6e4   :  { %14055 = vmatprep.subr.bf16.mxu1 %v16321_v58 }
 0x6e7   :  { %14056 = vmatpush3.bf16.msra.mxu1 %v16322_v37 }
 0x6ea   :  { %14982 = vmatmul.mubr.msk.bf16.gmra.mrb[132].mxu1 %vm9264_vm8, %v24924_v21  ;;  %v8655_v21 = vsel %vm8595_vm5, %v24938_v63, %v6888_v5  ;;  %v7489_v63 = vpop.permute.xlu1 %7488 }
 0x6eb   :  { %14985 = vmatprep.mubr.msk.bf16.mxu1 %vm9264_vm8, %v22814_v40  ;;  %v8752_v59 = vsel %vm8692_vm6, %v8655_v21, %v7465_v56  ;;  %v8042_v40 = vpop.permute.xlu0 %8041 }
 0x6ec   :  { %v8849_v19 = vsel %vm8789_vm7, %v8752_v59, %v8042_v40 }
 0x6ed   :  { %v8945_v54 = vsel %vm2071_vm0, %v8849_v19, %v8426_v62 }
 0x6ee   :  { %v8450_v57 = vpop.permute.xlu1 %8449 }
 0x6ef   :  { %v6912_v13 = vpop.permute.xlu0 %6911 }
 0x6f2   :  { %14986 = vmatmul.mubr.msk.bf16.gmra.mrb[136].mxu1 %vm9264_vm8, %v13581_v2 }
 0x6f3   :  { %14989 = vmatprep.mubr.msk.bf16.mxu1 %vm9264_vm8, %v22580_v38  ;;  %v13582_v38 = vpack.c.bf16 %v8945_v54, %v22978_v55 }
 0x6fa   :  { %14990 = vmatmul.mubr.msk.bf16.gmra.mrb[140].mxu1 %vm9264_vm8, %v22603_v60  ;;  %v8667_v60 = vsel %vm8595_vm5, %v24940_v50, %v6912_v13  ;;  %v7513_v50 = vpop.permute.xlu1 %7512 }
 0x6fb   :  { %14993 = vmatprep.mubr.msk.bf16.mxu1 %vm9264_vm8, %v22833_v22  ;;  %v8764_v31 = vsel %vm8692_vm6, %v8667_v60, %v7489_v63  ;;  %v8066_v22 = vpop.permute.xlu0 %8065 }
 0x6fc   :  { %v8861_v55 = vsel %vm8789_vm7, %v8764_v31, %v8066_v22 }
 0x6fd   :  { %v8957_v35 = vsel %vm2071_vm0, %v8861_v55, %v8450_v57 }
 0x6fe   :  { %v8474_v1 = vpop.permute.xlu1 %8473 }
 0x6ff   :  { %v6936_v20 = vpop.permute.xlu0 %6935 }
 0x702   :  { %14994 = vmatmul.mubr.msk.bf16.gmra.mrb[144].mxu1 %vm9264_vm8, %v13582_v38 }
 0x703   :  { %14997 = vmatprep.mubr.msk.bf16.mxu1 %vm9264_vm8, %v21933_v36  ;;  %v13583_v36 = vpack.c.bf16 %v8957_v35, %v22994_v7 }
 0x70a   :  { %14998 = vmatmul.mubr.msk.bf16.gmra.mrb[148].mxu1 %vm9264_vm8, %v21969_v17  ;;  %v8679_v17 = vsel %vm8595_vm5, %v24942_v24, %v6936_v20  ;;  %v7537_v24 = vpop.permute.xlu1 %7536 }
 0x70b   :  { %15001 = vmatprep.mubr.msk.bf16.mxu1 %vm9264_vm8, %v22852_v34  ;;  %v8776_v15 = vsel %vm8692_vm6, %v8679_v17, %v7513_v50  ;;  %v8090_v34 = vpop.permute.xlu0 %8089 }
 0x70c   :  { %v8873_v7 = vsel %vm8789_vm7, %v8776_v15, %v8090_v34 }
 0x70d   :  { %v8969_v26 = vsel %vm2071_vm0, %v8873_v7, %v8474_v1  ;;  %v23156_v1 = vld [vmem:[%s23860_s4] ss:$0 sm:$0xff] }
 0x70e   :  { %v8498_v47 = vpop.permute.xlu1 %8497 }
 0x70f   :  { %v6960_v29 = vpop.permute.xlu0 %6959 }
 0x712   :  { %15002 = vmatmul.mubr.msk.bf16.gmra.mrb[152].mxu1 %vm9264_vm8, %v13583_v36 }
 0x713   :  { %15005 = vmatprep.mubr.msk.bf16.mxu1 %vm9264_vm8, %v22200_v46  ;;  %v13584_v46 = vpack.c.bf16 %v8969_v26, %v23010_v8 }
 0x71a   :  { %15006 = vmatmul.mubr.msk.bf16.gmra.mrb[156].mxu1 %vm9264_vm8, %v22240_v43  ;;  %v8691_v43 = vsel %vm8595_vm5, %v24944_v3, %v6960_v29  ;;  %vm12183_vm5 = vcmask 916480  }
 0x71b   :  { %15009 = vmatprep.mubr.msk.bf16.mxu1 %vm9264_vm8, %v22871_v6  ;;  %v8788_v16 = vsel %vm8692_vm6, %v8691_v43, %v7537_v24  ;;  %v8114_v6 = vpop.permute.xlu0 %8113 }
 0x71c   :  { %v8885_v8 = vsel %vm8789_vm7, %v8788_v16, %v8114_v6 }
 0x71d   :  { %v8981_v41 = vsel %vm2071_vm0, %v8885_v8, %v8498_v47  ;;  %v16323_v8 = vld [vmem:[%s23859_s5 + $0x58] sm:$0xff]  }
 0x71e   :  { %14057 = vmatprep.subr.bf16.mxu1 %v16323_v8 }
 0x722   :  { %15010 = vmatmul.mubr.msk.bf16.gmra.mrb[160].mxu1 %vm9264_vm8, %v13584_v46 }
 0x723   :  { %15013 = vmatprep.mubr.msk.bf16.mxu1 %vm9264_vm8, %v22702_v12  ;;  %v13585_v12 = vpack.c.bf16 %v8981_v41, %v23026_v48 }
 0x72a   :  { %15014 = vmatmul.mubr.msk.bf16.gmra.mrb[164].mxu1 %vm9264_vm8, %v22322_v52 }
 0x72b   :  { %15017 = vmatprep.mubr.msk.bf16.mxu1 %vm9264_vm8, %v22890_v28 }
 0x732   :  { %15018 = vmatmul.mubr.msk.bf16.gmra.mrb[168].mxu1 %vm9264_vm8, %v13585_v12 }
 0x78d   :  { %v14959_v0 = vpop.f32.mrb[108].mxu1 }
 0x78e   :  { %11382 = vst [vmem:[#allocation2 + $0x10] sm:$0xff] %v14959_v0  ;;  %v11061_v3 = vpop.f32.mrb[109].mxu1 }
 0x78f   :  { %11380 = vst [vmem:[#allocation2] sm:$0xff] %v11061_v3  ;;  %v14960_v51 = vpop.f32.mrb[110].mxu1 }
 0x790   :  { %11383 = vst [vmem:[#allocation2 + $0x18] sm:$0xff] %v14960_v51  ;;  %v11064_v32 = vpop.f32.mrb[111].mxu1 }
 0x791   :  { %11381 = vst [vmem:[#allocation2 + $0x8] sm:$0xff] %v11064_v32 }
 0x795   :  { %v14963_v52 = vpop.f32.mrb[112].mxu1  ;;  %v11448_v45 = vld [vmem:[#allocation2 + $0x10] ss:$2 sm:$0xf] }
 0x796   :  { %11386 = vst [vmem:[#allocation2 + $0x30] sm:$0xff] %v14963_v52  ;;  %v11077_v49 = vpop.f32.mrb[113].mxu1  ;;  %v11576_v2 = vld [vmem:[#allocation2 + $0x11] ss:$2 sm:$0xf] }
 0x797   :  { %11384 = vst [vmem:[#allocation2 + $0x20] sm:$0xff] %v11077_v49  ;;  %v14964_v28 = vpop.f32.mrb[114].mxu1  ;;  %v11450_v30 = vld [vmem:[#allocation2 + $0x18] ss:$2 sm:$0xf]  ;;  %v11701_v57 = vmax.f32 %v11448_v45, %v11576_v2 }
 0x798   :  { %11387 = vst [vmem:[#allocation2 + $0x38] sm:$0xff] %v14964_v28  ;;  %v11080_v25 = vpop.f32.mrb[115].mxu1  ;;  %v11578_v56 = vld [vmem:[#allocation2 + $0x19] ss:$2 sm:$0xf] }
 0x799   :  { %11385 = vst [vmem:[#allocation2 + $0x28] sm:$0xff] %v11080_v25  ;;  %v11446_v21 = vld [vmem:[#allocation2 + $0x8] ss:$2 sm:$0xf]  ;;  %v11702_v38 = vmax.f32 %v11450_v30, %v11578_v56  ;;  %v16324_v28 = vld [vmem:[%s23859_s5 + $0x18] sm:$0xff]   ;;  %v16325_v25 = vld [vmem:[%s23859_s5 + $0x60] sm:$0xff]  }
 0x79a   :  { %v11574_v59 = vld [vmem:[#allocation2 + $0x9] ss:$2 sm:$0xf]  ;;  %v11444_v62 = vld [vmem:[#allocation2] ss:$2 sm:$0xf]  ;;  %14058 = vmatpush3.bf16.msra.mxu1 %v16324_v28 }
 0x79b   :  { %v11572_v40 = vld [vmem:[#allocation2 + $0x1] ss:$2 sm:$0xf]  ;;  %v11700_v22 = vmax.f32 %v11446_v21, %v11574_v59  ;;  %v11764_v20 = vmax.f32 %v11701_v57, %v11702_v38  ;;  %14059 = vmatprep.subr.bf16.mxu1 %v16325_v25 }
 0x79c   :  { %v11699_v50 = vmax.f32 %v11444_v62, %v11572_v40 }
 0x79d   :  { %v14967_v9 = vpop.f32.mrb[116].mxu1  ;;  %v11456_v63 = vld [vmem:[#allocation2 + $0x30] ss:$2 sm:$0xf]  ;;  %v11803_v49 = vadd.f32 %v23156_v1, %v11764_v20 }
 0x79e   :  { %11390 = vst [vmem:[#allocation2 + $0x50] sm:$0xff] %v14967_v9  ;;  %v11093_v48 = vpop.f32.mrb[117].mxu1  ;;  %v11584_v13 = vld [vmem:[#allocation2 + $0x31] ss:$2 sm:$0xf]  ;;  %v11763_v24 = vmax.f32 %v11699_v50, %v11700_v22 }
 0x79f   :  { %11388 = vst [vmem:[#allocation2 + $0x40] sm:$0xff] %v11093_v48  ;;  %v14968_v44 = vpop.f32.mrb[118].mxu1  ;;  %v11458_v19 = vld [vmem:[#allocation2 + $0x38] ss:$2 sm:$0xf]  ;;  %v11705_v17 = vmax.f32 %v11456_v63, %v11584_v13 }
 0x7a0   :  { %11391 = vst [vmem:[#allocation2 + $0x58] sm:$0xff] %v14968_v44  ;;  %v11096_v23 = vpop.f32.mrb[119].mxu1  ;;  %v11586_v54 = vld [vmem:[#allocation2 + $0x39] ss:$2 sm:$0xf] }
 0x7a1   :  { %11389 = vst [vmem:[#allocation2 + $0x48] sm:$0xff] %v11096_v23  ;;  %v11454_v60 = vld [vmem:[#allocation2 + $0x28] ss:$2 sm:$0xf]  ;;  %v11706_v55 = vmax.f32 %v11458_v19, %v11586_v54 }
 0x7a2   :  { %v11582_v31 = vld [vmem:[#allocation2 + $0x29] ss:$2 sm:$0xf]  ;;  %v11452_v35 = vld [vmem:[#allocation2 + $0x20] ss:$2 sm:$0xf] }
 0x7a3   :  { %v11580_v36 = vld [vmem:[#allocation2 + $0x21] ss:$2 sm:$0xf]  ;;  %v11704_v15 = vmax.f32 %v11454_v60, %v11582_v31  ;;  %v11766_v43 = vmax.f32 %v11705_v17, %v11706_v55 }
 0x7a4   :  { %v11703_v29 = vmax.f32 %v11452_v35, %v11580_v36 }
 0x7a5   :  { %v14971_v42 = vpop.f32.mrb[120].mxu1  ;;  %v11464_v34 = vld [vmem:[#allocation2 + $0x50] ss:$2 sm:$0xf]  ;;  %v11805_v4 = vadd.f32 %v23156_v1, %v11766_v43 }
 0x7a6   :  { %11394 = vst [vmem:[#allocation2 + $0x70] sm:$0xff] %v14971_v42  ;;  %v11109_v11 = vpop.f32.mrb[121].mxu1  ;;  %v11592_v7 = vld [vmem:[#allocation2 + $0x51] ss:$2 sm:$0xf]  ;;  %v11765_v12 = vmax.f32 %v11703_v29, %v11704_v15 }
 0x7a7   :  { %11392 = vst [vmem:[#allocation2 + $0x60] sm:$0xff] %v11109_v11  ;;  %v14972_v33 = vpop.f32.mrb[122].mxu1  ;;  %v11466_v26 = vld [vmem:[#allocation2 + $0x58] ss:$2 sm:$0xf]  ;;  %v11709_v44 = vmax.f32 %v11464_v34, %v11592_v7  ;;  %v11802_v11 = vadd.f32 %v23156_v1, %v11763_v24  ;;  %v23179_v2 = vmax.f32 %v11805_v4, 0.0 }
 0x7a8   :  { %11395 = vst [vmem:[#allocation2 + $0x78] sm:$0xff] %v14972_v33  ;;  %v11112_v61 = vpop.f32.mrb[123].mxu1  ;;  %v11594_v46 = vld [vmem:[#allocation2 + $0x59] ss:$2 sm:$0xf]  ;;  %v16326_v33 = vld [vmem:[%s23859_s5 + $0x20] sm:$0xff]  }
 0x7a9   :  { %11393 = vst [vmem:[#allocation2 + $0x68] sm:$0xff] %v11112_v61  ;;  %v11462_v16 = vld [vmem:[#allocation2 + $0x48] ss:$2 sm:$0xf]  ;;  %v11710_v51 = vmax.f32 %v11466_v26, %v11594_v46  ;;  %v23181_v56 = vmax.f32 %v11802_v11, 0.0  ;;  %14060 = vmatpush3.bf16.msra.mxu1 %v16326_v33  ;;  %v12122_v36 = vrot.slane %v23179_v2, 1 }
 0x7aa   :  { %v11590_v47 = vld [vmem:[#allocation2 + $0x49] ss:$2 sm:$0xf]  ;;  %v11460_v0 = vld [vmem:[#allocation2 + $0x40] ss:$2 sm:$0xf] }
 0x7ab   :  { %v11588_v3 = vld [vmem:[#allocation2 + $0x41] ss:$2 sm:$0xf]  ;;  %v11708_v53 = vmax.f32 %v11462_v16, %v11590_v47  ;;  %v16327_v61 = vld [vmem:[%s23859_s5 + $0x68] sm:$0xff]   ;;  %v11768_v30 = vmax.f32 %v11709_v44, %v11710_v51  ;;  %v11913_v22 = vrot.slane %v23181_v56, 2  ;;  %v11896_v55 = vrot.slane %v23181_v56, 1 }
 0x7ac   :  { %v11707_v58 = vmax.f32 %v11460_v0, %v11588_v3  ;;  %14061 = vmatprep.subr.bf16.mxu1 %v16327_v61  ;;  %v12139_v20 = vrot.slane %v23179_v2, 2  ;;  %v11930_v17 = vrot.slane %v23181_v56, 3  ;;  %v12156_v26 = vrot.slane %v23179_v2, 3  ;;  %v16329_v3 = vld [vmem:[%s23859_s5 + $0x70] sm:$0xff]  }
 0x7ad   :  { %v14975_v39 = vpop.f32.mrb[124].mxu1  ;;  %v11472_v18 = vld [vmem:[#allocation2 + $0x70] ss:$2 sm:$0xf]  ;;  %v11807_v19 = vadd.f32 %v23156_v1, %v11768_v30 }
 0x7ae   :  { %11398 = vst [vmem:[#allocation2 + $0x90] sm:$0xff] %v14975_v39  ;;  %v11125_v10 = vpop.f32.mrb[125].mxu1  ;;  %v11600_v23 = vld [vmem:[#allocation2 + $0x71] ss:$2 sm:$0xf]  ;;  %v11767_v21 = vmax.f32 %v11707_v58, %v11708_v53 }
 0x7af   :  { %11396 = vst [vmem:[#allocation2 + $0x80] sm:$0xff] %v11125_v10  ;;  %v14976_v27 = vpop.f32.mrb[126].mxu1  ;;  %v11474_v32 = vld [vmem:[#allocation2 + $0x78] ss:$2 sm:$0xf]  ;;  %v23176_v10 = vmax.f32 %v11803_v49, 0.0  ;;  %v11713_v59 = vmax.f32 %v11472_v18, %v11600_v23 }
 0x7b0   :  { %11399 = vst [vmem:[#allocation2 + $0x98] sm:$0xff] %v14976_v27  ;;  %v11128_v5 = vpop.f32.mrb[127].mxu1  ;;  %v11602_v9 = vld [vmem:[#allocation2 + $0x79] ss:$2 sm:$0xf]  ;;  %v11804_v27 = vadd.f32 %v23156_v1, %v11765_v12  ;;  %v11806_v50 = vadd.f32 %v23156_v1, %v11767_v21  ;;  %v23198_v34 = vmax.f32 %v11807_v19, 0.0 }
 0x7b1   :  { %11397 = vst [vmem:[#allocation2 + $0x88] sm:$0xff] %v11128_v5  ;;  %v11714_v37 = vmax.f32 %v11474_v32, %v11602_v9  ;;  %v16328_v5 = vld [vmem:[%s23859_s5 + $0x28] sm:$0xff]   ;;  %v11972_v54 = vrot.slane %v23176_v10, 1  ;;  %v11989_v63 = vrot.slane %v23176_v10, 2  ;;  %v12006_v35 = vrot.slane %v23176_v10, 3  ;;  %v16330_v4 = vld [vmem:[%s23859_s5 + $0x30] sm:$0xff]  }
 0x7b2   :  { %v11470_v62 = vld [vmem:[#allocation2 + $0x68] ss:$2 sm:$0xf]  ;;  %v11598_v40 = vld [vmem:[#allocation2 + $0x69] ss:$2 sm:$0xf]  ;;  %14062 = vmatpush3.bf16.msra.mxu1 %v16328_v5 }
 0x7b3   :  { %v23188_v38 = vmax.f32 %v11804_v27, 0.0  ;;  %v11468_v13 = vld [vmem:[#allocation2 + $0x60] ss:$2 sm:$0xf]  ;;  %v11770_v31 = vmax.f32 %v11713_v59, %v11714_v37  ;;  %v11712_v57 = vmax.f32 %v11470_v62, %v11598_v40  ;;  %v23208_v32 = vmax.f32 %v11806_v50, 0.0  ;;  %14063 = vmatprep.subr.bf16.mxu1 %v16329_v3 }
 0x7b4   :  { %v11596_v60 = vld [vmem:[#allocation2 + $0x61] ss:$2 sm:$0xf]  ;;  %v11955_v44 = vrot.slane %v23198_v34, 7  ;;  %v12007_v21 = vrot.slane %v23198_v34, 2 }
 0x7b5   :  { %v14979_v6 = vpop.f32.mrb[128].mxu1  ;;  %v11711_v15 = vmax.f32 %v11468_v13, %v11596_v60  ;;  %v12063_v7 = vrot.slane %v23188_v38, 2  ;;  %v11480_v46 = vld [vmem:[#allocation2 + $0x90] ss:$2 sm:$0xf]  ;;  %v11809_v16 = vadd.f32 %v23156_v1, %v11770_v31  ;;  %v12046_v12 = vrot.slane %v23188_v38, 1 }
 0x7b6   :  { %11402 = vst [vmem:[#allocation2 + $0xb0] sm:$0xff] %v14979_v6  ;;  %v11141_v41 = vpop.f32.mrb[129].mxu1  ;;  %v11608_v24 = vld [vmem:[#allocation2 + $0x91] ss:$2 sm:$0xf]  ;;  %v12080_v0 = vrot.slane %v23188_v38, 3  ;;  %14064 = vmatpush3.bf16.msra.mxu1 %v16330_v4 }
 0x7b7   :  { %11400 = vst [vmem:[#allocation2 + $0xa0] sm:$0xff] %v11141_v41  ;;  %v14980_v52 = vpop.f32.mrb[130].mxu1  ;;  %v11482_v29 = vld [vmem:[#allocation2 + $0x98] ss:$2 sm:$0xf]  ;;  %v11769_v47 = vmax.f32 %v11711_v15, %v11712_v57  ;;  %v23211_v23 = vmax.f32 %v11809_v16, 0.0  ;;  %v11717_v11 = vmax.f32 %v11480_v46, %v11608_v24 }
 0x7b8   :  { %11403 = vst [vmem:[#allocation2 + $0xb8] sm:$0xff] %v14980_v52  ;;  %v11144_v48 = vpop.f32.mrb[131].mxu1  ;;  %v11610_v43 = vld [vmem:[#allocation2 + $0x99] ss:$2 sm:$0xf]  ;;  %v11914_v13 = vrot.slane %v23208_v32, 1 }
 0x7b9   :  { %11401 = vst [vmem:[#allocation2 + $0xa8] sm:$0xff] %v11144_v48  ;;  %v11478_v6 = vld [vmem:[#allocation2 + $0x88] ss:$2 sm:$0xf]  ;;  %v11718_v28 = vmax.f32 %v11482_v29, %v11610_v43  ;;  %v11931_v60 = vrot.slane %v23208_v32, 2  ;;  %v12105_v31 = vrot.slane %v23211_v23, 7 }
 0x7ba   :  { %v11606_v8 = vld [vmem:[#allocation2 + $0x89] ss:$2 sm:$0xf]  ;;  %v11476_v52 = vld [vmem:[#allocation2 + $0x80] ss:$2 sm:$0xf] }
 0x7bb   :  { %v11604_v49 = vld [vmem:[#allocation2 + $0x81] ss:$2 sm:$0xf]  ;;  %v11716_v37 = vmax.f32 %v11478_v6, %v11606_v8  ;;  %v11772_v5 = vmax.f32 %v11717_v11, %v11718_v28  ;;  %v12140_v15 = vrot.slane %v23211_v23, 1 }
 0x7bc   :  { %v11715_v19 = vmax.f32 %v11476_v52, %v11604_v49 }
 0x7bd   :  { %v14983_v42 = vpop.f32.mrb[132].mxu1  ;;  %v11488_v33 = vld [vmem:[#allocation2 + $0xb0] ss:$2 sm:$0xf]  ;;  %v11811_v6 = vadd.f32 %v23156_v1, %v11772_v5 }
 0x7be   :  { %11406 = vst [vmem:[#allocation2 + $0xd0] sm:$0xff] %v14983_v42  ;;  %v11157_v14 = vpop.f32.mrb[133].mxu1  ;;  %v11990_v42 = vrot.slane %v23198_v34, 1  ;;  %v11616_v53 = vld [vmem:[#allocation2 + $0xb1] ss:$2 sm:$0xf]  ;;  %v11771_v43 = vmax.f32 %v11715_v19, %v11716_v37 }
 0x7bf   :  { %11404 = vst [vmem:[#allocation2 + $0xc0] sm:$0xff] %v11157_v14  ;;  %v14984_v39 = vpop.f32.mrb[134].mxu1  ;;  %v11490_v25 = vld [vmem:[#allocation2 + $0xb8] ss:$2 sm:$0xf]  ;;  %v11721_v46 = vmax.f32 %v11488_v33, %v11616_v53  ;;  %v23240_v33 = vsel %vm11875_vm9, %v11955_v44, %v23176_v10  ;;  %v23273_v10 = vsel %vm11875_vm9, %v11931_v60, %v11930_v17 }
 0x7c0   :  { %11407 = vst [vmem:[#allocation2 + $0xd8] sm:$0xff] %v14984_v39  ;;  %v11160_v45 = vpop.f32.mrb[135].mxu1  ;;  %v11618_v9 = vld [vmem:[#allocation2 + $0xb9] ss:$2 sm:$0xf]  ;;  %v11808_v39 = vadd.f32 %v23156_v1, %v11769_v47  ;;  %v11810_v53 = vadd.f32 %v23156_v1, %v11771_v43 }
 0x7c1   :  { %11405 = vst [vmem:[#allocation2 + $0xc8] sm:$0xff] %v11160_v45  ;;  %v11486_v14 = vld [vmem:[#allocation2 + $0xa8] ss:$2 sm:$0xf]  ;;  %v11722_v62 = vmax.f32 %v11490_v25, %v11618_v9  ;;  %v23230_v25 = vsel %vm11875_vm9, %v23198_v34, %v11972_v54  ;;  %v23246_v54 = vsel %vm11875_vm9, %v11990_v42, %v11989_v63  ;;  %v23261_v63 = vsel %vm11875_vm9, %v12007_v21, %v12006_v35 }
 0x7c2   :  { %v11484_v30 = vld [vmem:[#allocation2 + $0xa0] ss:$2 sm:$0xf]  ;;  %v11614_v27 = vld [vmem:[#allocation2 + $0xa9] ss:$2 sm:$0xf] }
 0x7c3   :  { %v11612_v59 = vld [vmem:[#allocation2 + $0xa1] ss:$2 sm:$0xf]  ;;  %v11720_v57 = vmax.f32 %v11486_v14, %v11614_v27  ;;  %v23222_v50 = vmax.f32 %v11808_v39, 0.0  ;;  %v23248_v14 = vmax.f32 %v11811_v6, 0.0  ;;  %v12157_v35 = vrot.slane %v23211_v23, 2 }
 0x7c4   :  { %v11719_v8 = vmax.f32 %v11484_v30, %v11612_v59 }
 0x7c5   :  { %v14987_v41 = vpop.f32.mrb[136].mxu1  ;;  %v11624_v3 = vld [vmem:[#allocation2 + $0xd1] ss:$2 sm:$0xf]  ;;  %v11974_v43 = vrot.slane %v23248_v14, 7 }
 0x7c6   :  { %11410 = vst [vmem:[#allocation2 + $0xf0] sm:$0xff] %v14987_v41  ;;  %v11173_v51 = vpop.f32.mrb[137].mxu1  ;;  %v11496_v41 = vld [vmem:[#allocation2 + $0xd0] ss:$2 sm:$0xf]  ;;  %v11773_v9 = vmax.f32 %v11719_v8, %v11720_v57 }
 0x7c7   :  { %11408 = vst [vmem:[#allocation2 + $0xe0] sm:$0xff] %v11173_v51  ;;  %v14988_v48 = vpop.f32.mrb[138].mxu1  ;;  %v11498_v24 = vld [vmem:[#allocation2 + $0xd8] ss:$2 sm:$0xf]  ;;  %v11774_v51 = vmax.f32 %v11721_v46, %v11722_v62  ;;  %v11725_v34 = vmax.f32 %v11496_v41, %v11624_v3  ;;  %v23290_v41 = vsel %vm11875_vm9, %v12105_v31, %v23179_v2  ;;  %v12009_v3 = vrot.slane %v23248_v14, 1 }
 0x7c8   :  { %11411 = vst [vmem:[#allocation2 + $0xf8] sm:$0xff] %v14988_v48  ;;  %v11176_v18 = vpop.f32.mrb[139].mxu1  ;;  %v11626_v29 = vld [vmem:[#allocation2 + $0xd9] ss:$2 sm:$0xf]  ;;  %v23236_v48 = vsel %vm11875_vm9, %v23208_v32, %v11896_v55  ;;  %v12064_v55 = vrot.slane %v23222_v50, 1  ;;  %v23307_v31 = vsel %vm11875_vm9, %v12140_v15, %v12139_v20 }
 0x7c9   :  { %11409 = vst [vmem:[#allocation2 + $0xe8] sm:$0xff] %v11176_v18  ;;  %v11494_v16 = vld [vmem:[#allocation2 + $0xc8] ss:$2 sm:$0xf]  ;;  %v11726_v28 = vmax.f32 %v11498_v24, %v11626_v29  ;;  %v11813_v44 = vadd.f32 %v23156_v1, %v11774_v51 }
 0x7ca   :  { %v11622_v47 = vld [vmem:[#allocation2 + $0xc9] ss:$2 sm:$0xf]  ;;  %v11492_v52 = vld [vmem:[#allocation2 + $0xc0] ss:$2 sm:$0xf]  ;;  %v23317_v20 = vsel %vm11875_vm9, %v12064_v55, %v12063_v7 }
 0x7cb   :  { %v11620_v49 = vld [vmem:[#allocation2 + $0xc1] ss:$2 sm:$0xf]  ;;  %v11724_v18 = vmax.f32 %v11494_v16, %v11622_v47  ;;  %v11776_v5 = vmax.f32 %v11725_v34, %v11726_v28  ;;  %v23281_v16 = vsel %vm11875_vm9, %v23211_v23, %v12122_v36  ;;  %v11957_v47 = vrot.slane %v23248_v14, 6 }
 0x7cc   :  { %v11723_v39 = vmax.f32 %v11492_v52, %v11620_v49  ;;  %v23284_v8 = vmax.f32 %v11813_v44, 0.0  ;;  %v23296_v36 = vsel %vm11875_vm9, %v23222_v50, %v12046_v12 }
 0x7cd   :  { %v14991_v61 = vpop.f32.mrb[140].mxu1  ;;  %v11504_v21 = vld [vmem:[#allocation2 + $0xf0] ss:$2 sm:$0xf]  ;;  %v11815_v49 = vadd.f32 %v23156_v1, %v11776_v5 }
 0x7ce   :  { %11414 = vst [vmem:[#allocation2 + $0x110] sm:$0xff] %v14991_v61  ;;  %v11189_v58 = vpop.f32.mrb[141].mxu1  ;;  %v12081_v61 = vrot.slane %v23222_v50, 2  ;;  %v11632_v46 = vld [vmem:[#allocation2 + $0xf1] ss:$2 sm:$0xf] }
 0x7cf   :  { %11412 = vst [vmem:[#allocation2 + $0x100] sm:$0xff] %v11189_v58  ;;  %v14992_v45 = vpop.f32.mrb[142].mxu1  ;;  %v23256_v58 = vsel %vm11875_vm9, %v11914_v13, %v11913_v22  ;;  %v23263_v42 = vld [vmem:[#allocation2 + $0xf8] ss:$2 sm:$0xf]  ;;  %v11775_v22 = vmax.f32 %v11723_v39, %v11724_v18  ;;  %v23268_v13 = vmax.f32 %v11810_v53, 0.0 }
 0x7d0   :  { %11415 = vst [vmem:[#allocation2 + $0x118] sm:$0xff] %v14992_v45  ;;  %v11192_v40 = vpop.f32.mrb[143].mxu1  ;;  %v23265_v37 = vld [vmem:[#allocation2 + $0xf9] ss:$2 sm:$0xf]  ;;  %v23323_v15 = vsel %vm11875_vm9, %v12081_v61, %v12080_v0  ;;  %v23328_v55 = vmax.f32 %v11815_v49, 0.0 }
 0x7d1   :  { %11413 = vst [vmem:[#allocation2 + $0x108] sm:$0xff] %v11192_v40  ;;  %v11812_v40 = vadd.f32 %v23156_v1, %v11773_v9  ;;  %v11502_v19 = vld [vmem:[#allocation2 + $0xe8] ss:$2 sm:$0xf]  ;;  %v11874_v9 = vrot.slane %v23208_v32, 7  ;;  %v11730_v12 = vmax.f32 %v23263_v42, %v23265_v37  ;;  %v11898_v32 = vrot.slane %v23268_v13, 7 }
 0x7d2   :  { %v11630_v24 = vld [vmem:[#allocation2 + $0xe9] ss:$2 sm:$0xf]  ;;  %v11500_v17 = vld [vmem:[#allocation2 + $0xe0] ss:$2 sm:$0xf] }
 0x7d3   :  { %v11628_v51 = vld [vmem:[#allocation2 + $0xe1] ss:$2 sm:$0xf]  ;;  %v23300_v28 = vmax.f32 %v11812_v40, 0.0  ;;  %v11728_v18 = vmax.f32 %v11502_v19, %v11630_v24  ;;  %v11933_v5 = vrot.slane %v23268_v13, 1  ;;  %v11876_v61 = vsel %vm11875_vm9, %v11874_v9, %v23181_v56 }
 0x7d4   :  { %v11727_v44 = vmax.f32 %v11500_v17, %v11628_v51  ;;  %v23351_v51 = vsel %vm11878_vm10, %v11974_v43, %v23230_v25  ;;  %v12159_v43 = vrot.slane %v23284_v8, 1  ;;  %v11976_v9 = vrot.slane %v23328_v55, 6 }
 0x7d5   :  { %v14995_v45 = vpop.f32.mrb[144].mxu1  ;;  %v11512_v7 = vld [vmem:[#allocation2 + $0x110] ss:$2 sm:$0xf]  ;;  %v12048_v0 = vrot.slane %v23300_v28, 7  ;;  %v12083_v25 = vrot.slane %v23300_v28, 1 }
 0x7d6   :  { %v11508_v4 = vld [vmem:[#allocation2 + $0x100] ss:$2 sm:$0xf]  ;;  %v11636_v11 = vld [vmem:[#allocation2 + $0x101] ss:$2 sm:$0xf]  ;;  %v11777_v19 = vmax.f32 %v11727_v44, %v11728_v18  ;;  %v23377_v18 = vsel %vm11878_vm10, %v11898_v32, %v23236_v48  ;;  %v23389_v32 = vsel %vm11878_vm10, %v23300_v28, %v23317_v20 }
 0x7d7   :  { %v11731_v59 = vmax.f32 %v11508_v4, %v11636_v11  ;;  %11418 = vst [vmem:[#allocation2 + $0x130] sm:$0xff] %v14995_v45  ;;  %v11205_v57 = vpop.f32.mrb[145].mxu1  ;;  %v11814_v11 = vadd.f32 %v23156_v1, %v11775_v22  ;;  %v11514_v34 = vld [vmem:[#allocation2 + $0x118] ss:$2 sm:$0xf]  ;;  %v12124_v45 = vrot.slane %v23284_v8, 7 }
 0x7d8   :  { %v11510_v30 = vld [vmem:[#allocation2 + $0x108] ss:$2 sm:$0xf]  ;;  %v11638_v27 = vld [vmem:[#allocation2 + $0x109] ss:$2 sm:$0xf] }
 0x7d9   :  { %v11732_v62 = vmax.f32 %v11510_v30, %v11638_v27  ;;  %11416 = vst [vmem:[#allocation2 + $0x120] sm:$0xff] %v11205_v57  ;;  %v14996_v29 = vpop.f32.mrb[146].mxu1  ;;  %v11877_v30 = vrot.slane %v23268_v13, 6  ;;  %v11729_v27 = vmax.f32 %v11504_v21, %v11632_v46  ;;  %v11642_v42 = vld [vmem:[#allocation2 + $0x119] ss:$2 sm:$0xf] }
 0x7da   :  { %11419 = vst [vmem:[#allocation2 + $0x138] sm:$0xff] %v14996_v29  ;;  %v11208_v60 = vpop.f32.mrb[147].mxu1  ;;  %v23334_v57 = vmax.f32 %v11814_v11, 0.0  ;;  %v11734_v24 = vmax.f32 %v11514_v34, %v11642_v42  ;;  %v23341_v29 = vsel %vm11878_vm10, %v23268_v13, %v23256_v58  ;;  %v23359_v58 = vsel %vm11878_vm10, %v12009_v3, %v23261_v63 }
 0x7db   :  { %v11779_v6 = vmax.f32 %v11731_v59, %v11732_v62  ;;  %11417 = vst [vmem:[#allocation2 + $0x128] sm:$0xff] %v11208_v60  ;;  %v12107_v59 = vrot.slane %v23284_v8, 6  ;;  %v11640_v62 = vld [vmem:[#allocation2 + $0x111] ss:$2 sm:$0xf]  ;;  %v11778_v40 = vmax.f32 %v11729_v27, %v11730_v12  ;;  %v11879_v56 = vsel %vm11878_vm10, %v11877_v30, %v11876_v61 }
 0x7dc   :  { %v11733_v13 = vmax.f32 %v11512_v7, %v11640_v62  ;;  %v11816_v3 = vadd.f32 %v23156_v1, %v11777_v19  ;;  %v11880_v2 = vrot.slane %v23334_v57, 5  ;;  %v11959_v12 = vrot.slane %v23328_v55, 5 }
 0x7dd   :  { %v14999_v52 = vpop.f32.mrb[148].mxu1  ;;  %v11818_v53 = vadd.f32 %v23156_v1, %v11779_v6  ;;  %v23346_v6 = vsel %vm11878_vm10, %v23248_v14, %v23246_v54  ;;  %v23366_v54 = vsel %vm11875_vm9, %v12157_v35, %v12156_v26  ;;  %v11993_v30 = vrot.slane %v23328_v55, 7 }
 0x7de   :  { %11422 = vst [vmem:[#allocation2 + $0x150] sm:$0xff] %v14999_v52  ;;  %v11221_v4 = vpop.f32.mrb[149].mxu1  ;;  %v23355_v52 = vsel %vm11878_vm10, %v11957_v47, %v23240_v33  ;;  %v11817_v47 = vadd.f32 %v23156_v1, %v11778_v40  ;;  %v11780_v35 = vmax.f32 %v11733_v13, %v11734_v24  ;;  %v11648_v11 = vld [vmem:[#allocation2 + $0x131] ss:$2 sm:$0xf]  ;;  %v11882_v27 = vsel %vm11881_vm11, %v11880_v2, %v11879_v56 }
 0x7df   :  { %11420 = vst [vmem:[#allocation2 + $0x140] sm:$0xff] %v11221_v4  ;;  %v15000_v39 = vpop.f32.mrb[150].mxu1  ;;  %v23336_v22 = vmax.f32 %v11818_v53, 0.0  ;;  %v11520_v4 = vld [vmem:[#allocation2 + $0x130] ss:$2 sm:$0xf]  ;;  %v23384_v42 = vsel %vm11878_vm10, %v12124_v45, %v23281_v16  ;;  %v23394_v7 = vsel %vm11878_vm10, %v23284_v8, %v23307_v31  ;;  %v11934_v61 = vsel %vm11878_vm10, %v11933_v5, %v23273_v10 }
 0x7e0   :  { %11423 = vst [vmem:[#allocation2 + $0x158] sm:$0xff] %v15000_v39  ;;  %v11224_v37 = vpop.f32.mrb[151].mxu1  ;;  %v11516_v21 = vld [vmem:[#allocation2 + $0x120] ss:$2 sm:$0xf]  ;;  %v23398_v62 = vmax.f32 %v11817_v47, 0.0  ;;  %v23411_v31 = vsel %vm11878_vm10, %v12107_v59, %v23290_v41  ;;  %v23417_v5 = vsel %vm11878_vm10, %v12048_v0, %v23296_v36  ;;  %v23468_v8 = vsel %vm11881_vm11, %v11993_v30, %v23346_v6 }
 0x7e1   :  { %11421 = vst [vmem:[#allocation2 + $0x148] sm:$0xff] %v11224_v37  ;;  %v11644_v46 = vld [vmem:[#allocation2 + $0x121] ss:$2 sm:$0xf]  ;;  %v11883_v44 = vrot.slane %v23336_v22, 4  ;;  %v23400_v16 = vmax.f32 %v11816_v3, 0.0  ;;  %v12084_v3 = vsel %vm11878_vm10, %v12083_v25, %v23323_v15 }
 0x7e2   :  { %v11518_v17 = vld [vmem:[#allocation2 + $0x128] ss:$2 sm:$0xf]  ;;  %v11646_v60 = vld [vmem:[#allocation2 + $0x129] ss:$2 sm:$0xf]  ;;  %v11735_v63 = vmax.f32 %v11516_v21, %v11644_v46  ;;  %v11819_v46 = vadd.f32 %v23156_v1, %v11780_v35 }
 0x7e3   :  { %v11736_v49 = vmax.f32 %v11518_v17, %v11646_v60  ;;  %v11522_v23 = vld [vmem:[#allocation2 + $0x138] ss:$2 sm:$0xf]  ;;  %v11650_v53 = vld [vmem:[#allocation2 + $0x139] ss:$2 sm:$0xf]  ;;  %v23403_v45 = vsel %vm11884_vm12, %v11883_v44, %v11882_v27 }
 0x7e4   :  { %v12031_v19 = vrot.slane %v23222_v50, 7  ;;  %v11738_v21 = vmax.f32 %v11522_v23, %v11650_v53  ;;  %v12033_v60 = vrot.slane %v23300_v28, 6  ;;  %v11917_v41 = vrot.slane %v23334_v57, 7 }
 0x7e5   :  { %v15003_v14 = vpop.f32.mrb[152].mxu1  ;;  %v11781_v39 = vmax.f32 %v11735_v63, %v11736_v49  ;;  %v11528_v13 = vld [vmem:[#allocation2 + $0x150] ss:$2 sm:$0xf]  ;;  %v11737_v49 = vmax.f32 %v11520_v4, %v11648_v11  ;;  %v11900_v59 = vrot.slane %v23334_v57, 6  ;;  %v12126_v47 = vrot.slane %v23398_v62, 6 }
 0x7e6   :  { %11426 = vst [vmem:[#allocation2 + $0x170] sm:$0xff] %v15003_v14  ;;  %v11237_v33 = vpop.f32.mrb[153].mxu1  ;;  %v11524_v37 = vld [vmem:[#allocation2 + $0x140] ss:$2 sm:$0xf]  ;;  %v12035_v28 = vrot.slane %v23400_v16, 5 }
 0x7e7   :  { %11424 = vst [vmem:[#allocation2 + $0x160] sm:$0xff] %v11237_v33  ;;  %v15004_v26 = vpop.f32.mrb[154].mxu1  ;;  %v11652_v40 = vld [vmem:[#allocation2 + $0x141] ss:$2 sm:$0xf]  ;;  %v11820_v17 = vadd.f32 %v23156_v1, %v11781_v39  ;;  %v12032_v33 = vsel %vm11875_vm9, %v12031_v19, %v23188_v38  ;;  %v12109_v35 = vrot.slane %v23398_v62, 5  ;;  %v23456_v19 = vsel %vm11881_vm11, %v11976_v9, %v23351_v51 }
 0x7e8   :  { %11427 = vst [vmem:[#allocation2 + $0x178] sm:$0xff] %v15004_v26  ;;  %v11240_v34 = vpop.f32.mrb[155].mxu1  ;;  %v11526_v48 = vld [vmem:[#allocation2 + $0x148] ss:$2 sm:$0xf]  ;;  %v11739_v56 = vmax.f32 %v11524_v37, %v11652_v40  ;;  %v11782_v26 = vmax.f32 %v11737_v49, %v11738_v21  ;;  %v12143_v38 = vrot.slane %v23398_v62, 7  ;;  %v12034_v15 = vsel %vm11878_vm10, %v12033_v60, %v12032_v33 }
 0x7e9   :  { %11425 = vst [vmem:[#allocation2 + $0x168] sm:$0xff] %v11240_v34  ;;  %v11530_v20 = vld [vmem:[#allocation2 + $0x158] ss:$2 sm:$0xf]  ;;  %v23431_v53 = vmax.f32 %v11819_v46, 0.0  ;;  %v23434_v39 = vmax.f32 %v11820_v17, 0.0  ;;  %v23439_v37 = vsel %vm11881_vm11, %v23334_v57, %v11934_v61  ;;  %v23450_v40 = vsel %vm11878_vm10, %v12159_v43, %v23366_v54 }
 0x7ea   :  { %v11654_v10 = vld [vmem:[#allocation2 + $0x149] ss:$2 sm:$0xf]  ;;  %v11658_v24 = vld [vmem:[#allocation2 + $0x159] ss:$2 sm:$0xf]  ;;  %v23462_v57 = vsel %vm11881_vm11, %v11959_v12, %v23355_v52  ;;  %v12036_v54 = vsel %vm11881_vm11, %v12035_v28, %v12034_v15  ;;  %v11821_v51 = vadd.f32 %v23156_v1, %v11782_v26  ;;  %v23474_v21 = vsel %vm11881_vm11, %v11917_v41, %v23341_v29 }
 0x7eb   :  { %v11740_v50 = vmax.f32 %v11526_v48, %v11654_v10  ;;  %v11656_v0 = vld [vmem:[#allocation2 + $0x151] ss:$2 sm:$0xf]  ;;  %v11742_v23 = vmax.f32 %v11530_v20, %v11658_v24  ;;  %v23444_v48 = vsel %vm11881_vm11, %v23328_v55, %v23359_v58  ;;  %v23478_v52 = vsel %vm11881_vm11, %v11900_v59, %v23377_v18 }
 0x7ec   :  { %v11741_v27 = vmax.f32 %v11528_v13, %v11656_v0  ;;  %v12067_v30 = vrot.slane %v23400_v16, 7  ;;  %v12037_v29 = vrot.slane %v23434_v39, 4  ;;  %v11995_v49 = vrot.slane %v23431_v53, 6 }
 0x7ed   :  { %v15007_v14 = vpop.f32.mrb[156].mxu1  ;;  %v11783_v63 = vmax.f32 %v11739_v56, %v11740_v50  ;;  %v11536_v43 = vld [vmem:[#allocation2 + $0x170] ss:$2 sm:$0xf]  ;;  %v11978_v56 = vrot.slane %v23431_v53, 5  ;;  %v12050_v50 = vrot.slane %v23400_v16, 6  ;;  %v23490_v41 = vsel %vm11881_vm11, %v23400_v16, %v12084_v3 }
 0x7ee   :  { %11430 = vst [vmem:[#allocation2 + $0x190] sm:$0xff] %v15007_v14  ;;  %v11253_v36 = vpop.f32.mrb[157].mxu1  ;;  %v11532_v44 = vld [vmem:[#allocation2 + $0x160] ss:$2 sm:$0xf]  ;;  %v11784_v20 = vmax.f32 %v11741_v27, %v11742_v23  ;;  %v11961_v14 = vrot.slane %v23431_v53, 4  ;;  %v23496_v28 = vsel %vm11884_vm12, %v12037_v29, %v12036_v54  ;;  %v23502_v16 = vsel %vm11881_vm11, %v12126_v47, %v23384_v42 }
 0x7ef   :  { %11428 = vst [vmem:[#allocation2 + $0x180] sm:$0xff] %v11253_v36  ;;  %v15008_v2 = vpop.f32.mrb[158].mxu1  ;;  %v11538_v11 = vld [vmem:[#allocation2 + $0x178] ss:$2 sm:$0xf]  ;;  %v11822_v34 = vadd.f32 %v23156_v1, %v11783_v63  ;;  %v23493_v63 = vmax.f32 %v11821_v51, 0.0  ;;  %v23513_v42 = vsel %vm11881_vm11, %v12109_v35, %v23411_v31 }
 0x7f0   :  { %11431 = vst [vmem:[#allocation2 + $0x198] sm:$0xff] %v15008_v2  ;;  %v11256_v4 = vpop.f32.mrb[159].mxu1  ;;  %v11666_v25 = vld [vmem:[#allocation2 + $0x179] ss:$2 sm:$0xf]  ;;  %v11823_v0 = vadd.f32 %v23156_v1, %v11784_v20  ;;  %v12012_v26 = vrot.slane %v23431_v53, 7 }
 0x7f1   :  { %11429 = vst [vmem:[#allocation2 + $0x188] sm:$0xff] %v11256_v4  ;;  %v11534_v58 = vld [vmem:[#allocation2 + $0x168] ss:$2 sm:$0xf]  ;;  %v23480_v6 = vmax.f32 %v11822_v34, 0.0  ;;  %v11746_v24 = vmax.f32 %v11538_v11, %v11666_v25  ;;  %v11919_v25 = vrot.slane %v23336_v22, 6 }
 0x7f2   :  { %v11660_v61 = vld [vmem:[#allocation2 + $0x161] ss:$2 sm:$0xf]  ;;  %v11662_v9 = vld [vmem:[#allocation2 + $0x169] ss:$2 sm:$0xf] }
 0x7f3   :  { %v11664_v12 = vld [vmem:[#allocation2 + $0x171] ss:$2 sm:$0xf]  ;;  %v11743_v55 = vmax.f32 %v11532_v44, %v11660_v61  ;;  %v11744_v46 = vmax.f32 %v11534_v58, %v11662_v9  ;;  %v11886_v4 = vrot.slane %v23480_v6, 3  ;;  %v11902_v27 = vrot.slane %v23336_v22, 5 }
 0x7f4   :  { %v11745_v36 = vmax.f32 %v11536_v43, %v11664_v12  ;;  %v23517_v58 = vsel %vm11881_vm11, %v12067_v30, %v23389_v32  ;;  %v23523_v61 = vsel %vm11881_vm11, %v12143_v38, %v23394_v7  ;;  %v23529_v20 = vmax.f32 %v11823_v0, 0.0 }
 0x7f5   :  { %v15011_v10 = vpop.f32.mrb[160].mxu1  ;;  %v11544_v60 = vld [vmem:[#allocation2 + $0x190] ss:$2 sm:$0xf]  ;;  %v11785_v13 = vmax.f32 %v11743_v55, %v11744_v46  ;;  %v23527_v54 = vsel %vm11887_vm13, %v11886_v4, %v23403_v45  ;;  %v12128_v31 = vrot.slane %v23493_v63, 5  ;;  %v11936_v51 = vrot.slane %v23336_v22, 7 }
 0x7f6   :  { %11434 = vst [vmem:[#allocation2 + $0x1b0] sm:$0xff] %v15011_v10  ;;  %v11269_v17 = vpop.f32.mrb[161].mxu1  ;;  %v11672_v18 = vld [vmem:[#allocation2 + $0x191] ss:$2 sm:$0xf]  ;;  %v11786_v34 = vmax.f32 %v11745_v36, %v11746_v24  ;;  %v12111_v32 = vrot.slane %v23493_v63, 4  ;;  %v12051_v22 = vsel %vm11881_vm11, %v12050_v50, %v23417_v5  ;;  %v23553_v5 = vsel %vm11881_vm11, %v23398_v62, %v23450_v40 }
 0x7f7   :  { %11432 = vst [vmem:[#allocation2 + $0x1a0] sm:$0xff] %v11269_v17  ;;  %v15012_v59 = vpop.f32.mrb[162].mxu1  ;;  %v11546_v33 = vld [vmem:[#allocation2 + $0x198] ss:$2 sm:$0xf]  ;;  %v11824_v3 = vadd.f32 %v23156_v1, %v11785_v13  ;;  %v11749_v43 = vmax.f32 %v11544_v60, %v11672_v18  ;;  %v12069_v30 = vrot.slane %v23434_v39, 6 }
 0x7f8   :  { %11435 = vst [vmem:[#allocation2 + $0x1b8] sm:$0xff] %v15012_v59  ;;  %v11272_v2 = vpop.f32.mrb[163].mxu1  ;;  %v11674_v23 = vld [vmem:[#allocation2 + $0x199] ss:$2 sm:$0xf]  ;;  %v11825_v45 = vadd.f32 %v23156_v1, %v11786_v34  ;;  %v12145_v10 = vrot.slane %v23493_v63, 6 }
 0x7f9   :  { %11433 = vst [vmem:[#allocation2 + $0x1a8] sm:$0xff] %v11272_v2  ;;  %v11750_v11 = vmax.f32 %v11546_v33, %v11674_v23  ;;  %v11540_v15 = vld [vmem:[#allocation2 + $0x180] ss:$2 sm:$0xf]  ;;  %v23534_v55 = vmax.f32 %v11824_v3, 0.0  ;;  %v12052_v60 = vrot.slane %v23434_v39, 5  ;;  %v23547_v33 = vsel %vm11884_vm12, %v11978_v56, %v23456_v19 }
 0x7fa   :  { %v11542_v47 = vld [vmem:[#allocation2 + $0x188] ss:$2 sm:$0xf]  ;;  %v11668_v44 = vld [vmem:[#allocation2 + $0x181] ss:$2 sm:$0xf]  ;;  %v23560_v23 = vsel %vm11884_vm12, %v11961_v14, %v23462_v57 }
 0x7fb   :  { %v11670_v35 = vld [vmem:[#allocation2 + $0x189] ss:$2 sm:$0xf]  ;;  %v11747_v9 = vmax.f32 %v11540_v15, %v11668_v44  ;;  %v11788_v46 = vmax.f32 %v11749_v43, %v11750_v11  ;;  %v12086_v18 = vrot.slane %v23434_v39, 7  ;;  %v11980_v36 = vrot.slane %v23529_v20, 4 }
 0x7fc   :  { %v11748_v12 = vmax.f32 %v11542_v47, %v11670_v35  ;;  %v12162_v50 = vrot.slane %v23493_v63, 7  ;;  %v11963_v19 = vrot.slane %v23529_v20, 3  ;;  %v12039_v3 = vrot.slane %v23534_v55, 3 }
 0x7fd   :  { %v15015_v7 = vpop.f32.mrb[164].mxu1  ;;  %v11552_v38 = vld [vmem:[#allocation2 + $0x1b0] ss:$2 sm:$0xf]  ;;  %v11827_v40 = vadd.f32 %v23156_v1, %v11788_v46  ;;  %v23566_v4 = vmax.f32 %v11825_v45, 0.0  ;;  %v11997_v11 = vrot.slane %v23529_v20, 5  ;;  %v23577_v35 = vsel %vm11884_vm12, %v11919_v25, %v23474_v21 }
 0x7fe   :  { %11438 = vst [vmem:[#allocation2 + $0x1d0] sm:$0xff] %v15015_v7  ;;  %v11285_v24 = vpop.f32.mrb[165].mxu1  ;;  %v11680_v29 = vld [vmem:[#allocation2 + $0x1b1] ss:$2 sm:$0xf]  ;;  %v11787_v17 = vmax.f32 %v11747_v9, %v11748_v12  ;;  %v11921_v15 = vrot.slane %v23480_v6, 5  ;;  %v23573_v14 = vsel %vm11887_vm13, %v12039_v3, %v23496_v28  ;;  %v23581_v9 = vsel %vm11884_vm12, %v11902_v27, %v23478_v52 }
 0x7ff   :  { %11436 = vst [vmem:[#allocation2 + $0x1c0] sm:$0xff] %v11285_v24  ;;  %v15016_v13 = vpop.f32.mrb[166].mxu1  ;;  %v11554_v59 = vld [vmem:[#allocation2 + $0x1b8] ss:$2 sm:$0xf]  ;;  %v11753_v34 = vmax.f32 %v11552_v38, %v11680_v29  ;;  %v12014_v57 = vrot.slane %v23529_v20, 6  ;;  %v23587_v12 = vsel %vm11884_vm12, %v11995_v49, %v23468_v8  ;;  %v23591_v28 = vsel %vm11884_vm12, %v11936_v51, %v23439_v37 }
 0x800   :  { %11439 = vst [vmem:[#allocation2 + $0x1d8] sm:$0xff] %v15016_v13  ;;  %v11288_v0 = vpop.f32.mrb[167].mxu1  ;;  %v11682_v2 = vld [vmem:[#allocation2 + $0x1b9] ss:$2 sm:$0xf]  ;;  %v11826_v56 = vadd.f32 %v23156_v1, %v11787_v17  ;;  %v11904_v21 = vrot.slane %v23480_v6, 4  ;;  %v12129_v8 = vsel %vm11884_vm12, %v12128_v31, %v23502_v16  ;;  %v12112_v37 = vsel %vm11884_vm12, %v12111_v32, %v23513_v42 }
 0x801   :  { %11437 = vst [vmem:[#allocation2 + $0x1c8] sm:$0xff] %v11288_v0  ;;  %v11754_v62 = vmax.f32 %v11554_v59, %v11682_v2  ;;  %v11548_v47 = vld [vmem:[#allocation2 + $0x1a0] ss:$2 sm:$0xf]  ;;  %v11938_v25 = vrot.slane %v23480_v6, 6  ;;  %v23597_v45 = vmax.f32 %v11827_v40, 0.0  ;;  %v12146_v13 = vsel %vm11884_vm12, %v12145_v10, %v23523_v61 }
 0x802   :  { %v11550_v44 = vld [vmem:[#allocation2 + $0x1a8] ss:$2 sm:$0xf]  ;;  %v11678_v43 = vld [vmem:[#allocation2 + $0x1a9] ss:$2 sm:$0xf]  ;;  %v12070_v16 = vsel %vm11884_vm12, %v12069_v30, %v23517_v58  ;;  %v12053_v42 = vsel %vm11884_vm12, %v12052_v60, %v12051_v22 }
 0x803   :  { %v11790_v7 = vmax.f32 %v11753_v34, %v11754_v62  ;;  %v11676_v38 = vld [vmem:[#allocation2 + $0x1a1] ss:$2 sm:$0xf]  ;;  %v23593_v46 = vmax.f32 %v11826_v56, 0.0  ;;  %v12130_v49 = vrot.slane %v23566_v4, 4  ;;  %v12113_v29 = vrot.slane %v23566_v4, 3 }
 0x804   :  { %v11752_v17 = vmax.f32 %v11550_v44, %v11678_v43  ;;  %v12147_v59 = vrot.slane %v23566_v4, 5  ;;  %v12071_v31 = vrot.slane %v23534_v55, 5  ;;  %v12164_v32 = vrot.slane %v23566_v4, 6 }
 0x805   :  { %v15019_v52 = vpop.f32.mrb[168].mxu1  ;;  %v11560_v27 = vld [vmem:[#allocation2 + $0x1d0] ss:$2 sm:$0xf]  ;;  %v11829_v62 = vadd.f32 %v23156_v1, %v11790_v7  ;;  %v11751_v61 = vmax.f32 %v11548_v47, %v11676_v38  ;;  %v12054_v10 = vrot.slane %v23534_v55, 4  ;;  %v11889_v40 = vrot.slane %v23593_v46, 2 }
 0x806   :  { %11442 = vst [vmem:[#allocation2 + $0x1f0] sm:$0xff] %v15019_v52  ;;  %v11301_v51 = vpop.f32.mrb[169].mxu1  ;;  %v11688_v24 = vld [vmem:[#allocation2 + $0x1d1] ss:$2 sm:$0xf]  ;;  %v11982_v58 = vrot.slane %v23597_v45, 3  ;;  %v12087_v1 = vsel %vm11884_vm12, %v12086_v18, %v23490_v41  ;;  %v23626_v47 = vsel %vm11884_vm12, %v12162_v50, %v23553_v5 }
 0x807   :  { %11440 = vst [vmem:[#allocation2 + $0x1e0] sm:$0xff] %v11301_v51  ;;  %v15020_v0 = vpop.f32.mrb[170].mxu1  ;;  %v11562_v2 = vld [vmem:[#allocation2 + $0x1d8] ss:$2 sm:$0xf]  ;;  %v11757_v34 = vmax.f32 %v11560_v27, %v11688_v24  ;;  %v12088_v22 = vrot.slane %v23534_v55, 6  ;;  %v11789_v52 = vmax.f32 %v11751_v61, %v11752_v17  ;;  %v23630_v7 = vsel %vm11890_vm14, %v11889_v40, %v23527_v54 }
 0x808   :  { %11443 = vst [vmem:[#allocation2 + $0x1f8] sm:$0xff] %v15020_v0  ;;  %v11304_v56 = vpop.f32.mrb[171].mxu1  ;;  %v11690_v3 = vld [vmem:[#allocation2 + $0x1d9] ss:$2 sm:$0xf]  ;;  %v11965_v55 = vrot.slane %v23597_v45, 2  ;;  %v11981_v0 = vsel %vm11887_vm13, %v11980_v36, %v23547_v33  ;;  %v11922_v33 = vsel %vm11887_vm13, %v11921_v15, %v23577_v35  ;;  %v11905_v36 = vsel %vm11887_vm13, %v11904_v21, %v23581_v9 }
 0x809   :  { %11441 = vst [vmem:[#allocation2 + $0x1e8] sm:$0xff] %v11304_v56  ;;  %v11758_v44 = vmax.f32 %v11562_v2, %v11690_v3  ;;  %v11556_v30 = vld [vmem:[#allocation2 + $0x1c0] ss:$2 sm:$0xf]  ;;  %v11923_v51 = vrot.slane %v23593_v46, 4  ;;  %v11999_v39 = vrot.slane %v23597_v45, 4  ;;  %v11964_v2 = vsel %vm11887_vm13, %v11963_v19, %v23560_v23 }
 0x80a   :  { %v11558_v60 = vld [vmem:[#allocation2 + $0x1c8] ss:$2 sm:$0xf]  ;;  %v11684_v43 = vld [vmem:[#allocation2 + $0x1c1] ss:$2 sm:$0xf]  ;;  %v23653_v56 = vsel %vm11887_vm13, %v11997_v11, %v23587_v12  ;;  %v12114_v11 = vsel %vm11887_vm13, %v12113_v29, %v12112_v37  ;;  %v12072_v12 = vsel %vm11887_vm13, %v12071_v31, %v12070_v16  ;;  %v12055_v37 = vsel %vm11887_vm13, %v12054_v10, %v12053_v42 }
 0x80b   :  { %v11792_v38 = vmax.f32 %v11757_v34, %v11758_v44  ;;  %v11686_v27 = vld [vmem:[#allocation2 + $0x1c9] ss:$2 sm:$0xf]  ;;  %v23635_v24 = vmax.f32 %v11829_v62, 0.0  ;;  %v11755_v41 = vmax.f32 %v11556_v30, %v11684_v43  ;;  %v11906_v18 = vrot.slane %v23593_v46, 3  ;;  %v16331_v9 = vld [vmem:[%s23859_s5 + $0x78] sm:$0xff]  }
 0x80c   :  { %v11756_v63 = vmax.f32 %v11558_v60, %v11686_v27  ;;  %v16356_v54 = vld [vmem:[%s23860_s4] ss:$0 sm:$0xff]  ;;  %v12131_v34 = vsel %vm11887_vm13, %v12130_v49, %v12129_v8  ;;  %v23667_v44 = vsel %vm11887_vm13, %v12147_v59, %v12146_v13  ;;  %v23678_v29 = vsel %vm11887_vm13, %v12088_v22, %v12087_v1  ;;  %v16332_v13 = vld [vmem:[%s23859_s5 + $0x38] sm:$0xff]   ;;  %14065 = vmatprep.subr.bf16.mxu1 %v16331_v9  ;;  %s16361_s5 = smov 80  }
 0x80d   :  { %v11568_v5 = vld [vmem:[#allocation2 + $0x1f0] ss:$2 sm:$0xf]  ;;  %v11696_v50 = vld [vmem:[#allocation2 + $0x1f1] ss:$2 sm:$0xf]  ;;  %v11831_v17 = vadd.f32 %v16356_v54, %v11792_v38  ;;  %v11828_v40 = vadd.f32 %v16356_v54, %v11789_v52  ;;  %v11983_v38 = vsel %vm11890_vm14, %v11982_v58, %v11981_v0  ;;  %14066 = vmatpush3.bf16.msra.mxu1 %v16332_v13  ;;  %v12165_v6 = vsel %vm11887_vm13, %v12164_v32, %v23626_v47 }
 0x80e   :  { %v11564_v3 = vld [vmem:[#allocation2 + $0x1e0] ss:$2 sm:$0xf]  ;;  %v11692_v62 = vld [vmem:[#allocation2 + $0x1e1] ss:$2 sm:$0xf]  ;;  %v11791_v61 = vmax.f32 %v11755_v41, %v11756_v63  ;;  %v11761_v30 = vmax.f32 %v11568_v5, %v11696_v50  ;;  %v11966_v41 = vsel %vm11890_vm14, %v11965_v55, %v11964_v2  ;;  %v11924_v50 = vsel %vm11890_vm14, %v11923_v51, %v11922_v33 }
 0x80f   :  { %v11570_v23 = vld [vmem:[#allocation2 + $0x1f8] ss:$2 sm:$0xf]  ;;  %v11698_v19 = vld [vmem:[#allocation2 + $0x1f9] ss:$2 sm:$0xf]  ;;  %v11759_v16 = vmax.f32 %v11564_v3, %v11692_v62 }
 0x810   :  { %v11762_v60 = vmax.f32 %v11570_v23, %v11698_v19  ;;  %v23669_v43 = vmax.f32 %v11831_v17, 0.0  ;;  %v11566_v15 = vld [vmem:[#allocation2 + $0x1e8] ss:$2 sm:$0xf]  ;;  %v11830_v35 = vadd.f32 %v16356_v54, %v11791_v61  ;;  %v12132_v21 = vrot.slane %v23635_v24, 3 }
 0x811   :  { %v12115_v8 = vrot.slane %v23635_v24, 2  ;;  %v11694_v49 = vld [vmem:[#allocation2 + $0x1e9] ss:$2 sm:$0xf]  ;;  %v11860_v52 = vmax.f32 %v11828_v40, 0.0  ;;  %v11940_v1 = vrot.slane %v23593_v46, 5  ;;  %v11907_v17 = vsel %vm11890_vm14, %v11906_v18, %v11905_v36 }
 0x812   :  { %v11794_v59 = vmax.f32 %v11761_v30, %v11762_v60  ;;  %v11760_v31 = vmax.f32 %v11566_v15, %v11694_v49  ;;  %v11984_v27 = vrot.slane %v23669_v43, 2  ;;  %v23686_v63 = vmax.f32 %v11830_v35, 0.0 }
 0x813   :  { %v11967_v10 = vrot.slane %v23669_v43, 1  ;;  %v12133_v5 = vsel %vm11890_vm14, %v12132_v21, %v12131_v34  ;;  %v12149_v58 = vrot.slane %v23635_v24, 4  ;;  %v12116_v55 = vsel %vm11890_vm14, %v12115_v8, %v12114_v11 }
 0x814   :  { %v11833_v42 = vadd.f32 %v16356_v54, %v11794_v59  ;;  %v11793_v22 = vmax.f32 %v11759_v16, %v11760_v31  ;;  %v12073_v3 = vrot.slane %v11860_v52, 4  ;;  %v11985_v62 = vsel %vm11893_vm15, %v11984_v27, %v11983_v38 }
 0x815   :  { %v12056_v61 = vrot.slane %v11860_v52, 3  ;;  %v12090_v40 = vrot.slane %v11860_v52, 5  ;;  %v11892_v46 = vrot.slane %v23686_v63, 1  ;;  %v11968_v51 = vsel %vm11893_vm15, %v11967_v10, %v11966_v41 }
 0x816   :  { %v23694_v0 = vmax.f32 %v11833_v42, 0.0  ;;  %v11832_v2 = vadd.f32 %v16356_v54, %v11793_v22  ;;  %v11925_v36 = vrot.slane %v23686_v63, 3  ;;  %v11908_v19 = vrot.slane %v23686_v63, 2 }
 0x817   :  { %v23706_v54 = vsel %vm11893_vm15, %v11892_v46, %v23630_v7  ;;  %v12041_v34 = vrot.slane %v11860_v52, 2  ;;  %v12074_v21 = vsel %vm11890_vm14, %v12073_v3, %v12072_v12  ;;  %v12057_v8 = vsel %vm11890_vm14, %v12056_v61, %v12055_v37 }
 0x818   :  { %v12134_v23 = vrot.slane %v23694_v0, 2  ;;  %v12117_v18 = vrot.slane %v23694_v0, 1  ;;  %v11864_v33 = vmax.f32 %v11832_v2, 0.0  ;;  %v12151_v7 = vrot.slane %v23694_v0, 3 }
 0x819   :  { %v12001_v16 = vrot.slane %v23669_v43, 3  ;;  %v12150_v31 = vsel %vm11890_vm14, %v12149_v58, %v23667_v44  ;;  %v12166_v12 = vrot.slane %v23635_v24, 5  ;;  %v11926_v37 = vsel %vm11893_vm15, %v11925_v36, %v11924_v50 }
 0x81a   :  { %v12135_v11 = vsel %vm11893_vm15, %v12134_v23, %v12133_v5  ;;  %v12118_v30 = vsel %vm11893_vm15, %v12117_v18, %v12116_v55  ;;  %v12075_v60 = vrot.slane %v11864_v33, 3  ;;  %v12058_v15 = vrot.slane %v11864_v33, 2 }
 0x81b   :  { %v15982_v35 = vpack.i.bf16 %v11985_v62, %v12135_v11  ;;  %v15977_v9 = vpack.i.bf16 %v11968_v51, %v12118_v30  ;;  %v12092_v59 = vrot.slane %v11864_v33, 4  ;;  %v12043_v52 = vrot.slane %v11864_v33, 1 }
 0x81c   :  { %v12076_v49 = vsel %vm11893_vm15, %v12075_v60, %v12074_v21  ;;  %v12059_v13 = vsel %vm11893_vm15, %v12058_v15, %v12057_v8  ;;  %v11909_v38 = vsel %vm11893_vm15, %v11908_v19, %v11907_v17  ;;  %v11942_v27 = vrot.slane %v23686_v63, 4 }
 0x81d   :  { %15983 = vrot.lane.b32.xlu0 %v15982_v35, %s16361_s5  ;;  %15978 = vrot.lane.b32.xlu1 %v15977_v9, %s16362_s14  ;;  %v12042_v41 = vsel %vm11890_vm14, %v12041_v34, %v23573_v14  ;;  %v15992_v42 = vpack.i.bf16 %v11926_v37, %v12076_v49  ;;  %v15987_v10 = vpack.i.bf16 %v11909_v38, %v12059_v13  ;;  %v12168_v63 = vrot.slane %v23694_v0, 4 }
 0x81e   :  { %v12091_v22 = vsel %vm11890_vm14, %v12090_v40, %v23678_v29  ;;  %v12044_v5 = vsel %vm11893_vm15, %v12043_v52, %v12042_v41  ;;  %v12152_v44 = vsel %vm11893_vm15, %v12151_v7, %v12150_v31  ;;  %v11939_v24 = vsel %vm11887_vm13, %v11938_v25, %v23591_v28  ;;  %v16334_v41 = vld [vmem:[%s23861_s7 + $0x8] sm:$0xff]  }
 0x81f   :  { %v12093_v50 = vsel %vm11893_vm15, %v12092_v59, %v12091_v22  ;;  %v12000_v14 = vsel %vm11890_vm14, %v11999_v39, %v23653_v56  ;;  %v11941_v29 = vsel %vm11890_vm14, %v11940_v1, %v11939_v24  ;;  %v12016_v17 = vrot.slane %v23597_v45, 5  ;;  %v16337_v22 = vld [vmem:[%s23861_s7 + $0x20] sm:$0xff]   ;;  %v16340_v24 = vld [vmem:[%s23861_s7 + $0x38] sm:$0xff]  }
 0x820   :  { %v12002_v28 = vsel %vm11893_vm15, %v12001_v16, %v12000_v14  ;;  %v11943_v25 = vsel %vm11893_vm15, %v11942_v27, %v11941_v29  ;;  %v12018_v58 = vrot.slane %v23669_v43, 4  ;;  %v12013_v39 = vsel %vm11884_vm12, %v12012_v26, %v23444_v48  ;;  %v16333_v27 = vld [vmem:[%s23861_s7] sm:$0xff]  }
 0x821   :  { %15993 = vrot.lane.b32.xlu1 %v15992_v42, %s16357_s19  ;;  %15988 = vrot.lane.b32.xlu0 %v15987_v10, %s16358_s27  ;;  %v16002_v0 = vpack.i.bf16 %v12002_v28, %v12152_v44  ;;  %v15997_v55 = vpack.i.bf16 %v11943_v25, %v12093_v50  ;;  %v12167_v45 = vsel %vm11890_vm14, %v12166_v12, %v12165_v6  ;;  %v16363_v56 = vmov 0.0   ;;  %s16364_s19 = smov 96   ;;  %s16365_s27 = smov 48   ;;  %v16335_v42 = vld [vmem:[%s23861_s7 + $0x10] sm:$0xff]   ;;  %v16336_v10 = vld [vmem:[%s23861_s7 + $0x18] sm:$0xff]  }
 0x822   :  { %15021 = vmatprep.subr.bf16.mxu1 %v16363_v56  ;;  %v12015_v4 = vsel %vm11887_vm13, %v12014_v57, %v12013_v39  ;;  %v12169_v32 = vsel %vm11893_vm15, %v12168_v63, %v12167_v45  ;;  %v16339_v44 = vld [vmem:[%s23861_s7 + $0x30] sm:$0xff]   ;;  %v13463_v63 = vld [vmem:[%s23863_s6] ss:$0 sm:$0xff]  ;;  %v16344_v45 = vld [vmem:[%s23862_s9 + $0x18] sm:$0xff]  }
 0x823   :  { %v12017_v47 = vsel %vm11890_vm14, %v12016_v17, %v12015_v4  ;;  %v16343_v39 = vld [vmem:[%s23862_s9 + $0x10] sm:$0xff]   ;;  %v16345_v4 = vld [vmem:[%s23862_s9 + $0x20] sm:$0xff]  }
 0x824   :  { %v12019_v53 = vsel %vm11893_vm15, %v12018_v58, %v12017_v47  ;;  %v16341_v58 = vld [vmem:[%s23862_s9] sm:$0xff]   ;;  %v16347_v47 = vld [vmem:[%s23862_s9 + $0x30] sm:$0xff]  }
 0x825   :  { %16003 = vrot.lane.b32.xlu1 %v16002_v0, %s16364_s19  ;;  %15998 = vrot.lane.b32.xlu0 %v15997_v55, %s16365_s27  ;;  %v16007_v48 = vpack.i.bf16 %v12019_v53, %v12169_v32  ;;  %v16342_v55 = vld [vmem:[%s23862_s9 + $0x8] sm:$0xff]   ;;  %v16348_v53 = vld [vmem:[%s23862_s9 + $0x38] sm:$0xff]  }
 0x826   :  { %v16346_v32 = vld [vmem:[%s23862_s9 + $0x28] sm:$0xff]  }
 0x829   :  { %16008 = vrot.lane.b32.xlu0 %v16007_v48, %s16366_s15  ;;  %v13480_v48 = vld [vmem:[%s23864_s8] ss:$0 sm:$0xff] }
 0x88f   :  { %v15984_v26 = vpop.permute.xlu0 %15983  ;;  %v15979_v43 = vpop.permute.xlu1 %15978 }
 0x890   :  { %v15981_v33 = vunpack.i.h.bf16 %v15979_v43  ;;  %v15980_v36 = vunpack.i.l.bf16 %v15979_v43  ;;  %v15986_v11 = vunpack.i.h.bf16 %v15984_v26  ;;  %v15985_v30 = vunpack.i.l.bf16 %v15984_v26 }
 0x893   :  { %v15994_v1 = vpop.permute.xlu1 %15993  ;;  %v15989_v2 = vpop.permute.xlu0 %15988 }
 0x894   :  { %v15991_v20 = vunpack.i.h.bf16 %v15989_v2  ;;  %v15990_v3 = vunpack.i.l.bf16 %v15989_v2  ;;  %v15996_v57 = vunpack.i.h.bf16 %v15994_v1  ;;  %v15995_v62 = vunpack.i.l.bf16 %v15994_v1 }
 0x896   :  { %v12173_v61 = vsel %vm8692_vm6, %v23706_v54, %v15991_v20  ;;  %v12185_v40 = vsel %vm8692_vm6, %v12044_v5, %v15990_v3  ;;  %v16338_v5 = vld [vmem:[%s23861_s7 + $0x28] sm:$0xff]  }
 0x897   :  { %v15999_v46 = vpop.permute.xlu0 %15998  ;;  %v16004_v23 = vpop.permute.xlu1 %16003  ;;  %v12174_v19 = vsel %vm2071_vm0, %v12173_v61, %v15996_v57  ;;  %v12186_v34 = vsel %vm2071_vm0, %v12185_v40, %v15995_v62  ;;  %vm16367_vm0 = vmmov 0   ;;  %v13489_v62 = vld [vmem:[%s23865_s10] ss:$0 sm:$0xff] }
 0x898   :  { %v16001_v51 = vunpack.i.h.bf16 %v15999_v46  ;;  %v16000_v18 = vunpack.i.l.bf16 %v15999_v46  ;;  %v16006_v15 = vunpack.i.h.bf16 %v16004_v23  ;;  %v16005_v35 = vunpack.i.l.bf16 %v16004_v23 }
 0x89a   :  { %v12176_v54 = vsel %vm12175_vm1, %v12174_v19, %v16001_v51  ;;  %v12187_v60 = vsel %vm12175_vm1, %v12186_v34, %v16000_v18 }
 0x89b   :  { %v12178_v9 = vsel %vm12177_vm2, %v12176_v54, %v15981_v33  ;;  %v12188_v21 = vsel %vm12177_vm2, %v12187_v60, %v15980_v36  ;;  %v16009_v8 = vpop.permute.xlu0 %16008 }
 0x89c   :  { %v16011_v49 = vunpack.i.h.bf16 %v16009_v8  ;;  %v16010_v13 = vunpack.i.l.bf16 %v16009_v8  ;;  %v12180_v7 = vsel %vm12179_vm3, %v12178_v9, %v15986_v11  ;;  %v12189_v59 = vsel %vm12179_vm3, %v12188_v21, %v15985_v30 }
 0x89d   :  { %v12182_v16 = vsel %vm12181_vm4, %v12180_v7, %v16006_v15  ;;  %v12190_v31 = vsel %vm12181_vm4, %v12189_v59, %v16005_v35 }
 0x89e   :  { %v12184_v12 = vsel %vm12183_vm5, %v12182_v16, %v16011_v49  ;;  %v12191_v52 = vsel %vm12183_vm5, %v12190_v31, %v16010_v13 }
 0x89f   :  { %v12192_v37 = vpack.c.bf16 %v12184_v12, %v12184_v12  ;;  %v12193_v38 = vpack.c.bf16 %v12191_v52, %v12191_v52 }
 0x8a1   :  { %12361 = vmatprep.mubr.bf16.mxu1 %v12193_v38 }
 0x8a2   :  { %12362 = vmatmul.mubr.bf16.vlgmr.msra.gmra.mrb[172].mxu1 %v12192_v37 }
 0x8a3   :  { %15022 = vmatpush3.bf16.msra.mxu1 %v16333_v27  ;;  %15037 = vmatprep.mubr.msk.bf16.mxu1 %vm16367_vm0, %v16363_v56 }
 0x8a4   :  { %15023 = vmatprep.subr.bf16.mxu1 %v16363_v56 }
 0x8a7   :  { %15024 = vmatpush3.bf16.msra.mxu1 %v16334_v41 }
 0x8a8   :  { %15025 = vmatprep.subr.bf16.mxu1 %v16363_v56 }
 0x8ab   :  { %15026 = vmatpush3.bf16.msra.mxu1 %v16335_v42 }
 0x8ac   :  { %15027 = vmatprep.subr.bf16.mxu1 %v16363_v56 }
 0x8af   :  { %15028 = vmatpush3.bf16.msra.mxu1 %v16336_v10 }
 0x8b0   :  { %15029 = vmatprep.subr.bf16.mxu1 %v16363_v56 }
 0x8b3   :  { %15030 = vmatpush3.bf16.msra.mxu1 %v16337_v22 }
 0x8b4   :  { %15031 = vmatprep.subr.bf16.mxu1 %v16363_v56 }
 0x8b7   :  { %15032 = vmatpush3.bf16.msra.mxu1 %v16338_v5 }
 0x8b8   :  { %15033 = vmatprep.subr.bf16.mxu1 %v16363_v56 }
 0x8bb   :  { %15034 = vmatpush3.bf16.msra.mxu1 %v16339_v44 }
 0x8bc   :  { %15035 = vmatprep.subr.bf16.mxu1 %v16363_v56 }
 0x8bf   :  { %15036 = vmatpush3.bf16.msra.mxu1 %v16340_v24 }
 0x8c0   :  { %15041 = vmatprep.subr.bf16.mxu1 %v16363_v56 }
 0x975   :  { %v14067_v50 = vpop.f32.mrb[172].mxu1 }
 0x976   :  { %v14068_v14 = vpop.f32.mrb[173].mxu1 }
 0x977   :  { %v14069_v29 = vadd.f32 %v14068_v14, %v14067_v50  ;;  %v14070_v17 = vpop.f32.mrb[174].mxu1 }
 0x978   :  { %v14071_v6 = vpop.f32.mrb[175].mxu1 }
 0x979   :  { %v12364_v28 = vadd.f32 %v14069_v29, %v13463_v63 }
 0x97b   :  { %v12369_v25 = vmax.f32 %v12364_v28, 0.0 }
 0x97d   :  { %v12370_v0 = vpack.c.bf16 %v12369_v25, %v12369_v25 }
 0x97f   :  { %15038 = vmatmul.mubr.bf16.vlgmr.msra.gmra.mrb[176].mxu1 %v12370_v0 }
 0x980   :  { %15042 = vmatpush3.bf16.msra.mxu1 %v16341_v58  ;;  %15057 = vmatprep.mubr.msk.bf16.mxu1 %vm16367_vm0, %v16363_v56 }
 0x981   :  { %15043 = vmatprep.subr.bf16.mxu1 %v16363_v56 }
 0x984   :  { %15044 = vmatpush3.bf16.msra.mxu1 %v16342_v55 }
 0x985   :  { %15045 = vmatprep.subr.bf16.mxu1 %v16363_v56 }
 0x988   :  { %15046 = vmatpush3.bf16.msra.mxu1 %v16343_v39 }
 0x989   :  { %15047 = vmatprep.subr.bf16.mxu1 %v16363_v56 }
 0x98c   :  { %15048 = vmatpush3.bf16.msra.mxu1 %v16344_v45 }
 0x98d   :  { %15049 = vmatprep.subr.bf16.mxu1 %v16363_v56 }
 0x990   :  { %15050 = vmatpush3.bf16.msra.mxu1 %v16345_v4 }
 0x991   :  { %15051 = vmatprep.subr.bf16.mxu1 %v16363_v56 }
 0x994   :  { %15052 = vmatpush3.bf16.msra.mxu1 %v16346_v32 }
 0x995   :  { %15053 = vmatprep.subr.bf16.mxu1 %v16363_v56 }
 0x998   :  { %15054 = vmatpush3.bf16.msra.mxu1 %v16347_v47 }
 0x999   :  { %15055 = vmatprep.subr.bf16.mxu1 %v16363_v56 }
 0x99c   :  { %15056 = vmatpush3.bf16.msra.mxu1 %v16348_v53 }
 0xa52   :  { %v12476_v26 = vpop.f32.mrb[176].mxu1 }
 0xa53   :  { %v12477_v43 = vadd.f32 %v13480_v48, %v12476_v26  ;;  %v15039_v1 = vpop.f32.mrb[177].mxu1 }
 0xa54   :  { %v12479_v2 = vpop.f32.mrb[178].mxu1 }
 0xa55   :  { %v12482_v20 = vmax.f32 %v12477_v43, 0.0  ;;  %v15040_v3 = vpop.f32.mrb[179].mxu1 }
 0xa57   :  { %v12483_v57 = vpack.c.bf16 %v12482_v20, %v12482_v20 }
 0xa59   :  { %15058 = vmatmul.mubr.bf16.vlgmr.msra.gmra.mrb[180].mxu1 %v12483_v57 }
 0xb2c   :  { %v12589_v61 = vpop.f32.mrb[180].mxu1 }
 0xb2d   :  { %v12590_v40 = vadd.f32 %v13489_v62, %v12589_v61  ;;  %v15059_v56 = vpop.f32.mrb[181].mxu1 }
 0xb2e   :  { %v12592_v46 = vpop.f32.mrb[182].mxu1 }
 0xb2f   :  { %12595 = vst [vmem:[%s23866_s11] sm:$0xff] %v12590_v40  ;;  %v15060_v23 = vpop.f32.mrb[183].mxu1 }

</bundles_post_ra>
